<compile_context>
chip_gen: v7x
topology: tpu7x:2x2x1
jax: 0.10.0
libtpu: 0.0.40
codegen_flags: <defaults>
</compile_context>

<pallas_src>
import functools

import jax
import jax.numpy as jnp
from jax.experimental import pallas as pl
from jax.experimental.pallas import tpu as pltpu

_BN_EPS = 1e-5

# (param key, bn key, kernel, stride, padding, output_padding)
_LAYER_CFG = (
    ("ct1", "bn1", 1, 1, 0, 0),
    ("ct2", "bn2", 3, 1, 0, 0),
    ("ct3", "bn3", 3, 2, 1, 0),
    ("ct4", "bn4", 3, 2, 1, 1),
    ("ct5", None, 3, 2, 1, 1),
)


def _out_size(n, k, s, p, op):
    return (n - 1) * s - 2 * p + k + op


# ------------------------- parameter pre-transforms -------------------------

def _build_conv_mats(wt, hw_in, stride, padding, out_pad, batch):
    """ConvTranspose2d -> (M_stack, S_stack) for the separable banded form.

    Activation layout: rows=(n,y), lanes=(x,c).
      Z = sum_ky  S[ky] @ (X @ M[ky])
      M[ky][ix*Cin+ci, ox*Cout+co] = wt[ci, co, ky, ox - s*ix + p]  (if in range)
      S[ky][n*Ho+oy,  m*H +iy]     = (n == m) and (oy == s*iy - p + ky)
    """
    c_in, c_out, k, _ = wt.shape
    h, w = hw_in
    h_out = _out_size(h, k, stride, padding, out_pad)
    w_out = _out_size(w, k, stride, padding, out_pad)

    ix = jnp.arange(w)
    ox = jnp.arange(w_out)
    kx = ox[None, :] - stride * ix[:, None] + padding            # [W, Wo]
    valid = (kx >= 0) & (kx < k)
    kxc = jnp.clip(kx, 0, k - 1)

    iy = jnp.arange(h)
    oy = jnp.arange(h_out)
    eye_n = jnp.eye(batch, dtype=jnp.float32)

    m_taps, s_taps = [], []
    for ky in range(k):
        w_ky = wt[:, :, ky, :]                                   # [Cin, Cout, k]
        w_sel = jnp.where(valid[None, None], w_ky[:, :, kxc], 0.0)  # [Cin,Cout,W,Wo]
        m_taps.append(jnp.transpose(w_sel, (2, 0, 3, 1))
                      .reshape(w * c_in, w_out * c_out))
        sel = (oy[:, None] == stride * iy[None, :] - padding + ky)
        sel = sel.astype(jnp.float32)                            # [Ho, H]
        s_taps.append((eye_n[:, None, :, None] * sel[None, :, None, :])
                      .reshape(batch * h_out, batch * h))
    return (jnp.stack(m_taps).astype(jnp.bfloat16),              # [k, W*Cin, Wo*Cout]
            jnp.stack(s_taps),                                   # [k, N*Ho, N*H] f32
            (h_out, w_out))


def _build_bn_gather(c_out, w_out):
    # G[x*C + c, c] = 1 : gathers per-channel sums out of the (x, c) lane layout.
    return jnp.kron(jnp.ones((w_out, 1), jnp.float32),
                    jnp.eye(c_out, dtype=jnp.float32))


def prepare_decoder_inputs(params, batch, hw_in):
    """Pre-transform PyTorch-layout parameters into the kernel operand list.

    Batch / spatial sizes are baked into the banded matrices: call once per
    input geometry, reuse across forward passes.  Returns (ops, meta).
    """
    ops = []
    hw = hw_in
    for name, bn, k, s, p, op in _LAYER_CFG:
        wt, bias = params[name]
        wt = wt.astype(jnp.float32)
        assert wt.shape[2] == k
        m_stack, s_stack, hw_out = _build_conv_mats(wt, hw, s, p, op, batch)
        ops += [m_stack, s_stack]
        c_out = wt.shape[1]
        if bn is not None:
            gamma, beta = params[bn]
            ops += [_build_bn_gather(c_out, hw_out[1]),
                    gamma.astype(jnp.float32).reshape(1, c_out),
                    beta.astype(jnp.float32).reshape(1, c_out)]
        else:
            # Final-layer bias pre-broadcast to the (x, c) lane layout.
            ops += [jnp.tile(bias.astype(jnp.float32).reshape(1, c_out),
                             (1, hw_out[1]))]
        hw = hw_out
    meta = dict(batch=batch, hw_in=hw_in, hw_out=hw,
                c_out=params["ct5"][0].shape[1])
    return ops, meta


# ------------------------------ Pallas kernel -------------------------------

def _decoder_kernel(*refs):
    """Whole-decoder forward; all operands are full-array VMEM blocks."""
    (x_ref,
     m1, s1, g1, ga1, be1,
     m2, s2, g2, ga2, be2,
     m3, s3, g3, ga3, be3,
     m4, s4, g4, ga4, be4,
     m5, s5, b5,
     out_ref) = refs

    def conv_t(x_bf16, m_ref, s_ref):
        # ConvTranspose2d:  Z = sum_ky S_ky @ (X @ M_ky); f32 accumulation.
        rout, lout = s_ref.shape[1], m_ref.shape[2]
        acc = jnp.zeros((rout, lout), jnp.float32)
        for ky in range(m_ref.shape[0]):
            tap = jnp.dot(x_bf16, m_ref[ky],
                          preferred_element_type=jnp.float32)
            acc = acc + jnp.dot(s_ref[ky], tap,
                                preferred_element_type=jnp.float32)
        return acc

    def bn_relu(z, g_ref, ga_ref, be_ref):
        # Training-mode BatchNorm2d + ReLU on the f32 conv output; exact
        # mean-centred variance.  Channel gather via the 0/1 matrix G,
        # channel->lane broadcast via lane-concat (both stay in (x,c) lanes).
        g = g_ref[...]                               # [Wo*C, C] f32
        c = g.shape[1]
        wo = z.shape[1] // c
        inv_count = 1.0 / float(z.shape[0] * wo)     # N*Ho*Wo samples / channel
        mean_c = inv_count * jnp.sum(
            jnp.dot(z, g, preferred_element_type=jnp.float32),
            axis=0, keepdims=True)                   # [1, C]
        d = z - jnp.concatenate([mean_c] * wo, axis=1)
        var_c = inv_count * jnp.sum(
            jnp.dot(d * d, g, preferred_element_type=jnp.float32),
            axis=0, keepdims=True)                   # [1, C]
        scale_c = ga_ref[...] * jax.lax.rsqrt(var_c + _BN_EPS)
        shift_c = be_ref[...] - mean_c * scale_c
        y = (z * jnp.concatenate([scale_c] * wo, axis=1)
             + jnp.concatenate([shift_c] * wo, axis=1))
        return jnp.maximum(y, 0.0).astype(jnp.bfloat16)

    a = x_ref[...]                                   # bf16, [N*H0, W0*C0]
    for m, s, g, ga, be in ((m1, s1, g1, ga1, be1),
                            (m2, s2, g2, ga2, be2),
                            (m3, s3, g3, ga3, be3),
                            (m4, s4, g4, ga4, be4)):
        a = bn_relu(conv_t(a, m, s), g, ga, be)

    logits = conv_t(a, m5, s5) + b5[...]
    out_ref[...] = 1.0 / (1.0 + jnp.exp(-logits))    # exact sigmoid on f32


# -------------------------------- JAX wrapper --------------------------------

def decoder_forward(ops, x_nchw, *, meta):
    """NCHW float32 in -> NCHW float32 in [0, 1] out (single pallas_call)."""
    n = meta["batch"]
    h_in, w_in = meta["hw_in"]
    h_out, w_out = meta["hw_out"]
    c_out = meta["c_out"]
    c_in = x_nchw.shape[1]
    assert x_nchw.shape[0] == n and x_nchw.shape[2:] == (h_in, w_in)

    # NCHW -> rows=(n,y), lanes=(x,c) 2-D layout.
    x2d = jnp.transpose(x_nchw, (0, 2, 3, 1)).reshape(n * h_in, w_in * c_in)
    inputs = [x2d.astype(jnp.bfloat16)] + list(ops)

    def _full_spec(arr):
        return pl.BlockSpec(arr.shape, lambda i, _nd=arr.ndim: (0,) * _nd)

    out2d = pl.pallas_call(
        _decoder_kernel,
        out_shape=jax.ShapeDtypeStruct((n * h_out, w_out * c_out), jnp.float32),
        grid=(1,),
        in_specs=[_full_spec(a) for a in inputs],
        out_specs=pl.BlockSpec((n * h_out, w_out * c_out), lambda i: (0, 0)),
        compiler_params=pltpu.CompilerParams(
            dimension_semantics=("arbitrary",)),
    )(*inputs)

    return jnp.transpose(out2d.reshape(n, h_out, w_out, c_out), (0, 3, 1, 2))


# ------------------------------ reference / init ----------------------------

def init_decoder_params(key, encoder_out_channels, latent_channels,
                        output_channels):
    """Deterministic synthetic parameters (shapes match the nn.Module)."""
    def conv_t(k, cin, cout, ksize):
        k1, k2 = jax.random.split(k)
        w = jax.random.normal(k1, (cin, cout, ksize, ksize), jnp.float32) * 0.1
        b = jax.random.normal(k2, (cout,), jnp.float32) * 0.05
        return w, b

    keys = jax.random.split(key, 5)
    return {
        "ct1": conv_t(keys[0], latent_channels, encoder_out_channels, 1),
        "bn1": (jnp.ones((encoder_out_channels,), jnp.float32),
                jnp.zeros((encoder_out_channels,), jnp.float32)),
        "ct2": conv_t(keys[1], encoder_out_channels, 64, 3),
        "bn2": (jnp.ones((64,), jnp.float32), jnp.zeros((64,), jnp.float32)),
        "ct3": conv_t(keys[2], 64, 32, 3),
        "bn3": (jnp.ones((32,), jnp.float32), jnp.zeros((32,), jnp.float32)),
        "ct4": conv_t(keys[3], 32, 32, 3),
        "bn4": (jnp.ones((32,), jnp.float32), jnp.zeros((32,), jnp.float32)),
        "ct5": conv_t(keys[4], 32, output_channels, 3),
    }


def _reference_forward(params, x_nchw):
    """Pure-JAX f32 reference (lax.conv_general_dilated) for validation."""
    def conv_t(x, wt, b, s, p, op):
        k = wt.shape[2]
        w = jnp.transpose(jnp.flip(wt, (2, 3)), (1, 0, 2, 3))    # OIHW, flipped
        lo = k - 1 - p
        y = jax.lax.conv_general_dilated(
            x, w, window_strides=(1, 1),
            padding=[(lo, lo + op), (lo, lo + op)],
            lhs_dilation=(s, s),
            dimension_numbers=("NCHW", "OIHW", "NCHW"))
        return y + b.reshape(1, -1, 1, 1)

    def bn_relu(x, gamma, beta):
        mean = jnp.mean(x, axis=(0, 2, 3), keepdims=True)
        var = jnp.mean((x - mean) ** 2, axis=(0, 2, 3), keepdims=True)
        y = (x - mean) * jax.lax.rsqrt(var + _BN_EPS)
        y = y * gamma.reshape(1, -1, 1, 1) + beta.reshape(1, -1, 1, 1)
        return jnp.maximum(y, 0.0)

    x = x_nchw
    for name, bn, _, s, p, op in _LAYER_CFG:
        wt, b = params[name]
        x = conv_t(x, wt, b, s, p, op)
        if bn is not None:
            gamma, beta = params[bn]
            x = bn_relu(x, gamma, beta)
        else:
            x = jax.nn.sigmoid(x)
    return x


if __name__ == "__main__":
    key = jax.random.PRNGKey(0)
    k_x, k_p = jax.random.split(key)

    encoder_out_channels, latent_channels, output_channels = 16, 8, 3
    n, h, w = 2, 4, 4                                    # small shapes
    x = jax.random.normal(k_x, (n, latent_channels, h, w), jnp.float32)

    params = init_decoder_params(k_p, encoder_out_channels, latent_channels,
                                 output_channels)

    ops, meta = prepare_decoder_inputs(params, n, (h, w))
    fwd = jax.jit(functools.partial(decoder_forward, meta=meta))
    out = jax.block_until_ready(fwd(ops, x))

    # spatial chain: 4 -> 4 -> 6 -> 11 -> 22 -> 44
    assert out.shape == (n, output_channels, 44, 44), out.shape
    assert bool(jnp.all(jnp.isfinite(out)))
    assert bool(jnp.all(out >= 0.0)) and bool(jnp.all(out <= 1.0))

    # Validate against a pure-JAX f32 reference of the PyTorch module.
    ref = _reference_forward(params, x)
    err = float(jnp.max(jnp.abs(out - ref)))
    assert err < 5e-2, f"max abs error vs reference: {err}"

    print("KERNEL_OK")
</pallas_src>

<mosaic_0001>
module attributes {stable_mosaic.version = 11 : i64} {
  func.func @_decoder_kernel(%arg0: i32, %arg1: memref<8x32xbf16, #tpu.memory_space<vmem>>, %arg2: memref<1x32x64xbf16, #tpu.memory_space<vmem>>, %arg3: memref<1x8x8xf32, #tpu.memory_space<vmem>>, %arg4: memref<64x16xf32, #tpu.memory_space<vmem>>, %arg5: memref<1x16xf32, #tpu.memory_space<vmem>>, %arg6: memref<1x16xf32, #tpu.memory_space<vmem>>, %arg7: memref<3x64x384xbf16, #tpu.memory_space<vmem>>, %arg8: memref<3x12x8xf32, #tpu.memory_space<vmem>>, %arg9: memref<384x64xf32, #tpu.memory_space<vmem>>, %arg10: memref<1x64xf32, #tpu.memory_space<vmem>>, %arg11: memref<1x64xf32, #tpu.memory_space<vmem>>, %arg12: memref<3x384x352xbf16, #tpu.memory_space<vmem>>, %arg13: memref<3x22x12xf32, #tpu.memory_space<vmem>>, %arg14: memref<352x32xf32, #tpu.memory_space<vmem>>, %arg15: memref<1x32xf32, #tpu.memory_space<vmem>>, %arg16: memref<1x32xf32, #tpu.memory_space<vmem>>, %arg17: memref<3x352x704xbf16, #tpu.memory_space<vmem>>, %arg18: memref<3x44x22xf32, #tpu.memory_space<vmem>>, %arg19: memref<704x32xf32, #tpu.memory_space<vmem>>, %arg20: memref<1x32xf32, #tpu.memory_space<vmem>>, %arg21: memref<1x32xf32, #tpu.memory_space<vmem>>, %arg22: memref<3x704x132xbf16, #tpu.memory_space<vmem>>, %arg23: memref<3x88x44xf32, #tpu.memory_space<vmem>>, %arg24: memref<1x132xf32, #tpu.memory_space<vmem>>, %arg25: memref<88x132xf32, #tpu.memory_space<vmem>>) attributes {dimension_semantics = [#tpu.dimension_semantics<arbitrary>], iteration_bounds = array<i64: 1>, scalar_prefetch = 0 : i64, scratch_operands = 0 : i64, tpu.core_type = #tpu.core_type<tc>, window_params = [{pipeline_mode = #tpu.pipeline_mode<synchronous>, transform_indices = @transform_0, window_bounds = array<i64: 8, 32>}, {pipeline_mode = #tpu.pipeline_mode<synchronous>, transform_indices = @transform_1, window_bounds = array<i64: 1, 32, 64>}, {pipeline_mode = #tpu.pipeline_mode<synchronous>, transform_indices = @transform_2, window_bounds = array<i64: 1, 8, 8>}, {pipeline_mode = #tpu.pipeline_mode<synchronous>, transform_indices = @transform_3, window_bounds = array<i64: 64, 16>}, {pipeline_mode = #tpu.pipeline_mode<synchronous>, transform_indices = @transform_4, window_bounds = array<i64: 1, 16>}, {pipeline_mode = #tpu.pipeline_mode<synchronous>, transform_indices = @transform_5, window_bounds = array<i64: 1, 16>}, {pipeline_mode = #tpu.pipeline_mode<synchronous>, transform_indices = @transform_6, window_bounds = array<i64: 3, 64, 384>}, {pipeline_mode = #tpu.pipeline_mode<synchronous>, transform_indices = @transform_7, window_bounds = array<i64: 3, 12, 8>}, {pipeline_mode = #tpu.pipeline_mode<synchronous>, transform_indices = @transform_8, window_bounds = array<i64: 384, 64>}, {pipeline_mode = #tpu.pipeline_mode<synchronous>, transform_indices = @transform_9, window_bounds = array<i64: 1, 64>}, {pipeline_mode = #tpu.pipeline_mode<synchronous>, transform_indices = @transform_10, window_bounds = array<i64: 1, 64>}, {pipeline_mode = #tpu.pipeline_mode<synchronous>, transform_indices = @transform_11, window_bounds = array<i64: 3, 384, 352>}, {pipeline_mode = #tpu.pipeline_mode<synchronous>, transform_indices = @transform_12, window_bounds = array<i64: 3, 22, 12>}, {pipeline_mode = #tpu.pipeline_mode<synchronous>, transform_indices = @transform_13, window_bounds = array<i64: 352, 32>}, {pipeline_mode = #tpu.pipeline_mode<synchronous>, transform_indices = @transform_14, window_bounds = array<i64: 1, 32>}, {pipeline_mode = #tpu.pipeline_mode<synchronous>, transform_indices = @transform_15, window_bounds = array<i64: 1, 32>}, {pipeline_mode = #tpu.pipeline_mode<synchronous>, transform_indices = @transform_16, window_bounds = array<i64: 3, 352, 704>}, {pipeline_mode = #tpu.pipeline_mode<synchronous>, transform_indices = @transform_17, window_bounds = array<i64: 3, 44, 22>}, {pipeline_mode = #tpu.pipeline_mode<synchronous>, transform_indices = @transform_18, window_bounds = array<i64: 704, 32>}, {pipeline_mode = #tpu.pipeline_mode<synchronous>, transform_indices = @transform_19, window_bounds = array<i64: 1, 32>}, {pipeline_mode = #tpu.pipeline_mode<synchronous>, transform_indices = @transform_20, window_bounds = array<i64: 1, 32>}, {pipeline_mode = #tpu.pipeline_mode<synchronous>, transform_indices = @transform_21, window_bounds = array<i64: 3, 704, 132>}, {pipeline_mode = #tpu.pipeline_mode<synchronous>, transform_indices = @transform_22, window_bounds = array<i64: 3, 88, 44>}, {pipeline_mode = #tpu.pipeline_mode<synchronous>, transform_indices = @transform_23, window_bounds = array<i64: 1, 132>}, {pipeline_mode = #tpu.pipeline_mode<synchronous>, transform_indices = @transform_24, window_bounds = array<i64: 88, 132>}]} {
    %c0 = arith.constant 0 : index
    %c0_0 = arith.constant 0 : index
    %0 = vector.load %arg1[%c0, %c0_0] : memref<8x32xbf16, #tpu.memory_space<vmem>>, vector<8x32xbf16>
    %cst = arith.constant 0.000000e+00 : f32
    %1 = vector.broadcast %cst : f32 to vector<8x64xf32>
    %c0_1 = arith.constant 0 : index
    %c0_2 = arith.constant 0 : index
    %c0_3 = arith.constant 0 : index
    %2 = vector.load %arg2[%c0_1, %c0_2, %c0_3] : memref<1x32x64xbf16, #tpu.memory_space<vmem>>, vector<1x32x64xbf16>
    %3 = vector.shape_cast %2 : vector<1x32x64xbf16> to vector<32x64xbf16>
    %cst_4 = arith.constant dense<0.000000e+00> : vector<8x64xf32>
    %4 = tpu.matmul %0, %3, %cst_4 {dimension_numbers = #tpu.dot_dimension_numbers<[1], [0], [0], [1], [0, 0, 1, 1], [], []>} : vector<8x32xbf16>, vector<32x64xbf16>, vector<8x64xf32> -> vector<8x64xf32>
    %c0_5 = arith.constant 0 : index
    %c0_6 = arith.constant 0 : index
    %c0_7 = arith.constant 0 : index
    %5 = vector.load %arg3[%c0_5, %c0_6, %c0_7] : memref<1x8x8xf32, #tpu.memory_space<vmem>>, vector<1x8x8xf32>
    %6 = vector.shape_cast %5 : vector<1x8x8xf32> to vector<8x8xf32>
    %cst_8 = arith.constant dense<0.000000e+00> : vector<8x64xf32>
    %7 = tpu.matmul %6, %4, %cst_8 {dimension_numbers = #tpu.dot_dimension_numbers<[1], [0], [0], [1], [0, 0, 1, 1], [], []>} : vector<8x8xf32>, vector<8x64xf32>, vector<8x64xf32> -> vector<8x64xf32>
    %8 = arith.addf %1, %7 : vector<8x64xf32>
    %c0_9 = arith.constant 0 : index
    %c0_10 = arith.constant 0 : index
    %9 = vector.load %arg4[%c0_9, %c0_10] : memref<64x16xf32, #tpu.memory_space<vmem>>, vector<64x16xf32>
    %cst_11 = arith.constant dense<0.000000e+00> : vector<8x16xf32>
    %10 = tpu.matmul %8, %9, %cst_11 {dimension_numbers = #tpu.dot_dimension_numbers<[1], [0], [0], [1], [0, 0, 1, 1], [], []>} : vector<8x64xf32>, vector<64x16xf32>, vector<8x16xf32> -> vector<8x16xf32>
    %cst_12 = arith.constant dense<0.000000e+00> : vector<16xf32>
    %11 = vector.multi_reduction <add>, %10, %cst_12 [0] : vector<8x16xf32> to vector<16xf32>
    %12 = vector.shape_cast %11 : vector<16xf32> to vector<1x16xf32>
    %cst_13 = arith.constant 3.125000e-02 : f32
    %13 = vector.broadcast %cst_13 : f32 to vector<1x16xf32>
    %14 = arith.mulf %13, %12 : vector<1x16xf32>
    %15 = tpu.concatenate %14, %14, %14, %14 in 1 : vector<1x16xf32>, vector<1x16xf32>, vector<1x16xf32>, vector<1x16xf32> -> vector<1x64xf32>
    %16 = vector.broadcast %15 : vector<1x64xf32> to vector<8x64xf32>
    %17 = arith.subf %8, %16 : vector<8x64xf32>
    %18 = arith.mulf %17, %17 : vector<8x64xf32>
    %cst_14 = arith.constant dense<0.000000e+00> : vector<8x16xf32>
    %19 = tpu.matmul %18, %9, %cst_14 {dimension_numbers = #tpu.dot_dimension_numbers<[1], [0], [0], [1], [0, 0, 1, 1], [], []>} : vector<8x64xf32>, vector<64x16xf32>, vector<8x16xf32> -> vector<8x16xf32>
    %cst_15 = arith.constant dense<0.000000e+00> : vector<16xf32>
    %20 = vector.multi_reduction <add>, %19, %cst_15 [0] : vector<8x16xf32> to vector<16xf32>
    %21 = vector.shape_cast %20 : vector<16xf32> to vector<1x16xf32>
    %cst_16 = arith.constant 3.125000e-02 : f32
    %22 = vector.broadcast %cst_16 : f32 to vector<1x16xf32>
    %23 = arith.mulf %22, %21 : vector<1x16xf32>
    %c0_17 = arith.constant 0 : index
    %c0_18 = arith.constant 0 : index
    %24 = vector.load %arg5[%c0_17, %c0_18] : memref<1x16xf32, #tpu.memory_space<vmem>>, vector<1x16xf32>
    %cst_19 = arith.constant 9.99999974E-6 : f32
    %25 = vector.broadcast %cst_19 : f32 to vector<1x16xf32>
    %26 = arith.addf %23, %25 : vector<1x16xf32>
    %27 = math.rsqrt %26 : vector<1x16xf32>
    %28 = arith.mulf %24, %27 : vector<1x16xf32>
    %c0_20 = arith.constant 0 : index
    %c0_21 = arith.constant 0 : index
    %29 = vector.load %arg6[%c0_20, %c0_21] : memref<1x16xf32, #tpu.memory_space<vmem>>, vector<1x16xf32>
    %30 = arith.mulf %14, %28 : vector<1x16xf32>
    %31 = arith.subf %29, %30 : vector<1x16xf32>
    %32 = tpu.concatenate %28, %28, %28, %28 in 1 : vector<1x16xf32>, vector<1x16xf32>, vector<1x16xf32>, vector<1x16xf32> -> vector<1x64xf32>
    %33 = vector.broadcast %32 : vector<1x64xf32> to vector<8x64xf32>
    %34 = arith.mulf %8, %33 : vector<8x64xf32>
    %35 = tpu.concatenate %31, %31, %31, %31 in 1 : vector<1x16xf32>, vector<1x16xf32>, vector<1x16xf32>, vector<1x16xf32> -> vector<1x64xf32>
    %36 = vector.broadcast %35 : vector<1x64xf32> to vector<8x64xf32>
    %37 = arith.addf %34, %36 : vector<8x64xf32>
    %cst_22 = arith.constant 0.000000e+00 : f32
    %38 = vector.broadcast %cst_22 : f32 to vector<8x64xf32>
    %39 = arith.maximumf %37, %38 : vector<8x64xf32>
    %40 = arith.truncf %39 : vector<8x64xf32> to vector<8x64xbf16>
    %cst_23 = arith.constant 0.000000e+00 : f32
    %41 = vector.broadcast %cst_23 : f32 to vector<12x384xf32>
    %c0_24 = arith.constant 0 : index
    %c0_25 = arith.constant 0 : index
    %c0_26 = arith.constant 0 : index
    %42 = vector.load %arg7[%c0_24, %c0_25, %c0_26] : memref<3x64x384xbf16, #tpu.memory_space<vmem>>, vector<1x64x384xbf16>
    %43 = vector.shape_cast %42 : vector<1x64x384xbf16> to vector<64x384xbf16>
    %cst_27 = arith.constant dense<0.000000e+00> : vector<8x384xf32>
    %44 = tpu.matmul %40, %43, %cst_27 {dimension_numbers = #tpu.dot_dimension_numbers<[1], [0], [0], [1], [0, 0, 1, 1], [], []>} : vector<8x64xbf16>, vector<64x384xbf16>, vector<8x384xf32> -> vector<8x384xf32>
    %c0_28 = arith.constant 0 : index
    %c0_29 = arith.constant 0 : index
    %c0_30 = arith.constant 0 : index
    %45 = vector.load %arg8[%c0_28, %c0_29, %c0_30] : memref<3x12x8xf32, #tpu.memory_space<vmem>>, vector<1x12x8xf32>
    %46 = vector.shape_cast %45 : vector<1x12x8xf32> to vector<12x8xf32>
    %cst_31 = arith.constant dense<0.000000e+00> : vector<12x384xf32>
    %47 = tpu.matmul %46, %44, %cst_31 {dimension_numbers = #tpu.dot_dimension_numbers<[1], [0], [0], [1], [0, 0, 1, 1], [], []>} : vector<12x8xf32>, vector<8x384xf32>, vector<12x384xf32> -> vector<12x384xf32>
    %48 = arith.addf %41, %47 : vector<12x384xf32>
    %c1 = arith.constant 1 : index
    %c0_32 = arith.constant 0 : index
    %c0_33 = arith.constant 0 : index
    %49 = vector.load %arg7[%c1, %c0_32, %c0_33] : memref<3x64x384xbf16, #tpu.memory_space<vmem>>, vector<1x64x384xbf16>
    %50 = vector.shape_cast %49 : vector<1x64x384xbf16> to vector<64x384xbf16>
    %cst_34 = arith.constant dense<0.000000e+00> : vector<8x384xf32>
    %51 = tpu.matmul %40, %50, %cst_34 {dimension_numbers = #tpu.dot_dimension_numbers<[1], [0], [0], [1], [0, 0, 1, 1], [], []>} : vector<8x64xbf16>, vector<64x384xbf16>, vector<8x384xf32> -> vector<8x384xf32>
    %c1_35 = arith.constant 1 : index
    %c0_36 = arith.constant 0 : index
    %c0_37 = arith.constant 0 : index
    %52 = vector.load %arg8[%c1_35, %c0_36, %c0_37] : memref<3x12x8xf32, #tpu.memory_space<vmem>>, vector<1x12x8xf32>
    %53 = vector.shape_cast %52 : vector<1x12x8xf32> to vector<12x8xf32>
    %cst_38 = arith.constant dense<0.000000e+00> : vector<12x384xf32>
    %54 = tpu.matmul %53, %51, %cst_38 {dimension_numbers = #tpu.dot_dimension_numbers<[1], [0], [0], [1], [0, 0, 1, 1], [], []>} : vector<12x8xf32>, vector<8x384xf32>, vector<12x384xf32> -> vector<12x384xf32>
    %55 = arith.addf %48, %54 : vector<12x384xf32>
    %c2 = arith.constant 2 : index
    %c0_39 = arith.constant 0 : index
    %c0_40 = arith.constant 0 : index
    %56 = vector.load %arg7[%c2, %c0_39, %c0_40] : memref<3x64x384xbf16, #tpu.memory_space<vmem>>, vector<1x64x384xbf16>
    %57 = vector.shape_cast %56 : vector<1x64x384xbf16> to vector<64x384xbf16>
    %cst_41 = arith.constant dense<0.000000e+00> : vector<8x384xf32>
    %58 = tpu.matmul %40, %57, %cst_41 {dimension_numbers = #tpu.dot_dimension_numbers<[1], [0], [0], [1], [0, 0, 1, 1], [], []>} : vector<8x64xbf16>, vector<64x384xbf16>, vector<8x384xf32> -> vector<8x384xf32>
    %c2_42 = arith.constant 2 : index
    %c0_43 = arith.constant 0 : index
    %c0_44 = arith.constant 0 : index
    %59 = vector.load %arg8[%c2_42, %c0_43, %c0_44] : memref<3x12x8xf32, #tpu.memory_space<vmem>>, vector<1x12x8xf32>
    %60 = vector.shape_cast %59 : vector<1x12x8xf32> to vector<12x8xf32>
    %cst_45 = arith.constant dense<0.000000e+00> : vector<12x384xf32>
    %61 = tpu.matmul %60, %58, %cst_45 {dimension_numbers = #tpu.dot_dimension_numbers<[1], [0], [0], [1], [0, 0, 1, 1], [], []>} : vector<12x8xf32>, vector<8x384xf32>, vector<12x384xf32> -> vector<12x384xf32>
    %62 = arith.addf %55, %61 : vector<12x384xf32>
    %c0_46 = arith.constant 0 : index
    %c0_47 = arith.constant 0 : index
    %63 = vector.load %arg9[%c0_46, %c0_47] : memref<384x64xf32, #tpu.memory_space<vmem>>, vector<384x64xf32>
    %cst_48 = arith.constant dense<0.000000e+00> : vector<12x64xf32>
    %64 = tpu.matmul %62, %63, %cst_48 {dimension_numbers = #tpu.dot_dimension_numbers<[1], [0], [0], [1], [0, 0, 1, 1], [], []>} : vector<12x384xf32>, vector<384x64xf32>, vector<12x64xf32> -> vector<12x64xf32>
    %cst_49 = arith.constant dense<0.000000e+00> : vector<64xf32>
    %65 = vector.multi_reduction <add>, %64, %cst_49 [0] : vector<12x64xf32> to vector<64xf32>
    %66 = vector.shape_cast %65 : vector<64xf32> to vector<1x64xf32>
    %cst_50 = arith.constant 0.013888889 : f32
    %67 = vector.broadcast %cst_50 : f32 to vector<1x64xf32>
    %68 = arith.mulf %67, %66 : vector<1x64xf32>
    %69 = tpu.concatenate %68, %68, %68, %68, %68, %68 in 1 : vector<1x64xf32>, vector<1x64xf32>, vector<1x64xf32>, vector<1x64xf32>, vector<1x64xf32>, vector<1x64xf32> -> vector<1x384xf32>
    %70 = vector.broadcast %69 : vector<1x384xf32> to vector<12x384xf32>
    %71 = arith.subf %62, %70 : vector<12x384xf32>
    %72 = arith.mulf %71, %71 : vector<12x384xf32>
    %cst_51 = arith.constant dense<0.000000e+00> : vector<12x64xf32>
    %73 = tpu.matmul %72, %63, %cst_51 {dimension_numbers = #tpu.dot_dimension_numbers<[1], [0], [0], [1], [0, 0, 1, 1], [], []>} : vector<12x384xf32>, vector<384x64xf32>, vector<12x64xf32> -> vector<12x64xf32>
    %cst_52 = arith.constant dense<0.000000e+00> : vector<64xf32>
    %74 = vector.multi_reduction <add>, %73, %cst_52 [0] : vector<12x64xf32> to vector<64xf32>
    %75 = vector.shape_cast %74 : vector<64xf32> to vector<1x64xf32>
    %cst_53 = arith.constant 0.013888889 : f32
    %76 = vector.broadcast %cst_53 : f32 to vector<1x64xf32>
    %77 = arith.mulf %76, %75 : vector<1x64xf32>
    %c0_54 = arith.constant 0 : index
    %c0_55 = arith.constant 0 : index
    %78 = vector.load %arg10[%c0_54, %c0_55] : memref<1x64xf32, #tpu.memory_space<vmem>>, vector<1x64xf32>
    %cst_56 = arith.constant 9.99999974E-6 : f32
    %79 = vector.broadcast %cst_56 : f32 to vector<1x64xf32>
    %80 = arith.addf %77, %79 : vector<1x64xf32>
    %81 = math.rsqrt %80 : vector<1x64xf32>
    %82 = arith.mulf %78, %81 : vector<1x64xf32>
    %c0_57 = arith.constant 0 : index
    %c0_58 = arith.constant 0 : index
    %83 = vector.load %arg11[%c0_57, %c0_58] : memref<1x64xf32, #tpu.memory_space<vmem>>, vector<1x64xf32>
    %84 = arith.mulf %68, %82 : vector<1x64xf32>
    %85 = arith.subf %83, %84 : vector<1x64xf32>
    %86 = tpu.concatenate %82, %82, %82, %82, %82, %82 in 1 : vector<1x64xf32>, vector<1x64xf32>, vector<1x64xf32>, vector<1x64xf32>, vector<1x64xf32>, vector<1x64xf32> -> vector<1x384xf32>
    %87 = vector.broadcast %86 : vector<1x384xf32> to vector<12x384xf32>
    %88 = arith.mulf %62, %87 : vector<12x384xf32>
    %89 = tpu.concatenate %85, %85, %85, %85, %85, %85 in 1 : vector<1x64xf32>, vector<1x64xf32>, vector<1x64xf32>, vector<1x64xf32>, vector<1x64xf32>, vector<1x64xf32> -> vector<1x384xf32>
    %90 = vector.broadcast %89 : vector<1x384xf32> to vector<12x384xf32>
    %91 = arith.addf %88, %90 : vector<12x384xf32>
    %cst_59 = arith.constant 0.000000e+00 : f32
    %92 = vector.broadcast %cst_59 : f32 to vector<12x384xf32>
    %93 = arith.maximumf %91, %92 : vector<12x384xf32>
    %94 = arith.truncf %93 : vector<12x384xf32> to vector<12x384xbf16>
    %cst_60 = arith.constant 0.000000e+00 : f32
    %95 = vector.broadcast %cst_60 : f32 to vector<22x352xf32>
    %c0_61 = arith.constant 0 : index
    %c0_62 = arith.constant 0 : index
    %c0_63 = arith.constant 0 : index
    %96 = vector.load %arg12[%c0_61, %c0_62, %c0_63] : memref<3x384x352xbf16, #tpu.memory_space<vmem>>, vector<1x384x352xbf16>
    %97 = vector.shape_cast %96 : vector<1x384x352xbf16> to vector<384x352xbf16>
    %cst_64 = arith.constant dense<0.000000e+00> : vector<12x352xf32>
    %98 = tpu.matmul %94, %97, %cst_64 {dimension_numbers = #tpu.dot_dimension_numbers<[1], [0], [0], [1], [0, 0, 1, 1], [], []>} : vector<12x384xbf16>, vector<384x352xbf16>, vector<12x352xf32> -> vector<12x352xf32>
    %c0_65 = arith.constant 0 : index
    %c0_66 = arith.constant 0 : index
    %c0_67 = arith.constant 0 : index
    %99 = vector.load %arg13[%c0_65, %c0_66, %c0_67] : memref<3x22x12xf32, #tpu.memory_space<vmem>>, vector<1x22x12xf32>
    %100 = vector.shape_cast %99 : vector<1x22x12xf32> to vector<22x12xf32>
    %cst_68 = arith.constant dense<0.000000e+00> : vector<22x352xf32>
    %101 = tpu.matmul %100, %98, %cst_68 {dimension_numbers = #tpu.dot_dimension_numbers<[1], [0], [0], [1], [0, 0, 1, 1], [], []>} : vector<22x12xf32>, vector<12x352xf32>, vector<22x352xf32> -> vector<22x352xf32>
    %102 = arith.addf %95, %101 : vector<22x352xf32>
    %c1_69 = arith.constant 1 : index
    %c0_70 = arith.constant 0 : index
    %c0_71 = arith.constant 0 : index
    %103 = vector.load %arg12[%c1_69, %c0_70, %c0_71] : memref<3x384x352xbf16, #tpu.memory_space<vmem>>, vector<1x384x352xbf16>
    %104 = vector.shape_cast %103 : vector<1x384x352xbf16> to vector<384x352xbf16>
    %cst_72 = arith.constant dense<0.000000e+00> : vector<12x352xf32>
    %105 = tpu.matmul %94, %104, %cst_72 {dimension_numbers = #tpu.dot_dimension_numbers<[1], [0], [0], [1], [0, 0, 1, 1], [], []>} : vector<12x384xbf16>, vector<384x352xbf16>, vector<12x352xf32> -> vector<12x352xf32>
    %c1_73 = arith.constant 1 : index
    %c0_74 = arith.constant 0 : index
    %c0_75 = arith.constant 0 : index
    %106 = vector.load %arg13[%c1_73, %c0_74, %c0_75] : memref<3x22x12xf32, #tpu.memory_space<vmem>>, vector<1x22x12xf32>
    %107 = vector.shape_cast %106 : vector<1x22x12xf32> to vector<22x12xf32>
    %cst_76 = arith.constant dense<0.000000e+00> : vector<22x352xf32>
    %108 = tpu.matmul %107, %105, %cst_76 {dimension_numbers = #tpu.dot_dimension_numbers<[1], [0], [0], [1], [0, 0, 1, 1], [], []>} : vector<22x12xf32>, vector<12x352xf32>, vector<22x352xf32> -> vector<22x352xf32>
    %109 = arith.addf %102, %108 : vector<22x352xf32>
    %c2_77 = arith.constant 2 : index
    %c0_78 = arith.constant 0 : index
    %c0_79 = arith.constant 0 : index
    %110 = vector.load %arg12[%c2_77, %c0_78, %c0_79] : memref<3x384x352xbf16, #tpu.memory_space<vmem>>, vector<1x384x352xbf16>
    %111 = vector.shape_cast %110 : vector<1x384x352xbf16> to vector<384x352xbf16>
    %cst_80 = arith.constant dense<0.000000e+00> : vector<12x352xf32>
    %112 = tpu.matmul %94, %111, %cst_80 {dimension_numbers = #tpu.dot_dimension_numbers<[1], [0], [0], [1], [0, 0, 1, 1], [], []>} : vector<12x384xbf16>, vector<384x352xbf16>, vector<12x352xf32> -> vector<12x352xf32>
    %c2_81 = arith.constant 2 : index
    %c0_82 = arith.constant 0 : index
    %c0_83 = arith.constant 0 : index
    %113 = vector.load %arg13[%c2_81, %c0_82, %c0_83] : memref<3x22x12xf32, #tpu.memory_space<vmem>>, vector<1x22x12xf32>
    %114 = vector.shape_cast %113 : vector<1x22x12xf32> to vector<22x12xf32>
    %cst_84 = arith.constant dense<0.000000e+00> : vector<22x352xf32>
    %115 = tpu.matmul %114, %112, %cst_84 {dimension_numbers = #tpu.dot_dimension_numbers<[1], [0], [0], [1], [0, 0, 1, 1], [], []>} : vector<22x12xf32>, vector<12x352xf32>, vector<22x352xf32> -> vector<22x352xf32>
    %116 = arith.addf %109, %115 : vector<22x352xf32>
    %c0_85 = arith.constant 0 : index
    %c0_86 = arith.constant 0 : index
    %117 = vector.load %arg14[%c0_85, %c0_86] : memref<352x32xf32, #tpu.memory_space<vmem>>, vector<352x32xf32>
    %cst_87 = arith.constant dense<0.000000e+00> : vector<22x32xf32>
    %118 = tpu.matmul %116, %117, %cst_87 {dimension_numbers = #tpu.dot_dimension_numbers<[1], [0], [0], [1], [0, 0, 1, 1], [], []>} : vector<22x352xf32>, vector<352x32xf32>, vector<22x32xf32> -> vector<22x32xf32>
    %cst_88 = arith.constant dense<0.000000e+00> : vector<32xf32>
    %119 = vector.multi_reduction <add>, %118, %cst_88 [0] : vector<22x32xf32> to vector<32xf32>
    %120 = vector.shape_cast %119 : vector<32xf32> to vector<1x32xf32>
    %cst_89 = arith.constant 0.00413223123 : f32
    %121 = vector.broadcast %cst_89 : f32 to vector<1x32xf32>
    %122 = arith.mulf %121, %120 : vector<1x32xf32>
    %123 = tpu.concatenate %122, %122, %122, %122, %122, %122, %122, %122, %122, %122, %122 in 1 : vector<1x32xf32>, vector<1x32xf32>, vector<1x32xf32>, vector<1x32xf32>, vector<1x32xf32>, vector<1x32xf32>, vector<1x32xf32>, vector<1x32xf32>, vector<1x32xf32>, vector<1x32xf32>, vector<1x32xf32> -> vector<1x352xf32>
    %124 = vector.broadcast %123 : vector<1x352xf32> to vector<22x352xf32>
    %125 = arith.subf %116, %124 : vector<22x352xf32>
    %126 = arith.mulf %125, %125 : vector<22x352xf32>
    %cst_90 = arith.constant dense<0.000000e+00> : vector<22x32xf32>
    %127 = tpu.matmul %126, %117, %cst_90 {dimension_numbers = #tpu.dot_dimension_numbers<[1], [0], [0], [1], [0, 0, 1, 1], [], []>} : vector<22x352xf32>, vector<352x32xf32>, vector<22x32xf32> -> vector<22x32xf32>
    %cst_91 = arith.constant dense<0.000000e+00> : vector<32xf32>
    %128 = vector.multi_reduction <add>, %127, %cst_91 [0] : vector<22x32xf32> to vector<32xf32>
    %129 = vector.shape_cast %128 : vector<32xf32> to vector<1x32xf32>
    %cst_92 = arith.constant 0.00413223123 : f32
    %130 = vector.broadcast %cst_92 : f32 to vector<1x32xf32>
    %131 = arith.mulf %130, %129 : vector<1x32xf32>
    %c0_93 = arith.constant 0 : index
    %c0_94 = arith.constant 0 : index
    %132 = vector.load %arg15[%c0_93, %c0_94] : memref<1x32xf32, #tpu.memory_space<vmem>>, vector<1x32xf32>
    %cst_95 = arith.constant 9.99999974E-6 : f32
    %133 = vector.broadcast %cst_95 : f32 to vector<1x32xf32>
    %134 = arith.addf %131, %133 : vector<1x32xf32>
    %135 = math.rsqrt %134 : vector<1x32xf32>
    %136 = arith.mulf %132, %135 : vector<1x32xf32>
    %c0_96 = arith.constant 0 : index
    %c0_97 = arith.constant 0 : index
    %137 = vector.load %arg16[%c0_96, %c0_97] : memref<1x32xf32, #tpu.memory_space<vmem>>, vector<1x32xf32>
    %138 = arith.mulf %122, %136 : vector<1x32xf32>
    %139 = arith.subf %137, %138 : vector<1x32xf32>
    %140 = tpu.concatenate %136, %136, %136, %136, %136, %136, %136, %136, %136, %136, %136 in 1 : vector<1x32xf32>, vector<1x32xf32>, vector<1x32xf32>, vector<1x32xf32>, vector<1x32xf32>, vector<1x32xf32>, vector<1x32xf32>, vector<1x32xf32>, vector<1x32xf32>, vector<1x32xf32>, vector<1x32xf32> -> vector<1x352xf32>
    %141 = vector.broadcast %140 : vector<1x352xf32> to vector<22x352xf32>
    %142 = arith.mulf %116, %141 : vector<22x352xf32>
    %143 = tpu.concatenate %139, %139, %139, %139, %139, %139, %139, %139, %139, %139, %139 in 1 : vector<1x32xf32>, vector<1x32xf32>, vector<1x32xf32>, vector<1x32xf32>, vector<1x32xf32>, vector<1x32xf32>, vector<1x32xf32>, vector<1x32xf32>, vector<1x32xf32>, vector<1x32xf32>, vector<1x32xf32> -> vector<1x352xf32>
    %144 = vector.broadcast %143 : vector<1x352xf32> to vector<22x352xf32>
    %145 = arith.addf %142, %144 : vector<22x352xf32>
    %cst_98 = arith.constant 0.000000e+00 : f32
    %146 = vector.broadcast %cst_98 : f32 to vector<22x352xf32>
    %147 = arith.maximumf %145, %146 : vector<22x352xf32>
    %148 = arith.truncf %147 : vector<22x352xf32> to vector<22x352xbf16>
    %cst_99 = arith.constant 0.000000e+00 : f32
    %149 = vector.broadcast %cst_99 : f32 to vector<44x704xf32>
    %c0_100 = arith.constant 0 : index
    %c0_101 = arith.constant 0 : index
    %c0_102 = arith.constant 0 : index
    %150 = vector.load %arg17[%c0_100, %c0_101, %c0_102] : memref<3x352x704xbf16, #tpu.memory_space<vmem>>, vector<1x352x704xbf16>
    %151 = vector.shape_cast %150 : vector<1x352x704xbf16> to vector<352x704xbf16>
    %cst_103 = arith.constant dense<0.000000e+00> : vector<22x704xf32>
    %152 = tpu.matmul %148, %151, %cst_103 {dimension_numbers = #tpu.dot_dimension_numbers<[1], [0], [0], [1], [0, 0, 1, 1], [], []>} : vector<22x352xbf16>, vector<352x704xbf16>, vector<22x704xf32> -> vector<22x704xf32>
    %c0_104 = arith.constant 0 : index
    %c0_105 = arith.constant 0 : index
    %c0_106 = arith.constant 0 : index
    %153 = vector.load %arg18[%c0_104, %c0_105, %c0_106] : memref<3x44x22xf32, #tpu.memory_space<vmem>>, vector<1x44x22xf32>
    %154 = vector.shape_cast %153 : vector<1x44x22xf32> to vector<44x22xf32>
    %cst_107 = arith.constant dense<0.000000e+00> : vector<44x704xf32>
    %155 = tpu.matmul %154, %152, %cst_107 {dimension_numbers = #tpu.dot_dimension_numbers<[1], [0], [0], [1], [0, 0, 1, 1], [], []>} : vector<44x22xf32>, vector<22x704xf32>, vector<44x704xf32> -> vector<44x704xf32>
    %156 = arith.addf %149, %155 : vector<44x704xf32>
    %c1_108 = arith.constant 1 : index
    %c0_109 = arith.constant 0 : index
    %c0_110 = arith.constant 0 : index
    %157 = vector.load %arg17[%c1_108, %c0_109, %c0_110] : memref<3x352x704xbf16, #tpu.memory_space<vmem>>, vector<1x352x704xbf16>
    %158 = vector.shape_cast %157 : vector<1x352x704xbf16> to vector<352x704xbf16>
    %cst_111 = arith.constant dense<0.000000e+00> : vector<22x704xf32>
    %159 = tpu.matmul %148, %158, %cst_111 {dimension_numbers = #tpu.dot_dimension_numbers<[1], [0], [0], [1], [0, 0, 1, 1], [], []>} : vector<22x352xbf16>, vector<352x704xbf16>, vector<22x704xf32> -> vector<22x704xf32>
    %c1_112 = arith.constant 1 : index
    %c0_113 = arith.constant 0 : index
    %c0_114 = arith.constant 0 : index
    %160 = vector.load %arg18[%c1_112, %c0_113, %c0_114] : memref<3x44x22xf32, #tpu.memory_space<vmem>>, vector<1x44x22xf32>
    %161 = vector.shape_cast %160 : vector<1x44x22xf32> to vector<44x22xf32>
    %cst_115 = arith.constant dense<0.000000e+00> : vector<44x704xf32>
    %162 = tpu.matmul %161, %159, %cst_115 {dimension_numbers = #tpu.dot_dimension_numbers<[1], [0], [0], [1], [0, 0, 1, 1], [], []>} : vector<44x22xf32>, vector<22x704xf32>, vector<44x704xf32> -> vector<44x704xf32>
    %163 = arith.addf %156, %162 : vector<44x704xf32>
    %c2_116 = arith.constant 2 : index
    %c0_117 = arith.constant 0 : index
    %c0_118 = arith.constant 0 : index
    %164 = vector.load %arg17[%c2_116, %c0_117, %c0_118] : memref<3x352x704xbf16, #tpu.memory_space<vmem>>, vector<1x352x704xbf16>
    %165 = vector.shape_cast %164 : vector<1x352x704xbf16> to vector<352x704xbf16>
    %cst_119 = arith.constant dense<0.000000e+00> : vector<22x704xf32>
    %166 = tpu.matmul %148, %165, %cst_119 {dimension_numbers = #tpu.dot_dimension_numbers<[1], [0], [0], [1], [0, 0, 1, 1], [], []>} : vector<22x352xbf16>, vector<352x704xbf16>, vector<22x704xf32> -> vector<22x704xf32>
    %c2_120 = arith.constant 2 : index
    %c0_121 = arith.constant 0 : index
    %c0_122 = arith.constant 0 : index
    %167 = vector.load %arg18[%c2_120, %c0_121, %c0_122] : memref<3x44x22xf32, #tpu.memory_space<vmem>>, vector<1x44x22xf32>
    %168 = vector.shape_cast %167 : vector<1x44x22xf32> to vector<44x22xf32>
    %cst_123 = arith.constant dense<0.000000e+00> : vector<44x704xf32>
    %169 = tpu.matmul %168, %166, %cst_123 {dimension_numbers = #tpu.dot_dimension_numbers<[1], [0], [0], [1], [0, 0, 1, 1], [], []>} : vector<44x22xf32>, vector<22x704xf32>, vector<44x704xf32> -> vector<44x704xf32>
    %170 = arith.addf %163, %169 : vector<44x704xf32>
    %c0_124 = arith.constant 0 : index
    %c0_125 = arith.constant 0 : index
    %171 = vector.load %arg19[%c0_124, %c0_125] : memref<704x32xf32, #tpu.memory_space<vmem>>, vector<704x32xf32>
    %cst_126 = arith.constant dense<0.000000e+00> : vector<44x32xf32>
    %172 = tpu.matmul %170, %171, %cst_126 {dimension_numbers = #tpu.dot_dimension_numbers<[1], [0], [0], [1], [0, 0, 1, 1], [], []>} : vector<44x704xf32>, vector<704x32xf32>, vector<44x32xf32> -> vector<44x32xf32>
    %cst_127 = arith.constant dense<0.000000e+00> : vector<32xf32>
    %173 = vector.multi_reduction <add>, %172, %cst_127 [0] : vector<44x32xf32> to vector<32xf32>
    %174 = vector.shape_cast %173 : vector<32xf32> to vector<1x32xf32>
    %cst_128 = arith.constant 0.00103305781 : f32
    %175 = vector.broadcast %cst_128 : f32 to vector<1x32xf32>
    %176 = arith.mulf %175, %174 : vector<1x32xf32>
    %177 = tpu.concatenate %176, %176, %176, %176, %176, %176, %176, %176, %176, %176, %176, %176, %176, %176, %176, %176 in 1 : vector<1x32xf32>, vector<1x32xf32>, vector<1x32xf32>, vector<1x32xf32>, vector<1x32xf32>, vector<1x32xf32>, vector<1x32xf32>, vector<1x32xf32>, vector<1x32xf32>, vector<1x32xf32>, vector<1x32xf32>, vector<1x32xf32>, vector<1x32xf32>, vector<1x32xf32>, vector<1x32xf32>, vector<1x32xf32> -> vector<1x512xf32>
    %178 = tpu.concatenate %176, %176, %176, %176, %176, %176 in 1 : vector<1x32xf32>, vector<1x32xf32>, vector<1x32xf32>, vector<1x32xf32>, vector<1x32xf32>, vector<1x32xf32> -> vector<1x192xf32>
    %179 = tpu.concatenate %177, %178 in 1 : vector<1x512xf32>, vector<1x192xf32> -> vector<1x704xf32>
    %180 = vector.broadcast %179 : vector<1x704xf32> to vector<44x704xf32>
    %181 = arith.subf %170, %180 : vector<44x704xf32>
    %182 = arith.mulf %181, %181 : vector<44x704xf32>
    %cst_129 = arith.constant dense<0.000000e+00> : vector<44x32xf32>
    %183 = tpu.matmul %182, %171, %cst_129 {dimension_numbers = #tpu.dot_dimension_numbers<[1], [0], [0], [1], [0, 0, 1, 1], [], []>} : vector<44x704xf32>, vector<704x32xf32>, vector<44x32xf32> -> vector<44x32xf32>
    %cst_130 = arith.constant dense<0.000000e+00> : vector<32xf32>
    %184 = vector.multi_reduction <add>, %183, %cst_130 [0] : vector<44x32xf32> to vector<32xf32>
    %185 = vector.shape_cast %184 : vector<32xf32> to vector<1x32xf32>
    %cst_131 = arith.constant 0.00103305781 : f32
    %186 = vector.broadcast %cst_131 : f32 to vector<1x32xf32>
    %187 = arith.mulf %186, %185 : vector<1x32xf32>
    %c0_132 = arith.constant 0 : index
    %c0_133 = arith.constant 0 : index
    %188 = vector.load %arg20[%c0_132, %c0_133] : memref<1x32xf32, #tpu.memory_space<vmem>>, vector<1x32xf32>
    %cst_134 = arith.constant 9.99999974E-6 : f32
    %189 = vector.broadcast %cst_134 : f32 to vector<1x32xf32>
    %190 = arith.addf %187, %189 : vector<1x32xf32>
    %191 = math.rsqrt %190 : vector<1x32xf32>
    %192 = arith.mulf %188, %191 : vector<1x32xf32>
    %c0_135 = arith.constant 0 : index
    %c0_136 = arith.constant 0 : index
    %193 = vector.load %arg21[%c0_135, %c0_136] : memref<1x32xf32, #tpu.memory_space<vmem>>, vector<1x32xf32>
    %194 = arith.mulf %176, %192 : vector<1x32xf32>
    %195 = arith.subf %193, %194 : vector<1x32xf32>
    %196 = tpu.concatenate %192, %192, %192, %192, %192, %192, %192, %192, %192, %192, %192, %192, %192, %192, %192, %192 in 1 : vector<1x32xf32>, vector<1x32xf32>, vector<1x32xf32>, vector<1x32xf32>, vector<1x32xf32>, vector<1x32xf32>, vector<1x32xf32>, vector<1x32xf32>, vector<1x32xf32>, vector<1x32xf32>, vector<1x32xf32>, vector<1x32xf32>, vector<1x32xf32>, vector<1x32xf32>, vector<1x32xf32>, vector<1x32xf32> -> vector<1x512xf32>
    %197 = tpu.concatenate %192, %192, %192, %192, %192, %192 in 1 : vector<1x32xf32>, vector<1x32xf32>, vector<1x32xf32>, vector<1x32xf32>, vector<1x32xf32>, vector<1x32xf32> -> vector<1x192xf32>
    %198 = tpu.concatenate %196, %197 in 1 : vector<1x512xf32>, vector<1x192xf32> -> vector<1x704xf32>
    %199 = vector.broadcast %198 : vector<1x704xf32> to vector<44x704xf32>
    %200 = arith.mulf %170, %199 : vector<44x704xf32>
    %201 = tpu.concatenate %195, %195, %195, %195, %195, %195, %195, %195, %195, %195, %195, %195, %195, %195, %195, %195 in 1 : vector<1x32xf32>, vector<1x32xf32>, vector<1x32xf32>, vector<1x32xf32>, vector<1x32xf32>, vector<1x32xf32>, vector<1x32xf32>, vector<1x32xf32>, vector<1x32xf32>, vector<1x32xf32>, vector<1x32xf32>, vector<1x32xf32>, vector<1x32xf32>, vector<1x32xf32>, vector<1x32xf32>, vector<1x32xf32> -> vector<1x512xf32>
    %202 = tpu.concatenate %195, %195, %195, %195, %195, %195 in 1 : vector<1x32xf32>, vector<1x32xf32>, vector<1x32xf32>, vector<1x32xf32>, vector<1x32xf32>, vector<1x32xf32> -> vector<1x192xf32>
    %203 = tpu.concatenate %201, %202 in 1 : vector<1x512xf32>, vector<1x192xf32> -> vector<1x704xf32>
    %204 = vector.broadcast %203 : vector<1x704xf32> to vector<44x704xf32>
    %205 = arith.addf %200, %204 : vector<44x704xf32>
    %cst_137 = arith.constant 0.000000e+00 : f32
    %206 = vector.broadcast %cst_137 : f32 to vector<44x704xf32>
    %207 = arith.maximumf %205, %206 : vector<44x704xf32>
    %208 = arith.truncf %207 : vector<44x704xf32> to vector<44x704xbf16>
    %cst_138 = arith.constant 0.000000e+00 : f32
    %209 = vector.broadcast %cst_138 : f32 to vector<88x132xf32>
    %c0_139 = arith.constant 0 : index
    %c0_140 = arith.constant 0 : index
    %c0_141 = arith.constant 0 : index
    %210 = vector.load %arg22[%c0_139, %c0_140, %c0_141] : memref<3x704x132xbf16, #tpu.memory_space<vmem>>, vector<1x704x132xbf16>
    %211 = vector.shape_cast %210 : vector<1x704x132xbf16> to vector<704x132xbf16>
    %cst_142 = arith.constant dense<0.000000e+00> : vector<44x132xf32>
    %212 = tpu.matmul %208, %211, %cst_142 {dimension_numbers = #tpu.dot_dimension_numbers<[1], [0], [0], [1], [0, 0, 1, 1], [], []>} : vector<44x704xbf16>, vector<704x132xbf16>, vector<44x132xf32> -> vector<44x132xf32>
    %c0_143 = arith.constant 0 : index
    %c0_144 = arith.constant 0 : index
    %c0_145 = arith.constant 0 : index
    %213 = vector.load %arg23[%c0_143, %c0_144, %c0_145] : memref<3x88x44xf32, #tpu.memory_space<vmem>>, vector<1x88x44xf32>
    %214 = vector.shape_cast %213 : vector<1x88x44xf32> to vector<88x44xf32>
    %cst_146 = arith.constant dense<0.000000e+00> : vector<88x132xf32>
    %215 = tpu.matmul %214, %212, %cst_146 {dimension_numbers = #tpu.dot_dimension_numbers<[1], [0], [0], [1], [0, 0, 1, 1], [], []>} : vector<88x44xf32>, vector<44x132xf32>, vector<88x132xf32> -> vector<88x132xf32>
    %216 = arith.addf %209, %215 : vector<88x132xf32>
    %c1_147 = arith.constant 1 : index
    %c0_148 = arith.constant 0 : index
    %c0_149 = arith.constant 0 : index
    %217 = vector.load %arg22[%c1_147, %c0_148, %c0_149] : memref<3x704x132xbf16, #tpu.memory_space<vmem>>, vector<1x704x132xbf16>
    %218 = vector.shape_cast %217 : vector<1x704x132xbf16> to vector<704x132xbf16>
    %cst_150 = arith.constant dense<0.000000e+00> : vector<44x132xf32>
    %219 = tpu.matmul %208, %218, %cst_150 {dimension_numbers = #tpu.dot_dimension_numbers<[1], [0], [0], [1], [0, 0, 1, 1], [], []>} : vector<44x704xbf16>, vector<704x132xbf16>, vector<44x132xf32> -> vector<44x132xf32>
    %c1_151 = arith.constant 1 : index
    %c0_152 = arith.constant 0 : index
    %c0_153 = arith.constant 0 : index
    %220 = vector.load %arg23[%c1_151, %c0_152, %c0_153] : memref<3x88x44xf32, #tpu.memory_space<vmem>>, vector<1x88x44xf32>
    %221 = vector.shape_cast %220 : vector<1x88x44xf32> to vector<88x44xf32>
    %cst_154 = arith.constant dense<0.000000e+00> : vector<88x132xf32>
    %222 = tpu.matmul %221, %219, %cst_154 {dimension_numbers = #tpu.dot_dimension_numbers<[1], [0], [0], [1], [0, 0, 1, 1], [], []>} : vector<88x44xf32>, vector<44x132xf32>, vector<88x132xf32> -> vector<88x132xf32>
    %223 = arith.addf %216, %222 : vector<88x132xf32>
    %c2_155 = arith.constant 2 : index
    %c0_156 = arith.constant 0 : index
    %c0_157 = arith.constant 0 : index
    %224 = vector.load %arg22[%c2_155, %c0_156, %c0_157] : memref<3x704x132xbf16, #tpu.memory_space<vmem>>, vector<1x704x132xbf16>
    %225 = vector.shape_cast %224 : vector<1x704x132xbf16> to vector<704x132xbf16>
    %cst_158 = arith.constant dense<0.000000e+00> : vector<44x132xf32>
    %226 = tpu.matmul %208, %225, %cst_158 {dimension_numbers = #tpu.dot_dimension_numbers<[1], [0], [0], [1], [0, 0, 1, 1], [], []>} : vector<44x704xbf16>, vector<704x132xbf16>, vector<44x132xf32> -> vector<44x132xf32>
    %c2_159 = arith.constant 2 : index
    %c0_160 = arith.constant 0 : index
    %c0_161 = arith.constant 0 : index
    %227 = vector.load %arg23[%c2_159, %c0_160, %c0_161] : memref<3x88x44xf32, #tpu.memory_space<vmem>>, vector<1x88x44xf32>
    %228 = vector.shape_cast %227 : vector<1x88x44xf32> to vector<88x44xf32>
    %cst_162 = arith.constant dense<0.000000e+00> : vector<88x132xf32>
    %229 = tpu.matmul %228, %226, %cst_162 {dimension_numbers = #tpu.dot_dimension_numbers<[1], [0], [0], [1], [0, 0, 1, 1], [], []>} : vector<88x44xf32>, vector<44x132xf32>, vector<88x132xf32> -> vector<88x132xf32>
    %230 = arith.addf %223, %229 : vector<88x132xf32>
    %c0_163 = arith.constant 0 : index
    %c0_164 = arith.constant 0 : index
    %231 = vector.load %arg24[%c0_163, %c0_164] : memref<1x132xf32, #tpu.memory_space<vmem>>, vector<1x132xf32>
    %232 = vector.broadcast %231 : vector<1x132xf32> to vector<88x132xf32>
    %233 = arith.addf %230, %232 : vector<88x132xf32>
    %cst_165 = arith.constant 0.000000e+00 : f32
    %234 = vector.broadcast %cst_165 : f32 to vector<88x132xf32>
    %235 = arith.subf %234, %233 : vector<88x132xf32>
    %236 = math.exp %235 : vector<88x132xf32>
    %cst_166 = arith.constant 1.000000e+00 : f32
    %237 = vector.broadcast %cst_166 : f32 to vector<88x132xf32>
    %238 = arith.addf %237, %236 : vector<88x132xf32>
    %cst_167 = arith.constant 1.000000e+00 : f32
    %239 = vector.broadcast %cst_167 : f32 to vector<88x132xf32>
    %240 = arith.divf %239, %238 : vector<88x132xf32>
    %c0_168 = arith.constant 0 : index
    %c0_169 = arith.constant 0 : index
    %241 = vector.load %arg25[%c0_168, %c0_169] : memref<88x132xf32, #tpu.memory_space<vmem>>, vector<88x132xf32>
    tpu.vector_store %arg25[%c0_168, %c0_169], %240 {strides = array<i32>} : memref<88x132xf32, #tpu.memory_space<vmem>>, vector<88x132xf32>,
    return
  }
  func.func @transform_0(%arg0: i32) -> (i32, i32) {
    %c0_i32 = arith.constant 0 : i32
    %c0_i32_0 = arith.constant 0 : i32
    %c0_i32_1 = arith.constant 0 : i32
    return %c0_i32, %c0_i32_0 : i32, i32
  }
  func.func @transform_1(%arg0: i32) -> (i32, i32, i32) {
    %c0_i32 = arith.constant 0 : i32
    %c0_i32_0 = arith.constant 0 : i32
    %c0_i32_1 = arith.constant 0 : i32
    %c0_i32_2 = arith.constant 0 : i32
    return %c0_i32, %c0_i32_0, %c0_i32_1 : i32, i32, i32
  }
  func.func @transform_2(%arg0: i32) -> (i32, i32, i32) {
    %c0_i32 = arith.constant 0 : i32
    %c0_i32_0 = arith.constant 0 : i32
    %c0_i32_1 = arith.constant 0 : i32
    %c0_i32_2 = arith.constant 0 : i32
    return %c0_i32, %c0_i32_0, %c0_i32_1 : i32, i32, i32
  }
  func.func @transform_3(%arg0: i32) -> (i32, i32) {
    %c0_i32 = arith.constant 0 : i32
    %c0_i32_0 = arith.constant 0 : i32
    %c0_i32_1 = arith.constant 0 : i32
    return %c0_i32, %c0_i32_0 : i32, i32
  }
  func.func @transform_4(%arg0: i32) -> (i32, i32) {
    %c0_i32 = arith.constant 0 : i32
    %c0_i32_0 = arith.constant 0 : i32
    %c0_i32_1 = arith.constant 0 : i32
    return %c0_i32, %c0_i32_0 : i32, i32
  }
  func.func @transform_5(%arg0: i32) -> (i32, i32) {
    %c0_i32 = arith.constant 0 : i32
    %c0_i32_0 = arith.constant 0 : i32
    %c0_i32_1 = arith.constant 0 : i32
    return %c0_i32, %c0_i32_0 : i32, i32
  }
  func.func @transform_6(%arg0: i32) -> (i32, i32, i32) {
    %c0_i32 = arith.constant 0 : i32
    %c0_i32_0 = arith.constant 0 : i32
    %c0_i32_1 = arith.constant 0 : i32
    %c0_i32_2 = arith.constant 0 : i32
    return %c0_i32, %c0_i32_0, %c0_i32_1 : i32, i32, i32
  }
  func.func @transform_7(%arg0: i32) -> (i32, i32, i32) {
    %c0_i32 = arith.constant 0 : i32
    %c0_i32_0 = arith.constant 0 : i32
    %c0_i32_1 = arith.constant 0 : i32
    %c0_i32_2 = arith.constant 0 : i32
    return %c0_i32, %c0_i32_0, %c0_i32_1 : i32, i32, i32
  }
  func.func @transform_8(%arg0: i32) -> (i32, i32) {
    %c0_i32 = arith.constant 0 : i32
    %c0_i32_0 = arith.constant 0 : i32
    %c0_i32_1 = arith.constant 0 : i32
    return %c0_i32, %c0_i32_0 : i32, i32
  }
  func.func @transform_9(%arg0: i32) -> (i32, i32) {
    %c0_i32 = arith.constant 0 : i32
    %c0_i32_0 = arith.constant 0 : i32
    %c0_i32_1 = arith.constant 0 : i32
    return %c0_i32, %c0_i32_0 : i32, i32
  }
  func.func @transform_10(%arg0: i32) -> (i32, i32) {
    %c0_i32 = arith.constant 0 : i32
    %c0_i32_0 = arith.constant 0 : i32
    %c0_i32_1 = arith.constant 0 : i32
    return %c0_i32, %c0_i32_0 : i32, i32
  }
  func.func @transform_11(%arg0: i32) -> (i32, i32, i32) {
    %c0_i32 = arith.constant 0 : i32
    %c0_i32_0 = arith.constant 0 : i32
    %c0_i32_1 = arith.constant 0 : i32
    %c0_i32_2 = arith.constant 0 : i32
    return %c0_i32, %c0_i32_0, %c0_i32_1 : i32, i32, i32
  }
  func.func @transform_12(%arg0: i32) -> (i32, i32, i32) {
    %c0_i32 = arith.constant 0 : i32
    %c0_i32_0 = arith.constant 0 : i32
    %c0_i32_1 = arith.constant 0 : i32
    %c0_i32_2 = arith.constant 0 : i32
    return %c0_i32, %c0_i32_0, %c0_i32_1 : i32, i32, i32
  }
  func.func @transform_13(%arg0: i32) -> (i32, i32) {
    %c0_i32 = arith.constant 0 : i32
    %c0_i32_0 = arith.constant 0 : i32
    %c0_i32_1 = arith.constant 0 : i32
    return %c0_i32, %c0_i32_0 : i32, i32
  }
  func.func @transform_14(%arg0: i32) -> (i32, i32) {
    %c0_i32 = arith.constant 0 : i32
    %c0_i32_0 = arith.constant 0 : i32
    %c0_i32_1 = arith.constant 0 : i32
    return %c0_i32, %c0_i32_0 : i32, i32
  }
  func.func @transform_15(%arg0: i32) -> (i32, i32) {
    %c0_i32 = arith.constant 0 : i32
    %c0_i32_0 = arith.constant 0 : i32
    %c0_i32_1 = arith.constant 0 : i32
    return %c0_i32, %c0_i32_0 : i32, i32
  }
  func.func @transform_16(%arg0: i32) -> (i32, i32, i32) {
    %c0_i32 = arith.constant 0 : i32
    %c0_i32_0 = arith.constant 0 : i32
    %c0_i32_1 = arith.constant 0 : i32
    %c0_i32_2 = arith.constant 0 : i32
    return %c0_i32, %c0_i32_0, %c0_i32_1 : i32, i32, i32
  }
  func.func @transform_17(%arg0: i32) -> (i32, i32, i32) {
    %c0_i32 = arith.constant 0 : i32
    %c0_i32_0 = arith.constant 0 : i32
    %c0_i32_1 = arith.constant 0 : i32
    %c0_i32_2 = arith.constant 0 : i32
    return %c0_i32, %c0_i32_0, %c0_i32_1 : i32, i32, i32
  }
  func.func @transform_18(%arg0: i32) -> (i32, i32) {
    %c0_i32 = arith.constant 0 : i32
    %c0_i32_0 = arith.constant 0 : i32
    %c0_i32_1 = arith.constant 0 : i32
    return %c0_i32, %c0_i32_0 : i32, i32
  }
  func.func @transform_19(%arg0: i32) -> (i32, i32) {
    %c0_i32 = arith.constant 0 : i32
    %c0_i32_0 = arith.constant 0 : i32
    %c0_i32_1 = arith.constant 0 : i32
    return %c0_i32, %c0_i32_0 : i32, i32
  }
  func.func @transform_20(%arg0: i32) -> (i32, i32) {
    %c0_i32 = arith.constant 0 : i32
    %c0_i32_0 = arith.constant 0 : i32
    %c0_i32_1 = arith.constant 0 : i32
    return %c0_i32, %c0_i32_0 : i32, i32
  }
  func.func @transform_21(%arg0: i32) -> (i32, i32, i32) {
    %c0_i32 = arith.constant 0 : i32
    %c0_i32_0 = arith.constant 0 : i32
    %c0_i32_1 = arith.constant 0 : i32
    %c0_i32_2 = arith.constant 0 : i32
    return %c0_i32, %c0_i32_0, %c0_i32_1 : i32, i32, i32
  }
  func.func @transform_22(%arg0: i32) -> (i32, i32, i32) {
    %c0_i32 = arith.constant 0 : i32
    %c0_i32_0 = arith.constant 0 : i32
    %c0_i32_1 = arith.constant 0 : i32
    %c0_i32_2 = arith.constant 0 : i32
    return %c0_i32, %c0_i32_0, %c0_i32_1 : i32, i32, i32
  }
  func.func @transform_23(%arg0: i32) -> (i32, i32) {
    %c0_i32 = arith.constant 0 : i32
    %c0_i32_0 = arith.constant 0 : i32
    %c0_i32_1 = arith.constant 0 : i32
    return %c0_i32, %c0_i32_0 : i32, i32
  }
  func.func @transform_24(%arg0: i32) -> (i32, i32) {
    %c0_i32 = arith.constant 0 : i32
    %c0_i32_0 = arith.constant 0 : i32
    %c0_i32_1 = arith.constant 0 : i32
    return %c0_i32, %c0_i32_0 : i32, i32
  }
}

</mosaic_0001>

<bundles_post_ra>
// kernel: decoder_forward.1
= control target key start
LH: loop header
LB: loop body
LE: loop exit
PB: predicated region body
PF: predicated region fallthrough
CT: control target
= control target key end

     0   :  { %v23804_v0 = vmov 0.0   ;;  %vm18280_vm0 = vmmov 0   ;;  %vm95_vm1 = vcmask 261120   ;;  %v23810_v6 = vmov 0.0|0.0   ;;  %s23774_s1 = inlined_call_operand.vmem [shape: bf16[1,32,64], index: 1, kind: input, shape index: {}]   ;;  %s23775_s0 = inlined_call_operand.vmem [shape: bf16[8,32], index: 0, kind: input, shape index: {}]   ;;  %s23776_s3 = inlined_call_operand.vmem [shape: f32[64,16], index: 3, kind: input, shape index: {}]   ;;  %s23777_s2 = inlined_call_operand.vmem [shape: f32[1,8,8], index: 2, kind: input, shape index: {}]   ;;  %s23778_s6 = inlined_call_operand.vmem [shape: bf16[3,64,384], index: 6, kind: input, shape index: {}]   ;;  %s23779_s4 = inlined_call_operand.vmem [shape: f32[1,16], index: 4, kind: input, shape index: {}]   ;;  %s23780_s5 = inlined_call_operand.vmem [shape: f32[1,16], index: 5, kind: input, shape index: {}]   ;;  %s23781_s7 = inlined_call_operand.vmem [shape: f32[3,12,8], index: 7, kind: input, shape index: {}]   ;;  %s23782_s8 = inlined_call_operand.vmem [shape: f32[384,64], index: 8, kind: input, shape index: {}]   ;;  %s23783_s11 = inlined_call_operand.vmem [shape: bf16[3,384,352], index: 11, kind: input, shape index: {}]   ;;  %s23784_s9 = inlined_call_operand.vmem [shape: f32[1,64], index: 9, kind: input, shape index: {}]   ;;  %s23785_s10 = inlined_call_operand.vmem [shape: f32[1,64], index: 10, kind: input, shape index: {}]   ;;  %s23786_s12 = inlined_call_operand.vmem [shape: f32[3,22,12], index: 12, kind: input, shape index: {}]   ;;  %s23787_s13 = inlined_call_operand.vmem [shape: f32[352,32], index: 13, kind: input, shape index: {}]   ;;  %s23788_s16 = inlined_call_operand.vmem [shape: bf16[3,352,704], index: 16, kind: input, shape index: {}]   ;;  %s23789_s14 = inlined_call_operand.vmem [shape: f32[1,32], index: 14, kind: input, shape index: {}]   ;;  %s23790_s15 = inlined_call_operand.vmem [shape: f32[1,32], index: 15, kind: input, shape index: {}]   ;;  %s23791_s17 = inlined_call_operand.vmem [shape: f32[3,44,22], index: 17, kind: input, shape index: {}]   ;;  %s23792_s18 = inlined_call_operand.vmem [shape: f32[704,32], index: 18, kind: input, shape index: {}]   ;;  %s23793_s21 = inlined_call_operand.vmem [shape: bf16[3,704,132], index: 21, kind: input, shape index: {}]   ;;  %s23794_s19 = inlined_call_operand.vmem [shape: f32[1,32], index: 19, kind: input, shape index: {}]   ;;  %s23795_s20 = inlined_call_operand.vmem [shape: f32[1,32], index: 20, kind: input, shape index: {}]   ;;  %s23796_s22 = inlined_call_operand.vmem [shape: f32[3,88,44], index: 22, kind: input, shape index: {}]   ;;  %s23797_s23 = inlined_call_operand.vmem [shape: f32[1,132], index: 23, kind: input, shape index: {}]   ;;  %s23798_s24 = inlined_call_operand.vmem [shape: f32[88,132], index: 24, kind: output, shape index: {}]  }
   0x1   :  { %23833 = sst [smem:[#allocation17_spill]] %s23774_s1  ;;  %15640 = vmatprep.subr.bf16.mxu0 %v23804_v0  ;;  %15644 = vmatprep.mubr.msk.bf16.mxu0 %vm18280_vm0, %v23804_v0  ;;  %vm140_vm2 = vcmask 64512   ;;  %vm222_vm3 = vcmask 523264   ;;  %vm296_vm4 = vcmask 130048   ;;  %v319_v34 = vlaneseq }
   0x2   :  { %23834 = sst [smem:[#allocation18_spill]] %s23775_s0  ;;  %s23842_s27 = sld [smem:[#allocation17_spill]]  ;;  %15648 = vmatprep.subr.mxu1 %v23804_v0  ;;  %15650 = vmatprep.mubr.msk.f32.mxu1 %vm18280_vm0, %v23804_v0  ;;  %vm317_vm5 = vcmask 392192   ;;  %vm1634_vm6 = vcmask 519168   ;;  %vm3193_vm7 = vcmask 1043456   ;;  %vm18287_vm8 = vmmov 1  }
   0x3   :  { %23835 = sst [smem:[#allocation19_spill]] %s23776_s3  ;;  %s23843_s1 = sld [smem:[#allocation18_spill]]  ;;  %v18480_v35 = vshrl.u32 %v319_v34, 7  ;;  %vm19467_vm9 = vmpackc.low %vm3193_vm7, %vm18287_vm8  ;;  %vm3183_vm10 = vcmask 97280   ;;  %vm4434_vm11 = vcmask 785408   ;;  %vm4607_vm12 = vcmask 259072  }
   0x4   :  { %23836 = sst [smem:[#allocation20_spill]] %s23777_s2  ;;  %s23844_s2 = sld [smem:[#allocation19_spill]]  ;;  %vm7162_vm13 = vcmask 1045504   ;;  %vm7143_vm14 = vcmask 179200   ;;  %vm9704_vm15 = vcmask 257024  }
   0x5   :  { %23837 = sst [smem:[#allocation21_spill]] %s23778_s6  ;;  %s23845_s6 = sld [smem:[#allocation20_spill]]  ;;  %23846 = vst [vmem:[#allocation2_spill] sm:$0xff] %v18480_v35  ;;  %v18483_v37 = vsub.s32 0, %v18480_v35 }
   0x6   :  { %23838 = sst [smem:[#allocation22_spill]] %s23779_s4  ;;  %s18283_s0 = smov 16  }
   0x7   :  { %23839 = sst [smem:[#allocation23_spill]] %s23780_s5  ;;  %s18284_s4 = smov 32  }
   0x8   :  { %23840 = sst [smem:[#allocation24_spill]] %s23781_s7  ;;  %v16855_v1 = vld [vmem:[%s23842_s27] sm:$0xff]   ;;  %v16856_v2 = vld [vmem:[%s23842_s27 + $0x8] sm:$0xff]   ;;  %s23847_s28 = sld [smem:[#allocation21_spill]] }
   0x9   :  { %23841 = sst [smem:[#allocation25_spill]] %s23782_s8  ;;  %15641 = vmatpush3.bf16.msra.mxu0 %v16855_v1  ;;  %v78_v3 = vld [vmem:[%s23843_s1] sm:$0xf]  ;;  %s23849_s25 = sld [smem:[#allocation23_spill]] }
   0xa   :  { %15642 = vmatprep.subr.bf16.mxu0 %v23804_v0  ;;  %v214_v4 = vld [vmem:[%s23844_s2] sm:$0xff]  ;;  %v215_v5 = vld [vmem:[%s23844_s2 + $0x8] sm:$0xff]  ;;  %v216_v8 = vld [vmem:[%s23844_s2 + $0x10] sm:$0xff] }
   0xb   :  { %v15978_v7 = vpack.c.bf16 %v215_v5, %v214_v4  ;;  %v217_v9 = vld [vmem:[%s23844_s2 + $0x18] sm:$0xff]  ;;  %v218_v11 = vld [vmem:[%s23844_s2 + $0x20] sm:$0xff]  ;;  %v219_v12 = vld [vmem:[%s23844_s2 + $0x28] sm:$0xff] }
   0xc   :  { %v15981_v10 = vpack.c.bf16 %v217_v9, %v216_v8  ;;  %v15984_v13 = vpack.c.bf16 %v219_v12, %v218_v11  ;;  %v220_v14 = vld [vmem:[%s23844_s2 + $0x30] sm:$0xff]  ;;  %v221_v15 = vld [vmem:[%s23844_s2 + $0x38] sm:$0xff]  ;;  %v139_v17 = vld [vmem:[%s23845_s6] sm:$0xff]  ;;  %s18282_s2 = smov 48   ;;  %s23848_s6 = sld [smem:[#allocation22_spill]] }
   0xd   :  { %15643 = vmatpush3.bf16.msra.mxu0 %v16856_v2  ;;  %v15987_v16 = vpack.c.bf16 %v221_v15, %v220_v14 }
   0xe   :  { %15989 = vmatprep.subr.bf16.mxu0 %v23810_v6  ;;  %v16859_v57 = vld [vmem:[%s23847_s28 + $0x4] ss:$12 sps:$4 sm:$0xff]   ;;  %v16857_v58 = vld [vmem:[%s23847_s28] ss:$12 sps:$4 sm:$0xff]   ;;  %v16860_v59 = vld [vmem:[%s23847_s28 + $0x8] ss:$12 sps:$4 sm:$0xff]  }
   0xf   :  { %v16863_v60 = vld [vmem:[%s23847_s28 + $0x1c] ss:$12 sps:$4 sm:$0xff]   ;;  %v16861_v62 = vld [vmem:[%s23847_s28 + $0x18] ss:$12 sps:$4 sm:$0xff]   ;;  %v16864_v63 = vld [vmem:[%s23847_s28 + $0x20] ss:$12 sps:$4 sm:$0xff]  }
  0x10   :  { %15645 = vmatmul.mubr.msk.bf16.vlgmr.msra.gmra.mrb[0].mxu0 %vm95_vm1, %v78_v3  ;;  %v16867_v1 = vld [vmem:[%s23847_s28 + $0x34] ss:$12 sps:$4 sm:$0xff]   ;;  %v16865_v4 = vld [vmem:[%s23847_s28 + $0x30] ss:$12 sps:$4 sm:$0xff]   ;;  %v16868_v5 = vld [vmem:[%s23847_s28 + $0x38] ss:$12 sps:$4 sm:$0xff]  }
  0x11   :  { %15688 = vmatprep.mubr.msk.f32.mxu0 %vm18280_vm0, %v23804_v0  ;;  %15991 = vmatpush3.bf16.msra.mxu0 %v15978_v7  ;;  %v410_v3 = vld [vmem:[%s23849_s25] sm:$0x1]  ;;  %v16869_v11 = vld [vmem:[%s23847_s28 + $0x48] ss:$12 sps:$4 sm:$0xff]   ;;  %v16872_v12 = vld [vmem:[%s23847_s28 + $0x50] ss:$12 sps:$4 sm:$0xff]  }
  0x12   :  { %15992 = vmatprep.subr.bf16.mxu0 %v23810_v6  ;;  %v406_v61 = vld [vmem:[%s23848_s6] sm:$0x1]  ;;  %v16875_v15 = vld [vmem:[%s23847_s28 + $0x64] ss:$12 sps:$4 sm:$0xff]   ;;  %s23850_s25 = sld [smem:[#allocation24_spill]] }
  0x15   :  { %15994 = vmatpush3.bf16.msra.mxu0 %v15981_v10 }
  0x16   :  { %15995 = vmatprep.subr.bf16.mxu0 %v23810_v6 }
  0x19   :  { %15997 = vmatpush3.bf16.msra.mxu0 %v15984_v13 }
  0x1a   :  { %15998 = vmatprep.subr.bf16.mxu0 %v23810_v6 }
  0x1d   :  { %16000 = vmatpush3.bf16.msra.mxu0 %v15987_v16 }
  0x1e   :  { %15691 = vmatprep.subr.bf16.mxu0 %v23804_v0 }
  0xe3   :  { %v133_v18 = vpop.f32.mrb[0].mxu0 }
  0xe4   :  { %v15646_v19 = vpop.f32.mrb[1].mxu0  ;;  %15649 = vmatpush3.msra.mxu1 %v133_v18 }
  0xe5   :  { %v136_v20 = vpop.f32.mrb[2].mxu0  ;;  %15651 = vmatmul.mubr.msk.f32.vlgmr.msra.gmra.mrb[0].mxu1 %vm140_vm2, %v139_v17  ;;  %15977 = vmatprep.subr.bf16.mxu1 %v23810_v6 }
  0xe6   :  { %v15647_v21 = vpop.f32.mrb[3].mxu0  ;;  %15979 = vmatpush3.bf16.msra.mxu1 %v15978_v7  ;;  %15669 = vmatprep.mubr.msk.f32.mxu1 %vm18280_vm0, %v23804_v0 }
  0xe7   :  { %15980 = vmatprep.subr.bf16.mxu1 %v23810_v6 }
  0xea   :  { %15982 = vmatpush3.bf16.msra.mxu1 %v15981_v10  ;;  %v16871_v10 = vld [vmem:[%s23847_s28 + $0x4c] ss:$12 sps:$4 sm:$0xff]  }
  0xeb   :  { %15983 = vmatprep.subr.bf16.mxu1 %v23810_v6 }
  0xee   :  { %15985 = vmatpush3.bf16.msra.mxu1 %v15984_v13 }
  0xef   :  { %15986 = vmatprep.subr.bf16.mxu1 %v23810_v6 }
  0xf2   :  { %15988 = vmatpush3.bf16.msra.mxu1 %v15987_v16  ;;  %v18285_v16 = vmov 0  }
  0xf3   :  { %542 = vmatprep.subr.bf16.mxu1 %v16859_v57 }
 0x1b8   :  { %v18472_v22 = vpop.f32.mrb[0].mxu1 }
 0x1b9   :  { %v15652_v23 = vpop.f32.mrb[1].mxu1  ;;  %15670 = vmatmul.mubr.msk.f32.vlgmr.msra.gmra.mrb[2].mxu1 %vm222_vm3, %v18472_v22 }
 0x1ba   :  { %543 = vmatpush1.bf16.msra.mxu1 %v16857_v58  ;;  %574 = vmatprep.mubr.bf16.mxu1 %v18285_v16 }
 0x1bb   :  { %544 = vmatprep.subr.bf16.mxu1 %v16863_v60 }
 0x1be   :  { %545 = vmatpush1.bf16.msra.mxu1 %v16861_v62 }
 0x1bf   :  { %546 = vmatprep.subr.bf16.mxu1 %v16867_v1 }
 0x1c2   :  { %547 = vmatpush1.bf16.msra.mxu1 %v16865_v4  ;;  %v16891_v4 = vld [vmem:[%s23847_s28 + $0xc4] ss:$12 sps:$4 sm:$0xff]  }
 0x1c3   :  { %548 = vmatprep.subr.bf16.mxu1 %v16871_v10  ;;  %v16896_v10 = vld [vmem:[%s23847_s28 + $0xe0] ss:$12 sps:$4 sm:$0xff]  }
 0x1c6   :  { %549 = vmatpush1.bf16.msra.mxu1 %v16869_v11  ;;  %v16893_v11 = vld [vmem:[%s23847_s28 + $0xd8] ss:$12 sps:$4 sm:$0xff]  }
 0x1c7   :  { %706 = vmatprep.subr.bf16.mxu1 %v16875_v15  ;;  %v16903_v15 = vld [vmem:[%s23847_s28 + $0x10c] ss:$12 sps:$4 sm:$0xff]  }
 0x28c   :  { %v292_v24 = vpop.f32.mrb[2].mxu1 }
 0x28d   :  { %v297_v25 = vsel %vm296_vm4, %v292_v24, 0.0  ;;  %v15671_v26 = vpop.f32.mrb[3].mxu1 }
 0x28e   :  { %v298_v27 = vrot.slane %v297_v25, 4 }
 0x290   :  { %v299_v28 = vadd.f32 %v298_v27, %v297_v25 }
 0x292   :  { %v300_v29 = vrot.slane %v299_v28, 2 }
 0x294   :  { %v301_v30 = vadd.f32 %v300_v29, %v299_v28 }
 0x296   :  { %v302_v31 = vrot.slane %v301_v30, 1 }
 0x298   :  { %v303_v32 = vadd.f32 %v302_v31, %v301_v30 }
 0x29a   :  { %v304_v33 = vmul.f32 0.03125, %v303_v32 }
 0x29c   :  { %312 = vrot.lane.b32.xlu1 %v304_v33, %s18282_s2  ;;  %306 = vrot.lane.b32.xlu0 %v304_v33, %s18283_s0 }
 0x2a0   :  { %309 = vrot.lane.b32.xlu0 %v304_v33, %s18284_s4 }
 0x30e   :  { %v307_v36 = vpop.permute.xlu0 %306  ;;  %v313_v40 = vpop.permute.xlu1 %312 }
 0x30f   :  { %v315_v38 = vsel %vm296_vm4, %v304_v33, %v307_v36  ;;  %v16873_v36 = vld [vmem:[%s23847_s28 + $0x60] ss:$12 sps:$4 sm:$0xff]  }
 0x312   :  { %v310_v39 = vpop.permute.xlu0 %309 }
 0x313   :  { %v316_v41 = vsel %vm95_vm1, %v315_v38, %v310_v39  ;;  %v16876_v38 = vld [vmem:[%s23847_s28 + $0x68] ss:$12 sps:$4 sm:$0xff]  }
 0x314   :  { %v318_v42 = vsel %vm317_vm5, %v316_v41, %v313_v40  ;;  %v16879_v40 = vld [vmem:[%s23847_s28 + $0x7c] ss:$12 sps:$4 sm:$0xff]   ;;  %v16880_v41 = vld [vmem:[%s23847_s28 + $0x80] ss:$12 sps:$4 sm:$0xff]  }
 0x315   :  { %v322_v43 = vrot.slane %v318_v42, %v18483_v37  ;;  %v16883_v42 = vld [vmem:[%s23847_s28 + $0x94] ss:$12 sps:$4 sm:$0xff]  }
 0x317   :  { %v323_v44 = vsub.f32 %v18472_v22, %v322_v43  ;;  %v16881_v43 = vld [vmem:[%s23847_s28 + $0x90] ss:$12 sps:$4 sm:$0xff]  }
 0x319   :  { %v324_v45 = vmul.f32 %v323_v44, %v323_v44  ;;  %v16884_v44 = vld [vmem:[%s23847_s28 + $0x98] ss:$12 sps:$4 sm:$0xff]  }
 0x31b   :  { %15689 = vmatmul.mubr.msk.f32.vlgmr.msra.gmra.mrb[4].mxu0 %vm222_vm3, %v324_v45  ;;  %v16887_v45 = vld [vmem:[%s23847_s28 + $0xac] ss:$12 sps:$4 sm:$0xff]  }
 0x31c   :  { %15699 = vmatprep.mubr.msk.bf16.mxu0 %vm18280_vm0, %v23804_v0  ;;  %15692 = vmatpush3.bf16.msra.mxu0 %v16860_v59  ;;  %v13285_v59 = vld [vmem:[%s23850_s25 + $0x18] sm:$0xf] }
 0x31d   :  { %15693 = vmatprep.subr.bf16.mxu0 %v23804_v0 }
 0x320   :  { %15694 = vmatpush3.bf16.msra.mxu0 %v16864_v63 }
 0x321   :  { %15695 = vmatprep.subr.bf16.mxu0 %v23804_v0 }
 0x324   :  { %15696 = vmatpush3.bf16.msra.mxu0 %v16868_v5  ;;  %v624_v5 = vld [vmem:[%s23850_s25 + $0x8] sm:$0xf] }
 0x325   :  { %15697 = vmatprep.subr.bf16.mxu0 %v23804_v0 }
 0x328   :  { %15698 = vmatpush3.bf16.msra.mxu0 %v16872_v12  ;;  %v16899_v12 = vld [vmem:[%s23847_s28 + $0xf4] ss:$12 sps:$4 sm:$0xff]  }
 0x329   :  { %15703 = vmatprep.subr.bf16.mxu0 %v23804_v0 }
 0x3ee   :  { %v394_v46 = vpop.f32.mrb[4].mxu0 }
 0x3ef   :  { %v398_v47 = vsel %vm296_vm4, %v394_v46, 0.0  ;;  %v15690_v48 = vpop.f32.mrb[5].mxu0  ;;  %v16885_v46 = vld [vmem:[%s23847_s28 + $0xa8] ss:$12 sps:$4 sm:$0xff]  }
 0x3f0   :  { %v399_v49 = vrot.slane %v398_v47, 4  ;;  %v13284_v48 = vld [vmem:[%s23850_s25 + $0x10] sm:$0xff] }
 0x3f2   :  { %v400_v50 = vadd.f32 %v399_v49, %v398_v47  ;;  %v16888_v47 = vld [vmem:[%s23847_s28 + $0xb0] ss:$12 sps:$4 sm:$0xff]  }
 0x3f4   :  { %v401_v51 = vrot.slane %v400_v50, 2 }
 0x3f6   :  { %v402_v52 = vadd.f32 %v401_v51, %v400_v50 }
 0x3f8   :  { %v403_v53 = vrot.slane %v402_v52, 1 }
 0x3fa   :  { %v404_v54 = vadd.f32 %v403_v53, %v402_v52 }
 0x3fc   :  { %v405_v55 = vmul.f32 0.03125, %v404_v54 }
 0x3fe   :  { %v407_v56 = vadd.f32 1e-05, %v405_v55 }
 0x400   :  { %18183 = vrsqrt.f32 %v407_v56 }
 0x40a   :  { %v18184_v2 = vpop.eup %18183 }
 0x40b   :  { %v409_v7 = vmul.f32 %v18184_v2, %v406_v61 }
 0x40d   :  { %v417_v8 = vrot.slane %v409_v7, %v18483_v37  ;;  %v411_v9 = vmul.f32 %v409_v7, %v304_v33 }
 0x40f   :  { %421 = vrot.lane.b32.xlu0 %v417_v8, %s18284_s4  ;;  %418 = vrot.lane.b32.xlu1 %v417_v8, %s18283_s0  ;;  %v412_v13 = vsub.f32 %v410_v3, %v411_v9  ;;  %v623_v3 = vld [vmem:[%s23850_s25] sm:$0xff]  ;;  %v16895_v9 = vld [vmem:[%s23847_s28 + $0xdc] ss:$12 sps:$4 sm:$0xff]  }
 0x411   :  { %v439_v14 = vrot.slane %v412_v13, %v18483_v37 }
 0x413   :  { %424 = vrot.lane.b32.xlu1 %v417_v8, %s18282_s2  ;;  %440 = vrot.lane.b32.xlu0 %v439_v14, %s18283_s0  ;;  %v16889_v8 = vld [vmem:[%s23847_s28 + $0xc0] ss:$12 sps:$4 sm:$0xff]  }
 0x417   :  { %443 = vrot.lane.b32.xlu1 %v439_v14, %s18284_s4  ;;  %446 = vrot.lane.b32.xlu0 %v439_v14, %s18282_s2  ;;  %v16897_v14 = vld [vmem:[%s23847_s28 + $0xf0] ss:$12 sps:$4 sm:$0xff]  }
 0x481   :  { %v422_v17 = vpop.permute.xlu0 %421  ;;  %v419_v18 = vpop.permute.xlu1 %418 }
 0x482   :  { %v427_v19 = vsel %vm296_vm4, %v409_v7, %v419_v18  ;;  %v16892_v7 = vld [vmem:[%s23847_s28 + $0xc8] ss:$12 sps:$4 sm:$0xff]  }
 0x483   :  { %v428_v20 = vsel %vm95_vm1, %v427_v19, %v422_v17  ;;  %v16904_v17 = vld [vmem:[%s23847_s28 + $0x110] ss:$12 sps:$4 sm:$0xff]   ;;  %v16901_v18 = vld [vmem:[%s23847_s28 + $0x108] ss:$12 sps:$4 sm:$0xff]   ;;  %v13324_v19 = vld [vmem:[%s23850_s25 + $0x20] sm:$0xff] }
 0x485   :  { %v425_v21 = vpop.permute.xlu1 %424  ;;  %v441_v23 = vpop.permute.xlu0 %440 }
 0x486   :  { %v429_v24 = vsel %vm317_vm5, %v428_v20, %v425_v21  ;;  %v449_v26 = vsel %vm296_vm4, %v412_v13, %v441_v23  ;;  %v16900_v13 = vld [vmem:[%s23847_s28 + $0xf8] ss:$12 sps:$4 sm:$0xff]   ;;  %v13325_v23 = vld [vmem:[%s23850_s25 + $0x28] sm:$0xf] }
 0x487   :  { %v433_v25 = vrot.slane %v429_v24, %v18483_v37 }
 0x489   :  { %v444_v27 = vpop.permute.xlu1 %443  ;;  %v447_v28 = vpop.permute.xlu0 %446  ;;  %v434_v31 = vmul.f32 %v433_v25, %v18472_v22  ;;  %v16877_v22 = vld [vmem:[%s23847_s28 + $0x78] ss:$12 sps:$4 sm:$0xff]   ;;  %s23851_s28 = sld [smem:[#allocation25_spill]] }
 0x48a   :  { %v450_v29 = vsel %vm95_vm1, %v449_v26, %v444_v27 }
 0x48b   :  { %v451_v30 = vsel %vm317_vm5, %v450_v29, %v447_v28 }
 0x48c   :  { %v455_v32 = vrot.slane %v451_v30, %v18483_v37 }
 0x48e   :  { %v456_v33 = vadd.f32 %v455_v32, %v434_v31 }
 0x48f   :  { %v1467_v20 = vld [vmem:[%s23851_s28 + $0x100] sm:$0xff]  ;;  %v1468_v21 = vld [vmem:[%s23851_s28 + $0x108] sm:$0xff]  ;;  %v1469_v30 = vld [vmem:[%s23851_s28 + $0x110] sm:$0xff] }
 0x490   :  { %v457_v34 = vmax.f32 %v456_v33, 0.0  ;;  %v1451_v24 = vld [vmem:[%s23851_s28 + $0x80] sm:$0xff]  ;;  %v1452_v25 = vld [vmem:[%s23851_s28 + $0x88] sm:$0xff]  ;;  %v18704_v28 = vpack.c.bf16 %v1468_v21, %v1467_v20  ;;  %v1470_v31 = vld [vmem:[%s23851_s28 + $0x118] sm:$0xff] }
 0x491   :  { %v1435_v26 = vld [vmem:[%s23851_s28] sm:$0xff]  ;;  %v1436_v29 = vld [vmem:[%s23851_s28 + $0x8] sm:$0xff] }
 0x492   :  { %v18567_v39 = vpack.c.bf16 %v457_v34, %v457_v34  ;;  %v1453_v34 = vld [vmem:[%s23851_s28 + $0x90] sm:$0xff]  ;;  %v1479_v20 = vld [vmem:[%s23851_s28 + $0x160] sm:$0xff]  ;;  %v1480_v21 = vld [vmem:[%s23851_s28 + $0x168] sm:$0xff] }
 0x494   :  { %13252 = vmatmul.mubr.msk.bf16.vlgmr.msra.gmra.mrb[4].mxu1 %vm222_vm3, %v18567_v39  ;;  %15700 = vmatmul.mubr.msk.bf16.vlgmr.msra.gmra.mrb[8].mxu0 %vm222_vm3, %v18567_v39 }
 0x495   :  { %707 = vmatpush1.bf16.msra.mxu1 %v16873_v36  ;;  %15704 = vmatpush3.bf16.msra.mxu0 %v16876_v38  ;;  %v1454_v36 = vld [vmem:[%s23851_s28 + $0x98] sm:$0xff] }
 0x496   :  { %708 = vmatprep.subr.bf16.mxu1 %v16879_v40  ;;  %15705 = vmatprep.subr.bf16.mxu0 %v23804_v0  ;;  %v18721_v40 = vpack.c.bf16 %v1452_v25, %v1451_v24  ;;  %v1445_v24 = vld [vmem:[%s23851_s28 + $0x50] sm:$0xff]  ;;  %v1446_v25 = vld [vmem:[%s23851_s28 + $0x58] sm:$0xff] }
 0x497   :  { %738 = vmatprep.mubr.bf16.mxu1 %v18285_v16  ;;  %15711 = vmatprep.mubr.msk.bf16.mxu0 %vm18280_vm0, %v23804_v0 }
 0x499   :  { %709 = vmatpush1.bf16.msra.mxu1 %v16877_v22  ;;  %15706 = vmatpush3.bf16.msra.mxu0 %v16880_v41 }
 0x49a   :  { %710 = vmatprep.subr.bf16.mxu1 %v16883_v42  ;;  %15707 = vmatprep.subr.bf16.mxu0 %v23804_v0  ;;  %v18724_v42 = vpack.c.bf16 %v1436_v29, %v1435_v26  ;;  %v1463_v26 = vld [vmem:[%s23851_s28 + $0xe0] sm:$0xff]  ;;  %v18867_v29 = vpack.c.bf16 %v1480_v21, %v1479_v20 }
 0x49d   :  { %711 = vmatpush1.bf16.msra.mxu1 %v16881_v43  ;;  %15708 = vmatpush3.bf16.msra.mxu0 %v16884_v44  ;;  %v18726_v43 = vpack.c.bf16 %v1470_v31, %v1469_v30  ;;  %v1471_v44 = vld [vmem:[%s23851_s28 + $0x120] sm:$0xff]  ;;  %v16023_v30 = vpack.c.bf16 %v1446_v25, %v1445_v24  ;;  %v1481_v31 = vld [vmem:[%s23851_s28 + $0x170] sm:$0xff] }
 0x49e   :  { %712 = vmatprep.subr.bf16.mxu1 %v16887_v45  ;;  %15709 = vmatprep.subr.bf16.mxu0 %v23804_v0  ;;  %v1472_v45 = vld [vmem:[%s23851_s28 + $0x128] sm:$0xff] }
 0x49f   :  { %v16905_v25 = vld [vmem:[%s23783_s11] ss:$12 sps:$4 sm:$0xff]  }
 0x4a1   :  { %713 = vmatpush1.bf16.msra.mxu1 %v16885_v46  ;;  %15710 = vmatpush3.bf16.msra.mxu0 %v16888_v47  ;;  %v18735_v47 = vpack.c.bf16 %v1454_v36, %v1453_v34  ;;  %v1447_v34 = vld [vmem:[%s23851_s28 + $0x60] sm:$0xff]  ;;  %v1448_v36 = vld [vmem:[%s23851_s28 + $0x68] sm:$0xff] }
 0x4a4   :  { %13282 = vmatmul.mubr.msk.bf16.vlgmr.msra.gmra.mrb[8].mxu1 %vm222_vm3, %v18567_v39  ;;  %15712 = vmatmul.mubr.msk.bf16.vlgmr.msra.gmra.mrb[12].mxu0 %vm222_vm3, %v18567_v39 }
 0x4a5   :  { %860 = vmatprep.mubr.f32.mxu1 %v23804_v0  ;;  %15717 = vmatprep.mubr.msk.f32.mxu0 %vm140_vm2, %v13284_v48 }
 0x567   :  { %v576_v49 = vpop.f32.mrb[4].mxu1  ;;  %v617_v50 = vpop.f32.mrb[8].mxu0 }
 0x568   :  { %v578_v51 = vpop.f32.mrb[5].mxu1  ;;  %v15701_v52 = vpop.f32.mrb[9].mxu0 }
 0x569   :  { %v580_v53 = vpop.f32.mrb[6].mxu1  ;;  %v620_v54 = vpop.f32.mrb[10].mxu0  ;;  %v18753_v52 = vpack.c.bf16 %v1472_v45, %v1471_v44  ;;  %v1449_v45 = vld [vmem:[%s23851_s28 + $0x70] sm:$0xff] }
 0x56a   :  { %v581_v55 = vpop.f32.mrb[7].mxu1  ;;  %v15702_v56 = vpop.f32.mrb[11].mxu0  ;;  %v1473_v54 = vld [vmem:[%s23851_s28 + $0x130] sm:$0xff] }
 0x56b   :  { %v1474_v55 = vld [vmem:[%s23851_s28 + $0x138] sm:$0xff] }
 0x577   :  { %v740_v57 = vpop.f32.mrb[8].mxu1  ;;  %v781_v58 = vpop.f32.mrb[12].mxu0 }
 0x578   :  { %v742_v60 = vpop.f32.mrb[9].mxu1  ;;  %v15713_v61 = vpop.f32.mrb[13].mxu0  ;;  %15715 = vmatprep.subr.mxu0 %v781_v58 }
 0x579   :  { %v744_v62 = vpop.f32.mrb[10].mxu1  ;;  %v784_v63 = vpop.f32.mrb[14].mxu0  ;;  %796 = vmatprep.subr.mxu1 %v742_v60  ;;  %15716 = vmatpush3.msra.mxu0 %v781_v58  ;;  %v1440_v58 = vld [vmem:[%s23851_s28 + $0x28] sm:$0xff]  ;;  %v1458_v60 = vld [vmem:[%s23851_s28 + $0xb8] sm:$0xff]  ;;  %v18783_v61 = vpack.c.bf16 %v1474_v55, %v1473_v54 }
 0x57a   :  { %v745_v1 = vpop.f32.mrb[11].mxu1  ;;  %v15714_v2 = vpop.f32.mrb[15].mxu0  ;;  %797 = vmatpush1.msra.mxu1 %v740_v57  ;;  %15718 = vmatmul.mubr.msk.f32.vlgmr.msra.gmra.mrb[6].mxu0 %vm140_vm2, %v13285_v59  ;;  %v1439_v57 = vld [vmem:[%s23851_s28 + $0x20] sm:$0xff] }
 0x57b   :  { %15720 = vmatprep.subr.mxu0 %v617_v50  ;;  %13286 = vmatmul.mubr.msk.f32.vlgmr.msra.gmra.mrb[12].mxu1 %vm140_vm2, %v13284_v48  ;;  %v1437_v48 = vld [vmem:[%s23851_s28 + $0x10] sm:$0xff]  ;;  %v18786_v62 = vpack.c.bf16 %v1440_v58, %v1439_v57  ;;  %v1475_v63 = vld [vmem:[%s23851_s28 + $0x140] sm:$0xff]  ;;  %v1476_v1 = vld [vmem:[%s23851_s28 + $0x148] sm:$0xff] }
 0x57c   :  { %954 = vmatprep.subr.mxu1 %v578_v51  ;;  %15721 = vmatpush3.msra.mxu0 %v617_v50  ;;  %v1455_v50 = vld [vmem:[%s23851_s28 + $0xa0] sm:$0xff]  ;;  %v1456_v51 = vld [vmem:[%s23851_s28 + $0xa8] sm:$0xff] }
 0x57d   :  { %955 = vmatpush1.msra.mxu1 %v576_v49  ;;  %866 = vmatprep.mubr.f32.mxu1 %v23804_v0  ;;  %v1438_v49 = vld [vmem:[%s23851_s28 + $0x18] sm:$0xff]  ;;  %v18766_v56 = vpack.c.bf16 %v1456_v51, %v1455_v50 }
 0x57e   :  { %15722 = vmatprep.mubr.msk.f32.mxu0 %vm140_vm2, %v623_v3  ;;  %15725 = vmatprep.subr.bf16.mxu0 %v23804_v0  ;;  %v18757_v53 = vpack.c.bf16 %v1438_v49, %v1437_v48 }
 0x57f   :  { %13287 = vmatmul.mubr.msk.f32.gmra.mrb[14].mxu1 %vm140_vm2, %v13285_v59  ;;  %1187 = vmatprep.subr.bf16.mxu1 %v16891_v4  ;;  %v1457_v59 = vld [vmem:[%s23851_s28 + $0xb0] sm:$0xff]  ;;  %v1442_v4 = vld [vmem:[%s23851_s28 + $0x38] sm:$0xff] }
 0x580   :  { %1018 = vmatprep.mubr.f32.mxu1 %v23804_v0  ;;  %v18795_v2 = vpack.c.bf16 %v1458_v60, %v1457_v59 }
 0x582   :  { %15723 = vmatmul.mubr.msk.f32.vlgmr.msra.gmra.mrb[6].mxu0 %vm140_vm2, %v624_v5 }
 0x583   :  { %15726 = vmatpush3.bf16.msra.mxu0 %v16892_v7  ;;  %13290 = vmatmul.mubr.msk.f32.vlgmr.msra.gmra.mrb[12].mxu1 %vm140_vm2, %v623_v3  ;;  %v1441_v3 = vld [vmem:[%s23851_s28 + $0x30] sm:$0xff]  ;;  %v1460_v7 = vld [vmem:[%s23851_s28 + $0xc8] sm:$0xff] }
 0x584   :  { %1188 = vmatpush1.bf16.msra.mxu1 %v16889_v8  ;;  %15727 = vmatprep.subr.bf16.mxu0 %v23804_v0  ;;  %v18811_v8 = vpack.c.bf16 %v1476_v1, %v1475_v63 }
 0x585   :  { %1189 = vmatprep.subr.bf16.mxu1 %v16895_v9  ;;  %1024 = vmatprep.mubr.f32.mxu1 %v23804_v0  ;;  %v18814_v9 = vpack.c.bf16 %v1442_v4, %v1441_v3 }
 0x586   :  { %15733 = vmatprep.mubr.msk.bf16.mxu0 %vm18280_vm0, %v23804_v0 }
 0x587   :  { %15728 = vmatpush3.bf16.msra.mxu0 %v16896_v10  ;;  %13291 = vmatmul.mubr.msk.f32.gmra.mrb[14].mxu1 %vm140_vm2, %v624_v5  ;;  %v1459_v5 = vld [vmem:[%s23851_s28 + $0xc0] sm:$0xff]  ;;  %v1477_v10 = vld [vmem:[%s23851_s28 + $0x150] sm:$0xff] }
 0x588   :  { %1190 = vmatpush1.bf16.msra.mxu1 %v16893_v11  ;;  %15729 = vmatprep.subr.bf16.mxu0 %v23804_v0  ;;  %v1478_v11 = vld [vmem:[%s23851_s28 + $0x158] sm:$0xff] }
 0x589   :  { %1191 = vmatprep.subr.bf16.mxu1 %v16899_v12  ;;  %1219 = vmatprep.mubr.bf16.mxu1 %v18285_v16  ;;  %v18823_v12 = vpack.c.bf16 %v1460_v7, %v1459_v5 }
 0x58b   :  { %15730 = vmatpush3.bf16.msra.mxu0 %v16900_v13  ;;  %v1443_v13 = vld [vmem:[%s23851_s28 + $0x40] sm:$0xff] }
 0x58c   :  { %1192 = vmatpush1.bf16.msra.mxu1 %v16897_v14  ;;  %15731 = vmatprep.subr.bf16.mxu0 %v23804_v0  ;;  %v1444_v14 = vld [vmem:[%s23851_s28 + $0x48] sm:$0xff] }
 0x58d   :  { %1193 = vmatprep.subr.bf16.mxu1 %v16903_v15  ;;  %v1461_v15 = vld [vmem:[%s23851_s28 + $0xd0] sm:$0xff] }
 0x58f   :  { %15732 = vmatpush3.bf16.msra.mxu0 %v16904_v17  ;;  %v1462_v17 = vld [vmem:[%s23851_s28 + $0xd8] sm:$0xff] }
 0x590   :  { %1194 = vmatpush1.bf16.msra.mxu1 %v16901_v18  ;;  %v18839_v18 = vpack.c.bf16 %v1478_v11, %v1477_v10 }
 0x592   :  { %15734 = vmatmul.mubr.msk.bf16.vlgmr.msra.gmra.mrb[16].mxu0 %vm222_vm3, %v18567_v39 }
 0x593   :  { %13322 = vmatmul.mubr.msk.bf16.vlgmr.msra.gmra.mrb[16].mxu1 %vm222_vm3, %v18567_v39  ;;  %15739 = vmatprep.mubr.msk.f32.mxu0 %vm140_vm2, %v13324_v19 }
 0x594   :  { %1341 = vmatprep.mubr.f32.mxu1 %v23804_v0 }
 0x665   :  { %v1262_v27 = vpop.f32.mrb[16].mxu0 }
 0x666   :  { %v1221_v32 = vpop.f32.mrb[16].mxu1  ;;  %v15735_v33 = vpop.f32.mrb[17].mxu0  ;;  %15737 = vmatprep.subr.mxu0 %v1262_v27 }
 0x667   :  { %v1223_v38 = vpop.f32.mrb[17].mxu1  ;;  %v1265_v39 = vpop.f32.mrb[18].mxu0  ;;  %15738 = vmatpush3.msra.mxu0 %v1262_v27  ;;  %v1464_v27 = vld [vmem:[%s23851_s28 + $0xe8] sm:$0xff] }
 0x668   :  { %v1225_v22 = vpop.f32.mrb[18].mxu1  ;;  %v15736_v41 = vpop.f32.mrb[19].mxu0  ;;  %1277 = vmatprep.subr.mxu1 %v1223_v38  ;;  %15740 = vmatmul.mubr.msk.f32.vlgmr.msra.gmra.mrb[6].mxu0 %vm140_vm2, %v13325_v23  ;;  %v16025_v33 = vpack.c.bf16 %v1464_v27, %v1463_v26  ;;  %v16027_v39 = vpack.c.bf16 %v1448_v36, %v1447_v34  ;;  %v16907_v26 = vld [vmem:[%s23783_s11 + $0x4] ss:$12 sps:$4 sm:$0xff]   ;;  %v16910_v27 = vld [vmem:[%s23783_s11 + $0x1c] ss:$12 sps:$4 sm:$0xff]  }
 0x669   :  { %v1226_v46 = vpop.f32.mrb[19].mxu1  ;;  %1278 = vmatpush1.msra.mxu1 %v1221_v32  ;;  %16034 = vmatprep.subr.bf16.mxu0 %v18704_v28  ;;  %v1482_v32 = vld [vmem:[%s23851_s28 + $0x178] sm:$0xff]  ;;  %v1465_v22 = vld [vmem:[%s23851_s28 + $0xf0] sm:$0xff] }
 0x66a   :  { %13326 = vmatmul.mubr.msk.f32.vlgmr.msra.gmra.mrb[12].mxu1 %vm140_vm2, %v13324_v19  ;;  %16036 = vmatpush3.bf16.msra.mxu0 %v18704_v28  ;;  %v18842_v19 = vpack.c.bf16 %v1444_v14, %v1443_v13  ;;  %v16061_v38 = vpack.c.bf16 %v1482_v32, %v1481_v31  ;;  %v1466_v41 = vld [vmem:[%s23851_s28 + $0xf8] sm:$0xff]  ;;  %v16919_v34 = vld [vmem:[%s23783_s11 + $0x64] ss:$12 sps:$4 sm:$0xff]   ;;  %v16932_v36 = vld [vmem:[%s23783_s11 + $0xc8] ss:$12 sps:$4 sm:$0xff]  }
 0x66b   :  { %1347 = vmatprep.mubr.f32.mxu1 %v23804_v0  ;;  %16002 = vmatprep.subr.bf16.mxu1 %v18721_v40  ;;  %v16029_v44 = vpack.c.bf16 %v1466_v41, %v1465_v22  ;;  %v1450_v46 = vld [vmem:[%s23851_s28 + $0x78] sm:$0xff]  ;;  %s18286_s28 = smov 64   ;;  %v16937_v41 = vld [vmem:[%s23783_s11 + $0xe0] ss:$12 sps:$4 sm:$0xff]  }
 0x66c   :  { %16004 = vmatpush3.bf16.msra.mxu1 %v18724_v42  ;;  %16038 = vmatprep.subr.bf16.mxu0 %v18726_v43  ;;  %v16031_v48 = vpack.c.bf16 %v1450_v46, %v1449_v45  ;;  %v16911_v31 = vld [vmem:[%s23783_s11 + $0x30] ss:$12 sps:$4 sm:$0xff]   ;;  %v16916_v32 = vld [vmem:[%s23783_s11 + $0x4c] ss:$12 sps:$4 sm:$0xff]  }
 0x66d   :  { %16006 = vmatprep.subr.bf16.mxu1 %v18735_v47  ;;  %v16922_v22 = vld [vmem:[%s23783_s11 + $0x7c] ss:$12 sps:$4 sm:$0xff]   ;;  %v16920_v45 = vld [vmem:[%s23783_s11 + $0x78] ss:$12 sps:$4 sm:$0xff]  }
 0x66e   :  { %13327 = vmatmul.mubr.msk.f32.gmra.mrb[14].mxu1 %vm140_vm2, %v13325_v23  ;;  %16040 = vmatpush3.bf16.msra.mxu0 %v18726_v43  ;;  %v18851_v23 = vpack.c.bf16 %v1462_v17, %v1461_v15  ;;  %v16942_v46 = vld [vmem:[%s23783_s11 + $0xf8] ss:$12 sps:$4 sm:$0xff]  }
 0x66f   :  { %16042 = vmatprep.subr.bf16.mxu0 %v18753_v52 }
 0x670   :  { %16008 = vmatpush3.bf16.msra.mxu1 %v18757_v53 }
 0x671   :  { %16010 = vmatprep.subr.bf16.mxu1 %v18766_v56 }
 0x672   :  { %16044 = vmatpush3.bf16.msra.mxu0 %v18753_v52 }
 0x673   :  { %16046 = vmatprep.subr.bf16.mxu0 %v18783_v61 }
 0x674   :  { %16012 = vmatpush3.bf16.msra.mxu1 %v18786_v62 }
 0x675   :  { %16014 = vmatprep.subr.bf16.mxu1 %v18795_v2 }
 0x676   :  { %16048 = vmatpush3.bf16.msra.mxu0 %v18783_v61 }
 0x677   :  { %16050 = vmatprep.subr.bf16.mxu0 %v18811_v8 }
 0x678   :  { %16016 = vmatpush3.bf16.msra.mxu1 %v18814_v9 }
 0x679   :  { %16018 = vmatprep.subr.bf16.mxu1 %v18823_v12 }
 0x67a   :  { %16052 = vmatpush3.bf16.msra.mxu0 %v18811_v8 }
 0x67b   :  { %16054 = vmatprep.subr.bf16.mxu0 %v18839_v18 }
 0x67c   :  { %16020 = vmatpush3.bf16.msra.mxu1 %v18842_v19 }
 0x67d   :  { %16022 = vmatprep.subr.bf16.mxu1 %v18851_v23 }
 0x67e   :  { %16056 = vmatpush3.bf16.msra.mxu0 %v18839_v18 }
 0x67f   :  { %16058 = vmatprep.subr.bf16.mxu0 %v18867_v29 }
 0x680   :  { %16024 = vmatpush3.bf16.msra.mxu1 %v16023_v30 }
 0x681   :  { %16026 = vmatprep.subr.bf16.mxu1 %v16025_v33 }
 0x682   :  { %16060 = vmatpush3.bf16.msra.mxu0 %v18867_v29 }
 0x683   :  { %16062 = vmatprep.subr.bf16.mxu0 %v16061_v38 }
 0x684   :  { %16028 = vmatpush3.bf16.msra.mxu1 %v16027_v39 }
 0x685   :  { %16030 = vmatprep.subr.bf16.mxu1 %v16029_v44 }
 0x686   :  { %16064 = vmatpush3.bf16.msra.mxu0 %v16061_v38 }
 0x687   :  { %16098 = vmatprep.subr.bf16.mxu0 %v18704_v28 }
 0x688   :  { %16032 = vmatpush3.bf16.msra.mxu1 %v16031_v48 }
 0x689   :  { %16066 = vmatprep.subr.bf16.mxu1 %v18721_v40 }
 0x73b   :  { %v18900_v49 = vpop.f32.mrb[6].mxu0 }
 0x73c   :  { %v18902_v50 = vpop.f32.mrb[7].mxu0 }
 0x73d   :  { %v18904_v51 = vpop.f32.mrb[12].mxu1  ;;  %15774 = vmatprep.mubr.f32.mxu0 %v18902_v50 }
 0x73e   :  { %v18907_v54 = vpop.f32.mrb[13].mxu1  ;;  %15775 = vmatmul.mubr.f32.vlgmr.msra.gmra.mrb[20].mxu0 %v18900_v49 }
 0x73f   :  { %1547 = vmatprep.mubr.f32.mxu1 %v18907_v54  ;;  %16100 = vmatpush3.bf16.msra.mxu0 %v18704_v28 }
 0x740   :  { %1548 = vmatmul.mubr.f32.vlgmr.msra.gmra.mrb[20].mxu1 %v18904_v51  ;;  %16102 = vmatprep.subr.bf16.mxu0 %v18726_v43 }
 0x741   :  { %v18914_v40 = vpop.f32.mrb[14].mxu1  ;;  %16068 = vmatpush3.bf16.msra.mxu1 %v18724_v42 }
 0x742   :  { %v18917_v55 = vpop.f32.mrb[15].mxu1  ;;  %16070 = vmatprep.subr.bf16.mxu1 %v18735_v47 }
 0x743   :  { %1552 = vmatprep.mubr.f32.mxu1 %v18917_v55  ;;  %16104 = vmatpush3.bf16.msra.mxu0 %v18726_v43 }
 0x744   :  { %1553 = vmatmul.mubr.f32.gmra.mrb[22].mxu1 %v18914_v40  ;;  %16106 = vmatprep.subr.bf16.mxu0 %v18753_v52 }
 0x745   :  { %16072 = vmatpush3.bf16.msra.mxu1 %v18757_v53 }
 0x746   :  { %16074 = vmatprep.subr.bf16.mxu1 %v18766_v56 }
 0x747   :  { %16108 = vmatpush3.bf16.msra.mxu0 %v18753_v52 }
 0x748   :  { %16110 = vmatprep.subr.bf16.mxu0 %v18783_v61 }
 0x749   :  { %16076 = vmatpush3.bf16.msra.mxu1 %v18786_v62 }
 0x74a   :  { %16078 = vmatprep.subr.bf16.mxu1 %v18795_v2 }
 0x74b   :  { %16112 = vmatpush3.bf16.msra.mxu0 %v18783_v61 }
 0x74c   :  { %16114 = vmatprep.subr.bf16.mxu0 %v18811_v8 }
 0x74d   :  { %16080 = vmatpush3.bf16.msra.mxu1 %v18814_v9 }
 0x74e   :  { %16082 = vmatprep.subr.bf16.mxu1 %v18823_v12 }
 0x74f   :  { %16116 = vmatpush3.bf16.msra.mxu0 %v18811_v8 }
 0x750   :  { %16118 = vmatprep.subr.bf16.mxu0 %v18839_v18 }
 0x751   :  { %16084 = vmatpush3.bf16.msra.mxu1 %v18842_v19 }
 0x752   :  { %16086 = vmatprep.subr.bf16.mxu1 %v18851_v23 }
 0x753   :  { %16120 = vmatpush3.bf16.msra.mxu0 %v18839_v18 }
 0x754   :  { %16122 = vmatprep.subr.bf16.mxu0 %v18867_v29 }
 0x755   :  { %16088 = vmatpush3.bf16.msra.mxu1 %v16023_v30  ;;  %v16913_v30 = vld [vmem:[%s23783_s11 + $0x34] ss:$12 sps:$4 sm:$0xff]  }
 0x756   :  { %16090 = vmatprep.subr.bf16.mxu1 %v16025_v33  ;;  %v16914_v33 = vld [vmem:[%s23783_s11 + $0x48] ss:$12 sps:$4 sm:$0xff]  }
 0x757   :  { %16124 = vmatpush3.bf16.msra.mxu0 %v18867_v29  ;;  %v16908_v29 = vld [vmem:[%s23783_s11 + $0x18] ss:$12 sps:$4 sm:$0xff]  }
 0x758   :  { %16126 = vmatprep.subr.bf16.mxu0 %v16061_v38 }
 0x759   :  { %16092 = vmatpush3.bf16.msra.mxu1 %v16027_v39  ;;  %v16917_v39 = vld [vmem:[%s23783_s11 + $0x60] ss:$12 sps:$4 sm:$0xff]  }
 0x75a   :  { %16094 = vmatprep.subr.bf16.mxu1 %v16029_v44  ;;  %v16938_v44 = vld [vmem:[%s23783_s11 + $0x20] ss:$12 sps:$4 sm:$0xff]  }
 0x75b   :  { %16128 = vmatpush3.bf16.msra.mxu0 %v16061_v38  ;;  %v16933_v38 = vld [vmem:[%s23783_s11 + $0x8] ss:$12 sps:$4 sm:$0xff]  }
 0x75c   :  { %15220 = vmatprep.subr.bf16.mxu0 %v16932_v36  ;;  %v16961_v36 = vld [vmem:[%s23783_s11 + $0x154] ss:$12 sps:$4 sm:$0xff]  }
 0x75d   :  { %16096 = vmatpush3.bf16.msra.mxu1 %v16031_v48  ;;  %v16943_v48 = vld [vmem:[%s23783_s11 + $0x38] ss:$12 sps:$4 sm:$0xff]  }
 0x75e   :  { %2359 = vmatprep.subr.bf16.mxu1 %v16907_v26 }
 0x811   :  { %v15776_v28 = vpop.f32.mrb[20].mxu0 }
 0x812   :  { %v1624_v42 = vpop.f32.mrb[21].mxu0 }
 0x813   :  { %v15140_v43 = vpop.f32.mrb[20].mxu1 }
 0x814   :  { %v15141_v47 = vpop.f32.mrb[21].mxu1 }
 0x815   :  { %v15142_v52 = vadd.f32 %v15141_v47, %v15140_v43  ;;  %v16948_v43 = vld [vmem:[%s23783_s11 + $0x50] ss:$12 sps:$4 sm:$0xff]  }
 0x816   :  { %v16923_v47 = vld [vmem:[%s23783_s11 + $0x90] ss:$12 sps:$4 sm:$0xff]  }
 0x817   :  { %v1625_v53 = vadd.f32 %v15142_v52, %v1624_v42  ;;  %v15143_v56 = vpop.f32.mrb[22].mxu1  ;;  %v16947_v42 = vld [vmem:[%s23783_s11 + $0x110] ss:$12 sps:$4 sm:$0xff]   ;;  %v16928_v52 = vld [vmem:[%s23783_s11 + $0xac] ss:$12 sps:$4 sm:$0xff]  }
 0x818   :  { %v15144_v57 = vpop.f32.mrb[23].mxu1 }
 0x819   :  { %v15145_v58 = vadd.f32 %v15144_v57, %v15143_v56  ;;  %v1633_v60 = vsel %vm222_vm3, %v1625_v53, 0.0  ;;  %v16926_v53 = vld [vmem:[%s23783_s11 + $0xa8] ss:$12 sps:$4 sm:$0xff]   ;;  %v16931_v57 = vld [vmem:[%s23783_s11 + $0xc4] ss:$12 sps:$4 sm:$0xff]  }
 0x81a   :  { %v16952_v56 = vld [vmem:[%s23783_s11 + $0x128] ss:$12 sps:$4 sm:$0xff]  }
 0x81b   :  { %v1630_v59 = vadd.f32 %v15776_v28, %v15145_v58  ;;  %v16925_v28 = vld [vmem:[%s23783_s11 + $0x94] ss:$12 sps:$4 sm:$0xff]  }
 0x81c   :  { %v16953_v58 = vld [vmem:[%s23783_s11 + $0x68] ss:$12 sps:$4 sm:$0xff]  }
 0x81d   :  { %v1635_v61 = vsel %vm1634_vm6, %v1630_v59, 0.0  ;;  %v16929_v59 = vld [vmem:[%s23783_s11 + $0xc0] ss:$12 sps:$4 sm:$0xff]  }
 0x81e   :  { %v1636_v62 = vadd.f32 %v1635_v61, %v1633_v60  ;;  %v16936_v60 = vld [vmem:[%s23783_s11 + $0xdc] ss:$12 sps:$4 sm:$0xff]   ;;  %v16934_v61 = vld [vmem:[%s23783_s11 + $0xd8] ss:$12 sps:$4 sm:$0xff]  }
 0x820   :  { %v1637_v63 = vrot.slane %v1636_v62, 4 }
 0x822   :  { %v1638_v1 = vadd.f32 %v1637_v63, %v1636_v62  ;;  %v16941_v62 = vld [vmem:[%s23783_s11 + $0xf4] ss:$12 sps:$4 sm:$0xff]   ;;  %v16939_v63 = vld [vmem:[%s23783_s11 + $0xf0] ss:$12 sps:$4 sm:$0xff]  }
 0x824   :  { %v1639_v2 = vrot.slane %v1638_v1, 2 }
 0x826   :  { %v1640_v3 = vadd.f32 %v1639_v2, %v1638_v1  ;;  %v16946_v1 = vld [vmem:[%s23783_s11 + $0x10c] ss:$12 sps:$4 sm:$0xff]   ;;  %v16944_v2 = vld [vmem:[%s23783_s11 + $0x108] ss:$12 sps:$4 sm:$0xff]  }
 0x828   :  { %v1641_v4 = vrot.slane %v1640_v3, 1 }
 0x82a   :  { %v1642_v5 = vadd.f32 %v1641_v4, %v1640_v3  ;;  %v16951_v3 = vld [vmem:[%s23783_s11 + $0x124] ss:$12 sps:$4 sm:$0xff]   ;;  %v16949_v4 = vld [vmem:[%s23783_s11 + $0x120] ss:$12 sps:$4 sm:$0xff]  }
 0x82c   :  { %v18943_v7 = vmul.f32 0.013888889, %v1642_v5 }
 0x82e   :  { %1645 = vrot.lane.b32.xlu1 %v18943_v7, %s18286_s28 }
 0x8a0   :  { %v1646_v8 = vpop.permute.xlu1 %1645 }
 0x8a1   :  { %v1648_v9 = vsel %vm222_vm3, %v18943_v7, %v1646_v8 }
 0x8a2   :  { %v1652_v10 = vrot.slane %v1648_v9, %v18483_v37 }
 0x8a4   :  { %v1654_v11 = vsub.f32 %v18907_v54, %v1652_v10  ;;  %v1655_v12 = vsub.f32 %v18902_v50, %v1652_v10  ;;  %v1653_v13 = vsub.f32 %v18904_v51, %v1652_v10  ;;  %v1658_v14 = vsub.f32 %v18900_v49, %v1652_v10 }
 0x8a5   :  { %v1657_v15 = vsub.f32 %v18917_v55, %v1652_v10  ;;  %v1656_v21 = vsub.f32 %v18914_v40, %v1652_v10 }
 0x8a6   :  { %v1660_v17 = vmul.f32 %v1654_v11, %v1654_v11  ;;  %v1661_v18 = vmul.f32 %v1655_v12, %v1655_v12  ;;  %v1659_v19 = vmul.f32 %v1653_v13, %v1653_v13  ;;  %v1664_v20 = vmul.f32 %v1658_v14, %v1658_v14 }
 0x8a7   :  { %v1663_v23 = vmul.f32 %v1657_v15, %v1657_v15  ;;  %v1662_v24 = vmul.f32 %v1656_v21, %v1656_v21 }
 0x8a8   :  { %1729 = vmatprep.mubr.f32.mxu1 %v1660_v17  ;;  %15809 = vmatprep.mubr.f32.mxu0 %v1661_v18 }
 0x8a9   :  { %1730 = vmatmul.mubr.f32.vlgmr.msra.gmra.mrb[24].mxu1 %v1659_v19  ;;  %15810 = vmatmul.mubr.f32.vlgmr.msra.gmra.mrb[22].mxu0 %v1664_v20 }
 0x8aa   :  { %1734 = vmatprep.mubr.f32.mxu1 %v1663_v23  ;;  %2360 = vmatpush1.bf16.msra.mxu1 %v16905_v25 }
 0x8ab   :  { %2361 = vmatprep.subr.bf16.mxu1 %v16910_v27  ;;  %15221 = vmatpush3.bf16.msra.mxu0 %v16933_v38  ;;  %v16962_v38 = vld [vmem:[%s23783_s11 + $0x158] ss:$12 sps:$4 sm:$0xff]  }
 0x8ac   :  { %15222 = vmatprep.subr.bf16.mxu0 %v16937_v41  ;;  %v1825_v41 = vld [vmem:[%s23784_s9] sm:$0x1] }
 0x8ad   :  { %1735 = vmatmul.mubr.f32.gmra.mrb[26].mxu1 %v1662_v24 }
 0x8ae   :  { %2362 = vmatpush1.bf16.msra.mxu1 %v16908_v29 }
 0x8af   :  { %2363 = vmatprep.subr.bf16.mxu1 %v16913_v30  ;;  %15223 = vmatpush3.bf16.msra.mxu0 %v16938_v44  ;;  %v16966_v44 = vld [vmem:[%s23783_s11 + $0x16c] ss:$12 sps:$4 sm:$0xff]  }
 0x8b0   :  { %15224 = vmatprep.subr.bf16.mxu0 %v16942_v46  ;;  %v16964_v46 = vld [vmem:[%s23783_s11 + $0x168] ss:$12 sps:$4 sm:$0xff]  }
 0x8b2   :  { %2364 = vmatpush1.bf16.msra.mxu1 %v16911_v31  ;;  %v16956_v31 = vld [vmem:[%s23783_s11 + $0x13c] ss:$12 sps:$4 sm:$0xff]  }
 0x8b3   :  { %2365 = vmatprep.subr.bf16.mxu1 %v16916_v32  ;;  %15225 = vmatpush3.bf16.msra.mxu0 %v16943_v48  ;;  %v16957_v32 = vld [vmem:[%s23783_s11 + $0x140] ss:$12 sps:$4 sm:$0xff]   ;;  %v16968_v48 = vld [vmem:[%s23783_s11 + $0xb0] ss:$12 sps:$4 sm:$0xff]  }
 0x8b4   :  { %15226 = vmatprep.subr.bf16.mxu0 %v16947_v42 }
 0x8b6   :  { %2366 = vmatpush1.bf16.msra.mxu1 %v16914_v33  ;;  %v16954_v33 = vld [vmem:[%s23783_s11 + $0x138] ss:$12 sps:$4 sm:$0xff]  }
 0x8b7   :  { %2367 = vmatprep.subr.bf16.mxu1 %v16919_v34  ;;  %15227 = vmatpush3.bf16.msra.mxu0 %v16948_v43  ;;  %v16958_v34 = vld [vmem:[%s23783_s11 + $0x80] ss:$12 sps:$4 sm:$0xff]  }
 0x8b8   :  { %15228 = vmatprep.subr.bf16.mxu0 %v16952_v56  ;;  %v1829_v43 = vld [vmem:[%s23785_s10] sm:$0x1] }
 0x8ba   :  { %2368 = vmatpush1.bf16.msra.mxu1 %v16917_v39  ;;  %v16959_v39 = vld [vmem:[%s23783_s11 + $0x150] ss:$12 sps:$4 sm:$0xff]  }
 0x8bb   :  { %2369 = vmatprep.subr.bf16.mxu1 %v16922_v22  ;;  %15229 = vmatpush3.bf16.msra.mxu0 %v16953_v58  ;;  %v16963_v22 = vld [vmem:[%s23783_s11 + $0x98] ss:$12 sps:$4 sm:$0xff]  }
 0x8bc   :  { %15230 = vmatprep.subr.bf16.mxu0 %v16957_v32  ;;  %v16985_v32 = vld [vmem:[%s23783_s11 + $0x1e0] ss:$12 sps:$4 sm:$0xff]  }
 0x8be   :  { %2370 = vmatpush1.bf16.msra.mxu1 %v16920_v45  ;;  %v16967_v45 = vld [vmem:[%s23783_s11 + $0x170] ss:$12 sps:$4 sm:$0xff]  }
 0x8bf   :  { %2371 = vmatprep.subr.bf16.mxu1 %v16925_v28  ;;  %15231 = vmatpush3.bf16.msra.mxu0 %v16958_v34  ;;  %v16991_v34 = vld [vmem:[%s23783_s11 + $0x1fc] ss:$12 sps:$4 sm:$0xff]  }
 0x8c0   :  { %15232 = vmatprep.subr.bf16.mxu0 %v16962_v38  ;;  %v16992_v38 = vld [vmem:[%s23783_s11 + $0x200] ss:$12 sps:$4 sm:$0xff]  }
 0x8c2   :  { %2372 = vmatpush1.bf16.msra.mxu1 %v16923_v47 }
 0x8c3   :  { %2373 = vmatprep.subr.bf16.mxu1 %v16928_v52  ;;  %15233 = vmatpush3.bf16.msra.mxu0 %v16963_v22  ;;  %v16993_v22 = vld [vmem:[%s23783_s11 + $0x210] ss:$12 sps:$4 sm:$0xff]  }
 0x8c4   :  { %15234 = vmatprep.subr.bf16.mxu0 %v16967_v45  ;;  %v16997_v45 = vld [vmem:[%s23783_s11 + $0x228] ss:$12 sps:$4 sm:$0xff]  }
 0x8c6   :  { %2374 = vmatpush1.bf16.msra.mxu1 %v16926_v53  ;;  %v16971_v53 = vld [vmem:[%s23783_s11 + $0x184] ss:$12 sps:$4 sm:$0xff]  }
 0x8c7   :  { %2375 = vmatprep.subr.bf16.mxu1 %v16931_v57  ;;  %15235 = vmatpush3.bf16.msra.mxu0 %v16968_v48  ;;  %v17003_v48 = vld [vmem:[%s23783_s11 + $0x244] ss:$12 sps:$4 sm:$0xff]  }
 0x8c8   :  { %15812 = vmatprep.subr.bf16.mxu0 %v23804_v0 }
 0x8ca   :  { %2376 = vmatpush1.bf16.msra.mxu1 %v16929_v59 }
 0x8cb   :  { %2377 = vmatprep.subr.bf16.mxu1 %v16936_v60 }
 0x8ce   :  { %2378 = vmatpush1.bf16.msra.mxu1 %v16934_v61 }
 0x8cf   :  { %2379 = vmatprep.subr.bf16.mxu1 %v16941_v62 }
 0x8d2   :  { %2380 = vmatpush1.bf16.msra.mxu1 %v16939_v63 }
 0x8d3   :  { %2381 = vmatprep.subr.bf16.mxu1 %v16946_v1 }
 0x8d6   :  { %2382 = vmatpush1.bf16.msra.mxu1 %v16944_v2 }
 0x8d7   :  { %2383 = vmatprep.subr.bf16.mxu1 %v16951_v3 }
 0x8da   :  { %2384 = vmatpush1.bf16.msra.mxu1 %v16949_v4 }
 0x8db   :  { %2385 = vmatprep.subr.bf16.mxu1 %v16956_v31  ;;  %v16987_v31 = vld [vmem:[%s23783_s11 + $0x1e4] ss:$12 sps:$4 sm:$0xff]  }
 0x8de   :  { %2386 = vmatpush1.bf16.msra.mxu1 %v16954_v33  ;;  %v16988_v33 = vld [vmem:[%s23783_s11 + $0x1e8] ss:$12 sps:$4 sm:$0xff]  }
 0x8df   :  { %2387 = vmatprep.subr.bf16.mxu1 %v16961_v36  ;;  %v16989_v36 = vld [vmem:[%s23783_s11 + $0x1f8] ss:$12 sps:$4 sm:$0xff]  }
 0x8e2   :  { %2388 = vmatpush1.bf16.msra.mxu1 %v16959_v39  ;;  %v16995_v39 = vld [vmem:[%s23783_s11 + $0x214] ss:$12 sps:$4 sm:$0xff]  }
 0x8e3   :  { %2389 = vmatprep.subr.bf16.mxu1 %v16966_v44  ;;  %v16999_v44 = vld [vmem:[%s23783_s11 + $0x22c] ss:$12 sps:$4 sm:$0xff]  }
 0x8e6   :  { %2390 = vmatpush1.bf16.msra.mxu1 %v16964_v46  ;;  %v17000_v46 = vld [vmem:[%s23783_s11 + $0x230] ss:$12 sps:$4 sm:$0xff]  }
 0x8e7   :  { %2402 = vmatprep.subr.bf16.mxu1 %v16971_v53  ;;  %v17006_v53 = vld [vmem:[%s23783_s11 + $0x258] ss:$12 sps:$4 sm:$0xff]  }
 0x97c   :  { %v15196_v5 = vpop.f32.mrb[24].mxu1  ;;  %v15811_v8 = vpop.f32.mrb[22].mxu0 }
 0x97d   :  { %v15197_v9 = vpop.f32.mrb[25].mxu1  ;;  %v1806_v10 = vpop.f32.mrb[23].mxu0 }
 0x97e   :  { %v15198_v11 = vadd.f32 %v15197_v9, %v15196_v5 }
 0x980   :  { %v1807_v12 = vadd.f32 %v15198_v11, %v1806_v10  ;;  %v15199_v13 = vpop.f32.mrb[26].mxu1 }
 0x981   :  { %v15200_v14 = vpop.f32.mrb[27].mxu1 }
 0x982   :  { %v1815_v15 = vsel %vm222_vm3, %v1807_v12, 0.0  ;;  %v15201_v17 = vadd.f32 %v15200_v14, %v15199_v13 }
 0x984   :  { %v1812_v18 = vadd.f32 %v15811_v8, %v15201_v17 }
 0x986   :  { %v1816_v19 = vsel %vm1634_vm6, %v1812_v18, 0.0 }
 0x987   :  { %v1817_v20 = vadd.f32 %v1816_v19, %v1815_v15  ;;  %v16975_v19 = vld [vmem:[%s23783_s11 + $0x19c] ss:$12 sps:$4 sm:$0xff]  }
 0x989   :  { %v1818_v21 = vrot.slane %v1817_v20, 4 }
 0x98b   :  { %v1819_v23 = vadd.f32 %v1818_v21, %v1817_v20  ;;  %v16973_v21 = vld [vmem:[%s23783_s11 + $0x198] ss:$12 sps:$4 sm:$0xff]  }
 0x98d   :  { %v1820_v24 = vrot.slane %v1819_v23, 2 }
 0x98f   :  { %v1821_v25 = vadd.f32 %v1820_v24, %v1819_v23  ;;  %v16976_v23 = vld [vmem:[%s23783_s11 + $0x1a0] ss:$12 sps:$4 sm:$0xff]  }
 0x990   :  { %v16979_v24 = vld [vmem:[%s23783_s11 + $0x1b4] ss:$12 sps:$4 sm:$0xff]  }
 0x991   :  { %v1822_v26 = vrot.slane %v1821_v25, 1 }
 0x993   :  { %v1823_v27 = vadd.f32 %v1822_v26, %v1821_v25  ;;  %v16977_v25 = vld [vmem:[%s23783_s11 + $0x1b0] ss:$12 sps:$4 sm:$0xff]   ;;  %v16980_v26 = vld [vmem:[%s23783_s11 + $0x1b8] ss:$12 sps:$4 sm:$0xff]  }
 0x995   :  { %v1824_v29 = vmul.f32 0.013888889, %v1823_v27  ;;  %v16983_v27 = vld [vmem:[%s23783_s11 + $0x1cc] ss:$12 sps:$4 sm:$0xff]  }
 0x997   :  { %v1826_v30 = vadd.f32 1e-05, %v1824_v29  ;;  %v16981_v29 = vld [vmem:[%s23783_s11 + $0x1c8] ss:$12 sps:$4 sm:$0xff]  }
 0x999   :  { %18185 = vrsqrt.f32 %v1826_v30  ;;  %v16984_v30 = vld [vmem:[%s23783_s11 + $0x1d0] ss:$12 sps:$4 sm:$0xff]  }
 0x9a3   :  { %v18186_v28 = vpop.eup %18185 }
 0x9a4   :  { %v1828_v42 = vmul.f32 %v18186_v28, %v1825_v41  ;;  %v16996_v41 = vld [vmem:[%s23783_s11 + $0x218] ss:$12 sps:$4 sm:$0xff]   ;;  %v17004_v28 = vld [vmem:[%s23783_s11 + $0x308] ss:$12 sps:$4 sm:$0xff]  }
 0x9a6   :  { %v1836_v47 = vrot.slane %v1828_v42, %v18483_v37  ;;  %v1830_v52 = vmul.f32 %v1828_v42, %v18943_v7 }
 0x9a8   :  { %1837 = vrot.lane.b32.xlu0 %v1836_v47, %s18286_s28  ;;  %v1831_v56 = vsub.f32 %v1829_v43, %v1830_v52  ;;  %v17005_v43 = vld [vmem:[%s23783_s11 + $0x248] ss:$12 sps:$4 sm:$0xff]   ;;  %v17009_v52 = vld [vmem:[%s23783_s11 + $0x320] ss:$12 sps:$4 sm:$0xff]  }
 0x9a9   :  { %v17008_v47 = vld [vmem:[%s23783_s11 + $0x25c] ss:$12 sps:$4 sm:$0xff]  }
 0x9aa   :  { %v1855_v57 = vrot.slane %v1831_v56, %v18483_v37 }
 0x9ac   :  { %1856 = vrot.lane.b32.xlu1 %v1855_v57, %s18286_s28  ;;  %v17013_v57 = vld [vmem:[%s23783_s11 + $0x274] ss:$12 sps:$4 sm:$0xff]  }
 0xa1a   :  { %v1838_v58 = vpop.permute.xlu0 %1837 }
 0xa1b   :  { %v1840_v59 = vsel %vm222_vm3, %v1828_v42, %v1838_v58  ;;  %v17001_v42 = vld [vmem:[%s23783_s11 + $0x240] ss:$12 sps:$4 sm:$0xff]   ;;  %v17014_v58 = vld [vmem:[%s23783_s11 + $0x338] ss:$12 sps:$4 sm:$0xff]  }
 0xa1c   :  { %v1844_v7 = vrot.slane %v1840_v59, %v18483_v37  ;;  %v17011_v59 = vld [vmem:[%s23783_s11 + $0x270] ss:$12 sps:$4 sm:$0xff]  }
 0xa1e   :  { %v1857_v60 = vpop.permute.xlu1 %1856  ;;  %v1845_v61 = vmul.f32 %v1844_v7, %v18904_v51  ;;  %v1846_v63 = vmul.f32 %v1844_v7, %v18907_v54  ;;  %v1848_v1 = vmul.f32 %v1844_v7, %v18914_v40  ;;  %v1849_v2 = vmul.f32 %v1844_v7, %v18917_v55 }
 0xa1f   :  { %v1859_v62 = vsel %vm222_vm3, %v1831_v56, %v1857_v60  ;;  %v1847_v4 = vmul.f32 %v1844_v7, %v18902_v50  ;;  %v1850_v5 = vmul.f32 %v18900_v49, %v1844_v7  ;;  %v16969_v50 = vld [vmem:[%s23783_s11 + $0x180] ss:$12 sps:$4 sm:$0xff]   ;;  %v16972_v49 = vld [vmem:[%s23783_s11 + $0x188] ss:$12 sps:$4 sm:$0xff]   ;;  %v17015_v7 = vld [vmem:[%s23783_s11 + $0x278] ss:$12 sps:$4 sm:$0xff]  }
 0xa20   :  { %v1863_v3 = vrot.slane %v1859_v62, %v18483_v37  ;;  %v17010_v56 = vld [vmem:[%s23783_s11 + $0x260] ss:$12 sps:$4 sm:$0xff]   ;;  %v17016_v62 = vld [vmem:[%s23783_s11 + $0x288] ss:$12 sps:$4 sm:$0xff]  }
 0xa21   :  { %v17018_v60 = vld [vmem:[%s23783_s11 + $0x28c] ss:$12 sps:$4 sm:$0xff]  }
 0xa22   :  { %v1865_v8 = vadd.f32 %v1863_v3, %v1846_v63  ;;  %v1868_v9 = vadd.f32 %v1863_v3, %v1849_v2  ;;  %v1864_v10 = vadd.f32 %v1863_v3, %v1845_v61  ;;  %v1867_v11 = vadd.f32 %v1863_v3, %v1848_v1  ;;  %v17019_v61 = vld [vmem:[%s23783_s11 + $0x350] ss:$12 sps:$4 sm:$0xff]   ;;  %v17024_v2 = vld [vmem:[%s23783_s11 + $0x368] ss:$12 sps:$4 sm:$0xff]  }
 0xa23   :  { %v1866_v12 = vadd.f32 %v1863_v3, %v1847_v4  ;;  %v1869_v51 = vadd.f32 %v1863_v3, %v1850_v5  ;;  %v17020_v63 = vld [vmem:[%s23783_s11 + $0x290] ss:$12 sps:$4 sm:$0xff]   ;;  %v17021_v3 = vld [vmem:[%s23783_s11 + $0x2a0] ss:$12 sps:$4 sm:$0xff]   ;;  %v17025_v4 = vld [vmem:[%s23783_s11 + $0x2a8] ss:$12 sps:$4 sm:$0xff]  }
 0xa24   :  { %v1871_v13 = vmax.f32 %v1865_v8, 0.0  ;;  %v1874_v14 = vmax.f32 %v1868_v9, 0.0  ;;  %v1870_v15 = vmax.f32 %v1864_v10, 0.0  ;;  %v1873_v54 = vmax.f32 %v1867_v11, 0.0  ;;  %v17023_v1 = vld [vmem:[%s23783_s11 + $0x2a4] ss:$12 sps:$4 sm:$0xff]  }
 0xa25   :  { %v1872_v17 = vmax.f32 %v1866_v12, 0.0  ;;  %v1875_v40 = vmax.f32 %v1869_v51, 0.0  ;;  %v17028_v5 = vld [vmem:[%s23783_s11 + $0x2bc] ss:$12 sps:$4 sm:$0xff]   ;;  %v17029_v8 = vld [vmem:[%s23783_s11 + $0x380] ss:$12 sps:$4 sm:$0xff]  }
 0xa26   :  { %v19127_v18 = vpack.c.bf16 %v1874_v14, %v1871_v13  ;;  %v19132_v55 = vpack.c.bf16 %v1873_v54, %v1870_v15  ;;  %v17026_v9 = vld [vmem:[%s23783_s11 + $0x2b8] ss:$12 sps:$4 sm:$0xff]   ;;  %v17030_v10 = vld [vmem:[%s23783_s11 + $0x2c0] ss:$12 sps:$4 sm:$0xff]   ;;  %v17031_v51 = vld [vmem:[%s23783_s11 + $0x2d0] ss:$12 sps:$4 sm:$0xff]  }
 0xa27   :  { %v19140_v20 = vpack.c.bf16 %v1875_v40, %v1872_v17  ;;  %v17033_v11 = vld [vmem:[%s23783_s11 + $0x2d4] ss:$12 sps:$4 sm:$0xff]   ;;  %v17034_v12 = vld [vmem:[%s23783_s11 + $0x398] ss:$12 sps:$4 sm:$0xff]   ;;  %v17039_v15 = vld [vmem:[%s23783_s11 + $0x3b0] ss:$12 sps:$4 sm:$0xff]  }
 0xa28   :  { %2391 = vmatprep.mubr.bf16.mxu1 %v19127_v18  ;;  %2477 = vmatprep.mubr.bf16.mxu0 %v19127_v18  ;;  %v17035_v13 = vld [vmem:[%s23783_s11 + $0x2d8] ss:$12 sps:$4 sm:$0xff]   ;;  %v17036_v54 = vld [vmem:[%s23783_s11 + $0x2e8] ss:$12 sps:$4 sm:$0xff]   ;;  %v17040_v17 = vld [vmem:[%s23783_s11 + $0x2f0] ss:$12 sps:$4 sm:$0xff]  }
 0xa29   :  { %2392 = vmatmul.mubr.bf16.vlgmr.msra.gmra.mrb[28].mxu1 %v19132_v55  ;;  %2478 = vmatmul.mubr.bf16.vlgmr.msra.gmra.mrb[24].mxu0 %v19132_v55  ;;  %v17038_v14 = vld [vmem:[%s23783_s11 + $0x2ec] ss:$12 sps:$4 sm:$0xff]   ;;  %v17043_v40 = vld [vmem:[%s23783_s11 + $0x304] ss:$12 sps:$4 sm:$0xff]  }
 0xa2a   :  { %2403 = vmatpush1.bf16.msra.mxu1 %v16969_v50  ;;  %15813 = vmatpush3.bf16.msra.mxu0 %v16972_v49  ;;  %v17041_v50 = vld [vmem:[%s23783_s11 + $0x300] ss:$12 sps:$4 sm:$0xff]   ;;  %v17044_v49 = vld [vmem:[%s23783_s11 + $0x3c8] ss:$12 sps:$4 sm:$0xff]  }
 0xa2b   :  { %2404 = vmatprep.subr.bf16.mxu1 %v16975_v19  ;;  %15814 = vmatprep.subr.bf16.mxu0 %v23804_v0  ;;  %v17047_v19 = vld [vmem:[%s23783_s11 + $0x31c] ss:$12 sps:$4 sm:$0xff]  }
 0xa2c   :  { %2434 = vmatprep.mubr.bf16.mxu1 %v18285_v16  ;;  %15828 = vmatprep.mubr.msk.bf16.mxu0 %vm18280_vm0, %v23804_v0 }
 0xa2e   :  { %2405 = vmatpush1.bf16.msra.mxu1 %v16973_v21  ;;  %15815 = vmatpush3.bf16.msra.mxu0 %v16976_v23  ;;  %v17045_v21 = vld [vmem:[%s23783_s11 + $0x318] ss:$12 sps:$4 sm:$0xff]   ;;  %v17048_v23 = vld [vmem:[%s23783_s11 + $0x3e0] ss:$12 sps:$4 sm:$0xff]  }
 0xa2f   :  { %2406 = vmatprep.subr.bf16.mxu1 %v16979_v24  ;;  %15816 = vmatprep.subr.bf16.mxu0 %v23804_v0  ;;  %v17051_v24 = vld [vmem:[%s23783_s11 + $0x334] ss:$12 sps:$4 sm:$0xff]  }
 0xa32   :  { %2407 = vmatpush1.bf16.msra.mxu1 %v16977_v25  ;;  %15817 = vmatpush3.bf16.msra.mxu0 %v16980_v26  ;;  %v17049_v25 = vld [vmem:[%s23783_s11 + $0x330] ss:$12 sps:$4 sm:$0xff]   ;;  %v17052_v26 = vld [vmem:[%s23783_s11 + $0x3f8] ss:$12 sps:$4 sm:$0xff]  }
 0xa33   :  { %2408 = vmatprep.subr.bf16.mxu1 %v16983_v27  ;;  %15818 = vmatprep.subr.bf16.mxu0 %v23804_v0  ;;  %v17055_v27 = vld [vmem:[%s23783_s11 + $0x34c] ss:$12 sps:$4 sm:$0xff]  }
 0xa36   :  { %2409 = vmatpush1.bf16.msra.mxu1 %v16981_v29  ;;  %15819 = vmatpush3.bf16.msra.mxu0 %v16984_v30  ;;  %v17053_v29 = vld [vmem:[%s23783_s11 + $0x348] ss:$12 sps:$4 sm:$0xff]   ;;  %v17056_v30 = vld [vmem:[%s23783_s11 + $0x410] ss:$12 sps:$4 sm:$0xff]  }
 0xa37   :  { %2410 = vmatprep.subr.bf16.mxu1 %v16987_v31  ;;  %15820 = vmatprep.subr.bf16.mxu0 %v23804_v0  ;;  %v17059_v31 = vld [vmem:[%s23783_s11 + $0x364] ss:$12 sps:$4 sm:$0xff]  }
 0xa3a   :  { %2411 = vmatpush1.bf16.msra.mxu1 %v16985_v32  ;;  %15821 = vmatpush3.bf16.msra.mxu0 %v16988_v33  ;;  %v17057_v32 = vld [vmem:[%s23783_s11 + $0x360] ss:$12 sps:$4 sm:$0xff]   ;;  %v17060_v33 = vld [vmem:[%s23783_s11 + $0x428] ss:$12 sps:$4 sm:$0xff]  }
 0xa3b   :  { %2412 = vmatprep.subr.bf16.mxu1 %v16991_v34  ;;  %15822 = vmatprep.subr.bf16.mxu0 %v23804_v0  ;;  %v17063_v34 = vld [vmem:[%s23783_s11 + $0x37c] ss:$12 sps:$4 sm:$0xff]  }
 0xa3e   :  { %2413 = vmatpush1.bf16.msra.mxu1 %v16989_v36  ;;  %15823 = vmatpush3.bf16.msra.mxu0 %v16992_v38  ;;  %v17061_v36 = vld [vmem:[%s23783_s11 + $0x378] ss:$12 sps:$4 sm:$0xff]   ;;  %v17064_v38 = vld [vmem:[%s23783_s11 + $0x440] ss:$12 sps:$4 sm:$0xff]  }
 0xa3f   :  { %2414 = vmatprep.subr.bf16.mxu1 %v16995_v39  ;;  %15824 = vmatprep.subr.bf16.mxu0 %v23804_v0  ;;  %v17067_v39 = vld [vmem:[%s23783_s11 + $0x394] ss:$12 sps:$4 sm:$0xff]  }
 0xa42   :  { %2415 = vmatpush1.bf16.msra.mxu1 %v16993_v22  ;;  %15825 = vmatpush3.bf16.msra.mxu0 %v16996_v41  ;;  %v17065_v22 = vld [vmem:[%s23783_s11 + $0x390] ss:$12 sps:$4 sm:$0xff]   ;;  %v17068_v41 = vld [vmem:[%s23783_s11 + $0x458] ss:$12 sps:$4 sm:$0xff]  }
 0xa43   :  { %2416 = vmatprep.subr.bf16.mxu1 %v16999_v44  ;;  %15826 = vmatprep.subr.bf16.mxu0 %v23804_v0  ;;  %v17071_v44 = vld [vmem:[%s23783_s11 + $0x3ac] ss:$12 sps:$4 sm:$0xff]  }
 0xa46   :  { %2417 = vmatpush1.bf16.msra.mxu1 %v16997_v45  ;;  %15827 = vmatpush3.bf16.msra.mxu0 %v17000_v46  ;;  %v17069_v45 = vld [vmem:[%s23783_s11 + $0x3a8] ss:$12 sps:$4 sm:$0xff]   ;;  %v17072_v46 = vld [vmem:[%s23783_s11 + $0x470] ss:$12 sps:$4 sm:$0xff]  }
 0xa47   :  { %3011 = vmatprep.subr.bf16.mxu0 %v17003_v48  ;;  %15251 = vmatprep.subr.bf16.mxu1 %v17004_v28  ;;  %v17075_v48 = vld [vmem:[%s23783_s11 + $0x3c4] ss:$12 sps:$4 sm:$0xff]   ;;  %v17073_v28 = vld [vmem:[%s23783_s11 + $0x3c0] ss:$12 sps:$4 sm:$0xff]  }
 0xa49   :  { %2435 = vmatmul.mubr.bf16.vlgmr.msra.gmra.mrb[28].mxu1 %v19140_v20  ;;  %15829 = vmatmul.mubr.bf16.vlgmr.msra.gmra.mrb[28].mxu0 %v19140_v20 }
 0xa4a   :  { %3012 = vmatpush1.bf16.msra.mxu0 %v17001_v42  ;;  %3043 = vmatprep.mubr.bf16.mxu0 %v19127_v18  ;;  %v17078_v42 = vld [vmem:[%s23783_s11 + $0x3dc] ss:$12 sps:$4 sm:$0xff]  }
 0xa4b   :  { %15252 = vmatpush3.bf16.msra.mxu1 %v17005_v43  ;;  %3129 = vmatprep.mubr.bf16.mxu1 %v19127_v18  ;;  %v17076_v43 = vld [vmem:[%s23783_s11 + $0x3d8] ss:$12 sps:$4 sm:$0xff]  }
 0xa4c   :  { %3013 = vmatprep.subr.bf16.mxu0 %v17008_v47  ;;  %15253 = vmatprep.subr.bf16.mxu1 %v17009_v52  ;;  %v17081_v47 = vld [vmem:[%s23783_s11 + $0x3f4] ss:$12 sps:$4 sm:$0xff]   ;;  %v17079_v52 = vld [vmem:[%s23783_s11 + $0x3f0] ss:$12 sps:$4 sm:$0xff]  }
 0xa4e   :  { %3014 = vmatpush1.bf16.msra.mxu0 %v17006_v53  ;;  %v17084_v53 = vld [vmem:[%s23783_s11 + $0x40c] ss:$12 sps:$4 sm:$0xff]  }
 0xa4f   :  { %15254 = vmatpush3.bf16.msra.mxu1 %v17010_v56  ;;  %3015 = vmatprep.subr.bf16.mxu0 %v17013_v57  ;;  %v17082_v56 = vld [vmem:[%s23783_s11 + $0x408] ss:$12 sps:$4 sm:$0xff]   ;;  %v17087_v57 = vld [vmem:[%s23783_s11 + $0x424] ss:$12 sps:$4 sm:$0xff]  }
 0xa50   :  { %15255 = vmatprep.subr.bf16.mxu1 %v17014_v58  ;;  %v17085_v58 = vld [vmem:[%s23783_s11 + $0x420] ss:$12 sps:$4 sm:$0xff]  }
 0xa52   :  { %3016 = vmatpush1.bf16.msra.mxu0 %v17011_v59  ;;  %v17090_v59 = vld [vmem:[%s23783_s11 + $0x43c] ss:$12 sps:$4 sm:$0xff]  }
 0xa53   :  { %15256 = vmatpush3.bf16.msra.mxu1 %v17015_v7  ;;  %3017 = vmatprep.subr.bf16.mxu0 %v17018_v60  ;;  %v17088_v7 = vld [vmem:[%s23783_s11 + $0x438] ss:$12 sps:$4 sm:$0xff]   ;;  %v17093_v60 = vld [vmem:[%s23783_s11 + $0x454] ss:$12 sps:$4 sm:$0xff]  }
 0xa54   :  { %15257 = vmatprep.subr.bf16.mxu1 %v17019_v61  ;;  %v17091_v61 = vld [vmem:[%s23783_s11 + $0x450] ss:$12 sps:$4 sm:$0xff]  }
 0xa56   :  { %3018 = vmatpush1.bf16.msra.mxu0 %v17016_v62  ;;  %v17096_v62 = vld [vmem:[%s23783_s11 + $0x46c] ss:$12 sps:$4 sm:$0xff]  }
 0xa57   :  { %15258 = vmatpush3.bf16.msra.mxu1 %v17020_v63  ;;  %3019 = vmatprep.subr.bf16.mxu0 %v17023_v1  ;;  %v17094_v63 = vld [vmem:[%s23783_s11 + $0x468] ss:$12 sps:$4 sm:$0xff]  }
 0xa58   :  { %15259 = vmatprep.subr.bf16.mxu1 %v17024_v2 }
 0xa5a   :  { %3020 = vmatpush1.bf16.msra.mxu0 %v17021_v3 }
 0xa5b   :  { %15260 = vmatpush3.bf16.msra.mxu1 %v17025_v4  ;;  %3021 = vmatprep.subr.bf16.mxu0 %v17028_v5 }
 0xa5c   :  { %15261 = vmatprep.subr.bf16.mxu1 %v17029_v8 }
 0xa5e   :  { %3022 = vmatpush1.bf16.msra.mxu0 %v17026_v9 }
 0xa5f   :  { %15262 = vmatpush3.bf16.msra.mxu1 %v17030_v10  ;;  %3023 = vmatprep.subr.bf16.mxu0 %v17033_v11 }
 0xa60   :  { %15263 = vmatprep.subr.bf16.mxu1 %v17034_v12 }
 0xa62   :  { %3024 = vmatpush1.bf16.msra.mxu0 %v17031_v51 }
 0xa63   :  { %15264 = vmatpush3.bf16.msra.mxu1 %v17035_v13  ;;  %3025 = vmatprep.subr.bf16.mxu0 %v17038_v14 }
 0xa64   :  { %15265 = vmatprep.subr.bf16.mxu1 %v17039_v15 }
 0xa66   :  { %3026 = vmatpush1.bf16.msra.mxu0 %v17036_v54 }
 0xa67   :  { %15266 = vmatpush3.bf16.msra.mxu1 %v17040_v17  ;;  %3027 = vmatprep.subr.bf16.mxu0 %v17043_v40 }
 0xa68   :  { %15832 = vmatprep.subr.bf16.mxu1 %v23804_v0 }
 0xa6a   :  { %3130 = vmatmul.mubr.bf16.vlgmr.msra.gmra.mrb[32].mxu1 %v19132_v55  ;;  %3028 = vmatpush1.bf16.msra.mxu0 %v17041_v50 }
 0xa6b   :  { %15833 = vmatpush3.bf16.msra.mxu1 %v17044_v49  ;;  %3029 = vmatprep.subr.bf16.mxu0 %v17047_v19 }
 0xa6c   :  { %15834 = vmatprep.subr.bf16.mxu1 %v23804_v0  ;;  %15848 = vmatprep.mubr.msk.bf16.mxu1 %vm18280_vm0, %v23804_v0 }
 0xa6e   :  { %3030 = vmatpush1.bf16.msra.mxu0 %v17045_v21 }
 0xa6f   :  { %15835 = vmatpush3.bf16.msra.mxu1 %v17048_v23  ;;  %3031 = vmatprep.subr.bf16.mxu0 %v17051_v24 }
 0xa70   :  { %15836 = vmatprep.subr.bf16.mxu1 %v23804_v0 }
 0xa72   :  { %3032 = vmatpush1.bf16.msra.mxu0 %v17049_v25 }
 0xa73   :  { %15837 = vmatpush3.bf16.msra.mxu1 %v17052_v26  ;;  %3033 = vmatprep.subr.bf16.mxu0 %v17055_v27 }
 0xa74   :  { %15838 = vmatprep.subr.bf16.mxu1 %v23804_v0 }
 0xa76   :  { %3034 = vmatpush1.bf16.msra.mxu0 %v17053_v29 }
 0xa77   :  { %15839 = vmatpush3.bf16.msra.mxu1 %v17056_v30  ;;  %3035 = vmatprep.subr.bf16.mxu0 %v17059_v31 }
 0xa78   :  { %15840 = vmatprep.subr.bf16.mxu1 %v23804_v0 }
 0xa7a   :  { %3036 = vmatpush1.bf16.msra.mxu0 %v17057_v32 }
 0xa7b   :  { %15841 = vmatpush3.bf16.msra.mxu1 %v17060_v33  ;;  %3037 = vmatprep.subr.bf16.mxu0 %v17063_v34  ;;  %v23852_v34 = vmov 0 }
 0xa7c   :  { %15842 = vmatprep.subr.bf16.mxu1 %v23804_v0  ;;  %v23853_v34 = vsel %vm19467_vm9, 4294967295, %v23852_v34 }
 0xa7d   :  { %23854 = vst [vmem:[#allocation3_spill] sm:$0xff] %v23853_v34 }
 0xa7e   :  { %3038 = vmatpush1.bf16.msra.mxu0 %v17061_v36 }
 0xa7f   :  { %15843 = vmatpush3.bf16.msra.mxu1 %v17064_v38  ;;  %3039 = vmatprep.subr.bf16.mxu0 %v17067_v39  ;;  %v13570_v38 = vld [vmem:[%s23786_s12 + $0x18] sm:$0xff]  ;;  %v17097_v39 = vld [vmem:[%s23783_s11 + $0x548] ss:$12 sps:$4 sm:$0xff]  }
 0xa80   :  { %15844 = vmatprep.subr.bf16.mxu1 %v23804_v0 }
 0xa82   :  { %3040 = vmatpush1.bf16.msra.mxu0 %v17065_v22  ;;  %v13571_v22 = vld [vmem:[%s23786_s12 + $0x20] sm:$0xff] }
 0xa83   :  { %15845 = vmatpush3.bf16.msra.mxu1 %v17068_v41  ;;  %3041 = vmatprep.subr.bf16.mxu0 %v17071_v44  ;;  %v13572_v41 = vld [vmem:[%s23786_s12 + $0x28] sm:$0x3f]  ;;  %v2527_v44 = vld [vmem:[%s23786_s12] sm:$0xff] }
 0xa84   :  { %15846 = vmatprep.subr.bf16.mxu1 %v23804_v0 }
 0xa86   :  { %3042 = vmatpush1.bf16.msra.mxu0 %v17069_v45  ;;  %v17098_v45 = vld [vmem:[%s23783_s11 + $0x488] ss:$12 sps:$4 sm:$0xff]  }
 0xa87   :  { %15847 = vmatpush3.bf16.msra.mxu1 %v17072_v46  ;;  %3054 = vmatprep.subr.bf16.mxu0 %v17075_v48  ;;  %v17099_v46 = vld [vmem:[%s23783_s11 + $0x560] ss:$12 sps:$4 sm:$0xff]  }
 0xa88   :  { %v19512_v48 = vld [vmem:[%s23786_s12 + $0x8] sm:$0xff] }
 0xa89   :  { %3044 = vmatmul.mubr.bf16.vlgmr.msra.gmra.mrb[32].mxu0 %v19132_v55 }
 0xa8a   :  { %15849 = vmatmul.mubr.bf16.vlgmr.msra.gmra.mrb[36].mxu1 %v19140_v20  ;;  %3055 = vmatpush1.bf16.msra.mxu0 %v17073_v28  ;;  %v17100_v28 = vld [vmem:[%s23783_s11 + $0x4a0] ss:$12 sps:$4 sm:$0xff]  }
 0xa8b   :  { %3056 = vmatprep.subr.bf16.mxu0 %v17078_v42  ;;  %3086 = vmatprep.mubr.bf16.mxu0 %v18285_v16  ;;  %v17101_v42 = vld [vmem:[%s23783_s11 + $0x578] ss:$12 sps:$4 sm:$0xff]  }
 0xa8c   :  { %3267 = vmatprep.mubr.f32.mxu1 %v23804_v0 }
 0xa8e   :  { %3057 = vmatpush1.bf16.msra.mxu0 %v17076_v43  ;;  %v19527_v43 = vld [vmem:[%s23786_s12 + $0x10] sm:$0x3f] }
 0xa8f   :  { %3058 = vmatprep.subr.bf16.mxu0 %v17081_v47  ;;  %v17102_v47 = vld [vmem:[%s23783_s11 + $0x4b8] ss:$12 sps:$4 sm:$0xff]  }
 0xa92   :  { %3059 = vmatpush1.bf16.msra.mxu0 %v17079_v52  ;;  %v17103_v52 = vld [vmem:[%s23783_s11 + $0x590] ss:$12 sps:$4 sm:$0xff]  }
 0xa93   :  { %3060 = vmatprep.subr.bf16.mxu0 %v17084_v53 }
 0xa96   :  { %3061 = vmatpush1.bf16.msra.mxu0 %v17082_v56  ;;  %v17104_v56 = vld [vmem:[%s23783_s11 + $0x4d0] ss:$12 sps:$4 sm:$0xff]  }
 0xa97   :  { %3062 = vmatprep.subr.bf16.mxu0 %v17087_v57 }
 0xa9a   :  { %3063 = vmatpush1.bf16.msra.mxu0 %v17085_v58  ;;  %v17105_v58 = vld [vmem:[%s23783_s11 + $0x5a8] ss:$12 sps:$4 sm:$0xff]  }
 0xa9b   :  { %3064 = vmatprep.subr.bf16.mxu0 %v17090_v59 }
 0xa9e   :  { %3065 = vmatpush1.bf16.msra.mxu0 %v17088_v7 }
 0xa9f   :  { %3066 = vmatprep.subr.bf16.mxu0 %v17093_v60 }
 0xaa2   :  { %3067 = vmatpush1.bf16.msra.mxu0 %v17091_v61 }
 0xaa3   :  { %3068 = vmatprep.subr.bf16.mxu0 %v17096_v62  ;;  %v17106_v62 = vld [vmem:[%s23783_s11 + $0x4e8] ss:$12 sps:$4 sm:$0xff]  }
 0xaa6   :  { %3069 = vmatpush1.bf16.msra.mxu0 %v17094_v63  ;;  %v17107_v63 = vld [vmem:[%s23783_s11 + $0x5c0] ss:$12 sps:$4 sm:$0xff]  }
 0xaa7   :  { %16135 = vmatprep.subr.bf16.mxu0 %v23810_v6 }
 0xaa9   :  { %3087 = vmatmul.mubr.bf16.vlgmr.msra.gmra.mrb[32].mxu0 %v19140_v20 }
 0xaaa   :  { %15856 = vmatprep.mubr.msk.f32.mxu0 %vm18280_vm0, %v23804_v0 }
 0xafc   :  { %v15236_v1 = vpop.f32.mrb[24].mxu0 }
 0xafd   :  { %v15237_v2 = vpop.f32.mrb[25].mxu0 }
 0xafe   :  { %v15238_v3 = vadd.f32 %v15237_v2, %v15236_v1  ;;  %v15239_v4 = vpop.f32.mrb[26].mxu0  ;;  %v17108_v1 = vld [vmem:[%s23783_s11 + $0x500] ss:$12 sps:$4 sm:$0xff]   ;;  %v17115_v2 = vld [vmem:[%s23783_s11 + $0x484] ss:$12 sps:$4 sm:$0xff]  }
 0xaff   :  { %v15240_v5 = vpop.f32.mrb[27].mxu0 }
 0xb00   :  { %v15241_v8 = vadd.f32 %v15240_v5, %v15239_v4  ;;  %v17110_v4 = vld [vmem:[%s23783_s11 + $0x518] ss:$12 sps:$4 sm:$0xff]   ;;  %v17111_v5 = vld [vmem:[%s23783_s11 + $0x5f0] ss:$12 sps:$4 sm:$0xff]  }
 0xb1c   :  { %v19455_v9 = vpop.f32.mrb[28].mxu1  ;;  %v2520_v10 = vpop.f32.mrb[28].mxu0 }
 0xb1d   :  { %v2521_v11 = vadd.f32 %v15238_v3, %v2520_v10  ;;  %v19457_v12 = vpop.f32.mrb[29].mxu1  ;;  %v15830_v51 = vpop.f32.mrb[29].mxu0  ;;  %v17109_v3 = vld [vmem:[%s23783_s11 + $0x5d8] ss:$12 sps:$4 sm:$0xff]   ;;  %v17116_v10 = vld [vmem:[%s23783_s11 + $0x608] ss:$12 sps:$4 sm:$0xff]  }
 0xb1e   :  { %v19459_v13 = vpop.f32.mrb[30].mxu1  ;;  %v2523_v14 = vpop.f32.mrb[30].mxu0  ;;  %v17120_v51 = vld [vmem:[%s23783_s11 + $0x620] ss:$12 sps:$4 sm:$0xff]  }
 0xb1f   :  { %v16142_v15 = vpack.c.bf16 %v19459_v13, %v19455_v9  ;;  %v2524_v54 = vadd.f32 %v15241_v8, %v2523_v14  ;;  %v19463_v17 = vpop.f32.mrb[31].mxu1  ;;  %v15831_v40 = vpop.f32.mrb[31].mxu0  ;;  %v17112_v8 = vld [vmem:[%s23783_s11 + $0x530] ss:$12 sps:$4 sm:$0xff]   ;;  %v17113_v9 = vld [vmem:[%s23783_s11 + $0x480] ss:$12 sps:$4 sm:$0xff]  }
 0xb20   :  { %v16139_v50 = vpack.c.bf16 %v19463_v17, %v19457_v12  ;;  %v17117_v12 = vld [vmem:[%s23783_s11 + $0x498] ss:$12 sps:$4 sm:$0xff]   ;;  %v17123_v13 = vld [vmem:[%s23783_s11 + $0x4b4] ss:$12 sps:$4 sm:$0xff]   ;;  %v17121_v14 = vld [vmem:[%s23783_s11 + $0x4b0] ss:$12 sps:$4 sm:$0xff]  }
 0xb21   :  { %v16146_v49 = vpack.c.bf16 %v2524_v54, %v2521_v11  ;;  %v17119_v11 = vld [vmem:[%s23783_s11 + $0x49c] ss:$12 sps:$4 sm:$0xff]   ;;  %v17127_v54 = vld [vmem:[%s23783_s11 + $0x4cc] ss:$12 sps:$4 sm:$0xff]  }
 0xb22   :  { %v17125_v17 = vld [vmem:[%s23783_s11 + $0x4c8] ss:$12 sps:$4 sm:$0xff]   ;;  %v17128_v40 = vld [vmem:[%s23783_s11 + $0x650] ss:$12 sps:$4 sm:$0xff]  }
 0xb3d   :  { %v15267_v19 = vpop.f32.mrb[32].mxu1 }
 0xb3e   :  { %v15268_v21 = vpop.f32.mrb[33].mxu1 }
 0xb3f   :  { %v15269_v23 = vadd.f32 %v15268_v21, %v15267_v19  ;;  %v15270_v24 = vpop.f32.mrb[34].mxu1  ;;  %v17135_v19 = vld [vmem:[%s23783_s11 + $0x4fc] ss:$12 sps:$4 sm:$0xff]   ;;  %v17133_v21 = vld [vmem:[%s23783_s11 + $0x4f8] ss:$12 sps:$4 sm:$0xff]  }
 0xb40   :  { %v15271_v25 = vpop.f32.mrb[35].mxu1 }
 0xb41   :  { %v15272_v26 = vadd.f32 %v15271_v25, %v15270_v24  ;;  %v17139_v24 = vld [vmem:[%s23783_s11 + $0x514] ss:$12 sps:$4 sm:$0xff]   ;;  %v17137_v25 = vld [vmem:[%s23783_s11 + $0x510] ss:$12 sps:$4 sm:$0xff]  }
 0xb5d   :  { %v3172_v27 = vpop.f32.mrb[36].mxu1 }
 0xb5e   :  { %v3173_v29 = vadd.f32 %v15269_v23, %v3172_v27  ;;  %v15850_v30 = vpop.f32.mrb[37].mxu1  ;;  %v17136_v23 = vld [vmem:[%s23783_s11 + $0x680] ss:$12 sps:$4 sm:$0xff]  }
 0xb5f   :  { %v3175_v31 = vpop.f32.mrb[38].mxu1  ;;  %v17143_v27 = vld [vmem:[%s23783_s11 + $0x52c] ss:$12 sps:$4 sm:$0xff]   ;;  %v17144_v30 = vld [vmem:[%s23783_s11 + $0x6b0] ss:$12 sps:$4 sm:$0xff]  }
 0xb60   :  { %v3176_v32 = vadd.f32 %v15272_v26, %v3175_v31  ;;  %v15851_v33 = vpop.f32.mrb[39].mxu1  ;;  %v17140_v26 = vld [vmem:[%s23783_s11 + $0x698] ss:$12 sps:$4 sm:$0xff]  }
 0xb61   :  { %v17147_v31 = vld [vmem:[%s23783_s11 + $0x544] ss:$12 sps:$4 sm:$0xff]   ;;  %v17150_v33 = vld [vmem:[%s23783_s11 + $0x55c] ss:$12 sps:$4 sm:$0xff]  }
 0xb62   :  { %v16136_v36 = vpack.c.bf16 %v3176_v32, %v3173_v29  ;;  %v17141_v29 = vld [vmem:[%s23783_s11 + $0x528] ss:$12 sps:$4 sm:$0xff]   ;;  %v17145_v32 = vld [vmem:[%s23783_s11 + $0x540] ss:$12 sps:$4 sm:$0xff]  }
 0xb64   :  { %16138 = vmatpush3.bf16.msk.msra.mxu0 %vm19467_vm9, %v16136_v36  ;;  %v17148_v36 = vld [vmem:[%s23783_s11 + $0x558] ss:$12 sps:$4 sm:$0xff]  }
 0xb65   :  { %16145 = vmatprep.subr.bf16.mxu0 %v23810_v6 }
 0xb67   :  { %15857 = vmatmul.mubr.msk.f32.vlgmr.msra.gmra.mrb[36].mxu0 %vm3183_vm10, %v13570_v38 }
 0xb68   :  { %16148 = vmatpush3.bf16.msk.msra.mxu0 %vm19467_vm9, %v16146_v49  ;;  %15859 = vmatprep.mubr.msk.f32.mxu0 %vm18280_vm0, %v23804_v0  ;;  %v17132_v49 = vld [vmem:[%s23783_s11 + $0x668] ss:$12 sps:$4 sm:$0xff]  }
 0xb69   :  { %15292 = vmatprep.subr.bf16.mxu0 %v17097_v39  ;;  %v17151_v39 = vld [vmem:[%s23783_s11 + $0x570] ss:$12 sps:$4 sm:$0xff]  }
 0xb6b   :  { %15860 = vmatmul.mubr.msk.f32.gmra.mrb[38].mxu0 %vm3183_vm10, %v13571_v22 }
 0xb6c   :  { %15862 = vmatprep.mubr.msk.f32.mxu0 %vm18280_vm0, %v23804_v0 }
 0xb6f   :  { %15863 = vmatmul.mubr.msk.f32.gmra.mrb[40].mxu0 %vm3183_vm10, %v13572_v41 }
 0xb70   :  { %15869 = vmatprep.mubr.msk.f32.mxu0 %vm18280_vm0, %v23804_v0 }
 0xb73   :  { %15870 = vmatmul.mubr.msk.f32.vlgmr.msra.gmra.mrb[36].mxu0 %vm3183_vm10, %v2527_v44 }
 0xb74   :  { %15293 = vmatpush3.bf16.msra.mxu0 %v17098_v45  ;;  %15872 = vmatprep.mubr.msk.f32.mxu0 %vm18280_vm0, %v23804_v0  ;;  %v17157_v45 = vld [vmem:[%s23783_s11 + $0x5a0] ss:$12 sps:$4 sm:$0xff]  }
 0xb75   :  { %15294 = vmatprep.subr.bf16.mxu0 %v17099_v46  ;;  %v17162_v46 = vld [vmem:[%s23783_s11 + $0x5bc] ss:$12 sps:$4 sm:$0xff]  }
 0xb77   :  { %15873 = vmatmul.mubr.msk.f32.gmra.mrb[38].mxu0 %vm3183_vm10, %v19512_v48 }
 0xb78   :  { %15295 = vmatpush3.bf16.msra.mxu0 %v17100_v28  ;;  %15875 = vmatprep.mubr.msk.f32.mxu0 %vm18280_vm0, %v23804_v0  ;;  %v17165_v28 = vld [vmem:[%s23783_s11 + $0x5d4] ss:$12 sps:$4 sm:$0xff]  }
 0xb79   :  { %15296 = vmatprep.subr.bf16.mxu0 %v17101_v42  ;;  %v17163_v42 = vld [vmem:[%s23783_s11 + $0x5d0] ss:$12 sps:$4 sm:$0xff]  }
 0xb7b   :  { %15876 = vmatmul.mubr.msk.f32.gmra.mrb[40].mxu0 %vm3183_vm10, %v19527_v43 }
 0xb7c   :  { %15297 = vmatpush3.bf16.msra.mxu0 %v17102_v47  ;;  %4146 = vmatprep.mubr.bf16.mxu0 %v19127_v18  ;;  %v3088_v53 = vpop.f32.mrb[32].mxu0  ;;  %v17166_v47 = vld [vmem:[%s23783_s11 + $0x5e8] ss:$12 sps:$4 sm:$0xff]  }
 0xb7d   :  { %v3090_v57 = vpop.f32.mrb[33].mxu0  ;;  %15298 = vmatprep.subr.bf16.mxu0 %v17103_v52  ;;  %v17171_v52 = vld [vmem:[%s23783_s11 + $0x604] ss:$12 sps:$4 sm:$0xff]  }
 0xb7e   :  { %v3092_v59 = vpop.f32.mrb[34].mxu0 }
 0xb7f   :  { %v16132_v7 = vpack.c.bf16 %v3092_v59, %v3088_v53  ;;  %v3094_v60 = vpop.f32.mrb[35].mxu0  ;;  %v17169_v53 = vld [vmem:[%s23783_s11 + $0x600] ss:$12 sps:$4 sm:$0xff]   ;;  %v17175_v59 = vld [vmem:[%s23783_s11 + $0x630] ss:$12 sps:$4 sm:$0xff]  }
 0xb80   :  { %15299 = vmatpush3.bf16.msra.mxu0 %v17104_v56  ;;  %v16129_v61 = vpack.c.bf16 %v3094_v60, %v3090_v57  ;;  %v17174_v56 = vld [vmem:[%s23783_s11 + $0x61c] ss:$12 sps:$4 sm:$0xff]   ;;  %v17172_v57 = vld [vmem:[%s23783_s11 + $0x618] ss:$12 sps:$4 sm:$0xff]  }
 0xb81   :  { %15300 = vmatprep.subr.bf16.mxu0 %v17105_v58  ;;  %v17177_v58 = vld [vmem:[%s23783_s11 + $0x634] ss:$12 sps:$4 sm:$0xff]   ;;  %v17183_v60 = vld [vmem:[%s23783_s11 + $0x664] ss:$12 sps:$4 sm:$0xff]  }
 0xb82   :  { %16131 = vmatprep.subr.msk.bf16.mxu1 %vm19467_vm9, %v16129_v61  ;;  %v17181_v61 = vld [vmem:[%s23783_s11 + $0x660] ss:$12 sps:$4 sm:$0xff]  }
 0xb83   :  { %16134 = vmatpush1.bf16.msk.msra.mxu1 %vm19467_vm9, %v16132_v7  ;;  %v17178_v7 = vld [vmem:[%s23783_s11 + $0x648] ss:$12 sps:$4 sm:$0xff]  }
 0xb84   :  { %15301 = vmatpush3.bf16.msra.mxu0 %v17106_v62  ;;  %16141 = vmatprep.subr.msk.bf16.mxu1 %vm19467_vm9, %v16139_v50  ;;  %v17131_v50 = vld [vmem:[%s23783_s11 + $0x4e4] ss:$12 sps:$4 sm:$0xff]   ;;  %v17186_v62 = vld [vmem:[%s23783_s11 + $0x67c] ss:$12 sps:$4 sm:$0xff]  }
 0xb85   :  { %15302 = vmatprep.subr.bf16.mxu0 %v17107_v63  ;;  %v17184_v63 = vld [vmem:[%s23783_s11 + $0x678] ss:$12 sps:$4 sm:$0xff]  }
 0xb86   :  { %13575 = vmatmul.mubr.msk.f32.vlgmr.msra.gmra.mrb[40].mxu1 %vm3183_vm10, %v13570_v38  ;;  %v17153_v38 = vld [vmem:[%s23783_s11 + $0x574] ss:$12 sps:$4 sm:$0xff]  }
 0xb87   :  { %16144 = vmatpush1.bf16.msk.msra.mxu1 %vm19467_vm9, %v16142_v15  ;;  %3273 = vmatprep.mubr.f32.mxu1 %v23804_v0  ;;  %v17124_v15 = vld [vmem:[%s23783_s11 + $0x638] ss:$12 sps:$4 sm:$0xff]  }
 0xb88   :  { %15303 = vmatpush3.bf16.msra.mxu0 %v17108_v1  ;;  %4028 = vmatprep.subr.bf16.mxu1 %v17115_v2  ;;  %v17189_v1 = vld [vmem:[%s23783_s11 + $0x694] ss:$12 sps:$4 sm:$0xff]   ;;  %v17187_v2 = vld [vmem:[%s23783_s11 + $0x690] ss:$12 sps:$4 sm:$0xff]  }
 0xb89   :  { %15304 = vmatprep.subr.bf16.mxu0 %v17109_v3  ;;  %v17192_v3 = vld [vmem:[%s23783_s11 + $0x6ac] ss:$12 sps:$4 sm:$0xff]  }
 0xb8a   :  { %13576 = vmatmul.mubr.msk.f32.gmra.mrb[42].mxu1 %vm3183_vm10, %v13571_v22  ;;  %v17156_v22 = vld [vmem:[%s23783_s11 + $0x58c] ss:$12 sps:$4 sm:$0xff]  }
 0xb8b   :  { %3279 = vmatprep.mubr.f32.mxu1 %v23804_v0 }
 0xb8c   :  { %15305 = vmatpush3.bf16.msra.mxu0 %v17110_v4  ;;  %v17190_v4 = vld [vmem:[%s23783_s11 + $0x6a8] ss:$12 sps:$4 sm:$0xff]  }
 0xb8d   :  { %15306 = vmatprep.subr.bf16.mxu0 %v17111_v5 }
 0xb8e   :  { %13577 = vmatmul.mubr.msk.f32.gmra.mrb[44].mxu1 %vm3183_vm10, %v13572_v41  ;;  %v17154_v41 = vld [vmem:[%s23783_s11 + $0x588] ss:$12 sps:$4 sm:$0xff]  }
 0xb8f   :  { %3448 = vmatprep.mubr.f32.mxu1 %v23804_v0 }
 0xb90   :  { %15307 = vmatpush3.bf16.msra.mxu0 %v17112_v8 }
 0xb91   :  { %15878 = vmatprep.subr.bf16.mxu0 %v23804_v0 }
 0xb92   :  { %13584 = vmatmul.mubr.msk.f32.vlgmr.msra.gmra.mrb[40].mxu1 %vm3183_vm10, %v2527_v44  ;;  %v17159_v44 = vld [vmem:[%s23783_s11 + $0x5a4] ss:$12 sps:$4 sm:$0xff]  }
 0xb93   :  { %4147 = vmatmul.mubr.bf16.vlgmr.msra.gmra.mrb[44].mxu0 %v19132_v55  ;;  %4029 = vmatpush1.bf16.msra.mxu1 %v17113_v9 }
 0xb94   :  { %15879 = vmatpush3.bf16.msra.mxu0 %v17116_v10  ;;  %3454 = vmatprep.mubr.f32.mxu1 %v23804_v0 }
 0xb95   :  { %4030 = vmatprep.subr.bf16.mxu1 %v17119_v11  ;;  %15880 = vmatprep.subr.bf16.mxu0 %v23804_v0 }
 0xb96   :  { %13585 = vmatmul.mubr.msk.f32.gmra.mrb[42].mxu1 %vm3183_vm10, %v19512_v48  ;;  %15894 = vmatprep.mubr.msk.bf16.mxu0 %vm18280_vm0, %v23804_v0  ;;  %v17160_v48 = vld [vmem:[%s23783_s11 + $0x5b8] ss:$12 sps:$4 sm:$0xff]  }
 0xb97   :  { %4031 = vmatpush1.bf16.msra.mxu1 %v17117_v12  ;;  %3460 = vmatprep.mubr.f32.mxu1 %v23804_v0 }
 0xb98   :  { %15881 = vmatpush3.bf16.msra.mxu0 %v17120_v51  ;;  %4032 = vmatprep.subr.bf16.mxu1 %v17123_v13 }
 0xb99   :  { %15882 = vmatprep.subr.bf16.mxu0 %v23804_v0 }
 0xb9a   :  { %13586 = vmatmul.mubr.msk.f32.gmra.mrb[44].mxu1 %vm3183_vm10, %v19527_v43  ;;  %v17168_v43 = vld [vmem:[%s23783_s11 + $0x5ec] ss:$12 sps:$4 sm:$0xff]  }
 0xb9b   :  { %4033 = vmatpush1.bf16.msra.mxu1 %v17121_v14  ;;  %4060 = vmatprep.mubr.bf16.mxu1 %v19127_v18  ;;  %v17129_v18 = vld [vmem:[%s23783_s11 + $0x4e0] ss:$12 sps:$4 sm:$0xff]  }
 0xb9c   :  { %15883 = vmatpush3.bf16.msra.mxu0 %v17124_v15  ;;  %4034 = vmatprep.subr.bf16.mxu1 %v17127_v54 }
 0xb9d   :  { %15884 = vmatprep.subr.bf16.mxu0 %v23804_v0 }
 0xb9f   :  { %4035 = vmatpush1.bf16.msra.mxu1 %v17125_v17 }
 0xba0   :  { %15885 = vmatpush3.bf16.msra.mxu0 %v17128_v40  ;;  %4036 = vmatprep.subr.bf16.mxu1 %v17131_v50  ;;  %v13760_v50 = vld [vmem:[%s23786_s12 + $0x38] sm:$0xff] }
 0xba1   :  { %15886 = vmatprep.subr.bf16.mxu0 %v23804_v0 }
 0xba3   :  { %4037 = vmatpush1.bf16.msra.mxu1 %v17129_v18  ;;  %v13761_v18 = vld [vmem:[%s23786_s12 + $0x40] sm:$0x3f] }
 0xba4   :  { %15887 = vmatpush3.bf16.msra.mxu0 %v17132_v49  ;;  %4038 = vmatprep.subr.bf16.mxu1 %v17135_v19 }
 0xba5   :  { %15888 = vmatprep.subr.bf16.mxu0 %v23804_v0 }
 0xba7   :  { %4039 = vmatpush1.bf16.msra.mxu1 %v17133_v21 }
 0xba8   :  { %15889 = vmatpush3.bf16.msra.mxu0 %v17136_v23  ;;  %4040 = vmatprep.subr.bf16.mxu1 %v17139_v24 }
 0xba9   :  { %15890 = vmatprep.subr.bf16.mxu0 %v23804_v0 }
 0xbab   :  { %4041 = vmatpush1.bf16.msra.mxu1 %v17137_v25 }
 0xbac   :  { %15891 = vmatpush3.bf16.msra.mxu0 %v17140_v26  ;;  %4042 = vmatprep.subr.bf16.mxu1 %v17143_v27  ;;  %v4422_v26 = vld [vmem:[%s23787_s13 + $0x100] sm:$0xff]  ;;  %v4423_v27 = vld [vmem:[%s23787_s13 + $0x108] sm:$0xff] }
 0xbad   :  { %15892 = vmatprep.subr.bf16.mxu0 %v23804_v0 }
 0xbaf   :  { %4043 = vmatpush1.bf16.msra.mxu1 %v17141_v29  ;;  %v19808_v29 = vpack.c.bf16 %v4423_v27, %v4422_v26  ;;  %v4403_v26 = vld [vmem:[%s23787_s13 + $0x68] sm:$0xff]  ;;  %v4420_v27 = vld [vmem:[%s23787_s13 + $0xf0] sm:$0xff] }
 0xbb0   :  { %15893 = vmatpush3.bf16.msra.mxu0 %v17144_v30  ;;  %4044 = vmatprep.subr.bf16.mxu1 %v17147_v31  ;;  %v4424_v30 = vld [vmem:[%s23787_s13 + $0x110] sm:$0xff]  ;;  %v4425_v31 = vld [vmem:[%s23787_s13 + $0x118] sm:$0xff] }
 0xbb1   :  { %16155 = vmatprep.subr.bf16.mxu0 %v23810_v6 }
 0xbb3   :  { %15895 = vmatmul.mubr.bf16.vlgmr.msra.gmra.mrb[48].mxu0 %v19140_v20  ;;  %4045 = vmatpush1.bf16.msra.mxu1 %v17145_v32  ;;  %v19820_v32 = vpack.c.bf16 %v4425_v31, %v4424_v30  ;;  %v4421_v30 = vld [vmem:[%s23787_s13 + $0xf8] sm:$0xff] }
 0xbb4   :  { %4046 = vmatprep.subr.bf16.mxu1 %v17150_v33  ;;  %15902 = vmatprep.mubr.msk.f32.mxu0 %vm18280_vm0, %v23804_v0  ;;  %v4426_v33 = vld [vmem:[%s23787_s13 + $0x120] sm:$0xff] }
 0xbb7   :  { %4047 = vmatpush1.bf16.msra.mxu1 %v17148_v36  ;;  %v4427_v36 = vld [vmem:[%s23787_s13 + $0x128] sm:$0xff] }
 0xbb8   :  { %4048 = vmatprep.subr.bf16.mxu1 %v17153_v38  ;;  %v19832_v38 = vpack.c.bf16 %v4427_v36, %v4426_v33  ;;  %v16187_v33 = vpack.c.bf16 %v4421_v30, %v4420_v27  ;;  %v4404_v36 = vld [vmem:[%s23787_s13 + $0x70] sm:$0xff] }
 0xbbb   :  { %4049 = vmatpush1.bf16.msra.mxu1 %v17151_v39  ;;  %v4428_v39 = vld [vmem:[%s23787_s13 + $0x130] sm:$0xff] }
 0xbbc   :  { %4050 = vmatprep.subr.bf16.mxu1 %v17156_v22  ;;  %v4429_v22 = vld [vmem:[%s23787_s13 + $0x138] sm:$0xff] }
 0xbbf   :  { %4051 = vmatpush1.bf16.msra.mxu1 %v17154_v41  ;;  %v19843_v41 = vpack.c.bf16 %v4429_v22, %v4428_v39  ;;  %v4405_v39 = vld [vmem:[%s23787_s13 + $0x78] sm:$0xff] }
 0xbc0   :  { %4052 = vmatprep.subr.bf16.mxu1 %v17159_v44  ;;  %v4430_v44 = vld [vmem:[%s23787_s13 + $0x140] sm:$0xff]  ;;  %v16189_v22 = vpack.c.bf16 %v4405_v39, %v4404_v36 }
 0xbc3   :  { %4053 = vmatpush1.bf16.msra.mxu1 %v17157_v45  ;;  %v4431_v45 = vld [vmem:[%s23787_s13 + $0x148] sm:$0xff] }
 0xbc4   :  { %4054 = vmatprep.subr.bf16.mxu1 %v17162_v46  ;;  %v19855_v46 = vpack.c.bf16 %v4431_v45, %v4430_v44 }
 0xbc7   :  { %4055 = vmatpush1.bf16.msra.mxu1 %v17160_v48  ;;  %v4432_v48 = vld [vmem:[%s23787_s13 + $0x150] sm:$0xff] }
 0xbc8   :  { %4056 = vmatprep.subr.bf16.mxu1 %v17165_v28  ;;  %v4433_v28 = vld [vmem:[%s23787_s13 + $0x158] sm:$0xff] }
 0xbcb   :  { %4057 = vmatpush1.bf16.msra.mxu1 %v17163_v42  ;;  %v19865_v42 = vpack.c.bf16 %v4433_v28, %v4432_v48 }
 0xbcc   :  { %4058 = vmatprep.subr.bf16.mxu1 %v17168_v43  ;;  %v4406_v43 = vld [vmem:[%s23787_s13 + $0x80] sm:$0xff] }
 0xbcf   :  { %4059 = vmatpush1.bf16.msra.mxu1 %v17166_v47  ;;  %v4407_v47 = vld [vmem:[%s23787_s13 + $0x88] sm:$0xff] }
 0xbd0   :  { %4071 = vmatprep.subr.bf16.mxu1 %v17171_v52  ;;  %v4390_v52 = vld [vmem:[%s23787_s13] sm:$0xff] }
 0xbd2   :  { %4061 = vmatmul.mubr.bf16.vlgmr.msra.gmra.mrb[48].mxu1 %v19132_v55  ;;  %v17180_v55 = vld [vmem:[%s23783_s11 + $0x64c] ss:$12 sps:$4 sm:$0xff]  }
 0xbd3   :  { %4072 = vmatpush1.bf16.msra.mxu1 %v17169_v53  ;;  %4103 = vmatprep.mubr.bf16.mxu1 %v18285_v16  ;;  %v16159_v53 = vpack.c.bf16 %v4407_v47, %v4406_v43 }
 0xbd4   :  { %4073 = vmatprep.subr.bf16.mxu1 %v17174_v56  ;;  %v4391_v56 = vld [vmem:[%s23787_s13 + $0x8] sm:$0xff] }
 0xbd7   :  { %4074 = vmatpush1.bf16.msra.mxu1 %v17172_v57  ;;  %v4408_v57 = vld [vmem:[%s23787_s13 + $0x90] sm:$0xff] }
 0xbd8   :  { %4075 = vmatprep.subr.bf16.mxu1 %v17177_v58  ;;  %v4409_v58 = vld [vmem:[%s23787_s13 + $0x98] sm:$0xff] }
 0xbdb   :  { %4076 = vmatpush1.bf16.msra.mxu1 %v17175_v59  ;;  %v19888_v59 = vpack.c.bf16 %v4391_v56, %v4390_v52 }
 0xbdc   :  { %4077 = vmatprep.subr.bf16.mxu1 %v17180_v55  ;;  %v19890_v55 = vpack.c.bf16 %v4409_v58, %v4408_v57 }
 0xbdf   :  { %4078 = vmatpush1.bf16.msra.mxu1 %v17178_v7  ;;  %v4392_v7 = vld [vmem:[%s23787_s13 + $0x10] sm:$0xff] }
 0xbe0   :  { %4079 = vmatprep.subr.bf16.mxu1 %v17183_v60  ;;  %v4393_v60 = vld [vmem:[%s23787_s13 + $0x18] sm:$0xff] }
 0xbe3   :  { %4080 = vmatpush1.bf16.msra.mxu1 %v17181_v61  ;;  %v4410_v61 = vld [vmem:[%s23787_s13 + $0xa0] sm:$0xff] }
 0xbe4   :  { %4081 = vmatprep.subr.bf16.mxu1 %v17186_v62  ;;  %v4411_v62 = vld [vmem:[%s23787_s13 + $0xa8] sm:$0xff] }
 0xbe7   :  { %4082 = vmatpush1.bf16.msra.mxu1 %v17184_v63  ;;  %v19905_v63 = vpack.c.bf16 %v4393_v60, %v4392_v7 }
 0xbe8   :  { %4083 = vmatprep.subr.bf16.mxu1 %v17189_v1  ;;  %v19908_v1 = vpack.c.bf16 %v4411_v62, %v4410_v61 }
 0xbeb   :  { %4084 = vmatpush1.bf16.msra.mxu1 %v17187_v2  ;;  %v4394_v2 = vld [vmem:[%s23787_s13 + $0x20] sm:$0xff] }
 0xbec   :  { %4085 = vmatprep.subr.bf16.mxu1 %v17192_v3  ;;  %v4395_v3 = vld [vmem:[%s23787_s13 + $0x28] sm:$0xff] }
 0xbef   :  { %4086 = vmatpush1.bf16.msra.mxu1 %v17190_v4  ;;  %v4412_v4 = vld [vmem:[%s23787_s13 + $0xb0] sm:$0xff] }
 0xbf2   :  { %4104 = vmatmul.mubr.bf16.vlgmr.msra.gmra.mrb[48].mxu1 %v19140_v20  ;;  %v13759_v20 = vld [vmem:[%s23786_s12 + $0x30] sm:$0xff] }
 0xbf3   :  { %4282 = vmatprep.mubr.f32.mxu1 %v23804_v0 }
 0xc66   :  { %v15308_v5 = vpop.f32.mrb[44].mxu0 }
 0xc67   :  { %v15309_v8 = vpop.f32.mrb[45].mxu0 }
 0xc68   :  { %v15310_v9 = vadd.f32 %v15309_v8, %v15308_v5  ;;  %v15311_v10 = vpop.f32.mrb[46].mxu0  ;;  %v4413_v5 = vld [vmem:[%s23787_s13 + $0xb8] sm:$0xff]  ;;  %v19923_v8 = vpack.c.bf16 %v4395_v3, %v4394_v2 }
 0xc69   :  { %v15312_v11 = vpop.f32.mrb[47].mxu0 }
 0xc6a   :  { %v15313_v12 = vadd.f32 %v15312_v11, %v15311_v10  ;;  %v4396_v10 = vld [vmem:[%s23787_s13 + $0x30] sm:$0xff]  ;;  %v4397_v11 = vld [vmem:[%s23787_s13 + $0x38] sm:$0xff] }
 0xc86   :  { %v4189_v51 = vpop.f32.mrb[48].mxu0 }
 0xc87   :  { %v4190_v13 = vadd.f32 %v15310_v9, %v4189_v51  ;;  %v15896_v14 = vpop.f32.mrb[49].mxu0  ;;  %v19926_v9 = vpack.c.bf16 %v4413_v5, %v4412_v4  ;;  %v4415_v51 = vld [vmem:[%s23787_s13 + $0xc8] sm:$0xff] }
 0xc88   :  { %v4192_v15 = vpop.f32.mrb[50].mxu0 }
 0xc89   :  { %v4193_v54 = vadd.f32 %v15313_v12, %v4192_v15  ;;  %v15897_v17 = vpop.f32.mrb[51].mxu0  ;;  %v4414_v12 = vld [vmem:[%s23787_s13 + $0xc0] sm:$0xff] }
 0xc8a   :  { %v19944_v14 = vpack.c.bf16 %v4415_v51, %v4414_v12  ;;  %v4398_v15 = vld [vmem:[%s23787_s13 + $0x40] sm:$0xff]  ;;  %v4416_v17 = vld [vmem:[%s23787_s13 + $0xd0] sm:$0xff] }
 0xc8b   :  { %v16156_v40 = vpack.c.bf16 %v4193_v54, %v4190_v13  ;;  %v19941_v13 = vpack.c.bf16 %v4397_v11, %v4396_v10  ;;  %v4399_v54 = vld [vmem:[%s23787_s13 + $0x48] sm:$0xff] }
 0xc8d   :  { %16158 = vmatpush3.bf16.msk.msra.mxu0 %vm19467_vm9, %v16156_v40  ;;  %v4417_v40 = vld [vmem:[%s23787_s13 + $0xd8] sm:$0xff] }
 0xc8e   :  { %16160 = vmatprep.subr.bf16.mxu0 %v16159_v53 }
 0xc90   :  { %15903 = vmatmul.mubr.msk.f32.vlgmr.msra.gmra.mrb[36].mxu0 %vm3183_vm10, %v13759_v20 }
 0xc91   :  { %15905 = vmatprep.mubr.msk.f32.mxu0 %vm18280_vm0, %v23804_v0  ;;  %16162 = vmatpush3.bf16.msra.mxu0 %v19888_v59 }
 0xc92   :  { %16164 = vmatprep.subr.bf16.mxu0 %v19890_v55 }
 0xc94   :  { %15906 = vmatmul.mubr.msk.f32.gmra.mrb[38].mxu0 %vm3183_vm10, %v13760_v50 }
 0xc95   :  { %15908 = vmatprep.mubr.msk.f32.mxu0 %vm18280_vm0, %v23804_v0  ;;  %16166 = vmatpush3.bf16.msra.mxu0 %v19905_v63 }
 0xc96   :  { %16168 = vmatprep.subr.bf16.mxu0 %v19908_v1 }
 0xc98   :  { %15909 = vmatmul.mubr.msk.f32.gmra.mrb[40].mxu0 %vm3183_vm10, %v13761_v18 }
 0xc99   :  { %16170 = vmatpush3.bf16.msra.mxu0 %v19923_v8 }
 0xc9a   :  { %16172 = vmatprep.subr.bf16.mxu0 %v19926_v9 }
 0xc9d   :  { %16174 = vmatpush3.bf16.msra.mxu0 %v19941_v13 }
 0xc9e   :  { %16176 = vmatprep.subr.bf16.mxu0 %v19944_v14 }
 0xcc5   :  { %v4105_v49 = vpop.f32.mrb[48].mxu1 }
 0xcc6   :  { %v4107_v19 = vpop.f32.mrb[49].mxu1 }
 0xcc7   :  { %v4109_v21 = vpop.f32.mrb[50].mxu1 }
 0xcc8   :  { %v16152_v23 = vpack.c.bf16 %v4109_v21, %v4105_v49  ;;  %v4111_v24 = vpop.f32.mrb[51].mxu1  ;;  %v4401_v49 = vld [vmem:[%s23787_s13 + $0x58] sm:$0xff]  ;;  %v4419_v21 = vld [vmem:[%s23787_s13 + $0xe8] sm:$0xff] }
 0xcc9   :  { %v16149_v25 = vpack.c.bf16 %v4111_v24, %v4107_v19  ;;  %v4418_v19 = vld [vmem:[%s23787_s13 + $0xe0] sm:$0xff] }
 0xcca   :  { %v16183_v24 = vpack.c.bf16 %v4419_v21, %v4418_v19 }
 0xccb   :  { %16151 = vmatprep.subr.msk.bf16.mxu1 %vm19467_vm9, %v16149_v25  ;;  %v4402_v25 = vld [vmem:[%s23787_s13 + $0x60] sm:$0xff] }
 0xccc   :  { %16154 = vmatpush1.bf16.msk.msra.mxu1 %vm19467_vm9, %v16152_v23  ;;  %v16185_v31 = vpack.c.bf16 %v4403_v26, %v4402_v25 }
 0xccd   :  { %16191 = vmatprep.subr.bf16.mxu1 %v23810_v6 }
 0xccf   :  { %13764 = vmatmul.mubr.msk.f32.vlgmr.msra.gmra.mrb[40].mxu1 %vm3183_vm10, %v13759_v20  ;;  %v19959_v20 = vpack.c.bf16 %v4399_v54, %v4398_v15 }
 0xcd0   :  { %4288 = vmatprep.mubr.f32.mxu1 %v23804_v0  ;;  %16193 = vmatpush3.bf16.msra.mxu1 %v19808_v29 }
 0xcd1   :  { %16194 = vmatprep.subr.bf16.mxu1 %v23810_v6  ;;  %16178 = vmatpush3.bf16.msra.mxu0 %v19959_v20 }
 0xcd3   :  { %13765 = vmatmul.mubr.msk.f32.gmra.mrb[42].mxu1 %vm3183_vm10, %v13760_v50  ;;  %v19962_v50 = vpack.c.bf16 %v4417_v40, %v4416_v17 }
 0xcd4   :  { %4294 = vmatprep.mubr.f32.mxu1 %v23804_v0  ;;  %16196 = vmatpush3.bf16.msra.mxu1 %v19820_v32 }
 0xcd5   :  { %16197 = vmatprep.subr.bf16.mxu1 %v23810_v6  ;;  %16180 = vmatprep.subr.bf16.mxu0 %v19962_v50 }
 0xcd7   :  { %13766 = vmatmul.mubr.msk.f32.gmra.mrb[44].mxu1 %vm3183_vm10, %v13761_v18  ;;  %v4400_v18 = vld [vmem:[%s23787_s13 + $0x50] sm:$0xff]  ;;  %s18288_s13 = smov 96  }
 0xcd8   :  { %16199 = vmatpush3.bf16.msra.mxu1 %v19832_v38  ;;  %15935 = vmatprep.mubr.msk.f32.mxu1 %vm18280_vm0, %v23804_v0  ;;  %v19977_v23 = vpack.c.bf16 %v4401_v49, %v4400_v18 }
 0xcd9   :  { %16200 = vmatprep.subr.bf16.mxu1 %v23810_v6 }
 0xcda   :  { %16182 = vmatpush3.bf16.msra.mxu0 %v19977_v23 }
 0xcdb   :  { %16184 = vmatprep.subr.bf16.mxu0 %v16183_v24 }
 0xcdc   :  { %16202 = vmatpush3.bf16.msra.mxu1 %v19843_v41 }
 0xcdd   :  { %16203 = vmatprep.subr.bf16.mxu1 %v23810_v6 }
 0xcde   :  { %16186 = vmatpush3.bf16.msra.mxu0 %v16185_v31 }
 0xcdf   :  { %16188 = vmatprep.subr.bf16.mxu0 %v16187_v33 }
 0xce0   :  { %16205 = vmatpush3.bf16.msra.mxu1 %v19855_v46 }
 0xce1   :  { %16206 = vmatprep.subr.bf16.mxu1 %v23810_v6 }
 0xce2   :  { %16190 = vmatpush3.bf16.msra.mxu0 %v16189_v22 }
 0xce3   :  { %16210 = vmatprep.subr.bf16.mxu0 %v16159_v53 }
 0xce4   :  { %16208 = vmatpush3.bf16.msra.mxu1 %v19865_v42 }
 0xce5   :  { %16241 = vmatprep.subr.bf16.mxu1 %v23810_v6 }
 0xd63   :  { %v19999_v44 = vpop.f32.mrb[36].mxu0 }
 0xd64   :  { %v15904_v45 = vpop.f32.mrb[37].mxu0  ;;  %15936 = vmatmul.mubr.msk.f32.vlgmr.msra.gmra.mrb[46].mxu1 %vm4434_vm11, %v19999_v44 }
 0xd65   :  { %15938 = vmatprep.mubr.msk.f32.mxu1 %vm18280_vm0, %v23804_v0  ;;  %16243 = vmatpush3.bf16.msra.mxu1 %v19808_v29 }
 0xd66   :  { %16244 = vmatprep.subr.bf16.mxu1 %v23810_v6 }
 0xd67   :  { %v20007_v48 = vpop.f32.mrb[38].mxu0 }
 0xd68   :  { %v15907_v28 = vpop.f32.mrb[39].mxu0  ;;  %15939 = vmatmul.mubr.msk.f32.gmra.mrb[52].mxu1 %vm4434_vm11, %v20007_v48 }
 0xd69   :  { %15941 = vmatprep.mubr.msk.f32.mxu1 %vm18280_vm0, %v23804_v0  ;;  %16246 = vmatpush3.bf16.msra.mxu1 %v19820_v32 }
 0xd6a   :  { %16247 = vmatprep.subr.bf16.mxu1 %v23810_v6 }
 0xd6b   :  { %v20015_v43 = vpop.f32.mrb[40].mxu0 }
 0xd6c   :  { %v15910_v47 = vpop.f32.mrb[41].mxu0  ;;  %15942 = vmatmul.mubr.msk.f32.gmra.mrb[54].mxu1 %vm4434_vm11, %v20015_v43 }
 0xd6d   :  { %16249 = vmatpush3.bf16.msra.mxu1 %v19832_v38  ;;  %15968 = vmatprep.mubr.msk.f32.mxu1 %vm18280_vm0, %v23804_v0 }
 0xd6e   :  { %16250 = vmatprep.subr.bf16.mxu1 %v23810_v6 }
 0xd71   :  { %16252 = vmatpush3.bf16.msra.mxu1 %v19843_v41 }
 0xd72   :  { %16253 = vmatprep.subr.bf16.mxu1 %v23810_v6 }
 0xd75   :  { %16255 = vmatpush3.bf16.msra.mxu1 %v19855_v46 }
 0xd76   :  { %16256 = vmatprep.subr.bf16.mxu1 %v23810_v6 }
 0xd79   :  { %16258 = vmatpush3.bf16.msra.mxu1 %v19865_v42 }
 0xda2   :  { %v20028_v29 = vpop.f32.mrb[40].mxu1 }
 0xda3   :  { %v20030_v32 = vpop.f32.mrb[41].mxu1 }
 0xda4   :  { %4508 = vmatprep.mubr.f32.mxu0 %v20030_v32 }
 0xda5   :  { %4509 = vmatmul.mubr.f32.vlgmr.msra.gmra.mrb[42].mxu0 %v20028_v29 }
 0xda6   :  { %v20034_v38 = vpop.f32.mrb[42].mxu1  ;;  %16212 = vmatpush3.bf16.msra.mxu0 %v19888_v59 }
 0xda7   :  { %v20037_v41 = vpop.f32.mrb[43].mxu1  ;;  %16214 = vmatprep.subr.bf16.mxu0 %v19890_v55 }
 0xda8   :  { %4513 = vmatprep.mubr.f32.mxu0 %v20037_v41 }
 0xda9   :  { %4514 = vmatmul.mubr.f32.gmra.mrb[52].mxu0 %v20034_v38 }
 0xdaa   :  { %v20042_v46 = vpop.f32.mrb[44].mxu1  ;;  %16216 = vmatpush3.bf16.msra.mxu0 %v19905_v63 }
 0xdab   :  { %v20045_v42 = vpop.f32.mrb[45].mxu1  ;;  %16218 = vmatprep.subr.bf16.mxu0 %v19908_v1 }
 0xdac   :  { %4518 = vmatprep.mubr.f32.mxu0 %v20045_v42 }
 0xdad   :  { %4519 = vmatmul.mubr.f32.gmra.mrb[54].mxu0 %v20042_v46 }
 0xdae   :  { %16220 = vmatpush3.bf16.msra.mxu0 %v19923_v8 }
 0xdaf   :  { %16222 = vmatprep.subr.bf16.mxu0 %v19926_v9 }
 0xdb2   :  { %16224 = vmatpush3.bf16.msra.mxu0 %v19941_v13 }
 0xdb3   :  { %16226 = vmatprep.subr.bf16.mxu0 %v19944_v14 }
 0xdb6   :  { %16228 = vmatpush3.bf16.msra.mxu0 %v19959_v20 }
 0xdb7   :  { %16230 = vmatprep.subr.bf16.mxu0 %v19962_v50 }
 0xdba   :  { %16232 = vmatpush3.bf16.msra.mxu0 %v19977_v23 }
 0xdbb   :  { %16234 = vmatprep.subr.bf16.mxu0 %v16183_v24 }
 0xdbe   :  { %16236 = vmatpush3.bf16.msra.mxu0 %v16185_v31 }
 0xdbf   :  { %16238 = vmatprep.subr.bf16.mxu0 %v16187_v33 }
 0xdc2   :  { %16240 = vmatpush3.bf16.msra.mxu0 %v16189_v22 }
 0xe37   :  { %v4590_v52 = vpop.f32.mrb[46].mxu1 }
 0xe38   :  { %v15937_v53 = vpop.f32.mrb[47].mxu1 }
 0xe3b   :  { %v4595_v56 = vpop.f32.mrb[52].mxu1 }
 0xe3c   :  { %v15940_v57 = vpop.f32.mrb[53].mxu1 }
 0xe3f   :  { %v4600_v58 = vpop.f32.mrb[54].mxu1 }
 0xe40   :  { %v15943_v59 = vpop.f32.mrb[55].mxu1 }
 0xe78   :  { %v15360_v55 = vpop.f32.mrb[42].mxu0 }
 0xe79   :  { %v15361_v7 = vpop.f32.mrb[43].mxu0 }
 0xe7a   :  { %v15362_v60 = vadd.f32 %v15361_v7, %v15360_v55  ;;  %v17193_v7 = vld [vmem:[%s23788_s16] ss:$24 sps:$4 sm:$0xff]  }
 0xe7c   :  { %v4591_v61 = vadd.f32 %v15362_v60, %v4590_v52  ;;  %v15363_v62 = vpop.f32.mrb[52].mxu0  ;;  %v17195_v60 = vld [vmem:[%s23788_s16 + $0x4] ss:$24 sps:$4 sm:$0xff]  }
 0xe7d   :  { %v15364_v63 = vpop.f32.mrb[53].mxu0  ;;  %5725 = vmatprep.subr.bf16.mxu0 %v17195_v60 }
 0xe7e   :  { %v15365_v1 = vadd.f32 %v15364_v63, %v15363_v62  ;;  %v4604_v5 = vsel %vm95_vm1, %v4591_v61, 0.0  ;;  %v17196_v61 = vld [vmem:[%s23788_s16 + $0x8] ss:$24 sps:$4 sm:$0xff]   ;;  %v17198_v62 = vld [vmem:[%s23788_s16 + $0xc] ss:$24 sps:$4 sm:$0xff]  }
 0xe7f   :  { %v17199_v63 = vld [vmem:[%s23788_s16 + $0x30] ss:$24 sps:$4 sm:$0xff]   ;;  %5827 = vmatprep.subr.bf16.mxu1 %v17198_v62 }
 0xe80   :  { %v4596_v2 = vadd.f32 %v15365_v1, %v4595_v56  ;;  %v15366_v3 = vpop.f32.mrb[54].mxu0  ;;  %v17201_v1 = vld [vmem:[%s23788_s16 + $0x34] ss:$24 sps:$4 sm:$0xff]  }
 0xe81   :  { %v15367_v4 = vpop.f32.mrb[55].mxu0 }
 0xe82   :  { %v4605_v8 = vsel %vm95_vm1, %v4596_v2, 0.0  ;;  %v15368_v9 = vadd.f32 %v15367_v4, %v15366_v3  ;;  %v17202_v2 = vld [vmem:[%s23788_s16 + $0x38] ss:$24 sps:$4 sm:$0xff]   ;;  %v17204_v3 = vld [vmem:[%s23788_s16 + $0x3c] ss:$24 sps:$4 sm:$0xff]  }
 0xe83   :  { %v4606_v10 = vadd.f32 %v4605_v8, %v4604_v5  ;;  %v17207_v4 = vld [vmem:[%s23788_s16 + $0x64] ss:$24 sps:$4 sm:$0xff]   ;;  %v17205_v5 = vld [vmem:[%s23788_s16 + $0x60] ss:$24 sps:$4 sm:$0xff]  }
 0xe84   :  { %v4601_v11 = vadd.f32 %v15368_v9, %v4600_v58  ;;  %v17210_v8 = vld [vmem:[%s23788_s16 + $0x6c] ss:$24 sps:$4 sm:$0xff]   ;;  %v17208_v9 = vld [vmem:[%s23788_s16 + $0x68] ss:$24 sps:$4 sm:$0xff]  }
 0xe86   :  { %v4608_v12 = vsel %vm4607_vm12, %v4601_v11, 0.0  ;;  %v17216_v11 = vld [vmem:[%s23788_s16 + $0x9c] ss:$24 sps:$4 sm:$0xff]  }
 0xe87   :  { %v4609_v51 = vadd.f32 %v4608_v12, %v4606_v10  ;;  %v17213_v10 = vld [vmem:[%s23788_s16 + $0x94] ss:$24 sps:$4 sm:$0xff]   ;;  %v17211_v12 = vld [vmem:[%s23788_s16 + $0x90] ss:$24 sps:$4 sm:$0xff]  }
 0xe89   :  { %v4610_v13 = vrot.slane %v4609_v51, 4 }
 0xe8b   :  { %v4611_v14 = vadd.f32 %v4610_v13, %v4609_v51  ;;  %v17214_v51 = vld [vmem:[%s23788_s16 + $0x98] ss:$24 sps:$4 sm:$0xff]   ;;  %v17219_v13 = vld [vmem:[%s23788_s16 + $0xc4] ss:$24 sps:$4 sm:$0xff]  }
 0xe8d   :  { %v4612_v15 = vrot.slane %v4611_v14, 2 }
 0xe8f   :  { %v4613_v54 = vadd.f32 %v4612_v15, %v4611_v14  ;;  %v17222_v14 = vld [vmem:[%s23788_s16 + $0xcc] ss:$24 sps:$4 sm:$0xff]   ;;  %v17217_v15 = vld [vmem:[%s23788_s16 + $0xc0] ss:$24 sps:$4 sm:$0xff]  }
 0xe91   :  { %v4614_v17 = vrot.slane %v4613_v54, 1 }
 0xe93   :  { %v4615_v40 = vadd.f32 %v4614_v17, %v4613_v54  ;;  %v17220_v54 = vld [vmem:[%s23788_s16 + $0xc8] ss:$24 sps:$4 sm:$0xff]   ;;  %v17225_v17 = vld [vmem:[%s23788_s16 + $0xf4] ss:$24 sps:$4 sm:$0xff]  }
 0xe95   :  { %v20060_v20 = vmul.f32 0.004132231, %v4615_v40  ;;  %v17228_v40 = vld [vmem:[%s23788_s16 + $0xfc] ss:$24 sps:$4 sm:$0xff]  }
 0xe97   :  { %4621 = vrot.lane.b32.xlu1 %v20060_v20, %s18286_s28  ;;  %4618 = vrot.lane.b32.xlu0 %v20060_v20, %s18284_s4 }
 0xe9b   :  { %4624 = vrot.lane.b32.xlu0 %v20060_v20, %s18288_s13 }
 0xf09   :  { %v4622_v50 = vpop.permute.xlu1 %4621  ;;  %v4619_v18 = vpop.permute.xlu0 %4618 }
 0xf0a   :  { %v4627_v49 = vsel %vm95_vm1, %v20060_v20, %v4619_v18  ;;  %v17226_v18 = vld [vmem:[%s23788_s16 + $0xf8] ss:$24 sps:$4 sm:$0xff]  }
 0xf0b   :  { %v4628_v19 = vsel %vm222_vm3, %v4627_v49, %v4622_v50  ;;  %v17223_v50 = vld [vmem:[%s23788_s16 + $0xf0] ss:$24 sps:$4 sm:$0xff]   ;;  %v17231_v49 = vld [vmem:[%s23788_s16 + $0x124] ss:$24 sps:$4 sm:$0xff]  }
 0xf0c   :  { %v4637_v21 = vrot.slane %v4628_v19, %v18483_v37 }
 0xf0d   :  { %v4625_v23 = vpop.permute.xlu0 %4624 }
 0xf0e   :  { %v4640_v24 = vsub.f32 %v19999_v44, %v4637_v21  ;;  %v4629_v25 = vsel %vm4434_vm11, %v4628_v19, %v4625_v23  ;;  %v4643_v30 = vsub.f32 %v20007_v48, %v4637_v21  ;;  %v4646_v47 = vsub.f32 %v20015_v43, %v4637_v21  ;;  %v17234_v19 = vld [vmem:[%s23788_s16 + $0x12c] ss:$24 sps:$4 sm:$0xff]   ;;  %v17229_v21 = vld [vmem:[%s23788_s16 + $0x120] ss:$24 sps:$4 sm:$0xff]  }
 0xf0f   :  { %v4633_v26 = vrot.slane %v4629_v25, %v18483_v37  ;;  %v17232_v23 = vld [vmem:[%s23788_s16 + $0x128] ss:$24 sps:$4 sm:$0xff]   ;;  %v17240_v25 = vld [vmem:[%s23788_s16 + $0x15c] ss:$24 sps:$4 sm:$0xff]  }
 0xf10   :  { %v4649_v27 = vmul.f32 %v4640_v24, %v4640_v24  ;;  %v4652_v45 = vmul.f32 %v4643_v30, %v4643_v30  ;;  %v4655_v57 = vmul.f32 %v4646_v47, %v4646_v47  ;;  %v17237_v24 = vld [vmem:[%s23788_s16 + $0x154] ss:$24 sps:$4 sm:$0xff]   ;;  %v17243_v30 = vld [vmem:[%s23788_s16 + $0x184] ss:$24 sps:$4 sm:$0xff]  }
 0xf11   :  { %v4639_v31 = vsub.f32 %v20030_v32, %v4633_v26  ;;  %v4638_v33 = vsub.f32 %v20028_v29, %v4633_v26  ;;  %v4642_v36 = vsub.f32 %v20037_v41, %v4633_v26  ;;  %v4641_v28 = vsub.f32 %v20034_v38, %v4633_v26  ;;  %v17255_v47 = vld [vmem:[%s23788_s16 + $0x1e4] ss:$24 sps:$4 sm:$0xff]  }
 0xf12   :  { %15969 = vmatmul.mubr.msk.f32.vlgmr.msra.gmra.mrb[56].mxu1 %vm4434_vm11, %v4649_v27  ;;  %v4645_v53 = vsub.f32 %v20045_v42, %v4633_v26  ;;  %v4644_v58 = vsub.f32 %v20042_v46, %v4633_v26  ;;  %v17235_v26 = vld [vmem:[%s23788_s16 + $0x150] ss:$24 sps:$4 sm:$0xff]  }
 0xf13   :  { %v4648_v39 = vmul.f32 %v4639_v31, %v4639_v31  ;;  %15971 = vmatprep.mubr.msk.f32.mxu1 %vm18280_vm0, %v23804_v0  ;;  %v4647_v22 = vmul.f32 %v4638_v33, %v4638_v33  ;;  %v4651_v52 = vmul.f32 %v4642_v36, %v4642_v36  ;;  %v4650_v56 = vmul.f32 %v4641_v28, %v4641_v28  ;;  %v17238_v27 = vld [vmem:[%s23788_s16 + $0x158] ss:$24 sps:$4 sm:$0xff]   ;;  %v17246_v33 = vld [vmem:[%s23788_s16 + $0x18c] ss:$24 sps:$4 sm:$0xff]   ;;  %v17244_v36 = vld [vmem:[%s23788_s16 + $0x188] ss:$24 sps:$4 sm:$0xff]  }
 0xf14   :  { %v4654_v59 = vmul.f32 %v4645_v53, %v4645_v53  ;;  %v4653_v55 = vmul.f32 %v4644_v58, %v4644_v58  ;;  %5828 = vmatpush1.bf16.msra.mxu1 %v17196_v61  ;;  %v17241_v31 = vld [vmem:[%s23788_s16 + $0x180] ss:$24 sps:$4 sm:$0xff]   ;;  %v17264_v58 = vld [vmem:[%s23788_s16 + $0x21c] ss:$24 sps:$4 sm:$0xff]  }
 0xf15   :  { %4729 = vmatprep.mubr.f32.mxu0 %v4648_v39  ;;  %5829 = vmatprep.subr.bf16.mxu1 %v17204_v3  ;;  %v17249_v39 = vld [vmem:[%s23788_s16 + $0x1b4] ss:$24 sps:$4 sm:$0xff]   ;;  %v17250_v28 = vld [vmem:[%s23788_s16 + $0x1b8] ss:$24 sps:$4 sm:$0xff]  }
 0xf16   :  { %4730 = vmatmul.mubr.f32.vlgmr.msra.gmra.mrb[56].mxu0 %v4647_v22  ;;  %15972 = vmatmul.mubr.msk.f32.gmra.mrb[58].mxu1 %vm4434_vm11, %v4652_v45  ;;  %v17252_v22 = vld [vmem:[%s23788_s16 + $0x1bc] ss:$24 sps:$4 sm:$0xff]   ;;  %v17247_v45 = vld [vmem:[%s23788_s16 + $0x1b0] ss:$24 sps:$4 sm:$0xff]   ;;  %v17253_v53 = vld [vmem:[%s23788_s16 + $0x1e0] ss:$24 sps:$4 sm:$0xff]  }
 0xf17   :  { %4734 = vmatprep.mubr.f32.mxu0 %v4651_v52  ;;  %15974 = vmatprep.mubr.msk.f32.mxu1 %vm18280_vm0, %v23804_v0  ;;  %v17258_v52 = vld [vmem:[%s23788_s16 + $0x1ec] ss:$24 sps:$4 sm:$0xff]   ;;  %vm11778_vm0 = vcmask 359424  }
 0xf18   :  { %5726 = vmatpush1.bf16.msra.mxu0 %v17193_v7  ;;  %5830 = vmatpush1.bf16.msra.mxu1 %v17202_v2 }
 0xf19   :  { %5727 = vmatprep.subr.bf16.mxu0 %v17201_v1  ;;  %5831 = vmatprep.subr.bf16.mxu1 %v17210_v8 }
 0xf1a   :  { %4735 = vmatmul.mubr.f32.gmra.mrb[58].mxu0 %v4650_v56  ;;  %15975 = vmatmul.mubr.msk.f32.gmra.mrb[60].mxu1 %vm4434_vm11, %v4655_v57  ;;  %v17256_v56 = vld [vmem:[%s23788_s16 + $0x1e8] ss:$24 sps:$4 sm:$0xff]   ;;  %v17261_v57 = vld [vmem:[%s23788_s16 + $0x214] ss:$24 sps:$4 sm:$0xff]  }
 0xf1b   :  { %4739 = vmatprep.mubr.f32.mxu0 %v4654_v59  ;;  %v17259_v59 = vld [vmem:[%s23788_s16 + $0x210] ss:$24 sps:$4 sm:$0xff]  }
 0xf1c   :  { %5728 = vmatpush1.bf16.msra.mxu0 %v17199_v63  ;;  %5832 = vmatpush1.bf16.msra.mxu1 %v17208_v9 }
 0xf1d   :  { %5729 = vmatprep.subr.bf16.mxu0 %v17207_v4  ;;  %5833 = vmatprep.subr.bf16.mxu1 %v17216_v11 }
 0xf1e   :  { %4740 = vmatmul.mubr.f32.gmra.mrb[60].mxu0 %v4653_v55  ;;  %v17262_v55 = vld [vmem:[%s23788_s16 + $0x218] ss:$24 sps:$4 sm:$0xff]  }
 0xf20   :  { %5730 = vmatpush1.bf16.msra.mxu0 %v17205_v5  ;;  %5834 = vmatpush1.bf16.msra.mxu1 %v17214_v51 }
 0xf21   :  { %5731 = vmatprep.subr.bf16.mxu0 %v17213_v10  ;;  %5835 = vmatprep.subr.bf16.mxu1 %v17222_v14 }
 0xf24   :  { %5732 = vmatpush1.bf16.msra.mxu0 %v17211_v12  ;;  %5836 = vmatpush1.bf16.msra.mxu1 %v17220_v54 }
 0xf25   :  { %5733 = vmatprep.subr.bf16.mxu0 %v17219_v13  ;;  %5837 = vmatprep.subr.bf16.mxu1 %v17228_v40 }
 0xf28   :  { %5734 = vmatpush1.bf16.msra.mxu0 %v17217_v15  ;;  %5838 = vmatpush1.bf16.msra.mxu1 %v17226_v18 }
 0xf29   :  { %5735 = vmatprep.subr.bf16.mxu0 %v17225_v17  ;;  %5839 = vmatprep.subr.bf16.mxu1 %v17234_v19 }
 0xf2c   :  { %5736 = vmatpush1.bf16.msra.mxu0 %v17223_v50  ;;  %5840 = vmatpush1.bf16.msra.mxu1 %v17232_v23 }
 0xf2d   :  { %5737 = vmatprep.subr.bf16.mxu0 %v17231_v49  ;;  %5841 = vmatprep.subr.bf16.mxu1 %v17240_v25 }
 0xf30   :  { %5738 = vmatpush1.bf16.msra.mxu0 %v17229_v21  ;;  %5842 = vmatpush1.bf16.msra.mxu1 %v17238_v27  ;;  %v17265_v27 = vld [vmem:[%s23788_s16 + $0x240] ss:$24 sps:$4 sm:$0xff]  }
 0xf31   :  { %5739 = vmatprep.subr.bf16.mxu0 %v17237_v24  ;;  %5843 = vmatprep.subr.bf16.mxu1 %v17246_v33  ;;  %v17270_v33 = vld [vmem:[%s23788_s16 + $0x24c] ss:$24 sps:$4 sm:$0xff]  }
 0xf34   :  { %5740 = vmatpush1.bf16.msra.mxu0 %v17235_v26  ;;  %5844 = vmatpush1.bf16.msra.mxu1 %v17244_v36  ;;  %v4837_v36 = vld [vmem:[%s23789_s14] sm:$0x1] }
 0xf35   :  { %5741 = vmatprep.subr.bf16.mxu0 %v17243_v30  ;;  %5845 = vmatprep.subr.bf16.mxu1 %v17252_v22  ;;  %v17267_v30 = vld [vmem:[%s23788_s16 + $0x244] ss:$24 sps:$4 sm:$0xff]  }
 0xf36   :  { %v17276_v22 = vld [vmem:[%s23788_s16 + $0x27c] ss:$24 sps:$4 sm:$0xff]  }
 0xf38   :  { %5742 = vmatpush1.bf16.msra.mxu0 %v17241_v31  ;;  %5846 = vmatpush1.bf16.msra.mxu1 %v17250_v28  ;;  %v17268_v31 = vld [vmem:[%s23788_s16 + $0x248] ss:$24 sps:$4 sm:$0xff]   ;;  %v17274_v28 = vld [vmem:[%s23788_s16 + $0x278] ss:$24 sps:$4 sm:$0xff]  }
 0xf39   :  { %5743 = vmatprep.subr.bf16.mxu0 %v17249_v39  ;;  %5847 = vmatprep.subr.bf16.mxu1 %v17258_v52  ;;  %v17273_v39 = vld [vmem:[%s23788_s16 + $0x274] ss:$24 sps:$4 sm:$0xff]   ;;  %v4841_v52 = vld [vmem:[%s23790_s15] sm:$0x1] }
 0xf3c   :  { %5744 = vmatpush1.bf16.msra.mxu0 %v17247_v45  ;;  %5848 = vmatpush1.bf16.msra.mxu1 %v17256_v56  ;;  %v17271_v45 = vld [vmem:[%s23788_s16 + $0x270] ss:$24 sps:$4 sm:$0xff]   ;;  %v17279_v56 = vld [vmem:[%s23788_s16 + $0x2a4] ss:$24 sps:$4 sm:$0xff]  }
 0xf3d   :  { %5745 = vmatprep.subr.bf16.mxu0 %v17255_v47  ;;  %5849 = vmatprep.subr.bf16.mxu1 %v17264_v58 }
 0xf40   :  { %5746 = vmatpush1.bf16.msra.mxu0 %v17253_v53  ;;  %5850 = vmatpush1.bf16.msra.mxu1 %v17262_v55  ;;  %v17277_v55 = vld [vmem:[%s23788_s16 + $0x2a0] ss:$24 sps:$4 sm:$0xff]  }
 0xf41   :  { %5747 = vmatprep.subr.bf16.mxu0 %v17261_v57  ;;  %5851 = vmatprep.subr.bf16.mxu1 %v17270_v33  ;;  %v17282_v57 = vld [vmem:[%s23788_s16 + $0x2ac] ss:$24 sps:$4 sm:$0xff]  }
 0xf44   :  { %5748 = vmatpush1.bf16.msra.mxu0 %v17259_v59  ;;  %5852 = vmatpush1.bf16.msra.mxu1 %v17268_v31 }
 0xf45   :  { %5749 = vmatprep.subr.bf16.mxu0 %v17267_v30  ;;  %5853 = vmatprep.subr.bf16.mxu1 %v17276_v22 }
 0xf48   :  { %5750 = vmatpush1.bf16.msra.mxu0 %v17265_v27  ;;  %5854 = vmatpush1.bf16.msra.mxu1 %v17274_v28 }
 0xf49   :  { %5751 = vmatprep.subr.bf16.mxu0 %v17273_v39  ;;  %5855 = vmatprep.subr.bf16.mxu1 %v17282_v57 }
 0xf4c   :  { %5752 = vmatpush1.bf16.msra.mxu0 %v17271_v45 }
 0xf4d   :  { %5753 = vmatprep.subr.bf16.mxu0 %v17279_v56  ;;  %v17292_v56 = vld [vmem:[%s23788_s16 + $0x308] ss:$24 sps:$4 sm:$0xff]  }
 0xf50   :  { %5754 = vmatpush1.bf16.msra.mxu0 %v17277_v55  ;;  %v17295_v55 = vld [vmem:[%s23788_s16 + $0x330] ss:$24 sps:$4 sm:$0xff]  }
 0xfe5   :  { %v4811_v7 = vpop.f32.mrb[56].mxu1 }
 0xfe6   :  { %v15970_v60 = vpop.f32.mrb[57].mxu1 }
 0xfe9   :  { %v15416_v61 = vpop.f32.mrb[56].mxu0  ;;  %v4816_v62 = vpop.f32.mrb[58].mxu1 }
 0xfea   :  { %v15417_v63 = vpop.f32.mrb[57].mxu0  ;;  %v15973_v1 = vpop.f32.mrb[59].mxu1 }
 0xfeb   :  { %v15418_v2 = vadd.f32 %v15417_v63, %v15416_v61  ;;  %v17288_v61 = vld [vmem:[%s23788_s16 + $0x2dc] ss:$24 sps:$4 sm:$0xff]   ;;  %v17283_v63 = vld [vmem:[%s23788_s16 + $0x2d0] ss:$24 sps:$4 sm:$0xff]  }
 0xfec   :  { %v17286_v1 = vld [vmem:[%s23788_s16 + $0x2d8] ss:$24 sps:$4 sm:$0xff]  }
 0xfed   :  { %v4812_v3 = vadd.f32 %v15418_v2, %v4811_v7  ;;  %v15419_v4 = vpop.f32.mrb[58].mxu0  ;;  %v4821_v5 = vpop.f32.mrb[60].mxu1  ;;  %v17280_v7 = vld [vmem:[%s23788_s16 + $0x2a8] ss:$24 sps:$4 sm:$0xff]   ;;  %v17291_v2 = vld [vmem:[%s23788_s16 + $0x304] ss:$24 sps:$4 sm:$0xff]  }
 0xfee   :  { %v15420_v8 = vpop.f32.mrb[59].mxu0  ;;  %v15976_v9 = vpop.f32.mrb[61].mxu1  ;;  %5856 = vmatpush1.bf16.msra.mxu1 %v17280_v7  ;;  %v17298_v7 = vld [vmem:[%s23788_s16 + $0x338] ss:$24 sps:$4 sm:$0xff]  }
 0xfef   :  { %v15421_v10 = vadd.f32 %v15420_v8, %v15419_v4  ;;  %v4825_v13 = vsel %vm95_vm1, %v4812_v3, 0.0  ;;  %5857 = vmatprep.subr.bf16.mxu1 %v17288_v61  ;;  %v17294_v3 = vld [vmem:[%s23788_s16 + $0x30c] ss:$24 sps:$4 sm:$0xff]  }
 0xff0   :  { %v17306_v61 = vld [vmem:[%s23788_s16 + $0x36c] ss:$24 sps:$4 sm:$0xff]  }
 0xff1   :  { %v4817_v11 = vadd.f32 %v15421_v10, %v4816_v62  ;;  %v15422_v12 = vpop.f32.mrb[60].mxu0 }
 0xff2   :  { %v15423_v51 = vpop.f32.mrb[61].mxu0  ;;  %5858 = vmatpush1.bf16.msra.mxu1 %v17286_v1 }
 0xff3   :  { %v4826_v14 = vsel %vm95_vm1, %v4817_v11, 0.0  ;;  %v15424_v15 = vadd.f32 %v15423_v51, %v15422_v12  ;;  %5878 = vmatprep.subr.bf16.mxu1 %v17294_v3  ;;  %v17312_v3 = vld [vmem:[%s23788_s16 + $0x39c] ss:$24 sps:$4 sm:$0xff]  }
 0xff4   :  { %v4827_v54 = vadd.f32 %v4826_v14, %v4825_v13 }
 0xff5   :  { %v4822_v17 = vadd.f32 %v15424_v15, %v4821_v5 }
 0xff7   :  { %v4828_v40 = vsel %vm4607_vm12, %v4822_v17, 0.0 }
 0xff8   :  { %v4829_v50 = vadd.f32 %v4828_v40, %v4827_v54 }
 0xffa   :  { %v4830_v18 = vrot.slane %v4829_v50, 4 }
 0xffc   :  { %v4831_v49 = vadd.f32 %v4830_v18, %v4829_v50 }
 0xffe   :  { %v4832_v19 = vrot.slane %v4831_v49, 2 }
0x1000   :  { %v4833_v21 = vadd.f32 %v4832_v19, %v4831_v49 }
0x1002   :  { %v4834_v23 = vrot.slane %v4833_v21, 1 }
0x1004   :  { %v4835_v24 = vadd.f32 %v4834_v23, %v4833_v21 }
0x1006   :  { %v4836_v25 = vmul.f32 0.004132231, %v4835_v24 }
0x1008   :  { %v4838_v26 = vadd.f32 1e-05, %v4836_v25 }
0x100a   :  { %18187 = vrsqrt.f32 %v4838_v26 }
0x1014   :  { %v18188_v47 = vpop.eup %18187 }
0x1015   :  { %v4840_v53 = vmul.f32 %v18188_v47, %v4837_v36 }
0x1017   :  { %v4848_v58 = vrot.slane %v4840_v53, %v18483_v37  ;;  %v4842_v59 = vmul.f32 %v4840_v53, %v20060_v20  ;;  %v17285_v20 = vld [vmem:[%s23788_s16 + $0x2d4] ss:$24 sps:$4 sm:$0xff]  }
0x1018   :  { %5755 = vmatprep.subr.bf16.mxu0 %v17285_v20  ;;  %v17303_v20 = vld [vmem:[%s23788_s16 + $0x364] ss:$24 sps:$4 sm:$0xff]  }
0x1019   :  { %4852 = vrot.lane.b32.xlu0 %v4848_v58, %s18286_s28  ;;  %4849 = vrot.lane.b32.xlu1 %v4848_v58, %s18284_s4  ;;  %v4843_v60 = vsub.f32 %v4841_v52, %v4842_v59 }
0x101a   :  { %5756 = vmatpush1.bf16.msra.mxu0 %v17283_v63  ;;  %v17304_v63 = vld [vmem:[%s23788_s16 + $0x368] ss:$24 sps:$4 sm:$0xff]  }
0x101b   :  { %v4882_v62 = vrot.slane %v4843_v60, %v18483_v37  ;;  %5776 = vmatprep.subr.bf16.mxu0 %v17291_v2  ;;  %v17309_v2 = vld [vmem:[%s23788_s16 + $0x394] ss:$24 sps:$4 sm:$0xff]  }
0x101d   :  { %4855 = vrot.lane.b32.xlu1 %v4848_v58, %s18288_s13  ;;  %4883 = vrot.lane.b32.xlu0 %v4882_v62, %s18284_s4  ;;  %v17300_v58 = vld [vmem:[%s23788_s16 + $0x33c] ss:$24 sps:$4 sm:$0xff]  }
0x1021   :  { %4886 = vrot.lane.b32.xlu1 %v4882_v62, %s18286_s28  ;;  %4889 = vrot.lane.b32.xlu0 %v4882_v62, %s18288_s13  ;;  %v17301_v62 = vld [vmem:[%s23788_s16 + $0x360] ss:$24 sps:$4 sm:$0xff]  }
0x108b   :  { %v4853_v4 = vpop.permute.xlu0 %4852  ;;  %v4850_v5 = vpop.permute.xlu1 %4849 }
0x108c   :  { %v4858_v8 = vsel %vm95_vm1, %v4840_v53, %v4850_v5  ;;  %v17289_v53 = vld [vmem:[%s23788_s16 + $0x300] ss:$24 sps:$4 sm:$0xff]  }
0x108d   :  { %v4859_v9 = vsel %vm222_vm3, %v4858_v8, %v4853_v4  ;;  %v17307_v4 = vld [vmem:[%s23788_s16 + $0x390] ss:$24 sps:$4 sm:$0xff]   ;;  %v17315_v8 = vld [vmem:[%s23788_s16 + $0x3c4] ss:$24 sps:$4 sm:$0xff]  }
0x108e   :  { %v20309_v12 = vrot.slane %v4859_v9, %v18483_v37  ;;  %v17310_v5 = vld [vmem:[%s23788_s16 + $0x398] ss:$24 sps:$4 sm:$0xff]  }
0x108f   :  { %v4856_v10 = vpop.permute.xlu1 %4855  ;;  %v4884_v11 = vpop.permute.xlu0 %4883 }
0x1090   :  { %v4860_v51 = vsel %vm4434_vm11, %v4859_v9, %v4856_v10  ;;  %v4892_v14 = vsel %vm95_vm1, %v4843_v60, %v4884_v11  ;;  %v4871_v17 = vmul.f32 %v20309_v12, %v19999_v44  ;;  %v4874_v18 = vmul.f32 %v20309_v12, %v20007_v48  ;;  %v17318_v9 = vld [vmem:[%s23788_s16 + $0x3cc] ss:$24 sps:$4 sm:$0xff]   ;;  %v17313_v10 = vld [vmem:[%s23788_s16 + $0x3c0] ss:$24 sps:$4 sm:$0xff]  }
0x1091   :  { %v4864_v13 = vrot.slane %v4860_v51, %v18483_v37  ;;  %v17316_v11 = vld [vmem:[%s23788_s16 + $0x3c8] ss:$24 sps:$4 sm:$0xff]   ;;  %v17321_v51 = vld [vmem:[%s23788_s16 + $0x3f4] ss:$24 sps:$4 sm:$0xff]  }
0x1093   :  { %v4887_v15 = vpop.permute.xlu1 %4886  ;;  %v4890_v54 = vpop.permute.xlu0 %4889  ;;  %v4869_v50 = vmul.f32 %v4864_v13, %v20028_v29  ;;  %v4870_v21 = vmul.f32 %v4864_v13, %v20030_v32  ;;  %v4872_v23 = vmul.f32 %v4864_v13, %v20034_v38  ;;  %v4873_v24 = vmul.f32 %v4864_v13, %v20037_v41 }
0x1094   :  { %v4893_v40 = vsel %vm222_vm3, %v4892_v14, %v4887_v15  ;;  %v4876_v25 = vmul.f32 %v4864_v13, %v20045_v42  ;;  %v4875_v28 = vmul.f32 %v4864_v13, %v20042_v46  ;;  %v17297_v46 = vld [vmem:[%s23788_s16 + $0x334] ss:$24 sps:$4 sm:$0xff]   ;;  %v17319_v14 = vld [vmem:[%s23788_s16 + $0x3f0] ss:$24 sps:$4 sm:$0xff]  }
0x1095   :  { %v20321_v49 = vrot.slane %v4893_v40, %v18483_v37  ;;  %v4894_v19 = vsel %vm4434_vm11, %v4893_v40, %v4890_v54  ;;  %v17324_v13 = vld [vmem:[%s23788_s16 + $0x3fc] ss:$24 sps:$4 sm:$0xff]   ;;  %v17322_v15 = vld [vmem:[%s23788_s16 + $0x3f8] ss:$24 sps:$4 sm:$0xff]   ;;  %v4877_v40 = vmul.f32 %v20309_v12, %v20015_v43 }
0x1096   :  { %v4898_v44 = vrot.slane %v4894_v19, %v18483_v37  ;;  %v17327_v54 = vld [vmem:[%s23788_s16 + $0x14] ss:$24 sps:$4 sm:$0xff]   ;;  %v17331_v12 = vld [vmem:[%s23788_s16 + $0x40] ss:$24 sps:$4 sm:$0xff]  }
0x1097   :  { %v4905_v29 = vadd.f32 %v20321_v49, %v4871_v17  ;;  %v4908_v26 = vadd.f32 %v20321_v49, %v4874_v18  ;;  %v17330_v17 = vld [vmem:[%s23788_s16 + $0x424] ss:$24 sps:$4 sm:$0xff]   ;;  %v17328_v18 = vld [vmem:[%s23788_s16 + $0x420] ss:$24 sps:$4 sm:$0xff]   ;;  %v4911_v19 = vadd.f32 %v20321_v49, %v4877_v40  ;;  %v17336_v43 = vld [vmem:[%s23788_s16 + $0x454] ss:$24 sps:$4 sm:$0xff]  }
0x1098   :  { %v4903_v48 = vadd.f32 %v4898_v44, %v4869_v50  ;;  %v4904_v27 = vadd.f32 %v4898_v44, %v4870_v21  ;;  %v4906_v30 = vadd.f32 %v4898_v44, %v4872_v23  ;;  %v4907_v31 = vadd.f32 %v4898_v44, %v4873_v24  ;;  %v17325_v50 = vld [vmem:[%s23788_s16 + $0x10] ss:$24 sps:$4 sm:$0xff]   ;;  %v17333_v21 = vld [vmem:[%s23788_s16 + $0x44] ss:$24 sps:$4 sm:$0xff]   ;;  %v17339_v24 = vld [vmem:[%s23788_s16 + $0x74] ss:$24 sps:$4 sm:$0xff]  }
0x1099   :  { %v4914_v33 = vmax.f32 %v4905_v29, 0.0  ;;  %v4917_v36 = vmax.f32 %v4908_v26, 0.0  ;;  %v4910_v39 = vadd.f32 %v4898_v44, %v4876_v25  ;;  %v4909_v57 = vadd.f32 %v4898_v44, %v4875_v28  ;;  %v17334_v49 = vld [vmem:[%s23788_s16 + $0x450] ss:$24 sps:$4 sm:$0xff]   ;;  %v17342_v44 = vld [vmem:[%s23788_s16 + $0x484] ss:$24 sps:$4 sm:$0xff]  }
0x109a   :  { %v4912_v32 = vmax.f32 %v4903_v48, 0.0  ;;  %v4913_v22 = vmax.f32 %v4904_v27, 0.0  ;;  %v4915_v38 = vmax.f32 %v4906_v30, 0.0  ;;  %v4916_v41 = vmax.f32 %v4907_v31, 0.0  ;;  %v17337_v25 = vld [vmem:[%s23788_s16 + $0x70] ss:$24 sps:$4 sm:$0xff]  }
0x109b   :  { %v20331_v45 = vpack.c.bf16 %v4917_v36, %v4914_v33  ;;  %v4919_v42 = vmax.f32 %v4910_v39, 0.0  ;;  %v4918_v60 = vmax.f32 %v4909_v57, 0.0  ;;  %v4920_v23 = vmax.f32 %v4911_v19, 0.0  ;;  %v17340_v26 = vld [vmem:[%s23788_s16 + $0x480] ss:$24 sps:$4 sm:$0xff]  }
0x109c   :  { %v20334_v47 = vpack.c.bf16 %v4915_v38, %v4912_v32  ;;  %v20336_v52 = vpack.c.bf16 %v4916_v41, %v4913_v22  ;;  %v17345_v48 = vld [vmem:[%s23788_s16 + $0xa4] ss:$24 sps:$4 sm:$0xff]   ;;  %v17348_v27 = vld [vmem:[%s23788_s16 + $0x4b4] ss:$24 sps:$4 sm:$0xff]   ;;  %v17343_v30 = vld [vmem:[%s23788_s16 + $0xa0] ss:$24 sps:$4 sm:$0xff]  }
0x109d   :  { %v20352_v59 = vpack.c.bf16 %v4919_v42, %v4919_v42  ;;  %v20376_v1 = vpack.c.bf16 %v4918_v60, %v4918_v60  ;;  %v20460_v29 = vpack.c.bf16 %v4920_v23, %v4920_v23  ;;  %v17346_v31 = vld [vmem:[%s23788_s16 + $0x4b0] ss:$24 sps:$4 sm:$0xff]   ;;  %v17351_v33 = vld [vmem:[%s23788_s16 + $0xd4] ss:$24 sps:$4 sm:$0xff]   ;;  %v17354_v36 = vld [vmem:[%s23788_s16 + $0x4e4] ss:$24 sps:$4 sm:$0xff]  }
0x109e   :  { %5757 = vmatprep.mubr.bf16.mxu0 %v20336_v52  ;;  %5859 = vmatprep.mubr.bf16.mxu1 %v20336_v52  ;;  %v17349_v39 = vld [vmem:[%s23788_s16 + $0xd0] ss:$24 sps:$4 sm:$0xff]   ;;  %v17352_v32 = vld [vmem:[%s23788_s16 + $0x4e0] ss:$24 sps:$4 sm:$0xff]   ;;  %v17357_v22 = vld [vmem:[%s23788_s16 + $0x104] ss:$24 sps:$4 sm:$0xff]  }
0x109f   :  { %5758 = vmatmul.mubr.bf16.vlgmr.msra.gmra.mrb[64].mxu0 %v20334_v47  ;;  %5860 = vmatmul.mubr.bf16.vlgmr.msra.gmra.mrb[64].mxu1 %v20334_v47  ;;  %v17360_v38 = vld [vmem:[%s23788_s16 + $0x514] ss:$24 sps:$4 sm:$0xff]   ;;  %v17355_v41 = vld [vmem:[%s23788_s16 + $0x100] ss:$24 sps:$4 sm:$0xff]   ;;  %v17358_v28 = vld [vmem:[%s23788_s16 + $0x510] ss:$24 sps:$4 sm:$0xff]  }
0x10a0   :  { %5777 = vmatpush1.bf16.msra.mxu0 %v17289_v53  ;;  %5879 = vmatpush1.bf16.msra.mxu1 %v17292_v56  ;;  %v17363_v42 = vld [vmem:[%s23788_s16 + $0x134] ss:$24 sps:$4 sm:$0xff]   ;;  %v17366_v53 = vld [vmem:[%s23788_s16 + $0x544] ss:$24 sps:$4 sm:$0xff]   ;;  %v17361_v56 = vld [vmem:[%s23788_s16 + $0x130] ss:$24 sps:$4 sm:$0xff]  }
0x10a1   :  { %5767 = vmatprep.mubr.bf16.mxu0 %v20352_v59  ;;  %5869 = vmatprep.mubr.bf16.mxu1 %v20352_v59  ;;  %v17364_v57 = vld [vmem:[%s23788_s16 + $0x540] ss:$24 sps:$4 sm:$0xff]   ;;  %v17375_v60 = vld [vmem:[%s23788_s16 + $0x194] ss:$24 sps:$4 sm:$0xff]  }
0x10a2   :  { %5778 = vmatprep.subr.bf16.mxu0 %v17297_v46  ;;  %5880 = vmatprep.subr.bf16.mxu1 %v17300_v58  ;;  %v17369_v46 = vld [vmem:[%s23788_s16 + $0x164] ss:$24 sps:$4 sm:$0xff]   ;;  %v17372_v58 = vld [vmem:[%s23788_s16 + $0x574] ss:$24 sps:$4 sm:$0xff]   ;;  %v17400_v40 = vld [vmem:[%s23788_s16 + $0x660] ss:$24 sps:$4 sm:$0xff]  }
0x10a3   :  { %v17403_v19 = vld [vmem:[%s23788_s16 + $0x280] ss:$24 sps:$4 sm:$0xff]  }
0x10a4   :  { %5779 = vmatpush1.bf16.msra.mxu0 %v17295_v55  ;;  %5881 = vmatpush1.bf16.msra.mxu1 %v17298_v7  ;;  %v17367_v55 = vld [vmem:[%s23788_s16 + $0x160] ss:$24 sps:$4 sm:$0xff]   ;;  %v17370_v7 = vld [vmem:[%s23788_s16 + $0x570] ss:$24 sps:$4 sm:$0xff]  }
0x10a5   :  { %5780 = vmatprep.subr.bf16.mxu0 %v17303_v20  ;;  %5882 = vmatprep.subr.bf16.mxu1 %v17306_v61  ;;  %v17378_v20 = vld [vmem:[%s23788_s16 + $0x5a4] ss:$24 sps:$4 sm:$0xff]   ;;  %v17373_v61 = vld [vmem:[%s23788_s16 + $0x190] ss:$24 sps:$4 sm:$0xff]   ;;  %v17412_v23 = vld [vmem:[%s23788_s16 + $0x6c0] ss:$24 sps:$4 sm:$0xff]  }
0x10a7   :  { %5768 = vmatmul.mubr.bf16.gmra.mrb[68].mxu0 %v20376_v1  ;;  %5870 = vmatmul.mubr.bf16.gmra.mrb[68].mxu1 %v20376_v1 }
0x10a8   :  { %5781 = vmatpush1.bf16.msra.mxu0 %v17301_v62  ;;  %5883 = vmatpush1.bf16.msra.mxu1 %v17304_v63  ;;  %v17376_v62 = vld [vmem:[%s23788_s16 + $0x5a0] ss:$24 sps:$4 sm:$0xff]   ;;  %v17381_v63 = vld [vmem:[%s23788_s16 + $0x1c4] ss:$24 sps:$4 sm:$0xff]  }
0x10a9   :  { %5782 = vmatprep.subr.bf16.mxu0 %v17309_v2  ;;  %5884 = vmatprep.subr.bf16.mxu1 %v17312_v3  ;;  %v17384_v2 = vld [vmem:[%s23788_s16 + $0x5d4] ss:$24 sps:$4 sm:$0xff]   ;;  %v17379_v3 = vld [vmem:[%s23788_s16 + $0x1c0] ss:$24 sps:$4 sm:$0xff]  }
0x10aa   :  { %5808 = vmatprep.mubr.bf16.mxu0 %v18285_v16  ;;  %5910 = vmatprep.mubr.bf16.mxu1 %v18285_v16 }
0x10ac   :  { %5783 = vmatpush1.bf16.msra.mxu0 %v17307_v4  ;;  %5885 = vmatpush1.bf16.msra.mxu1 %v17310_v5  ;;  %v17382_v4 = vld [vmem:[%s23788_s16 + $0x5d0] ss:$24 sps:$4 sm:$0xff]   ;;  %v17387_v5 = vld [vmem:[%s23788_s16 + $0x1f4] ss:$24 sps:$4 sm:$0xff]  }
0x10ad   :  { %5784 = vmatprep.subr.bf16.mxu0 %v17315_v8  ;;  %5886 = vmatprep.subr.bf16.mxu1 %v17318_v9  ;;  %v17390_v8 = vld [vmem:[%s23788_s16 + $0x604] ss:$24 sps:$4 sm:$0xff]   ;;  %v17385_v9 = vld [vmem:[%s23788_s16 + $0x1f0] ss:$24 sps:$4 sm:$0xff]  }
0x10b0   :  { %5785 = vmatpush1.bf16.msra.mxu0 %v17313_v10  ;;  %5887 = vmatpush1.bf16.msra.mxu1 %v17316_v11  ;;  %v17388_v10 = vld [vmem:[%s23788_s16 + $0x600] ss:$24 sps:$4 sm:$0xff]   ;;  %v17393_v11 = vld [vmem:[%s23788_s16 + $0x224] ss:$24 sps:$4 sm:$0xff]  }
0x10b1   :  { %5786 = vmatprep.subr.bf16.mxu0 %v17321_v51  ;;  %5888 = vmatprep.subr.bf16.mxu1 %v17324_v13  ;;  %v17396_v51 = vld [vmem:[%s23788_s16 + $0x634] ss:$24 sps:$4 sm:$0xff]   ;;  %v17391_v13 = vld [vmem:[%s23788_s16 + $0x220] ss:$24 sps:$4 sm:$0xff]  }
0x10b4   :  { %5787 = vmatpush1.bf16.msra.mxu0 %v17319_v14  ;;  %5889 = vmatpush1.bf16.msra.mxu1 %v17322_v15  ;;  %v17394_v14 = vld [vmem:[%s23788_s16 + $0x630] ss:$24 sps:$4 sm:$0xff]   ;;  %v17399_v15 = vld [vmem:[%s23788_s16 + $0x254] ss:$24 sps:$4 sm:$0xff]  }
0x10b5   :  { %5929 = vmatprep.subr.bf16.mxu0 %v17327_v54  ;;  %6830 = vmatprep.subr.bf16.mxu1 %v17330_v17  ;;  %v17402_v54 = vld [vmem:[%s23788_s16 + $0x664] ss:$24 sps:$4 sm:$0xff]   ;;  %v17397_v17 = vld [vmem:[%s23788_s16 + $0x250] ss:$24 sps:$4 sm:$0xff]  }
0x10b7   :  { %13909 = vmatmul.mubr.msk.bf16.vlgmr.msra.gmra.mrb[64].mxu0 %vm4434_vm11, %v20331_v45  ;;  %13911 = vmatmul.mubr.msk.bf16.vlgmr.msra.gmra.mrb[64].mxu1 %vm4434_vm11, %v20331_v45 }
0x10b8   :  { %5930 = vmatpush1.bf16.msra.mxu0 %v17325_v50  ;;  %6831 = vmatpush1.bf16.msra.mxu1 %v17328_v18  ;;  %v17405_v50 = vld [vmem:[%s23788_s16 + $0x284] ss:$24 sps:$4 sm:$0xff]   ;;  %v17408_v18 = vld [vmem:[%s23788_s16 + $0x694] ss:$24 sps:$4 sm:$0xff]  }
0x10b9   :  { %5931 = vmatprep.subr.bf16.mxu0 %v17333_v21  ;;  %6832 = vmatprep.subr.bf16.mxu1 %v17336_v43  ;;  %v17406_v21 = vld [vmem:[%s23788_s16 + $0x690] ss:$24 sps:$4 sm:$0xff]   ;;  %v17411_v43 = vld [vmem:[%s23788_s16 + $0x2b4] ss:$24 sps:$4 sm:$0xff]  }
0x10ba   :  { %5818 = vmatprep.mubr.bf16.mxu0 %v18285_v16  ;;  %5920 = vmatprep.mubr.bf16.mxu1 %v18285_v16 }
0x10bc   :  { %5932 = vmatpush1.bf16.msra.mxu0 %v17331_v12  ;;  %6833 = vmatpush1.bf16.msra.mxu1 %v17334_v49  ;;  %v17414_v12 = vld [vmem:[%s23788_s16 + $0x6c4] ss:$24 sps:$4 sm:$0xff]   ;;  %v17409_v49 = vld [vmem:[%s23788_s16 + $0x2b0] ss:$24 sps:$4 sm:$0xff]  }
0x10bd   :  { %5933 = vmatprep.subr.bf16.mxu0 %v17339_v24  ;;  %6834 = vmatprep.subr.bf16.mxu1 %v17342_v44  ;;  %v17417_v24 = vld [vmem:[%s23788_s16 + $0x2e4] ss:$24 sps:$4 sm:$0xff]   ;;  %v17420_v44 = vld [vmem:[%s23788_s16 + $0x6f4] ss:$24 sps:$4 sm:$0xff]  }
0x10bf   :  { %13910 = vmatmul.mubr.msk.bf16.gmra.mrb[68].mxu0 %vm4434_vm11, %v20460_v29  ;;  %13912 = vmatmul.mubr.msk.bf16.gmra.mrb[68].mxu1 %vm4434_vm11, %v20460_v29 }
0x10c0   :  { %5934 = vmatpush1.bf16.msra.mxu0 %v17337_v25  ;;  %5961 = vmatprep.mubr.bf16.mxu0 %v20336_v52  ;;  %v17415_v25 = vld [vmem:[%s23788_s16 + $0x2e0] ss:$24 sps:$4 sm:$0xff]  }
0x10c1   :  { %6835 = vmatpush1.bf16.msra.mxu1 %v17340_v26  ;;  %6862 = vmatprep.mubr.bf16.mxu1 %v20336_v52  ;;  %v17418_v26 = vld [vmem:[%s23788_s16 + $0x6f0] ss:$24 sps:$4 sm:$0xff]  }
0x10c2   :  { %5935 = vmatprep.subr.bf16.mxu0 %v17345_v48  ;;  %6836 = vmatprep.subr.bf16.mxu1 %v17348_v27  ;;  %v17423_v48 = vld [vmem:[%s23788_s16 + $0x314] ss:$24 sps:$4 sm:$0xff]   ;;  %v17426_v27 = vld [vmem:[%s23788_s16 + $0x724] ss:$24 sps:$4 sm:$0xff]  }
0x10c4   :  { %5936 = vmatpush1.bf16.msra.mxu0 %v17343_v30  ;;  %v17421_v30 = vld [vmem:[%s23788_s16 + $0x310] ss:$24 sps:$4 sm:$0xff]  }
0x10c5   :  { %6837 = vmatpush1.bf16.msra.mxu1 %v17346_v31  ;;  %5937 = vmatprep.subr.bf16.mxu0 %v17351_v33  ;;  %v17424_v31 = vld [vmem:[%s23788_s16 + $0x720] ss:$24 sps:$4 sm:$0xff]   ;;  %v17429_v33 = vld [vmem:[%s23788_s16 + $0x344] ss:$24 sps:$4 sm:$0xff]  }
0x10c6   :  { %6838 = vmatprep.subr.bf16.mxu1 %v17354_v36  ;;  %v17432_v36 = vld [vmem:[%s23788_s16 + $0x754] ss:$24 sps:$4 sm:$0xff]  }
0x10c8   :  { %5938 = vmatpush1.bf16.msra.mxu0 %v17349_v39  ;;  %v17427_v39 = vld [vmem:[%s23788_s16 + $0x340] ss:$24 sps:$4 sm:$0xff]  }
0x10c9   :  { %6839 = vmatpush1.bf16.msra.mxu1 %v17352_v32  ;;  %5939 = vmatprep.subr.bf16.mxu0 %v17357_v22  ;;  %v17430_v32 = vld [vmem:[%s23788_s16 + $0x750] ss:$24 sps:$4 sm:$0xff]   ;;  %v17435_v22 = vld [vmem:[%s23788_s16 + $0x374] ss:$24 sps:$4 sm:$0xff]  }
0x10ca   :  { %6840 = vmatprep.subr.bf16.mxu1 %v17360_v38  ;;  %v17438_v38 = vld [vmem:[%s23788_s16 + $0x784] ss:$24 sps:$4 sm:$0xff]  }
0x10cc   :  { %5940 = vmatpush1.bf16.msra.mxu0 %v17355_v41  ;;  %v17433_v41 = vld [vmem:[%s23788_s16 + $0x370] ss:$24 sps:$4 sm:$0xff]  }
0x10cd   :  { %6841 = vmatpush1.bf16.msra.mxu1 %v17358_v28  ;;  %5941 = vmatprep.subr.bf16.mxu0 %v17363_v42  ;;  %v17436_v28 = vld [vmem:[%s23788_s16 + $0x780] ss:$24 sps:$4 sm:$0xff]   ;;  %v17441_v42 = vld [vmem:[%s23788_s16 + $0x3a4] ss:$24 sps:$4 sm:$0xff]  }
0x10ce   :  { %6842 = vmatprep.subr.bf16.mxu1 %v17366_v53  ;;  %v17444_v53 = vld [vmem:[%s23788_s16 + $0x7b4] ss:$24 sps:$4 sm:$0xff]  }
0x10d0   :  { %5942 = vmatpush1.bf16.msra.mxu0 %v17361_v56  ;;  %v17439_v56 = vld [vmem:[%s23788_s16 + $0x3a0] ss:$24 sps:$4 sm:$0xff]  }
0x10d1   :  { %6843 = vmatpush1.bf16.msra.mxu1 %v17364_v57  ;;  %5943 = vmatprep.subr.bf16.mxu0 %v17369_v46  ;;  %v17442_v57 = vld [vmem:[%s23788_s16 + $0x7b0] ss:$24 sps:$4 sm:$0xff]   ;;  %v17447_v46 = vld [vmem:[%s23788_s16 + $0x3d4] ss:$24 sps:$4 sm:$0xff]  }
0x10d2   :  { %6844 = vmatprep.subr.bf16.mxu1 %v17372_v58  ;;  %v17450_v58 = vld [vmem:[%s23788_s16 + $0x7e4] ss:$24 sps:$4 sm:$0xff]  }
0x10d4   :  { %5944 = vmatpush1.bf16.msra.mxu0 %v17367_v55  ;;  %v17445_v55 = vld [vmem:[%s23788_s16 + $0x3d0] ss:$24 sps:$4 sm:$0xff]  }
0x10d5   :  { %6845 = vmatpush1.bf16.msra.mxu1 %v17370_v7  ;;  %5945 = vmatprep.subr.bf16.mxu0 %v17375_v60  ;;  %v17448_v7 = vld [vmem:[%s23788_s16 + $0x7e0] ss:$24 sps:$4 sm:$0xff]   ;;  %v17453_v60 = vld [vmem:[%s23788_s16 + $0x404] ss:$24 sps:$4 sm:$0xff]  }
0x10d6   :  { %6846 = vmatprep.subr.bf16.mxu1 %v17378_v20  ;;  %v17456_v20 = vld [vmem:[%s23788_s16 + $0x814] ss:$24 sps:$4 sm:$0xff]  }
0x10d8   :  { %5946 = vmatpush1.bf16.msra.mxu0 %v17373_v61  ;;  %v17451_v61 = vld [vmem:[%s23788_s16 + $0x400] ss:$24 sps:$4 sm:$0xff]  }
0x10d9   :  { %6847 = vmatpush1.bf16.msra.mxu1 %v17376_v62  ;;  %5947 = vmatprep.subr.bf16.mxu0 %v17381_v63  ;;  %v17454_v62 = vld [vmem:[%s23788_s16 + $0x810] ss:$24 sps:$4 sm:$0xff]   ;;  %v17459_v63 = vld [vmem:[%s23788_s16 + $0x42c] ss:$24 sps:$4 sm:$0xff]  }
0x10da   :  { %6848 = vmatprep.subr.bf16.mxu1 %v17384_v2  ;;  %v17462_v2 = vld [vmem:[%s23788_s16 + $0x434] ss:$24 sps:$4 sm:$0xff]  }
0x10dc   :  { %5948 = vmatpush1.bf16.msra.mxu0 %v17379_v3  ;;  %v17457_v3 = vld [vmem:[%s23788_s16 + $0x428] ss:$24 sps:$4 sm:$0xff]  }
0x10dd   :  { %6849 = vmatpush1.bf16.msra.mxu1 %v17382_v4  ;;  %5949 = vmatprep.subr.bf16.mxu0 %v17387_v5  ;;  %v17460_v4 = vld [vmem:[%s23788_s16 + $0x430] ss:$24 sps:$4 sm:$0xff]   ;;  %v17465_v5 = vld [vmem:[%s23788_s16 + $0x45c] ss:$24 sps:$4 sm:$0xff]  }
0x10de   :  { %6850 = vmatprep.subr.bf16.mxu1 %v17390_v8  ;;  %v17468_v8 = vld [vmem:[%s23788_s16 + $0x464] ss:$24 sps:$4 sm:$0xff]  }
0x10e0   :  { %5950 = vmatpush1.bf16.msra.mxu0 %v17385_v9  ;;  %v17463_v9 = vld [vmem:[%s23788_s16 + $0x458] ss:$24 sps:$4 sm:$0xff]  }
0x10e1   :  { %6851 = vmatpush1.bf16.msra.mxu1 %v17388_v10  ;;  %5951 = vmatprep.subr.bf16.mxu0 %v17393_v11  ;;  %v17466_v10 = vld [vmem:[%s23788_s16 + $0x460] ss:$24 sps:$4 sm:$0xff]   ;;  %v17471_v11 = vld [vmem:[%s23788_s16 + $0x48c] ss:$24 sps:$4 sm:$0xff]  }
0x10e2   :  { %6852 = vmatprep.subr.bf16.mxu1 %v17396_v51  ;;  %v17474_v51 = vld [vmem:[%s23788_s16 + $0x494] ss:$24 sps:$4 sm:$0xff]  }
0x10e4   :  { %5952 = vmatpush1.bf16.msra.mxu0 %v17391_v13  ;;  %v17469_v13 = vld [vmem:[%s23788_s16 + $0x488] ss:$24 sps:$4 sm:$0xff]  }
0x10e5   :  { %6853 = vmatpush1.bf16.msra.mxu1 %v17394_v14  ;;  %5953 = vmatprep.subr.bf16.mxu0 %v17399_v15  ;;  %v17472_v14 = vld [vmem:[%s23788_s16 + $0x490] ss:$24 sps:$4 sm:$0xff]   ;;  %v17477_v15 = vld [vmem:[%s23788_s16 + $0x4bc] ss:$24 sps:$4 sm:$0xff]  }
0x10e6   :  { %6854 = vmatprep.subr.bf16.mxu1 %v17402_v54  ;;  %v17480_v54 = vld [vmem:[%s23788_s16 + $0x4c4] ss:$24 sps:$4 sm:$0xff]  }
0x10e8   :  { %5954 = vmatpush1.bf16.msra.mxu0 %v17397_v17  ;;  %v17475_v17 = vld [vmem:[%s23788_s16 + $0x4b8] ss:$24 sps:$4 sm:$0xff]  }
0x10e9   :  { %6855 = vmatpush1.bf16.msra.mxu1 %v17400_v40  ;;  %5955 = vmatprep.subr.bf16.mxu0 %v17405_v50  ;;  %v17478_v40 = vld [vmem:[%s23788_s16 + $0x4c0] ss:$24 sps:$4 sm:$0xff]   ;;  %v17483_v50 = vld [vmem:[%s23788_s16 + $0x4ec] ss:$24 sps:$4 sm:$0xff]  }
0x10ea   :  { %6856 = vmatprep.subr.bf16.mxu1 %v17408_v18  ;;  %v17486_v18 = vld [vmem:[%s23788_s16 + $0x4f4] ss:$24 sps:$4 sm:$0xff]  }
0x10ec   :  { %5956 = vmatpush1.bf16.msra.mxu0 %v17403_v19  ;;  %v17481_v19 = vld [vmem:[%s23788_s16 + $0x4e8] ss:$24 sps:$4 sm:$0xff]  }
0x10ed   :  { %6857 = vmatpush1.bf16.msra.mxu1 %v17406_v21  ;;  %5957 = vmatprep.subr.bf16.mxu0 %v17411_v43  ;;  %v17484_v21 = vld [vmem:[%s23788_s16 + $0x4f0] ss:$24 sps:$4 sm:$0xff]   ;;  %v17489_v43 = vld [vmem:[%s23788_s16 + $0x51c] ss:$24 sps:$4 sm:$0xff]  }
0x10ee   :  { %6858 = vmatprep.subr.bf16.mxu1 %v17414_v12  ;;  %v17492_v12 = vld [vmem:[%s23788_s16 + $0x524] ss:$24 sps:$4 sm:$0xff]  }
0x10f0   :  { %5958 = vmatpush1.bf16.msra.mxu0 %v17409_v49  ;;  %v17487_v49 = vld [vmem:[%s23788_s16 + $0x518] ss:$24 sps:$4 sm:$0xff]  }
0x10f1   :  { %6859 = vmatpush1.bf16.msra.mxu1 %v17412_v23  ;;  %5959 = vmatprep.subr.bf16.mxu0 %v17417_v24  ;;  %v17490_v23 = vld [vmem:[%s23788_s16 + $0x520] ss:$24 sps:$4 sm:$0xff]   ;;  %v17495_v24 = vld [vmem:[%s23788_s16 + $0x54c] ss:$24 sps:$4 sm:$0xff]  }
0x10f2   :  { %6860 = vmatprep.subr.bf16.mxu1 %v17420_v44  ;;  %v17498_v44 = vld [vmem:[%s23788_s16 + $0x554] ss:$24 sps:$4 sm:$0xff]  }
0x10f4   :  { %5960 = vmatpush1.bf16.msra.mxu0 %v17415_v25  ;;  %v17493_v25 = vld [vmem:[%s23788_s16 + $0x548] ss:$24 sps:$4 sm:$0xff]  }
0x10f5   :  { %6861 = vmatpush1.bf16.msra.mxu1 %v17418_v26  ;;  %5980 = vmatprep.subr.bf16.mxu0 %v17423_v48  ;;  %v17496_v26 = vld [vmem:[%s23788_s16 + $0x550] ss:$24 sps:$4 sm:$0xff]   ;;  %v17501_v48 = vld [vmem:[%s23788_s16 + $0x57c] ss:$24 sps:$4 sm:$0xff]  }
0x10f6   :  { %6881 = vmatprep.subr.bf16.mxu1 %v17426_v27  ;;  %v17504_v27 = vld [vmem:[%s23788_s16 + $0x584] ss:$24 sps:$4 sm:$0xff]  }
0x10f7   :  { %5962 = vmatmul.mubr.bf16.vlgmr.msra.gmra.mrb[72].mxu0 %v20334_v47 }
0x10f8   :  { %6863 = vmatmul.mubr.bf16.vlgmr.msra.gmra.mrb[72].mxu1 %v20334_v47  ;;  %5971 = vmatprep.mubr.bf16.mxu0 %v20352_v59 }
0x10f9   :  { %5981 = vmatpush1.bf16.msra.mxu0 %v17421_v30  ;;  %6872 = vmatprep.mubr.bf16.mxu1 %v20352_v59  ;;  %v17499_v30 = vld [vmem:[%s23788_s16 + $0x578] ss:$24 sps:$4 sm:$0xff]  }
0x10fa   :  { %6882 = vmatpush1.bf16.msra.mxu1 %v17424_v31  ;;  %5982 = vmatprep.subr.bf16.mxu0 %v17429_v33  ;;  %v17502_v31 = vld [vmem:[%s23788_s16 + $0x580] ss:$24 sps:$4 sm:$0xff]   ;;  %v17507_v33 = vld [vmem:[%s23788_s16 + $0x5ac] ss:$24 sps:$4 sm:$0xff]  }
0x10fb   :  { %6883 = vmatprep.subr.bf16.mxu1 %v17432_v36  ;;  %v17510_v36 = vld [vmem:[%s23788_s16 + $0x5b4] ss:$24 sps:$4 sm:$0xff]  }
0x10fd   :  { %5983 = vmatpush1.bf16.msra.mxu0 %v17427_v39  ;;  %v17505_v39 = vld [vmem:[%s23788_s16 + $0x5a8] ss:$24 sps:$4 sm:$0xff]  }
0x10fe   :  { %6884 = vmatpush1.bf16.msra.mxu1 %v17430_v32  ;;  %5984 = vmatprep.subr.bf16.mxu0 %v17435_v22  ;;  %v17508_v32 = vld [vmem:[%s23788_s16 + $0x5b0] ss:$24 sps:$4 sm:$0xff]   ;;  %v17513_v22 = vld [vmem:[%s23788_s16 + $0x5dc] ss:$24 sps:$4 sm:$0xff]  }
0x10ff   :  { %5972 = vmatmul.mubr.bf16.gmra.mrb[76].mxu0 %v20376_v1  ;;  %6885 = vmatprep.subr.bf16.mxu1 %v17438_v38  ;;  %v17516_v38 = vld [vmem:[%s23788_s16 + $0x5e4] ss:$24 sps:$4 sm:$0xff]  }
0x1100   :  { %6873 = vmatmul.mubr.bf16.gmra.mrb[76].mxu1 %v20376_v1  ;;  %6012 = vmatprep.mubr.bf16.mxu0 %v18285_v16 }
0x1101   :  { %5985 = vmatpush1.bf16.msra.mxu0 %v17433_v41  ;;  %6913 = vmatprep.mubr.bf16.mxu1 %v18285_v16  ;;  %v17511_v41 = vld [vmem:[%s23788_s16 + $0x5d8] ss:$24 sps:$4 sm:$0xff]  }
0x1102   :  { %6886 = vmatpush1.bf16.msra.mxu1 %v17436_v28  ;;  %5986 = vmatprep.subr.bf16.mxu0 %v17441_v42  ;;  %v17514_v28 = vld [vmem:[%s23788_s16 + $0x5e0] ss:$24 sps:$4 sm:$0xff]   ;;  %v17519_v42 = vld [vmem:[%s23788_s16 + $0x60c] ss:$24 sps:$4 sm:$0xff]  }
0x1103   :  { %6887 = vmatprep.subr.bf16.mxu1 %v17444_v53  ;;  %v17522_v53 = vld [vmem:[%s23788_s16 + $0x614] ss:$24 sps:$4 sm:$0xff]  }
0x1105   :  { %5987 = vmatpush1.bf16.msra.mxu0 %v17439_v56  ;;  %v17517_v56 = vld [vmem:[%s23788_s16 + $0x608] ss:$24 sps:$4 sm:$0xff]  }
0x1106   :  { %6888 = vmatpush1.bf16.msra.mxu1 %v17442_v57  ;;  %5988 = vmatprep.subr.bf16.mxu0 %v17447_v46  ;;  %v17520_v57 = vld [vmem:[%s23788_s16 + $0x610] ss:$24 sps:$4 sm:$0xff]   ;;  %v17525_v46 = vld [vmem:[%s23788_s16 + $0x63c] ss:$24 sps:$4 sm:$0xff]  }
0x1107   :  { %6889 = vmatprep.subr.bf16.mxu1 %v17450_v58  ;;  %v17528_v58 = vld [vmem:[%s23788_s16 + $0x644] ss:$24 sps:$4 sm:$0xff]  }
0x1109   :  { %5989 = vmatpush1.bf16.msra.mxu0 %v17445_v55  ;;  %v17523_v55 = vld [vmem:[%s23788_s16 + $0x638] ss:$24 sps:$4 sm:$0xff]  }
0x110a   :  { %6890 = vmatpush1.bf16.msra.mxu1 %v17448_v7  ;;  %5990 = vmatprep.subr.bf16.mxu0 %v17453_v60  ;;  %v17526_v7 = vld [vmem:[%s23788_s16 + $0x640] ss:$24 sps:$4 sm:$0xff]   ;;  %v17531_v60 = vld [vmem:[%s23788_s16 + $0x66c] ss:$24 sps:$4 sm:$0xff]  }
0x110b   :  { %6891 = vmatprep.subr.bf16.mxu1 %v17456_v20  ;;  %v17534_v20 = vld [vmem:[%s23788_s16 + $0x674] ss:$24 sps:$4 sm:$0xff]  }
0x110d   :  { %5991 = vmatpush1.bf16.msra.mxu0 %v17451_v61  ;;  %v17529_v61 = vld [vmem:[%s23788_s16 + $0x668] ss:$24 sps:$4 sm:$0xff]  }
0x110e   :  { %6892 = vmatpush1.bf16.msra.mxu1 %v17454_v62  ;;  %6932 = vmatprep.subr.bf16.mxu0 %v17459_v63  ;;  %v17532_v62 = vld [vmem:[%s23788_s16 + $0x670] ss:$24 sps:$4 sm:$0xff]   ;;  %v17537_v63 = vld [vmem:[%s23788_s16 + $0x69c] ss:$24 sps:$4 sm:$0xff]  }
0x110f   :  { %7034 = vmatprep.subr.bf16.mxu1 %v17462_v2  ;;  %v17540_v2 = vld [vmem:[%s23788_s16 + $0x6a4] ss:$24 sps:$4 sm:$0xff]  }
0x1110   :  { %13913 = vmatmul.mubr.msk.bf16.vlgmr.msra.gmra.mrb[72].mxu0 %vm4434_vm11, %v20331_v45 }
0x1111   :  { %14179 = vmatmul.mubr.msk.bf16.vlgmr.msra.gmra.mrb[72].mxu1 %vm4434_vm11, %v20331_v45  ;;  %6933 = vmatpush1.bf16.msra.mxu0 %v17457_v3  ;;  %v17535_v3 = vld [vmem:[%s23788_s16 + $0x698] ss:$24 sps:$4 sm:$0xff]  }
0x1112   :  { %7035 = vmatpush1.bf16.msra.mxu1 %v17460_v4  ;;  %6934 = vmatprep.subr.bf16.mxu0 %v17465_v5  ;;  %v17538_v4 = vld [vmem:[%s23788_s16 + $0x6a0] ss:$24 sps:$4 sm:$0xff]   ;;  %v17543_v5 = vld [vmem:[%s23788_s16 + $0x6cc] ss:$24 sps:$4 sm:$0xff]  }
0x1113   :  { %7036 = vmatprep.subr.bf16.mxu1 %v17468_v8  ;;  %6022 = vmatprep.mubr.bf16.mxu0 %v18285_v16  ;;  %v17546_v8 = vld [vmem:[%s23788_s16 + $0x6d4] ss:$24 sps:$4 sm:$0xff]  }
0x1114   :  { %6923 = vmatprep.mubr.bf16.mxu1 %v18285_v16 }
0x1115   :  { %6935 = vmatpush1.bf16.msra.mxu0 %v17463_v9  ;;  %v17541_v9 = vld [vmem:[%s23788_s16 + $0x6c8] ss:$24 sps:$4 sm:$0xff]  }
0x1116   :  { %7037 = vmatpush1.bf16.msra.mxu1 %v17466_v10  ;;  %6936 = vmatprep.subr.bf16.mxu0 %v17471_v11  ;;  %v17544_v10 = vld [vmem:[%s23788_s16 + $0x6d0] ss:$24 sps:$4 sm:$0xff]   ;;  %v17549_v11 = vld [vmem:[%s23788_s16 + $0x6fc] ss:$24 sps:$4 sm:$0xff]  }
0x1117   :  { %7038 = vmatprep.subr.bf16.mxu1 %v17474_v51  ;;  %v17552_v51 = vld [vmem:[%s23788_s16 + $0x704] ss:$24 sps:$4 sm:$0xff]  }
0x1118   :  { %13914 = vmatmul.mubr.msk.bf16.gmra.mrb[76].mxu0 %vm4434_vm11, %v20460_v29 }
0x1119   :  { %14180 = vmatmul.mubr.msk.bf16.gmra.mrb[76].mxu1 %vm4434_vm11, %v20460_v29  ;;  %6937 = vmatpush1.bf16.msra.mxu0 %v17469_v13  ;;  %v17547_v13 = vld [vmem:[%s23788_s16 + $0x6f8] ss:$24 sps:$4 sm:$0xff]  }
0x111a   :  { %6964 = vmatprep.mubr.bf16.mxu0 %v20336_v52  ;;  %7039 = vmatpush1.bf16.msra.mxu1 %v17472_v14  ;;  %v17550_v14 = vld [vmem:[%s23788_s16 + $0x700] ss:$24 sps:$4 sm:$0xff]  }
0x111b   :  { %7066 = vmatprep.mubr.bf16.mxu1 %v20336_v52  ;;  %6938 = vmatprep.subr.bf16.mxu0 %v17477_v15  ;;  %v17555_v15 = vld [vmem:[%s23788_s16 + $0x72c] ss:$24 sps:$4 sm:$0xff]  }
0x111c   :  { %7040 = vmatprep.subr.bf16.mxu1 %v17480_v54  ;;  %v17558_v54 = vld [vmem:[%s23788_s16 + $0x734] ss:$24 sps:$4 sm:$0xff]  }
0x111d   :  { %6939 = vmatpush1.bf16.msra.mxu0 %v17475_v17  ;;  %v17553_v17 = vld [vmem:[%s23788_s16 + $0x728] ss:$24 sps:$4 sm:$0xff]  }
0x111e   :  { %7041 = vmatpush1.bf16.msra.mxu1 %v17478_v40  ;;  %6940 = vmatprep.subr.bf16.mxu0 %v17483_v50  ;;  %v17556_v40 = vld [vmem:[%s23788_s16 + $0x730] ss:$24 sps:$4 sm:$0xff]   ;;  %v17561_v50 = vld [vmem:[%s23788_s16 + $0x75c] ss:$24 sps:$4 sm:$0xff]  }
0x111f   :  { %7042 = vmatprep.subr.bf16.mxu1 %v17486_v18  ;;  %v17564_v18 = vld [vmem:[%s23788_s16 + $0x764] ss:$24 sps:$4 sm:$0xff]  }
0x1121   :  { %6941 = vmatpush1.bf16.msra.mxu0 %v17481_v19  ;;  %v17559_v19 = vld [vmem:[%s23788_s16 + $0x758] ss:$24 sps:$4 sm:$0xff]  }
0x1122   :  { %7043 = vmatpush1.bf16.msra.mxu1 %v17484_v21  ;;  %6942 = vmatprep.subr.bf16.mxu0 %v17489_v43  ;;  %v17562_v21 = vld [vmem:[%s23788_s16 + $0x760] ss:$24 sps:$4 sm:$0xff]   ;;  %v17567_v43 = vld [vmem:[%s23788_s16 + $0x78c] ss:$24 sps:$4 sm:$0xff]  }
0x1123   :  { %7044 = vmatprep.subr.bf16.mxu1 %v17492_v12  ;;  %v17570_v12 = vld [vmem:[%s23788_s16 + $0x794] ss:$24 sps:$4 sm:$0xff]  }
0x1125   :  { %6943 = vmatpush1.bf16.msra.mxu0 %v17487_v49  ;;  %v17565_v49 = vld [vmem:[%s23788_s16 + $0x788] ss:$24 sps:$4 sm:$0xff]  }
0x1126   :  { %7045 = vmatpush1.bf16.msra.mxu1 %v17490_v23  ;;  %6944 = vmatprep.subr.bf16.mxu0 %v17495_v24  ;;  %v17568_v23 = vld [vmem:[%s23788_s16 + $0x790] ss:$24 sps:$4 sm:$0xff]   ;;  %v17573_v24 = vld [vmem:[%s23788_s16 + $0x7bc] ss:$24 sps:$4 sm:$0xff]  }
0x1127   :  { %7046 = vmatprep.subr.bf16.mxu1 %v17498_v44  ;;  %v17576_v44 = vld [vmem:[%s23788_s16 + $0x7c4] ss:$24 sps:$4 sm:$0xff]  }
0x1129   :  { %6945 = vmatpush1.bf16.msra.mxu0 %v17493_v25  ;;  %v17571_v25 = vld [vmem:[%s23788_s16 + $0x7b8] ss:$24 sps:$4 sm:$0xff]  }
0x112a   :  { %7047 = vmatpush1.bf16.msra.mxu1 %v17496_v26  ;;  %6946 = vmatprep.subr.bf16.mxu0 %v17501_v48  ;;  %v17574_v26 = vld [vmem:[%s23788_s16 + $0x7c0] ss:$24 sps:$4 sm:$0xff]   ;;  %v17579_v48 = vld [vmem:[%s23788_s16 + $0x7ec] ss:$24 sps:$4 sm:$0xff]  }
0x112b   :  { %7048 = vmatprep.subr.bf16.mxu1 %v17504_v27  ;;  %v17582_v27 = vld [vmem:[%s23788_s16 + $0x7f4] ss:$24 sps:$4 sm:$0xff]  }
0x112d   :  { %6947 = vmatpush1.bf16.msra.mxu0 %v17499_v30  ;;  %v17577_v30 = vld [vmem:[%s23788_s16 + $0x7e8] ss:$24 sps:$4 sm:$0xff]  }
0x112e   :  { %7049 = vmatpush1.bf16.msra.mxu1 %v17502_v31  ;;  %6948 = vmatprep.subr.bf16.mxu0 %v17507_v33  ;;  %v17580_v31 = vld [vmem:[%s23788_s16 + $0x7f0] ss:$24 sps:$4 sm:$0xff]   ;;  %v17585_v33 = vld [vmem:[%s23788_s16 + $0x81c] ss:$24 sps:$4 sm:$0xff]  }
0x112f   :  { %7050 = vmatprep.subr.bf16.mxu1 %v17510_v36  ;;  %v17588_v36 = vld [vmem:[%s23788_s16 + $0x824] ss:$24 sps:$4 sm:$0xff]  }
0x1131   :  { %6949 = vmatpush1.bf16.msra.mxu0 %v17505_v39  ;;  %v17583_v39 = vld [vmem:[%s23788_s16 + $0x818] ss:$24 sps:$4 sm:$0xff]  }
0x1132   :  { %7051 = vmatpush1.bf16.msra.mxu1 %v17508_v32  ;;  %6950 = vmatprep.subr.bf16.mxu0 %v17513_v22  ;;  %v17586_v32 = vld [vmem:[%s23788_s16 + $0x820] ss:$24 sps:$4 sm:$0xff]  }
0x1133   :  { %7052 = vmatprep.subr.bf16.mxu1 %v17516_v38 }
0x1135   :  { %6951 = vmatpush1.bf16.msra.mxu0 %v17511_v41 }
0x1136   :  { %7053 = vmatpush1.bf16.msra.mxu1 %v17514_v28  ;;  %6952 = vmatprep.subr.bf16.mxu0 %v17519_v42 }
0x1137   :  { %7054 = vmatprep.subr.bf16.mxu1 %v17522_v53 }
0x1139   :  { %6953 = vmatpush1.bf16.msra.mxu0 %v17517_v56 }
0x113a   :  { %7055 = vmatpush1.bf16.msra.mxu1 %v17520_v57  ;;  %6954 = vmatprep.subr.bf16.mxu0 %v17525_v46 }
0x113b   :  { %7056 = vmatprep.subr.bf16.mxu1 %v17528_v58 }
0x113d   :  { %6955 = vmatpush1.bf16.msra.mxu0 %v17523_v55 }
0x113e   :  { %7057 = vmatpush1.bf16.msra.mxu1 %v17526_v7  ;;  %6956 = vmatprep.subr.bf16.mxu0 %v17531_v60 }
0x113f   :  { %7058 = vmatprep.subr.bf16.mxu1 %v17534_v20 }
0x1141   :  { %6957 = vmatpush1.bf16.msra.mxu0 %v17529_v61 }
0x1142   :  { %7059 = vmatpush1.bf16.msra.mxu1 %v17532_v62  ;;  %6958 = vmatprep.subr.bf16.mxu0 %v17537_v63 }
0x1143   :  { %7060 = vmatprep.subr.bf16.mxu1 %v17540_v2 }
0x1145   :  { %6959 = vmatpush1.bf16.msra.mxu0 %v17535_v3 }
0x1146   :  { %7061 = vmatpush1.bf16.msra.mxu1 %v17538_v4  ;;  %6960 = vmatprep.subr.bf16.mxu0 %v17543_v5 }
0x1147   :  { %7062 = vmatprep.subr.bf16.mxu1 %v17546_v8 }
0x1149   :  { %6961 = vmatpush1.bf16.msra.mxu0 %v17541_v9 }
0x114a   :  { %7063 = vmatpush1.bf16.msra.mxu1 %v17544_v10  ;;  %6962 = vmatprep.subr.bf16.mxu0 %v17549_v11 }
0x114b   :  { %7064 = vmatprep.subr.bf16.mxu1 %v17552_v51 }
0x114d   :  { %6963 = vmatpush1.bf16.msra.mxu0 %v17547_v13 }
0x114e   :  { %7065 = vmatpush1.bf16.msra.mxu1 %v17550_v14  ;;  %6983 = vmatprep.subr.bf16.mxu0 %v17555_v15 }
0x114f   :  { %7085 = vmatprep.subr.bf16.mxu1 %v17558_v54 }
0x1150   :  { %6965 = vmatmul.mubr.bf16.vlgmr.msra.gmra.mrb[80].mxu0 %v20334_v47 }
0x1151   :  { %7067 = vmatmul.mubr.bf16.vlgmr.msra.gmra.mrb[80].mxu1 %v20334_v47  ;;  %6974 = vmatprep.mubr.bf16.mxu0 %v20352_v59 }
0x1152   :  { %6984 = vmatpush1.bf16.msra.mxu0 %v17553_v17  ;;  %7076 = vmatprep.mubr.bf16.mxu1 %v20352_v59 }
0x1153   :  { %7086 = vmatpush1.bf16.msra.mxu1 %v17556_v40  ;;  %6985 = vmatprep.subr.bf16.mxu0 %v17561_v50 }
0x1154   :  { %7087 = vmatprep.subr.bf16.mxu1 %v17564_v18 }
0x1156   :  { %6986 = vmatpush1.bf16.msra.mxu0 %v17559_v19 }
0x1157   :  { %7088 = vmatpush1.bf16.msra.mxu1 %v17562_v21  ;;  %6987 = vmatprep.subr.bf16.mxu0 %v17567_v43 }
0x1158   :  { %6975 = vmatmul.mubr.bf16.gmra.mrb[84].mxu0 %v20376_v1  ;;  %7089 = vmatprep.subr.bf16.mxu1 %v17570_v12  ;;  %v14185_v12 = vld [vmem:[%s23791_s17 + $0x30] sm:$0xff] }
0x1159   :  { %7077 = vmatmul.mubr.bf16.gmra.mrb[84].mxu1 %v20376_v1  ;;  %7015 = vmatprep.mubr.bf16.mxu0 %v18285_v16 }
0x115a   :  { %6988 = vmatpush1.bf16.msra.mxu0 %v17565_v49  ;;  %7117 = vmatprep.mubr.bf16.mxu1 %v18285_v16 }
0x115b   :  { %7090 = vmatpush1.bf16.msra.mxu1 %v17568_v23  ;;  %6989 = vmatprep.subr.bf16.mxu0 %v17573_v24 }
0x115c   :  { %7091 = vmatprep.subr.bf16.mxu1 %v17576_v44  ;;  %v14186_v44 = vld [vmem:[%s23791_s17 + $0x38] sm:$0xff] }
0x115e   :  { %6990 = vmatpush1.bf16.msra.mxu0 %v17571_v25  ;;  %v14187_v25 = vld [vmem:[%s23791_s17 + $0x40] sm:$0xff] }
0x115f   :  { %7092 = vmatpush1.bf16.msra.mxu1 %v17574_v26  ;;  %6991 = vmatprep.subr.bf16.mxu0 %v17579_v48  ;;  %v14188_v26 = vld [vmem:[%s23791_s17 + $0x48] sm:$0xff]  ;;  %v14189_v48 = vld [vmem:[%s23791_s17 + $0x50] sm:$0xff] }
0x1160   :  { %7093 = vmatprep.subr.bf16.mxu1 %v17582_v27  ;;  %v21081_v27 = vld [vmem:[%s23791_s17 + $0x58] sm:$0xf] }
0x1162   :  { %6992 = vmatpush1.bf16.msra.mxu0 %v17577_v30 }
0x1163   :  { %7094 = vmatpush1.bf16.msra.mxu1 %v17580_v31  ;;  %6993 = vmatprep.subr.bf16.mxu0 %v17585_v33 }
0x1164   :  { %7095 = vmatprep.subr.bf16.mxu1 %v17588_v36 }
0x1166   :  { %6994 = vmatpush1.bf16.msra.mxu0 %v17583_v39 }
0x1167   :  { %7096 = vmatpush1.bf16.msra.mxu1 %v17586_v32 }
0x1169   :  { %14181 = vmatmul.mubr.msk.bf16.vlgmr.msra.gmra.mrb[80].mxu0 %vm4434_vm11, %v20331_v45 }
0x116a   :  { %14183 = vmatmul.mubr.msk.bf16.vlgmr.msra.gmra.mrb[80].mxu1 %vm4434_vm11, %v20331_v45  ;;  %7025 = vmatprep.mubr.bf16.mxu0 %v18285_v16 }
0x116b   :  { %7127 = vmatprep.mubr.bf16.mxu1 %v18285_v16 }
0x1171   :  { %14182 = vmatmul.mubr.msk.bf16.gmra.mrb[84].mxu0 %vm4434_vm11, %v20460_v29 }
0x1172   :  { %14184 = vmatmul.mubr.msk.bf16.gmra.mrb[84].mxu1 %vm4434_vm11, %v20460_v29  ;;  %7245 = vmatprep.mubr.f32.mxu0 %v23804_v0 }
0x1173   :  { %7346 = vmatprep.mubr.f32.mxu1 %v23804_v0 }
0x118a   :  { %v21003_v22 = vpop.f32.mrb[64].mxu0  ;;  %v21005_v38 = vpop.f32.mrb[64].mxu1 }
0x118b   :  { %v21007_v41 = vpop.f32.mrb[65].mxu0  ;;  %v21009_v28 = vpop.f32.mrb[65].mxu1 }
0x118c   :  { %v21011_v42 = vpop.f32.mrb[66].mxu0  ;;  %v21013_v53 = vpop.f32.mrb[66].mxu1 }
0x118d   :  { %v16273_v56 = vpack.c.bf16 %v21011_v42, %v21003_v22  ;;  %v16277_v57 = vpack.c.bf16 %v21013_v53, %v21005_v38  ;;  %v21019_v46 = vpop.f32.mrb[67].mxu0  ;;  %v21021_v58 = vpop.f32.mrb[67].mxu1  ;;  %v17591_v22 = vld [vmem:[%s23788_s16 + $0x844] ss:$24 sps:$4 sm:$0xff]   ;;  %v17589_v38 = vld [vmem:[%s23788_s16 + $0x840] ss:$24 sps:$4 sm:$0xff]  }
0x118e   :  { %v16271_v55 = vpack.c.bf16 %v21019_v46, %v21007_v41  ;;  %v16275_v7 = vpack.c.bf16 %v21021_v58, %v21009_v28  ;;  %v21147_v41 = vld [vmem:[%s23791_s17] sm:$0xff]  ;;  %v17594_v28 = vld [vmem:[%s23788_s16 + $0x874] ss:$24 sps:$4 sm:$0xff]   ;;  %v17592_v42 = vld [vmem:[%s23788_s16 + $0x870] ss:$24 sps:$4 sm:$0xff]  }
0x118f   :  { %v21163_v53 = vld [vmem:[%s23791_s17 + $0x8] sm:$0xff]  ;;  %v17595_v46 = vld [vmem:[%s23788_s16 + $0x8a0] ss:$24 sps:$4 sm:$0xff]   ;;  %v21188_v58 = vld [vmem:[%s23791_s17 + $0x10] sm:$0xff] }
0x1192   :  { %v21027_v60 = vpop.f32.mrb[68].mxu0  ;;  %v21029_v20 = vpop.f32.mrb[68].mxu1 }
0x1193   :  { %v21031_v61 = vpop.f32.mrb[69].mxu0  ;;  %v21033_v62 = vpop.f32.mrb[69].mxu1 }
0x1194   :  { %v5824_v63 = vpop.f32.mrb[70].mxu0  ;;  %v5926_v2 = vpop.f32.mrb[70].mxu1 }
0x1195   :  { %v5825_v3 = vpop.f32.mrb[71].mxu0  ;;  %v5927_v4 = vpop.f32.mrb[71].mxu1 }
0x11e3   :  { %v21035_v5 = vpop.f32.mrb[72].mxu0 }
0x11e4   :  { %v6915_v8 = vpop.f32.mrb[72].mxu1  ;;  %v21037_v9 = vpop.f32.mrb[73].mxu0 }
0x11e5   :  { %v6917_v10 = vpop.f32.mrb[73].mxu1  ;;  %v21039_v11 = vpop.f32.mrb[74].mxu0 }
0x11e6   :  { %v16281_v51 = vpack.c.bf16 %v21039_v11, %v21035_v5  ;;  %v6919_v13 = vpop.f32.mrb[74].mxu1  ;;  %v21043_v14 = vpop.f32.mrb[75].mxu0  ;;  %v17606_v5 = vld [vmem:[%s23788_s16 + $0x934] ss:$24 sps:$4 sm:$0xff]   ;;  %v21241_v11 = vld [vmem:[%s23791_s17 + $0x28] sm:$0xf] }
0x11e7   :  { %v16261_v15 = vpack.c.bf16 %v6919_v13, %v6915_v8  ;;  %v16279_v54 = vpack.c.bf16 %v21043_v14, %v21037_v9  ;;  %v6921_v17 = vpop.f32.mrb[75].mxu1  ;;  %v17604_v9 = vld [vmem:[%s23788_s16 + $0x930] ss:$24 sps:$4 sm:$0xff]   ;;  %v17607_v14 = vld [vmem:[%s23788_s16 + $0x960] ss:$24 sps:$4 sm:$0xff]  }
0x11e8   :  { %v16259_v40 = vpack.c.bf16 %v6921_v17, %v6917_v10 }
0x11ea   :  { %16260 = vmatprep.subr.bf16.mxu0 %v16259_v40 }
0x11eb   :  { %16262 = vmatpush1.bf16.msra.mxu0 %v16261_v15  ;;  %v21047_v50 = vpop.f32.mrb[76].mxu0 }
0x11ec   :  { %v6925_v18 = vpop.f32.mrb[76].mxu1  ;;  %v21049_v19 = vpop.f32.mrb[77].mxu0 }
0x11ed   :  { %v6927_v21 = vpop.f32.mrb[77].mxu1  ;;  %v6028_v43 = vpop.f32.mrb[78].mxu0 }
0x11ee   :  { %v6929_v49 = vpop.f32.mrb[78].mxu1  ;;  %14191 = vmatprep.subr.msk.mxu0 %vm7162_vm13, %v6927_v21  ;;  %v6029_v23 = vpop.f32.mrb[79].mxu0 }
0x11ef   :  { %v6930_v24 = vpop.f32.mrb[79].mxu1  ;;  %14192 = vmatpush1.msk.msra.mxu0 %vm7162_vm13, %v6925_v18  ;;  %v17616_v23 = vld [vmem:[%s23788_s16 + $0x878] ss:$24 sps:$4 sm:$0xff]  }
0x11f0   :  { %14193 = vmatmul.mubr.msk.f32.vlgmr.msra.gmra.mrb[62].mxu0 %vm7143_vm14, %v14185_v12  ;;  %v17621_v24 = vld [vmem:[%s23788_s16 + $0x9c4] ss:$24 sps:$4 sm:$0xff]  }
0x11f1   :  { %7251 = vmatprep.mubr.f32.mxu0 %v23804_v0 }
0x11f4   :  { %14194 = vmatmul.mubr.msk.f32.gmra.mrb[88].mxu0 %vm7143_vm14, %v14186_v44 }
0x11f5   :  { %7257 = vmatprep.mubr.f32.mxu0 %v23804_v0 }
0x11f8   :  { %14195 = vmatmul.mubr.msk.f32.gmra.mrb[90].mxu0 %vm7143_vm14, %v14187_v25 }
0x11f9   :  { %7263 = vmatprep.mubr.f32.mxu0 %v23804_v0 }
0x11fc   :  { %14196 = vmatmul.mubr.msk.f32.gmra.mrb[92].mxu0 %vm7143_vm14, %v14188_v26 }
0x11fd   :  { %7269 = vmatprep.mubr.f32.mxu0 %v23804_v0 }
0x1200   :  { %14197 = vmatmul.mubr.msk.f32.gmra.mrb[94].mxu0 %vm7143_vm14, %v14189_v48 }
0x1201   :  { %7275 = vmatprep.mubr.f32.mxu0 %v23804_v0 }
0x1204   :  { %14198 = vmatmul.mubr.msk.f32.gmra.mrb[96].mxu0 %vm7143_vm14, %v21081_v27 }
0x1205   :  { %7447 = vmatprep.mubr.f32.mxu0 %v23804_v0 }
0x123c   :  { %v7017_v30 = vpop.f32.mrb[80].mxu0 }
0x123d   :  { %v7119_v31 = vpop.f32.mrb[80].mxu1  ;;  %v7019_v33 = vpop.f32.mrb[81].mxu0 }
0x123e   :  { %v7121_v36 = vpop.f32.mrb[81].mxu1  ;;  %v7021_v39 = vpop.f32.mrb[82].mxu0 }
0x123f   :  { %v16265_v32 = vpack.c.bf16 %v7021_v39, %v7017_v30  ;;  %v7123_v63 = vpop.f32.mrb[82].mxu1  ;;  %v7023_v2 = vpop.f32.mrb[83].mxu0  ;;  %v17625_v30 = vld [vmem:[%s23788_s16 + $0x9f0] ss:$24 sps:$4 sm:$0xff]   ;;  %v17631_v39 = vld [vmem:[%s23788_s16 + $0xa20] ss:$24 sps:$4 sm:$0xff]  }
0x1240   :  { %v16269_v3 = vpack.c.bf16 %v7123_v63, %v7119_v31  ;;  %v16263_v4 = vpack.c.bf16 %v7023_v2, %v7019_v33  ;;  %v7125_v8 = vpop.f32.mrb[83].mxu1  ;;  %v17628_v31 = vld [vmem:[%s23788_s16 + $0x8d8] ss:$24 sps:$4 sm:$0xff]   ;;  %v17633_v33 = vld [vmem:[%s23788_s16 + $0xa24] ss:$24 sps:$4 sm:$0xff]  }
0x1241   :  { %v16267_v10 = vpack.c.bf16 %v7125_v8, %v7121_v36  ;;  %v17636_v36 = vld [vmem:[%s23788_s16 + $0x90c] ss:$24 sps:$4 sm:$0xff]   ;;  %v17642_v2 = vld [vmem:[%s23788_s16 + $0x93c] ss:$24 sps:$4 sm:$0xff]  }
0x1242   :  { %16264 = vmatprep.subr.bf16.mxu1 %v16263_v4  ;;  %v17639_v63 = vld [vmem:[%s23788_s16 + $0xa54] ss:$24 sps:$4 sm:$0xff]   ;;  %v17640_v4 = vld [vmem:[%s23788_s16 + $0x938] ss:$24 sps:$4 sm:$0xff]   ;;  %v17645_v8 = vld [vmem:[%s23788_s16 + $0xa84] ss:$24 sps:$4 sm:$0xff]  }
0x1243   :  { %16268 = vmatprep.subr.bf16.mxu0 %v16267_v10  ;;  %16266 = vmatpush1.bf16.msra.mxu1 %v16265_v32  ;;  %v17634_v32 = vld [vmem:[%s23788_s16 + $0x908] ss:$24 sps:$4 sm:$0xff]   ;;  %v17648_v10 = vld [vmem:[%s23788_s16 + $0x96c] ss:$24 sps:$4 sm:$0xff]  }
0x1244   :  { %16270 = vmatpush1.bf16.msra.mxu0 %v16269_v3  ;;  %v7027_v13 = vpop.f32.mrb[84].mxu0  ;;  %v17637_v3 = vld [vmem:[%s23788_s16 + $0xa50] ss:$24 sps:$4 sm:$0xff]  }
0x1245   :  { %v7129_v15 = vpop.f32.mrb[84].mxu1  ;;  %v7029_v17 = vpop.f32.mrb[85].mxu0 }
0x1246   :  { %v7131_v40 = vpop.f32.mrb[85].mxu1  ;;  %v7031_v18 = vpop.f32.mrb[86].mxu0  ;;  %14199 = vmatprep.subr.msk.mxu1 %vm7162_vm13, %v7029_v17  ;;  %v17651_v17 = vld [vmem:[%s23788_s16 + $0xab4] ss:$24 sps:$4 sm:$0xff]  }
0x1247   :  { %v7133_v21 = vpop.f32.mrb[86].mxu1  ;;  %14207 = vmatprep.subr.msk.mxu0 %vm7162_vm13, %v7131_v40  ;;  %v7032_v43 = vpop.f32.mrb[87].mxu0  ;;  %14200 = vmatpush1.msk.msra.mxu1 %vm7162_vm13, %v7027_v13  ;;  %v17643_v13 = vld [vmem:[%s23788_s16 + $0xa80] ss:$24 sps:$4 sm:$0xff]   ;;  %v17654_v40 = vld [vmem:[%s23788_s16 + $0x99c] ss:$24 sps:$4 sm:$0xff]  }
0x1248   :  { %v7134_v49 = vpop.f32.mrb[87].mxu1  ;;  %14208 = vmatpush1.msk.msra.mxu0 %vm7162_vm13, %v7129_v15  ;;  %14201 = vmatmul.mubr.msk.f32.vlgmr.msra.gmra.mrb[62].mxu1 %vm7143_vm14, %v14185_v12  ;;  %v17646_v15 = vld [vmem:[%s23788_s16 + $0x968] ss:$24 sps:$4 sm:$0xff]   ;;  %v17652_v21 = vld [vmem:[%s23788_s16 + $0x998] ss:$24 sps:$4 sm:$0xff]  }
0x1249   :  { %14209 = vmatmul.mubr.msk.f32.vlgmr.msra.gmra.mrb[98].mxu0 %vm7143_vm14, %v14185_v12  ;;  %16272 = vmatprep.subr.bf16.mxu0 %v16271_v55  ;;  %v17600_v55 = vld [vmem:[%s23788_s16 + $0x8d4] ss:$24 sps:$4 sm:$0xff]   ;;  %v17613_v12 = vld [vmem:[%s23788_s16 + $0x990] ss:$24 sps:$4 sm:$0xff]   ;;  %v17657_v43 = vld [vmem:[%s23788_s16 + $0xae4] ss:$24 sps:$4 sm:$0xff]  }
0x124a   :  { %16276 = vmatprep.subr.bf16.mxu1 %v16275_v7  ;;  %16274 = vmatpush1.bf16.msra.mxu0 %v16273_v56  ;;  %v17597_v56 = vld [vmem:[%s23788_s16 + $0x8a4] ss:$24 sps:$4 sm:$0xff]   ;;  %v17598_v7 = vld [vmem:[%s23788_s16 + $0x8d0] ss:$24 sps:$4 sm:$0xff]  }
0x124b   :  { %16278 = vmatpush1.bf16.msra.mxu1 %v16277_v57  ;;  %14215 = vmatprep.subr.msk.mxu0 %vm7162_vm13, %v21031_v61  ;;  %v17612_v57 = vld [vmem:[%s23788_s16 + $0x84c] ss:$24 sps:$4 sm:$0xff]   ;;  %v17601_v61 = vld [vmem:[%s23788_s16 + $0x900] ss:$24 sps:$4 sm:$0xff]   ;;  %v17649_v18 = vld [vmem:[%s23788_s16 + $0xab0] ss:$24 sps:$4 sm:$0xff]  }
0x124c   :  { %14223 = vmatprep.subr.msk.mxu1 %vm7162_vm13, %v21033_v62  ;;  %7352 = vmatprep.mubr.f32.mxu1 %v23804_v0  ;;  %v21224_v62 = vld [vmem:[%s23791_s17 + $0x20] sm:$0xff] }
0x124d   :  { %7453 = vmatprep.mubr.f32.mxu0 %v23804_v0  ;;  %14202 = vmatmul.mubr.msk.f32.gmra.mrb[88].mxu1 %vm7143_vm14, %v14186_v44  ;;  %v17660_v49 = vld [vmem:[%s23788_s16 + $0x9cc] ss:$24 sps:$4 sm:$0xff]  }
0x124e   :  { %14210 = vmatmul.mubr.msk.f32.gmra.mrb[100].mxu0 %vm7143_vm14, %v14186_v44  ;;  %7358 = vmatprep.mubr.f32.mxu1 %v23804_v0  ;;  %v17624_v44 = vld [vmem:[%s23788_s16 + $0x8ac] ss:$24 sps:$4 sm:$0xff]  }
0x124f   :  { %14216 = vmatpush1.msk.msra.mxu0 %vm7162_vm13, %v21027_v60  ;;  %14224 = vmatpush1.msk.msra.mxu1 %vm7162_vm13, %v21029_v20  ;;  %v21207_v60 = vld [vmem:[%s23791_s17 + $0x18] sm:$0xff] }
0x1250   :  { %16280 = vmatprep.subr.bf16.mxu0 %v16279_v54  ;;  %7459 = vmatprep.mubr.f32.mxu0 %v23804_v0  ;;  %v17603_v20 = vld [vmem:[%s23788_s16 + $0x904] ss:$24 sps:$4 sm:$0xff]   ;;  %v17610_v54 = vld [vmem:[%s23788_s16 + $0x848] ss:$24 sps:$4 sm:$0xff]  }
0x1251   :  { %14203 = vmatmul.mubr.msk.f32.gmra.mrb[90].mxu1 %vm7143_vm14, %v14187_v25  ;;  %8616 = vmatprep.subr.bf16.mxu1 %v17591_v22  ;;  %v17655_v22 = vld [vmem:[%s23788_s16 + $0xae0] ss:$24 sps:$4 sm:$0xff]  }
0x1252   :  { %14211 = vmatmul.mubr.msk.f32.gmra.mrb[102].mxu0 %vm7143_vm14, %v14187_v25  ;;  %7364 = vmatprep.mubr.f32.mxu1 %v23804_v0  ;;  %v17619_v25 = vld [vmem:[%s23788_s16 + $0x9c0] ss:$24 sps:$4 sm:$0xff]  }
0x1253   :  { %7465 = vmatprep.mubr.f32.mxu0 %v23804_v0 }
0x1255   :  { %14204 = vmatmul.mubr.msk.f32.gmra.mrb[92].mxu1 %vm7143_vm14, %v14188_v26 }
0x1256   :  { %14212 = vmatmul.mubr.msk.f32.gmra.mrb[104].mxu0 %vm7143_vm14, %v14188_v26  ;;  %7370 = vmatprep.mubr.f32.mxu1 %v23804_v0  ;;  %v17622_v26 = vld [vmem:[%s23788_s16 + $0x8a8] ss:$24 sps:$4 sm:$0xff]  }
0x1257   :  { %7471 = vmatprep.mubr.f32.mxu0 %v23804_v0 }
0x1259   :  { %14205 = vmatmul.mubr.msk.f32.gmra.mrb[94].mxu1 %vm7143_vm14, %v14189_v48 }
0x125a   :  { %14213 = vmatmul.mubr.msk.f32.gmra.mrb[106].mxu0 %vm7143_vm14, %v14189_v48  ;;  %7376 = vmatprep.mubr.f32.mxu1 %v23804_v0  ;;  %v17627_v48 = vld [vmem:[%s23788_s16 + $0x9f4] ss:$24 sps:$4 sm:$0xff]  }
0x125b   :  { %7477 = vmatprep.mubr.f32.mxu0 %v23804_v0 }
0x125d   :  { %14206 = vmatmul.mubr.msk.f32.gmra.mrb[96].mxu1 %vm7143_vm14, %v21081_v27 }
0x125e   :  { %14214 = vmatmul.mubr.msk.f32.gmra.mrb[108].mxu0 %vm7143_vm14, %v21081_v27  ;;  %7685 = vmatprep.mubr.f32.mxu1 %v23804_v0  ;;  %v17630_v27 = vld [vmem:[%s23788_s16 + $0x8dc] ss:$24 sps:$4 sm:$0xff]  }
0x125f   :  { %7584 = vmatprep.mubr.f32.mxu0 %v23804_v0 }
0x1261   :  { %14225 = vmatmul.mubr.msk.f32.vlgmr.msra.gmra.mrb[62].mxu1 %vm7143_vm14, %v21147_v41 }
0x1262   :  { %14217 = vmatmul.mubr.msk.f32.vlgmr.msra.gmra.mrb[62].mxu0 %vm7143_vm14, %v21147_v41  ;;  %8617 = vmatpush1.bf16.msra.mxu1 %v17589_v38  ;;  %v17658_v38 = vld [vmem:[%s23788_s16 + $0x9c8] ss:$24 sps:$4 sm:$0xff]  }
0x1263   :  { %16282 = vmatpush1.bf16.msra.mxu0 %v16281_v51  ;;  %7590 = vmatprep.mubr.f32.mxu0 %v23804_v0  ;;  %v17609_v51 = vld [vmem:[%s23788_s16 + $0x964] ss:$24 sps:$4 sm:$0xff]  }
0x1264   :  { %14231 = vmatprep.subr.msk.mxu0 %vm7162_vm13, %v21049_v19  ;;  %7691 = vmatprep.mubr.f32.mxu1 %v23804_v0  ;;  %v17618_v19 = vld [vmem:[%s23788_s16 + $0x87c] ss:$24 sps:$4 sm:$0xff]  }
0x1265   :  { %8618 = vmatprep.subr.bf16.mxu1 %v17594_v28  ;;  %14226 = vmatmul.mubr.msk.f32.gmra.mrb[88].mxu1 %vm7143_vm14, %v21163_v53  ;;  %v17666_v28 = vld [vmem:[%s23788_s16 + $0x9fc] ss:$24 sps:$4 sm:$0xff]  }
0x1266   :  { %14218 = vmatmul.mubr.msk.f32.gmra.mrb[88].mxu0 %vm7143_vm14, %v21163_v53  ;;  %8619 = vmatpush1.bf16.msra.mxu1 %v17592_v42  ;;  %v17661_v42 = vld [vmem:[%s23788_s16 + $0xb10] ss:$24 sps:$4 sm:$0xff]  }
0x1267   :  { %14232 = vmatpush1.msk.msra.mxu0 %vm7162_vm13, %v21047_v50  ;;  %7596 = vmatprep.mubr.f32.mxu0 %v23804_v0  ;;  %v17615_v50 = vld [vmem:[%s23788_s16 + $0x994] ss:$24 sps:$4 sm:$0xff]  }
0x1268   :  { %7697 = vmatprep.mubr.f32.mxu1 %v23804_v0  ;;  %8620 = vmatprep.subr.bf16.mxu1 %v17597_v56  ;;  %v17669_v56 = vld [vmem:[%s23788_s16 + $0xb44] ss:$24 sps:$4 sm:$0xff]  }
0x1269   :  { %14227 = vmatmul.mubr.msk.f32.gmra.mrb[90].mxu1 %vm7143_vm14, %v21188_v58  ;;  %8718 = vmatprep.subr.bf16.mxu0 %v17612_v57  ;;  %v17672_v57 = vld [vmem:[%s23788_s16 + $0xa2c] ss:$24 sps:$4 sm:$0xff]  }
0x126a   :  { %14219 = vmatmul.mubr.msk.f32.gmra.mrb[90].mxu0 %vm7143_vm14, %v21188_v58  ;;  %8621 = vmatpush1.bf16.msra.mxu1 %v17595_v46  ;;  %v17667_v46 = vld [vmem:[%s23788_s16 + $0xb40] ss:$24 sps:$4 sm:$0xff]  }
0x126b   :  { %7602 = vmatprep.mubr.f32.mxu0 %v23804_v0  ;;  %7703 = vmatprep.mubr.f32.mxu1 %v23804_v0 }
0x126c   :  { %8622 = vmatprep.subr.bf16.mxu1 %v17600_v55  ;;  %v17675_v55 = vld [vmem:[%s23788_s16 + $0xb74] ss:$24 sps:$4 sm:$0xff]  }
0x126d   :  { %14228 = vmatmul.mubr.msk.f32.gmra.mrb[92].mxu1 %vm7143_vm14, %v21207_v60 }
0x126e   :  { %14220 = vmatmul.mubr.msk.f32.gmra.mrb[92].mxu0 %vm7143_vm14, %v21207_v60  ;;  %8623 = vmatpush1.bf16.msra.mxu1 %v17598_v7  ;;  %v17678_v7 = vld [vmem:[%s23788_s16 + $0xa5c] ss:$24 sps:$4 sm:$0xff]  }
0x126f   :  { %7608 = vmatprep.mubr.f32.mxu0 %v23804_v0  ;;  %7709 = vmatprep.mubr.f32.mxu1 %v23804_v0 }
0x1270   :  { %8624 = vmatprep.subr.bf16.mxu1 %v17603_v20  ;;  %v17676_v20 = vld [vmem:[%s23788_s16 + $0xa58] ss:$24 sps:$4 sm:$0xff]  }
0x1271   :  { %14229 = vmatmul.mubr.msk.f32.gmra.mrb[94].mxu1 %vm7143_vm14, %v21224_v62 }
0x1272   :  { %14221 = vmatmul.mubr.msk.f32.gmra.mrb[94].mxu0 %vm7143_vm14, %v21224_v62  ;;  %8625 = vmatpush1.bf16.msra.mxu1 %v17601_v61  ;;  %v17681_v61 = vld [vmem:[%s23788_s16 + $0xba4] ss:$24 sps:$4 sm:$0xff]  }
0x1273   :  { %7614 = vmatprep.mubr.f32.mxu0 %v23804_v0  ;;  %7715 = vmatprep.mubr.f32.mxu1 %v23804_v0 }
0x1274   :  { %8626 = vmatprep.subr.bf16.mxu1 %v17606_v5  ;;  %v17679_v5 = vld [vmem:[%s23788_s16 + $0xba0] ss:$24 sps:$4 sm:$0xff]  }
0x1275   :  { %14230 = vmatmul.mubr.msk.f32.gmra.mrb[96].mxu1 %vm7143_vm14, %v21241_v11 }
0x1276   :  { %14222 = vmatmul.mubr.msk.f32.gmra.mrb[96].mxu0 %vm7143_vm14, %v21241_v11  ;;  %8627 = vmatpush1.bf16.msra.mxu1 %v17604_v9  ;;  %v17682_v9 = vld [vmem:[%s23788_s16 + $0xa88] ss:$24 sps:$4 sm:$0xff]  }
0x1277   :  { %8648 = vmatprep.mubr.bf16.mxu1 %v20336_v52  ;;  %7786 = vmatprep.mubr.f32.mxu0 %v23804_v0 }
0x1278   :  { %8628 = vmatprep.subr.bf16.mxu1 %v17609_v51  ;;  %v17690_v51 = vld [vmem:[%s23788_s16 + $0xabc] ss:$24 sps:$4 sm:$0xff]  }
0x127a   :  { %14233 = vmatmul.mubr.msk.f32.vlgmr.msra.gmra.mrb[98].mxu0 %vm7143_vm14, %v21147_v41  ;;  %8629 = vmatpush1.bf16.msra.mxu1 %v17607_v14  ;;  %v17663_v41 = vld [vmem:[%s23788_s16 + $0xb14] ss:$24 sps:$4 sm:$0xff]   ;;  %v17685_v14 = vld [vmem:[%s23788_s16 + $0xbd0] ss:$24 sps:$4 sm:$0xff]  }
0x127b   :  { %8719 = vmatpush1.bf16.msra.mxu0 %v17610_v54  ;;  %7792 = vmatprep.mubr.f32.mxu0 %v23804_v0  ;;  %v17688_v54 = vld [vmem:[%s23788_s16 + $0xab8] ss:$24 sps:$4 sm:$0xff]  }
0x127c   :  { %8630 = vmatprep.subr.bf16.mxu1 %v17615_v50  ;;  %8720 = vmatprep.subr.bf16.mxu0 %v17618_v19  ;;  %v17693_v50 = vld [vmem:[%s23788_s16 + $0xc04] ss:$24 sps:$4 sm:$0xff]  }
0x127d   :  { %v17696_v19 = vld [vmem:[%s23788_s16 + $0xaec] ss:$24 sps:$4 sm:$0xff]  }
0x127e   :  { %14234 = vmatmul.mubr.msk.f32.gmra.mrb[100].mxu0 %vm7143_vm14, %v21163_v53  ;;  %8631 = vmatpush1.bf16.msra.mxu1 %v17613_v12  ;;  %v17664_v53 = vld [vmem:[%s23788_s16 + $0x9f8] ss:$24 sps:$4 sm:$0xff]  }
0x127f   :  { %8721 = vmatpush1.bf16.msra.mxu0 %v17616_v23  ;;  %7798 = vmatprep.mubr.f32.mxu0 %v23804_v0  ;;  %v17691_v12 = vld [vmem:[%s23788_s16 + $0xc00] ss:$24 sps:$4 sm:$0xff]  }
0x1280   :  { %8632 = vmatprep.subr.bf16.mxu1 %v17621_v24  ;;  %8722 = vmatprep.subr.bf16.mxu0 %v17624_v44  ;;  %v17694_v23 = vld [vmem:[%s23788_s16 + $0xae8] ss:$24 sps:$4 sm:$0xff]   ;;  %v17699_v24 = vld [vmem:[%s23788_s16 + $0xc34] ss:$24 sps:$4 sm:$0xff]  }
0x1281   :  { %v17702_v44 = vld [vmem:[%s23788_s16 + $0xb1c] ss:$24 sps:$4 sm:$0xff]  }
0x1282   :  { %14235 = vmatmul.mubr.msk.f32.gmra.mrb[102].mxu0 %vm7143_vm14, %v21188_v58  ;;  %8633 = vmatpush1.bf16.msra.mxu1 %v17619_v25  ;;  %v17670_v58 = vld [vmem:[%s23788_s16 + $0xa28] ss:$24 sps:$4 sm:$0xff]  }
0x1283   :  { %8723 = vmatpush1.bf16.msra.mxu0 %v17622_v26  ;;  %7804 = vmatprep.mubr.f32.mxu0 %v23804_v0  ;;  %v17697_v25 = vld [vmem:[%s23788_s16 + $0xc30] ss:$24 sps:$4 sm:$0xff]  }
0x1284   :  { %8634 = vmatprep.subr.bf16.mxu1 %v17627_v48  ;;  %8724 = vmatprep.subr.bf16.mxu0 %v17630_v27  ;;  %v17700_v26 = vld [vmem:[%s23788_s16 + $0xb18] ss:$24 sps:$4 sm:$0xff]   ;;  %v17708_v48 = vld [vmem:[%s23788_s16 + $0x854] ss:$24 sps:$4 sm:$0xff]  }
0x1285   :  { %v17705_v27 = vld [vmem:[%s23788_s16 + $0xb4c] ss:$24 sps:$4 sm:$0xff]  }
0x1286   :  { %14236 = vmatmul.mubr.msk.f32.gmra.mrb[104].mxu0 %vm7143_vm14, %v21207_v60  ;;  %8635 = vmatpush1.bf16.msra.mxu1 %v17625_v30  ;;  %v17673_v60 = vld [vmem:[%s23788_s16 + $0xb70] ss:$24 sps:$4 sm:$0xff]  }
0x1287   :  { %8725 = vmatpush1.bf16.msra.mxu0 %v17628_v31  ;;  %7810 = vmatprep.mubr.f32.mxu0 %v23804_v0  ;;  %v17706_v30 = vld [vmem:[%s23788_s16 + $0x850] ss:$24 sps:$4 sm:$0xff]  }
0x1288   :  { %8636 = vmatprep.subr.bf16.mxu1 %v17633_v33  ;;  %8726 = vmatprep.subr.bf16.mxu0 %v17636_v36  ;;  %v17703_v31 = vld [vmem:[%s23788_s16 + $0xb48] ss:$24 sps:$4 sm:$0xff]   ;;  %v17711_v33 = vld [vmem:[%s23788_s16 + $0xb7c] ss:$24 sps:$4 sm:$0xff]  }
0x1289   :  { %v17714_v36 = vld [vmem:[%s23788_s16 + $0x884] ss:$24 sps:$4 sm:$0xff]  }
0x128a   :  { %14237 = vmatmul.mubr.msk.f32.gmra.mrb[106].mxu0 %vm7143_vm14, %v21224_v62  ;;  %8637 = vmatpush1.bf16.msra.mxu1 %v17631_v39  ;;  %v17684_v62 = vld [vmem:[%s23788_s16 + $0xa8c] ss:$24 sps:$4 sm:$0xff]   ;;  %v17712_v39 = vld [vmem:[%s23788_s16 + $0x880] ss:$24 sps:$4 sm:$0xff]  }
0x128b   :  { %8727 = vmatpush1.bf16.msra.mxu0 %v17634_v32  ;;  %7816 = vmatprep.mubr.f32.mxu0 %v23804_v0  ;;  %v17709_v32 = vld [vmem:[%s23788_s16 + $0xb78] ss:$24 sps:$4 sm:$0xff]  }
0x128c   :  { %8638 = vmatprep.subr.bf16.mxu1 %v17639_v63  ;;  %8728 = vmatprep.subr.bf16.mxu0 %v17642_v2  ;;  %v17720_v63 = vld [vmem:[%s23788_s16 + $0x8b4] ss:$24 sps:$4 sm:$0xff]  }
0x128d   :  { %v17717_v2 = vld [vmem:[%s23788_s16 + $0xbac] ss:$24 sps:$4 sm:$0xff]  }
0x128e   :  { %14238 = vmatmul.mubr.msk.f32.gmra.mrb[108].mxu0 %vm7143_vm14, %v21241_v11  ;;  %8639 = vmatpush1.bf16.msra.mxu1 %v17637_v3  ;;  %v17687_v11 = vld [vmem:[%s23788_s16 + $0xbd4] ss:$24 sps:$4 sm:$0xff]   ;;  %v17718_v3 = vld [vmem:[%s23788_s16 + $0x8b0] ss:$24 sps:$4 sm:$0xff]  }
0x128f   :  { %8729 = vmatpush1.bf16.msra.mxu0 %v17640_v4  ;;  %8750 = vmatprep.mubr.bf16.mxu0 %v20336_v52  ;;  %v17715_v4 = vld [vmem:[%s23788_s16 + $0xba8] ss:$24 sps:$4 sm:$0xff]  }
0x1290   :  { %8640 = vmatprep.subr.bf16.mxu1 %v17645_v8  ;;  %8730 = vmatprep.subr.bf16.mxu0 %v17648_v10  ;;  %v17723_v8 = vld [vmem:[%s23788_s16 + $0xbdc] ss:$24 sps:$4 sm:$0xff]  }
0x1291   :  { %v17726_v10 = vld [vmem:[%s23788_s16 + $0x8e4] ss:$24 sps:$4 sm:$0xff]  }
0x1292   :  { %8641 = vmatpush1.bf16.msra.mxu1 %v17643_v13  ;;  %v17724_v13 = vld [vmem:[%s23788_s16 + $0x8e0] ss:$24 sps:$4 sm:$0xff]  }
0x1293   :  { %8731 = vmatpush1.bf16.msra.mxu0 %v17646_v15  ;;  %8642 = vmatprep.subr.bf16.mxu1 %v17651_v17  ;;  %v17721_v15 = vld [vmem:[%s23788_s16 + $0xbd8] ss:$24 sps:$4 sm:$0xff]   ;;  %v17732_v17 = vld [vmem:[%s23788_s16 + $0x914] ss:$24 sps:$4 sm:$0xff]  }
0x1294   :  { %8732 = vmatprep.subr.bf16.mxu0 %v17654_v40  ;;  %v17729_v40 = vld [vmem:[%s23788_s16 + $0xc0c] ss:$24 sps:$4 sm:$0xff]  }
0x1296   :  { %8643 = vmatpush1.bf16.msra.mxu1 %v17649_v18  ;;  %v17727_v18 = vld [vmem:[%s23788_s16 + $0xc08] ss:$24 sps:$4 sm:$0xff]  }
0x1297   :  { %8733 = vmatpush1.bf16.msra.mxu0 %v17652_v21  ;;  %8644 = vmatprep.subr.bf16.mxu1 %v17657_v43  ;;  %v17738_v21 = vld [vmem:[%s23788_s16 + $0x944] ss:$24 sps:$4 sm:$0xff]  }
0x1298   :  { %8734 = vmatprep.subr.bf16.mxu0 %v17660_v49  ;;  %v17735_v43 = vld [vmem:[%s23788_s16 + $0xc3c] ss:$24 sps:$4 sm:$0xff]   ;;  %v17736_v49 = vld [vmem:[%s23788_s16 + $0x940] ss:$24 sps:$4 sm:$0xff]  }
0x129a   :  { %8645 = vmatpush1.bf16.msra.mxu1 %v17655_v22  ;;  %v17733_v22 = vld [vmem:[%s23788_s16 + $0xc38] ss:$24 sps:$4 sm:$0xff]  }
0x129b   :  { %8735 = vmatpush1.bf16.msra.mxu0 %v17658_v38  ;;  %8646 = vmatprep.subr.bf16.mxu1 %v17663_v41  ;;  %v17741_v38 = vld [vmem:[%s23788_s16 + $0x974] ss:$24 sps:$4 sm:$0xff]   ;;  %v17739_v41 = vld [vmem:[%s23788_s16 + $0x970] ss:$24 sps:$4 sm:$0xff]  }
0x129c   :  { %8736 = vmatprep.subr.bf16.mxu0 %v17666_v28  ;;  %v17744_v28 = vld [vmem:[%s23788_s16 + $0x9a4] ss:$24 sps:$4 sm:$0xff]  }
0x129e   :  { %8647 = vmatpush1.bf16.msra.mxu1 %v17661_v42  ;;  %v17742_v42 = vld [vmem:[%s23788_s16 + $0x9a0] ss:$24 sps:$4 sm:$0xff]  }
0x129f   :  { %8737 = vmatpush1.bf16.msra.mxu0 %v17664_v53  ;;  %8667 = vmatprep.subr.bf16.mxu1 %v17669_v56  ;;  %v17747_v53 = vld [vmem:[%s23788_s16 + $0x9d4] ss:$24 sps:$4 sm:$0xff]   ;;  %v17745_v56 = vld [vmem:[%s23788_s16 + $0x9d0] ss:$24 sps:$4 sm:$0xff]  }
0x12a0   :  { %8738 = vmatprep.subr.bf16.mxu0 %v17672_v57  ;;  %v17750_v57 = vld [vmem:[%s23788_s16 + $0xa04] ss:$24 sps:$4 sm:$0xff]  }
0x12a1   :  { %8649 = vmatmul.mubr.bf16.vlgmr.msra.gmra.mrb[100].mxu1 %v20334_v47 }
0x12a2   :  { %8658 = vmatprep.mubr.bf16.mxu1 %v20352_v59  ;;  %8668 = vmatpush1.bf16.msra.mxu1 %v17667_v46  ;;  %v17748_v46 = vld [vmem:[%s23788_s16 + $0xa00] ss:$24 sps:$4 sm:$0xff]  }
0x12a3   :  { %8739 = vmatpush1.bf16.msra.mxu0 %v17670_v58  ;;  %8669 = vmatprep.subr.bf16.mxu1 %v17675_v55  ;;  %v17753_v58 = vld [vmem:[%s23788_s16 + $0xa34] ss:$24 sps:$4 sm:$0xff]   ;;  %v17751_v55 = vld [vmem:[%s23788_s16 + $0xa30] ss:$24 sps:$4 sm:$0xff]  }
0x12a4   :  { %8740 = vmatprep.subr.bf16.mxu0 %v17678_v7  ;;  %v17756_v7 = vld [vmem:[%s23788_s16 + $0xa64] ss:$24 sps:$4 sm:$0xff]  }
0x12a6   :  { %8670 = vmatpush1.bf16.msra.mxu1 %v17673_v60  ;;  %v17754_v60 = vld [vmem:[%s23788_s16 + $0xa60] ss:$24 sps:$4 sm:$0xff]  }
0x12a7   :  { %8741 = vmatpush1.bf16.msra.mxu0 %v17676_v20  ;;  %8671 = vmatprep.subr.bf16.mxu1 %v17681_v61  ;;  %v17759_v20 = vld [vmem:[%s23788_s16 + $0xa94] ss:$24 sps:$4 sm:$0xff]   ;;  %v17757_v61 = vld [vmem:[%s23788_s16 + $0xa90] ss:$24 sps:$4 sm:$0xff]  }
0x12a8   :  { %8742 = vmatprep.subr.bf16.mxu0 %v17684_v62  ;;  %v17762_v62 = vld [vmem:[%s23788_s16 + $0xac4] ss:$24 sps:$4 sm:$0xff]  }
0x12a9   :  { %8659 = vmatmul.mubr.bf16.gmra.mrb[104].mxu1 %v20376_v1 }
0x12aa   :  { %8672 = vmatpush1.bf16.msra.mxu1 %v17679_v5  ;;  %8699 = vmatprep.mubr.bf16.mxu1 %v18285_v16  ;;  %v17760_v5 = vld [vmem:[%s23788_s16 + $0xac0] ss:$24 sps:$4 sm:$0xff]  }
0x12ab   :  { %8743 = vmatpush1.bf16.msra.mxu0 %v17682_v9  ;;  %8673 = vmatprep.subr.bf16.mxu1 %v17687_v11  ;;  %v17765_v9 = vld [vmem:[%s23788_s16 + $0xaf4] ss:$24 sps:$4 sm:$0xff]   ;;  %v17763_v11 = vld [vmem:[%s23788_s16 + $0xaf0] ss:$24 sps:$4 sm:$0xff]  }
0x12ac   :  { %8744 = vmatprep.subr.bf16.mxu0 %v17690_v51  ;;  %v17768_v51 = vld [vmem:[%s23788_s16 + $0xb24] ss:$24 sps:$4 sm:$0xff]  }
0x12ae   :  { %8674 = vmatpush1.bf16.msra.mxu1 %v17685_v14  ;;  %v17766_v14 = vld [vmem:[%s23788_s16 + $0xb20] ss:$24 sps:$4 sm:$0xff]  }
0x12af   :  { %8745 = vmatpush1.bf16.msra.mxu0 %v17688_v54  ;;  %8675 = vmatprep.subr.bf16.mxu1 %v17693_v50  ;;  %v17771_v54 = vld [vmem:[%s23788_s16 + $0xb54] ss:$24 sps:$4 sm:$0xff]   ;;  %v17769_v50 = vld [vmem:[%s23788_s16 + $0xb50] ss:$24 sps:$4 sm:$0xff]  }
0x12b0   :  { %8746 = vmatprep.subr.bf16.mxu0 %v17696_v19  ;;  %v17774_v19 = vld [vmem:[%s23788_s16 + $0xb84] ss:$24 sps:$4 sm:$0xff]  }
0x12b2   :  { %8676 = vmatpush1.bf16.msra.mxu1 %v17691_v12  ;;  %v17772_v12 = vld [vmem:[%s23788_s16 + $0xb80] ss:$24 sps:$4 sm:$0xff]  }
0x12b3   :  { %8747 = vmatpush1.bf16.msra.mxu0 %v17694_v23  ;;  %8677 = vmatprep.subr.bf16.mxu1 %v17699_v24  ;;  %v17777_v23 = vld [vmem:[%s23788_s16 + $0xbb4] ss:$24 sps:$4 sm:$0xff]   ;;  %v17775_v24 = vld [vmem:[%s23788_s16 + $0xbb0] ss:$24 sps:$4 sm:$0xff]  }
0x12b4   :  { %8748 = vmatprep.subr.bf16.mxu0 %v17702_v44  ;;  %v17783_v44 = vld [vmem:[%s23788_s16 + $0xc14] ss:$24 sps:$4 sm:$0xff]  }
0x12b6   :  { %8678 = vmatpush1.bf16.msra.mxu1 %v17697_v25  ;;  %v17781_v25 = vld [vmem:[%s23788_s16 + $0xc10] ss:$24 sps:$4 sm:$0xff]  }
0x12b7   :  { %8749 = vmatpush1.bf16.msra.mxu0 %v17700_v26  ;;  %8820 = vmatprep.subr.bf16.mxu1 %v17708_v48  ;;  %v17784_v26 = vld [vmem:[%s23788_s16 + $0xc40] ss:$24 sps:$4 sm:$0xff]  }
0x12b8   :  { %8769 = vmatprep.subr.bf16.mxu0 %v17705_v27 }
0x12b9   :  { %14503 = vmatmul.mubr.msk.bf16.vlgmr.msra.gmra.mrb[100].mxu1 %vm4434_vm11, %v20331_v45 }
0x12ba   :  { %8751 = vmatmul.mubr.bf16.vlgmr.msra.gmra.mrb[112].mxu0 %v20334_v47  ;;  %8821 = vmatpush1.bf16.msra.mxu1 %v17706_v30 }
0x12bb   :  { %8760 = vmatprep.mubr.bf16.mxu0 %v20352_v59  ;;  %8770 = vmatpush1.bf16.msra.mxu0 %v17703_v31 }
0x12bc   :  { %8771 = vmatprep.subr.bf16.mxu0 %v17711_v33  ;;  %8822 = vmatprep.subr.bf16.mxu1 %v17714_v36 }
0x12bd   :  { %8709 = vmatprep.mubr.bf16.mxu1 %v18285_v16 }
0x12be   :  { %8823 = vmatpush1.bf16.msra.mxu1 %v17712_v39 }
0x12bf   :  { %8772 = vmatpush1.bf16.msra.mxu0 %v17709_v32  ;;  %8824 = vmatprep.subr.bf16.mxu1 %v17720_v63  ;;  %v21669_v63 = vld [vmem:[%s23791_s17 + $0x68] sm:$0xff] }
0x12c0   :  { %8773 = vmatprep.subr.bf16.mxu0 %v17717_v2  ;;  %v21677_v2 = vld [vmem:[%s23791_s17 + $0x70] sm:$0xff] }
0x12c1   :  { %14504 = vmatmul.mubr.msk.bf16.gmra.mrb[104].mxu1 %vm4434_vm11, %v20460_v29 }
0x12c2   :  { %8761 = vmatmul.mubr.bf16.gmra.mrb[116].mxu0 %v20376_v1  ;;  %8825 = vmatpush1.bf16.msra.mxu1 %v17718_v3  ;;  %v21685_v3 = vld [vmem:[%s23791_s17 + $0x78] sm:$0xff] }
0x12c3   :  { %8774 = vmatpush1.bf16.msra.mxu0 %v17715_v4  ;;  %8852 = vmatprep.mubr.bf16.mxu1 %v20336_v52  ;;  %v17730_v52 = vld [vmem:[%s23788_s16 + $0x910] ss:$24 sps:$4 sm:$0xff]  }
0x12c4   :  { %8775 = vmatprep.subr.bf16.mxu0 %v17723_v8  ;;  %8826 = vmatprep.subr.bf16.mxu1 %v17726_v10  ;;  %v21693_v8 = vld [vmem:[%s23791_s17 + $0x80] sm:$0xff] }
0x12c5   :  { %8801 = vmatprep.mubr.bf16.mxu0 %v18285_v16 }
0x12c6   :  { %8827 = vmatpush1.bf16.msra.mxu1 %v17724_v13 }
0x12c7   :  { %8776 = vmatpush1.bf16.msra.mxu0 %v17721_v15  ;;  %8828 = vmatprep.subr.bf16.mxu1 %v17732_v17 }
0x12c8   :  { %8777 = vmatprep.subr.bf16.mxu0 %v17729_v40 }
0x12ca   :  { %8829 = vmatpush1.bf16.msra.mxu1 %v17730_v52  ;;  %v21701_v52 = vld [vmem:[%s23791_s17 + $0x88] sm:$0xf] }
0x12cb   :  { %8778 = vmatpush1.bf16.msra.mxu0 %v17727_v18  ;;  %8830 = vmatprep.subr.bf16.mxu1 %v17738_v21  ;;  %v9352_v18 = vld [vmem:[%s23792_s18 + $0x180] sm:$0xff]  ;;  %v9353_v21 = vld [vmem:[%s23792_s18 + $0x188] sm:$0xff] }
0x12cc   :  { %8779 = vmatprep.subr.bf16.mxu0 %v17735_v43  ;;  %v9336_v43 = vld [vmem:[%s23792_s18 + $0x100] sm:$0xff] }
0x12ce   :  { %8831 = vmatpush1.bf16.msra.mxu1 %v17736_v49  ;;  %v9337_v49 = vld [vmem:[%s23792_s18 + $0x108] sm:$0xff] }
0x12cf   :  { %8780 = vmatpush1.bf16.msra.mxu0 %v17733_v22  ;;  %8832 = vmatprep.subr.bf16.mxu1 %v17741_v38  ;;  %v9354_v22 = vld [vmem:[%s23792_s18 + $0x190] sm:$0xff]  ;;  %v9355_v38 = vld [vmem:[%s23792_s18 + $0x198] sm:$0xff] }
0x12d2   :  { %14505 = vmatmul.mubr.msk.bf16.vlgmr.msra.gmra.mrb[112].mxu0 %vm4434_vm11, %v20331_v45  ;;  %8833 = vmatpush1.bf16.msra.mxu1 %v17739_v41 }
0x12d3   :  { %8834 = vmatprep.subr.bf16.mxu1 %v17744_v28  ;;  %8811 = vmatprep.mubr.bf16.mxu0 %v18285_v16  ;;  %v21724_v28 = vpack.c.bf16 %v9353_v21, %v9352_v18  ;;  %v9326_v21 = vld [vmem:[%s23792_s18 + $0xb0] sm:$0xff] }
0x12d6   :  { %8835 = vmatpush1.bf16.msra.mxu1 %v17742_v42 }
0x12d7   :  { %8836 = vmatprep.subr.bf16.mxu1 %v17747_v53  ;;  %v21726_v53 = vpack.c.bf16 %v9337_v49, %v9336_v43  ;;  %v9327_v43 = vld [vmem:[%s23792_s18 + $0xb8] sm:$0xff]  ;;  %v9360_v49 = vld [vmem:[%s23792_s18 + $0x1c0] sm:$0xff] }
0x12da   :  { %14506 = vmatmul.mubr.msk.bf16.gmra.mrb[116].mxu0 %vm4434_vm11, %v20460_v29  ;;  %8837 = vmatpush1.bf16.msra.mxu1 %v17745_v56 }
0x12db   :  { %8838 = vmatprep.subr.bf16.mxu1 %v17750_v57  ;;  %9029 = vmatprep.mubr.f32.mxu0 %v23804_v0  ;;  %v21729_v57 = vpack.c.bf16 %v9355_v38, %v9354_v22  ;;  %v9361_v22 = vld [vmem:[%s23792_s18 + $0x1c8] sm:$0xff] }
0x12de   :  { %8839 = vmatpush1.bf16.msra.mxu1 %v17748_v46 }
0x12df   :  { %8840 = vmatprep.subr.bf16.mxu1 %v17753_v58 }
0x12e2   :  { %8841 = vmatpush1.bf16.msra.mxu1 %v17751_v55 }
0x12e3   :  { %8842 = vmatprep.subr.bf16.mxu1 %v17756_v7 }
0x12e6   :  { %8843 = vmatpush1.bf16.msra.mxu1 %v17754_v60 }
0x12e7   :  { %8844 = vmatprep.subr.bf16.mxu1 %v17759_v20 }
0x12ea   :  { %8845 = vmatpush1.bf16.msra.mxu1 %v17757_v61 }
0x12eb   :  { %8846 = vmatprep.subr.bf16.mxu1 %v17762_v62  ;;  %v9320_v62 = vld [vmem:[%s23792_s18 + $0x80] sm:$0xff] }
0x12ee   :  { %8847 = vmatpush1.bf16.msra.mxu1 %v17760_v5  ;;  %v9321_v5 = vld [vmem:[%s23792_s18 + $0x88] sm:$0xff] }
0x12ef   :  { %8848 = vmatprep.subr.bf16.mxu1 %v17765_v9  ;;  %v9338_v9 = vld [vmem:[%s23792_s18 + $0x110] sm:$0xff] }
0x12f2   :  { %8849 = vmatpush1.bf16.msra.mxu1 %v17763_v11  ;;  %v9304_v11 = vld [vmem:[%s23792_s18] sm:$0xff] }
0x12f3   :  { %8850 = vmatprep.subr.bf16.mxu1 %v17768_v51  ;;  %v9305_v51 = vld [vmem:[%s23792_s18 + $0x8] sm:$0xff] }
0x12f6   :  { %8851 = vmatpush1.bf16.msra.mxu1 %v17766_v14  ;;  %v9339_v14 = vld [vmem:[%s23792_s18 + $0x118] sm:$0xff] }
0x12f7   :  { %8871 = vmatprep.subr.bf16.mxu1 %v17771_v54  ;;  %v9322_v54 = vld [vmem:[%s23792_s18 + $0x90] sm:$0xff] }
0x12f9   :  { %8853 = vmatmul.mubr.bf16.vlgmr.msra.gmra.mrb[108].mxu1 %v20334_v47  ;;  %v17780_v47 = vld [vmem:[%s23788_s16 + $0xbe4] ss:$24 sps:$4 sm:$0xff]  }
0x12fa   :  { %8862 = vmatprep.mubr.bf16.mxu1 %v20352_v59  ;;  %8872 = vmatpush1.bf16.msra.mxu1 %v17769_v50  ;;  %v17778_v59 = vld [vmem:[%s23788_s16 + $0xbe0] ss:$24 sps:$4 sm:$0xff]  }
0x12fb   :  { %8873 = vmatprep.subr.bf16.mxu1 %v17774_v19  ;;  %v9323_v50 = vld [vmem:[%s23792_s18 + $0x98] sm:$0xff]  ;;  %v21776_v19 = vpack.c.bf16 %v9339_v14, %v9338_v9  ;;  %v9313_v14 = vld [vmem:[%s23792_s18 + $0x48] sm:$0xff] }
0x12fc   :  { %v9347_v9 = vld [vmem:[%s23792_s18 + $0x158] sm:$0xff] }
0x12fe   :  { %8874 = vmatpush1.bf16.msra.mxu1 %v17772_v12 }
0x12ff   :  { %8875 = vmatprep.subr.bf16.mxu1 %v17777_v23  ;;  %v21778_v23 = vpack.c.bf16 %v9321_v5, %v9320_v62 }
0x1301   :  { %8863 = vmatmul.mubr.bf16.gmra.mrb[112].mxu1 %v20376_v1  ;;  %v17786_v1 = vld [vmem:[%s23788_s16 + $0xc44] ss:$24 sps:$4 sm:$0xff]  }
0x1302   :  { %8876 = vmatpush1.bf16.msra.mxu1 %v17775_v24  ;;  %8903 = vmatprep.mubr.bf16.mxu1 %v18285_v16  ;;  %v9356_v24 = vld [vmem:[%s23792_s18 + $0x1a0] sm:$0xff] }
0x1303   :  { %8877 = vmatprep.subr.bf16.mxu1 %v17780_v47  ;;  %v9357_v47 = vld [vmem:[%s23792_s18 + $0x1a8] sm:$0xff] }
0x1306   :  { %8878 = vmatpush1.bf16.msra.mxu1 %v17778_v59 }
0x1307   :  { %8879 = vmatprep.subr.bf16.mxu1 %v17783_v44  ;;  %v21786_v44 = vpack.c.bf16 %v9305_v51, %v9304_v11  ;;  %v9312_v51 = vld [vmem:[%s23792_s18 + $0x40] sm:$0xff] }
0x130a   :  { %8880 = vmatpush1.bf16.msra.mxu1 %v17781_v25  ;;  %v21789_v25 = vpack.c.bf16 %v9357_v47, %v9356_v24  ;;  %v9364_v24 = vld [vmem:[%s23792_s18 + $0x1e0] sm:$0xff]  ;;  %v9365_v47 = vld [vmem:[%s23792_s18 + $0x1e8] sm:$0xff] }
0x130b   :  { %8881 = vmatprep.subr.bf16.mxu1 %v17786_v1  ;;  %v9340_v1 = vld [vmem:[%s23792_s18 + $0x120] sm:$0xff] }
0x130e   :  { %8882 = vmatpush1.bf16.msra.mxu1 %v17784_v26  ;;  %v9341_v26 = vld [vmem:[%s23792_s18 + $0x128] sm:$0xff] }
0x1311   :  { %14507 = vmatmul.mubr.msk.bf16.vlgmr.msra.gmra.mrb[108].mxu1 %vm4434_vm11, %v20331_v45  ;;  %v21659_v45 = vld [vmem:[%s23791_s17 + $0x60] sm:$0xff] }
0x1312   :  { %8913 = vmatprep.mubr.bf16.mxu1 %v18285_v16 }
0x1319   :  { %14508 = vmatmul.mubr.msk.bf16.gmra.mrb[112].mxu1 %vm4434_vm11, %v20460_v29 }
0x131a   :  { %9130 = vmatprep.mubr.f32.mxu1 %v23804_v0 }
0x138c   :  { %v8701_v48 = vpop.f32.mrb[100].mxu1 }
0x138d   :  { %v8703_v27 = vpop.f32.mrb[101].mxu1 }
0x138e   :  { %v8705_v30 = vpop.f32.mrb[102].mxu1 }
0x138f   :  { %v16285_v31 = vpack.c.bf16 %v8705_v30, %v8701_v48  ;;  %v8707_v33 = vpop.f32.mrb[103].mxu1  ;;  %v9306_v30 = vld [vmem:[%s23792_s18 + $0x10] sm:$0xff] }
0x1390   :  { %v16283_v36 = vpack.c.bf16 %v8707_v33, %v8703_v27  ;;  %v21798_v27 = vpack.c.bf16 %v9323_v50, %v9322_v54  ;;  %v21806_v33 = vpack.c.bf16 %v9341_v26, %v9340_v1  ;;  %v9330_v50 = vld [vmem:[%s23792_s18 + $0xd0] sm:$0xff]  ;;  %v21946_v1 = vpack.c.bf16 %v9365_v47, %v9364_v24  ;;  %v9349_v26 = vld [vmem:[%s23792_s18 + $0x168] sm:$0xff]  ;;  %v9372_v24 = vld [vmem:[%s23792_s18 + $0x220] sm:$0xff] }
0x1391   :  { %v9373_v47 = vld [vmem:[%s23792_s18 + $0x228] sm:$0xff] }
0x1392   :  { %16284 = vmatprep.subr.bf16.mxu0 %v16283_v36 }
0x1393   :  { %16286 = vmatpush1.bf16.msra.mxu0 %v16285_v31  ;;  %v9307_v31 = vld [vmem:[%s23792_s18 + $0x18] sm:$0xff] }
0x1394   :  { %v8711_v39 = vpop.f32.mrb[104].mxu1 }
0x1395   :  { %v8713_v32 = vpop.f32.mrb[105].mxu1 }
0x1396   :  { %v8715_v16 = vpop.f32.mrb[106].mxu1  ;;  %14515 = vmatprep.subr.msk.mxu0 %vm7162_vm13, %v8713_v32  ;;  %v9325_v32 = vld [vmem:[%s23792_s18 + $0xa8] sm:$0xff] }
0x1397   :  { %v8716_v29 = vpop.f32.mrb[107].mxu1  ;;  %14516 = vmatpush1.msk.msra.mxu0 %vm7162_vm13, %v8711_v39  ;;  %v9324_v39 = vld [vmem:[%s23792_s18 + $0xa0] sm:$0xff]  ;;  %v9358_v16 = vld [vmem:[%s23792_s18 + $0x1b0] sm:$0xff] }
0x1398   :  { %14517 = vmatmul.mubr.msk.f32.vlgmr.msra.gmra.mrb[62].mxu0 %vm7143_vm14, %v21659_v45  ;;  %v9359_v29 = vld [vmem:[%s23792_s18 + $0x1b8] sm:$0xff] }
0x1399   :  { %9035 = vmatprep.mubr.f32.mxu0 %v23804_v0 }
0x139c   :  { %14518 = vmatmul.mubr.msk.f32.gmra.mrb[88].mxu0 %vm7143_vm14, %v21669_v63 }
0x139d   :  { %9041 = vmatprep.mubr.f32.mxu0 %v23804_v0 }
0x13a0   :  { %14519 = vmatmul.mubr.msk.f32.gmra.mrb[90].mxu0 %vm7143_vm14, %v21677_v2 }
0x13a1   :  { %9047 = vmatprep.mubr.f32.mxu0 %v23804_v0 }
0x13a4   :  { %14520 = vmatmul.mubr.msk.f32.gmra.mrb[92].mxu0 %vm7143_vm14, %v21685_v3 }
0x13a5   :  { %v8803_v4 = vpop.f32.mrb[112].mxu0  ;;  %9053 = vmatprep.mubr.f32.mxu0 %v23804_v0 }
0x13a6   :  { %v8805_v10 = vpop.f32.mrb[113].mxu0 }
0x13a7   :  { %v8807_v13 = vpop.f32.mrb[114].mxu0 }
0x13a8   :  { %v16289_v15 = vpack.c.bf16 %v8807_v13, %v8803_v4  ;;  %v8809_v17 = vpop.f32.mrb[115].mxu0  ;;  %14521 = vmatmul.mubr.msk.f32.gmra.mrb[94].mxu0 %vm7143_vm14, %v21693_v8  ;;  %v21827_v4 = vpack.c.bf16 %v9307_v31, %v9306_v30  ;;  %v9343_v13 = vld [vmem:[%s23792_s18 + $0x138] sm:$0xff]  ;;  %v9314_v30 = vld [vmem:[%s23792_s18 + $0x50] sm:$0xff] }
0x13a9   :  { %v16287_v40 = vpack.c.bf16 %v8809_v17, %v8805_v10  ;;  %9059 = vmatprep.mubr.f32.mxu0 %v23804_v0  ;;  %v21829_v10 = vpack.c.bf16 %v9359_v29, %v9358_v16  ;;  %v9308_v17 = vld [vmem:[%s23792_s18 + $0x20] sm:$0xff]  ;;  %v9315_v31 = vld [vmem:[%s23792_s18 + $0x58] sm:$0xff]  ;;  %v9366_v16 = vld [vmem:[%s23792_s18 + $0x1f0] sm:$0xff] }
0x13aa   :  { %v9367_v29 = vld [vmem:[%s23792_s18 + $0x1f8] sm:$0xff] }
0x13ab   :  { %16288 = vmatprep.subr.bf16.mxu1 %v16287_v40  ;;  %v9309_v40 = vld [vmem:[%s23792_s18 + $0x28] sm:$0xff] }
0x13ac   :  { %16290 = vmatpush1.bf16.msra.mxu1 %v16289_v15  ;;  %14522 = vmatmul.mubr.msk.f32.gmra.mrb[96].mxu0 %vm7143_vm14, %v21701_v52  ;;  %v21838_v15 = vpack.c.bf16 %v9325_v32, %v9324_v39  ;;  %v21866_v38 = vpack.c.bf16 %v9309_v40, %v9308_v17  ;;  %v9332_v39 = vld [vmem:[%s23792_s18 + $0xe0] sm:$0xff]  ;;  %v9333_v32 = vld [vmem:[%s23792_s18 + $0xe8] sm:$0xff]  ;;  %v9351_v17 = vld [vmem:[%s23792_s18 + $0x178] sm:$0xff] }
0x13ad   :  { %v8813_v41 = vpop.f32.mrb[116].mxu0  ;;  %9231 = vmatprep.mubr.f32.mxu0 %v23804_v0  ;;  %v21994_v40 = vpack.c.bf16 %v9333_v32, %v9332_v39  ;;  %v9375_v39 = vld [vmem:[%s23792_s18 + $0x238] sm:$0xff] }
0x13ae   :  { %v8815_v42 = vpop.f32.mrb[117].mxu0 }
0x13af   :  { %v8817_v56 = vpop.f32.mrb[118].mxu0  ;;  %14523 = vmatprep.subr.msk.mxu1 %vm7162_vm13, %v8815_v42  ;;  %v9345_v42 = vld [vmem:[%s23792_s18 + $0x148] sm:$0xff] }
0x13b0   :  { %v8818_v46 = vpop.f32.mrb[119].mxu0  ;;  %14524 = vmatpush1.msk.msra.mxu1 %vm7162_vm13, %v8813_v41  ;;  %v21868_v41 = vpack.c.bf16 %v9361_v22, %v9360_v49  ;;  %v21877_v56 = vpack.c.bf16 %v9327_v43, %v9326_v21  ;;  %v9316_v21 = vld [vmem:[%s23792_s18 + $0x60] sm:$0xff]  ;;  %v9317_v43 = vld [vmem:[%s23792_s18 + $0x68] sm:$0xff]  ;;  %v9334_v22 = vld [vmem:[%s23792_s18 + $0xf0] sm:$0xff] }
0x13b1   :  { %14525 = vmatmul.mubr.msk.f32.vlgmr.msra.gmra.mrb[62].mxu1 %vm7143_vm14, %v21659_v45  ;;  %16328 = vmatprep.subr.bf16.mxu1 %v21724_v28  ;;  %v9310_v46 = vld [vmem:[%s23792_s18 + $0x30] sm:$0xff] }
0x13b2   :  { %9136 = vmatprep.mubr.f32.mxu1 %v23804_v0  ;;  %16330 = vmatpush3.bf16.msra.mxu1 %v21726_v53 }
0x13b3   :  { %16332 = vmatprep.subr.bf16.mxu1 %v21729_v57 }
0x13b5   :  { %14526 = vmatmul.mubr.msk.f32.gmra.mrb[88].mxu1 %vm7143_vm14, %v21669_v63 }
0x13b6   :  { %9142 = vmatprep.mubr.f32.mxu1 %v23804_v0  ;;  %16334 = vmatpush3.bf16.msra.mxu1 %v21776_v19 }
0x13b7   :  { %16336 = vmatprep.subr.bf16.mxu1 %v21789_v25 }
0x13b9   :  { %14527 = vmatmul.mubr.msk.f32.gmra.mrb[90].mxu1 %vm7143_vm14, %v21677_v2 }
0x13ba   :  { %9148 = vmatprep.mubr.f32.mxu1 %v23804_v0  ;;  %16338 = vmatpush3.bf16.msra.mxu1 %v21806_v33 }
0x13bb   :  { %16340 = vmatprep.subr.bf16.mxu1 %v21829_v10 }
0x13bd   :  { %14528 = vmatmul.mubr.msk.f32.gmra.mrb[92].mxu1 %vm7143_vm14, %v21685_v3 }
0x13be   :  { %9154 = vmatprep.mubr.f32.mxu1 %v23804_v0 }
0x13c1   :  { %14529 = vmatmul.mubr.msk.f32.gmra.mrb[94].mxu1 %vm7143_vm14, %v21693_v8 }
0x13c2   :  { %9160 = vmatprep.mubr.f32.mxu1 %v23804_v0 }
0x13c5   :  { %14530 = vmatmul.mubr.msk.f32.gmra.mrb[96].mxu1 %vm7143_vm14, %v21701_v52 }
0x13e4   :  { %v8905_v58 = vpop.f32.mrb[108].mxu1 }
0x13e5   :  { %v8907_v55 = vpop.f32.mrb[109].mxu1 }
0x13e6   :  { %v8909_v7 = vpop.f32.mrb[110].mxu1 }
0x13e7   :  { %v16293_v60 = vpack.c.bf16 %v8909_v7, %v8905_v58  ;;  %v8911_v20 = vpop.f32.mrb[111].mxu1  ;;  %v9311_v58 = vld [vmem:[%s23792_s18 + $0x38] sm:$0xff]  ;;  %v9328_v7 = vld [vmem:[%s23792_s18 + $0xc0] sm:$0xff] }
0x13e8   :  { %v16291_v61 = vpack.c.bf16 %v8911_v20, %v8907_v55  ;;  %v9362_v20 = vld [vmem:[%s23792_s18 + $0x1d0] sm:$0xff]  ;;  %v21905_v62 = vpack.c.bf16 %v9311_v58, %v9310_v46 }
0x13e9   :  { %v9318_v58 = vld [vmem:[%s23792_s18 + $0x70] sm:$0xff] }
0x13ea   :  { %16292 = vmatprep.subr.bf16.mxu0 %v16291_v61  ;;  %v9363_v61 = vld [vmem:[%s23792_s18 + $0x1d8] sm:$0xff] }
0x13eb   :  { %16294 = vmatpush1.bf16.msra.mxu0 %v16293_v60  ;;  %v9329_v60 = vld [vmem:[%s23792_s18 + $0xc8] sm:$0xff]  ;;  %v21907_v5 = vpack.c.bf16 %v9363_v61, %v9362_v20 }
0x13ec   :  { %v8915_v12 = vpop.f32.mrb[112].mxu1  ;;  %v21916_v11 = vpack.c.bf16 %v9329_v60, %v9328_v7  ;;  %v9319_v7 = vld [vmem:[%s23792_s18 + $0x78] sm:$0xff]  ;;  %v9368_v60 = vld [vmem:[%s23792_s18 + $0x200] sm:$0xff]  ;;  %v9369_v20 = vld [vmem:[%s23792_s18 + $0x208] sm:$0xff] }
0x13ed   :  { %v8917_v59 = vpop.f32.mrb[113].mxu1 }
0x13ee   :  { %v8919_v48 = vpop.f32.mrb[114].mxu1  ;;  %14531 = vmatprep.subr.msk.mxu0 %vm7162_vm13, %v8917_v59  ;;  %v21944_v59 = vpack.c.bf16 %v9313_v14, %v9312_v51  ;;  %v9371_v51 = vld [vmem:[%s23792_s18 + $0x218] sm:$0xff] }
0x13ef   :  { %v8920_v36 = vpop.f32.mrb[115].mxu1  ;;  %14532 = vmatpush1.msk.msra.mxu0 %vm7162_vm13, %v8915_v12  ;;  %v9331_v12 = vld [vmem:[%s23792_s18 + $0xd8] sm:$0xff] }
0x13f0   :  { %14533 = vmatmul.mubr.msk.f32.vlgmr.msra.gmra.mrb[98].mxu0 %vm7143_vm14, %v21659_v45  ;;  %16296 = vmatprep.subr.bf16.mxu0 %v21778_v23  ;;  %v9342_v45 = vld [vmem:[%s23792_s18 + $0x130] sm:$0xff]  ;;  %v21955_v48 = vpack.c.bf16 %v9331_v12, %v9330_v50 }
0x13f1   :  { %9237 = vmatprep.mubr.f32.mxu0 %v23804_v0  ;;  %16298 = vmatpush3.bf16.msra.mxu0 %v21786_v44  ;;  %v21847_v18 = vpack.c.bf16 %v9343_v13, %v9342_v45  ;;  %v21983_v45 = vpack.c.bf16 %v9315_v31, %v9314_v30  ;;  %v21985_v13 = vpack.c.bf16 %v9367_v29, %v9366_v16  ;;  %v9374_v31 = vld [vmem:[%s23792_s18 + $0x230] sm:$0xff] }
0x13f2   :  { %16300 = vmatprep.subr.bf16.mxu0 %v21798_v27  ;;  %v22089_v16 = vpack.c.bf16 %v9375_v39, %v9374_v31  ;;  %v9382_v31 = vld [vmem:[%s23792_s18 + $0x270] sm:$0xff]  ;;  %v9383_v39 = vld [vmem:[%s23792_s18 + $0x278] sm:$0xff] }
0x13f3   :  { %16342 = vmatpush3.bf16.msra.mxu1 %v21847_v18 }
0x13f4   :  { %14534 = vmatmul.mubr.msk.f32.gmra.mrb[100].mxu0 %vm7143_vm14, %v21669_v63  ;;  %v9344_v63 = vld [vmem:[%s23792_s18 + $0x140] sm:$0xff]  ;;  %16344 = vmatprep.subr.bf16.mxu1 %v21868_v41 }
0x13f5   :  { %9243 = vmatprep.mubr.f32.mxu0 %v23804_v0  ;;  %16302 = vmatpush3.bf16.msra.mxu0 %v21827_v4  ;;  %v21886_v55 = vpack.c.bf16 %v9345_v42, %v9344_v63  ;;  %v9335_v63 = vld [vmem:[%s23792_s18 + $0xf8] sm:$0xff]  ;;  %v22015_v42 = vpack.c.bf16 %v9317_v43, %v9316_v21 }
0x13f6   :  { %16304 = vmatprep.subr.bf16.mxu0 %v21838_v15  ;;  %v22018_v46 = vpack.c.bf16 %v9335_v63, %v9334_v22  ;;  %v9378_v63 = vld [vmem:[%s23792_s18 + $0x250] sm:$0xff] }
0x13f7   :  { %16346 = vmatpush3.bf16.msra.mxu1 %v21886_v55 }
0x13f8   :  { %14535 = vmatmul.mubr.msk.f32.gmra.mrb[102].mxu0 %vm7143_vm14, %v21677_v2  ;;  %v9346_v2 = vld [vmem:[%s23792_s18 + $0x150] sm:$0xff]  ;;  %16348 = vmatprep.subr.bf16.mxu1 %v21907_v5 }
0x13f9   :  { %9249 = vmatprep.mubr.f32.mxu0 %v23804_v0  ;;  %16306 = vmatpush3.bf16.msra.mxu0 %v21866_v38  ;;  %v21925_v54 = vpack.c.bf16 %v9347_v9, %v9346_v2  ;;  %v9370_v9 = vld [vmem:[%s23792_s18 + $0x210] sm:$0xff] }
0x13fa   :  { %16308 = vmatprep.subr.bf16.mxu0 %v21877_v56  ;;  %v22057_v50 = vpack.c.bf16 %v9371_v51, %v9370_v9  ;;  %v9380_v9 = vld [vmem:[%s23792_s18 + $0x260] sm:$0xff]  ;;  %v9381_v51 = vld [vmem:[%s23792_s18 + $0x268] sm:$0xff] }
0x13fb   :  { %16350 = vmatpush3.bf16.msra.mxu1 %v21925_v54 }
0x13fc   :  { %14536 = vmatmul.mubr.msk.f32.gmra.mrb[104].mxu0 %vm7143_vm14, %v21685_v3  ;;  %v9348_v3 = vld [vmem:[%s23792_s18 + $0x160] sm:$0xff]  ;;  %16352 = vmatprep.subr.bf16.mxu1 %v21946_v1 }
0x13fd   :  { %9255 = vmatprep.mubr.f32.mxu0 %v23804_v0  ;;  %16310 = vmatpush3.bf16.msra.mxu0 %v21905_v62  ;;  %v21964_v36 = vpack.c.bf16 %v9349_v26, %v9348_v3  ;;  %v22073_v26 = vpack.c.bf16 %v9373_v47, %v9372_v24  ;;  %v22135_v24 = vpack.c.bf16 %v9381_v51, %v9380_v9  ;;  %v9385_v9 = vld [vmem:[%s23792_s18 + $0x288] sm:$0xff] }
0x13fe   :  { %16312 = vmatprep.subr.bf16.mxu0 %v21916_v11 }
0x13ff   :  { %16354 = vmatpush3.bf16.msra.mxu1 %v21964_v36 }
0x1400   :  { %14537 = vmatmul.mubr.msk.f32.gmra.mrb[106].mxu0 %vm7143_vm14, %v21693_v8  ;;  %v9350_v8 = vld [vmem:[%s23792_s18 + $0x170] sm:$0xff]  ;;  %16356 = vmatprep.subr.bf16.mxu1 %v21985_v13 }
0x1401   :  { %9261 = vmatprep.mubr.f32.mxu0 %v23804_v0  ;;  %16314 = vmatpush3.bf16.msra.mxu0 %v21944_v59  ;;  %v22003_v49 = vpack.c.bf16 %v9351_v17, %v9350_v8  ;;  %v9376_v8 = vld [vmem:[%s23792_s18 + $0x240] sm:$0xff]  ;;  %v9377_v17 = vld [vmem:[%s23792_s18 + $0x248] sm:$0xff] }
0x1402   :  { %16316 = vmatprep.subr.bf16.mxu0 %v21955_v48  ;;  %v22105_v43 = vpack.c.bf16 %v9377_v17, %v9376_v8  ;;  %v22151_v17 = vpack.c.bf16 %v9383_v39, %v9382_v31 }
0x1403   :  { %16358 = vmatpush3.bf16.msra.mxu1 %v22003_v49 }
0x1404   :  { %14538 = vmatmul.mubr.msk.f32.gmra.mrb[108].mxu0 %vm7143_vm14, %v21701_v52  ;;  %16396 = vmatprep.subr.bf16.mxu1 %v21778_v23  ;;  %v22029_v52 = vpack.c.bf16 %v9319_v7, %v9318_v58  ;;  %v22042_v23 = vpack.c.bf16 %v9369_v20, %v9368_v60  ;;  %v9379_v58 = vld [vmem:[%s23792_s18 + $0x258] sm:$0xff] }
0x1405   :  { %16318 = vmatpush3.bf16.msra.mxu0 %v21983_v45  ;;  %v22121_v60 = vpack.c.bf16 %v9379_v58, %v9378_v63  ;;  %v9384_v58 = vld [vmem:[%s23792_s18 + $0x280] sm:$0xff] }
0x1406   :  { %16320 = vmatprep.subr.bf16.mxu0 %v21994_v40  ;;  %v22169_v31 = vpack.c.bf16 %v9385_v9, %v9384_v58 }
0x1408   :  { %23855 = vst [vmem:[#allocation4_spill] sm:$0xff] %v22169_v31 }
0x1409   :  { %16322 = vmatpush3.bf16.msra.mxu0 %v22015_v42 }
0x140a   :  { %16324 = vmatprep.subr.bf16.mxu0 %v22018_v46 }
0x140d   :  { %16326 = vmatpush3.bf16.msra.mxu0 %v22029_v52 }
0x140e   :  { %16359 = vmatprep.subr.bf16.mxu0 %v23810_v6 }
0x146b   :  { %v22040_v61 = vpop.f32.mrb[62].mxu0 }
0x146c   :  { %v22044_v2 = vpop.f32.mrb[63].mxu0 }
0x146d   :  { %9474 = vmatprep.mubr.f32.mxu0 %v22044_v2 }
0x146e   :  { %9475 = vmatmul.mubr.f32.vlgmr.msra.gmra.mrb[110].mxu0 %v22040_v61 }
0x146f   :  { %v22054_v14 = vpop.f32.mrb[88].mxu0  ;;  %16361 = vmatpush1.bf16.msra.mxu0 %v22042_v23 }
0x1470   :  { %v22059_v12 = vpop.f32.mrb[89].mxu0  ;;  %16362 = vmatprep.subr.bf16.mxu0 %v23810_v6 }
0x1471   :  { %9479 = vmatprep.mubr.f32.mxu0 %v22059_v12 }
0x1472   :  { %9480 = vmatmul.mubr.f32.gmra.mrb[120].mxu0 %v22054_v14 }
0x1473   :  { %v22070_v3 = vpop.f32.mrb[90].mxu0  ;;  %16364 = vmatpush1.bf16.msra.mxu0 %v22057_v50 }
0x1474   :  { %v22075_v30 = vpop.f32.mrb[91].mxu0  ;;  %16365 = vmatprep.subr.bf16.mxu0 %v23810_v6 }
0x1475   :  { %9484 = vmatprep.mubr.f32.mxu0 %v22075_v30 }
0x1476   :  { %9485 = vmatmul.mubr.f32.gmra.mrb[122].mxu0 %v22070_v3 }
0x1477   :  { %v22086_v32 = vpop.f32.mrb[92].mxu0  ;;  %16367 = vmatpush1.bf16.msra.mxu0 %v22073_v26 }
0x1478   :  { %v22091_v29 = vpop.f32.mrb[93].mxu0  ;;  %16368 = vmatprep.subr.bf16.mxu0 %v23810_v6 }
0x1479   :  { %9489 = vmatprep.mubr.f32.mxu0 %v22091_v29 }
0x147a   :  { %9490 = vmatmul.mubr.f32.gmra.mrb[124].mxu0 %v22086_v32 }
0x147b   :  { %v22102_v21 = vpop.f32.mrb[94].mxu0  ;;  %16370 = vmatpush1.bf16.msra.mxu0 %v22089_v16 }
0x147c   :  { %v22107_v22 = vpop.f32.mrb[95].mxu0  ;;  %16371 = vmatprep.subr.bf16.mxu0 %v23810_v6 }
0x147d   :  { %9494 = vmatprep.mubr.f32.mxu0 %v22107_v22 }
0x147e   :  { %9495 = vmatmul.mubr.f32.gmra.mrb[126].mxu0 %v22102_v21 }
0x147f   :  { %v22118_v7 = vpop.f32.mrb[96].mxu0  ;;  %16373 = vmatpush1.bf16.msra.mxu0 %v22105_v43 }
0x1480   :  { %v22123_v20 = vpop.f32.mrb[97].mxu0  ;;  %16374 = vmatprep.subr.bf16.mxu0 %v23810_v6 }
0x1481   :  { %9499 = vmatprep.mubr.f32.mxu0 %v22123_v20 }
0x1482   :  { %9500 = vmatmul.mubr.f32.gmra.mrb[128].mxu0 %v22118_v7 }
0x1483   :  { %16376 = vmatpush1.bf16.msra.mxu0 %v22121_v60 }
0x1484   :  { %v22137_v47 = vpop.f32.mrb[62].mxu1  ;;  %16377 = vmatprep.subr.bf16.mxu0 %v23810_v6 }
0x1485   :  { %v22146_v8 = vpop.f32.mrb[63].mxu1 }
0x1486   :  { %9569 = vmatprep.mubr.f32.mxu1 %v22146_v8 }
0x1487   :  { %9570 = vmatmul.mubr.f32.vlgmr.msra.gmra.mrb[98].mxu1 %v22137_v47  ;;  %16379 = vmatpush1.bf16.msra.mxu0 %v22135_v24 }
0x1488   :  { %v22153_v63 = vpop.f32.mrb[88].mxu1  ;;  %16380 = vmatprep.subr.bf16.mxu0 %v23810_v6  ;;  %16398 = vmatpush3.bf16.msra.mxu1 %v21786_v44  ;;  %v9386_v44 = vld [vmem:[%s23792_s18 + $0x290] sm:$0xff] }
0x1489   :  { %v22163_v51 = vpop.f32.mrb[89].mxu1  ;;  %16400 = vmatprep.subr.bf16.mxu1 %v21798_v27  ;;  %v9387_v27 = vld [vmem:[%s23792_s18 + $0x298] sm:$0xff] }
0x148a   :  { %9574 = vmatprep.mubr.f32.mxu1 %v22163_v51  ;;  %v22187_v58 = vpack.c.bf16 %v9387_v27, %v9386_v44 }
0x148b   :  { %9575 = vmatmul.mubr.f32.gmra.mrb[116].mxu1 %v22153_v63  ;;  %16382 = vmatpush1.bf16.msra.mxu0 %v22151_v17 }
0x148c   :  { %v22171_v39 = vpop.f32.mrb[90].mxu1  ;;  %16383 = vmatprep.subr.bf16.mxu0 %v23810_v6  ;;  %16402 = vmatpush3.bf16.msra.mxu1 %v21827_v4  ;;  %23856 = vst [vmem:[#allocation5_spill] sm:$0xff] %v22187_v58  ;;  %v9388_v4 = vld [vmem:[%s23792_s18 + $0x2a0] sm:$0xff] }
0x148d   :  { %v22181_v0 = vpop.f32.mrb[91].mxu1  ;;  %16404 = vmatprep.subr.bf16.mxu1 %v21838_v15  ;;  %v9389_v15 = vld [vmem:[%s23792_s18 + $0x2a8] sm:$0xff] }
0x148e   :  { %9579 = vmatprep.mubr.f32.mxu1 %v22181_v0  ;;  %v22205_v44 = vpack.c.bf16 %v9389_v15, %v9388_v4 }
0x148f   :  { %9580 = vmatmul.mubr.f32.gmra.mrb[118].mxu1 %v22171_v39  ;;  %16385 = vmatpush1.bf16.msra.mxu0 %v22169_v31 }
0x1490   :  { %v22189_v9 = vpop.f32.mrb[92].mxu1  ;;  %16386 = vmatprep.subr.bf16.mxu0 %v23810_v6  ;;  %16406 = vmatpush3.bf16.msra.mxu1 %v21866_v38  ;;  %23857 = vst [vmem:[#allocation6_spill] sm:$0xff] %v22205_v44  ;;  %v9390_v38 = vld [vmem:[%s23792_s18 + $0x2b0] sm:$0xff] }
0x1491   :  { %v22199_v35 = vpop.f32.mrb[93].mxu1  ;;  %16408 = vmatprep.subr.bf16.mxu1 %v21877_v56  ;;  %v9391_v56 = vld [vmem:[%s23792_s18 + $0x2b8] sm:$0xff] }
0x1492   :  { %9584 = vmatprep.mubr.f32.mxu1 %v22199_v35  ;;  %v22223_v4 = vpack.c.bf16 %v9391_v56, %v9390_v38 }
0x1493   :  { %9585 = vmatmul.mubr.f32.gmra.mrb[120].mxu1 %v22189_v9  ;;  %16388 = vmatpush1.bf16.msra.mxu0 %v22187_v58 }
0x1494   :  { %v22207_v27 = vpop.f32.mrb[94].mxu1  ;;  %16389 = vmatprep.subr.bf16.mxu0 %v23810_v6  ;;  %16410 = vmatpush3.bf16.msra.mxu1 %v21905_v62  ;;  %23858 = vst [vmem:[#allocation7_spill] sm:$0xff] %v22223_v4 }
0x1495   :  { %v22217_v34 = vpop.f32.mrb[95].mxu1  ;;  %16412 = vmatprep.subr.bf16.mxu1 %v21916_v11 }
0x1496   :  { %9589 = vmatprep.mubr.f32.mxu1 %v22217_v34 }
0x1497   :  { %9590 = vmatmul.mubr.f32.gmra.mrb[122].mxu1 %v22207_v27  ;;  %16391 = vmatpush1.bf16.msra.mxu0 %v22205_v44 }
0x1498   :  { %v22225_v15 = vpop.f32.mrb[96].mxu1  ;;  %16392 = vmatprep.subr.bf16.mxu0 %v23810_v6  ;;  %16414 = vmatpush3.bf16.msra.mxu1 %v21944_v59 }
0x1499   :  { %v22229_v58 = vpop.f32.mrb[97].mxu1  ;;  %16416 = vmatprep.subr.bf16.mxu1 %v21955_v48 }
0x149a   :  { %9594 = vmatprep.mubr.f32.mxu1 %v22229_v58 }
0x149b   :  { %9595 = vmatmul.mubr.f32.gmra.mrb[124].mxu1 %v22225_v15  ;;  %16394 = vmatpush1.bf16.msra.mxu0 %v22223_v4 }
0x149c   :  { %16428 = vmatprep.subr.bf16.mxu0 %v21724_v28  ;;  %16418 = vmatpush3.bf16.msra.mxu1 %v21983_v45 }
0x149d   :  { %16420 = vmatprep.subr.bf16.mxu1 %v21994_v40 }
0x14a0   :  { %16422 = vmatpush3.bf16.msra.mxu1 %v22015_v42 }
0x14a1   :  { %16424 = vmatprep.subr.bf16.mxu1 %v22018_v46 }
0x14a4   :  { %16426 = vmatpush3.bf16.msra.mxu1 %v22029_v52 }
0x14a5   :  { %16459 = vmatprep.subr.bf16.mxu1 %v23810_v6 }
0x14c3   :  { %v22242_v62 = vpop.f32.mrb[98].mxu0 }
0x14c4   :  { %23859 = vst [vmem:[#allocation8_spill] sm:$0xff] %v22242_v62  ;;  %v22244_v11 = vpop.f32.mrb[99].mxu0 }
0x14c5   :  { %14539 = vmatprep.mubr.msk.f32.mxu0 %vm222_vm3, %v22244_v11 }
0x14c6   :  { %9665 = vmatmul.mubr.f32.vlgmr.msra.gmra.mrb[130].mxu0 %v22242_v62 }
0x14c7   :  { %v22249_v28 = vpop.f32.mrb[100].mxu0  ;;  %16430 = vmatpush3.bf16.msra.mxu0 %v21726_v53 }
0x14c8   :  { %23860 = vst [vmem:[#allocation9_spill] sm:$0xff] %v22249_v28  ;;  %v22252_v59 = vpop.f32.mrb[101].mxu0  ;;  %16432 = vmatprep.subr.bf16.mxu0 %v21729_v57 }
0x14c9   :  { %23861 = vst [vmem:[#allocation10_spill] sm:$0xff] %v22252_v59  ;;  %14540 = vmatprep.mubr.msk.f32.mxu0 %vm222_vm3, %v22252_v59 }
0x14ca   :  { %9670 = vmatmul.mubr.f32.gmra.mrb[132].mxu0 %v22249_v28 }
0x14cb   :  { %v22258_v48 = vpop.f32.mrb[102].mxu0  ;;  %16434 = vmatpush3.bf16.msra.mxu0 %v21776_v19 }
0x14cc   :  { %23862 = vst [vmem:[#allocation11_spill] sm:$0xff] %v22258_v48  ;;  %v22261_v45 = vpop.f32.mrb[103].mxu0  ;;  %16436 = vmatprep.subr.bf16.mxu0 %v21789_v25 }
0x14cd   :  { %23863 = vst [vmem:[#allocation12_spill] sm:$0xff] %v22261_v45  ;;  %14541 = vmatprep.mubr.msk.f32.mxu0 %vm222_vm3, %v22261_v45 }
0x14ce   :  { %9675 = vmatmul.mubr.f32.gmra.mrb[134].mxu0 %v22258_v48 }
0x14cf   :  { %v22267_v53 = vpop.f32.mrb[104].mxu0  ;;  %16438 = vmatpush3.bf16.msra.mxu0 %v21806_v33 }
0x14d0   :  { %23864 = vst [vmem:[#allocation13_spill] sm:$0xff] %v22267_v53  ;;  %v22270_v57 = vpop.f32.mrb[105].mxu0  ;;  %16440 = vmatprep.subr.bf16.mxu0 %v21829_v10 }
0x14d1   :  { %23865 = vst [vmem:[#allocation14_spill] sm:$0xff] %v22270_v57  ;;  %14542 = vmatprep.mubr.msk.f32.mxu0 %vm222_vm3, %v22270_v57 }
0x14d2   :  { %9680 = vmatmul.mubr.f32.gmra.mrb[136].mxu0 %v22267_v53 }
0x14d3   :  { %v22276_v19 = vpop.f32.mrb[106].mxu0  ;;  %16442 = vmatpush3.bf16.msra.mxu0 %v21847_v18 }
0x14d4   :  { %v22279_v25 = vpop.f32.mrb[107].mxu0  ;;  %16444 = vmatprep.subr.bf16.mxu0 %v21868_v41 }
0x14d5   :  { %23866 = vst [vmem:[#allocation15_spill] sm:$0xff] %v22279_v25  ;;  %14543 = vmatprep.mubr.msk.f32.mxu0 %vm222_vm3, %v22279_v25 }
0x14d6   :  { %9685 = vmatmul.mubr.f32.gmra.mrb[138].mxu0 %v22276_v19 }
0x14d7   :  { %v22285_v33 = vpop.f32.mrb[108].mxu0  ;;  %16446 = vmatpush3.bf16.msra.mxu0 %v21886_v55 }
0x14d8   :  { %v22288_v10 = vpop.f32.mrb[109].mxu0  ;;  %16448 = vmatprep.subr.bf16.mxu0 %v21907_v5 }
0x14d9   :  { %23867 = vst [vmem:[#allocation16_spill] sm:$0xff] %v22288_v10  ;;  %14544 = vmatprep.mubr.msk.f32.mxu0 %vm222_vm3, %v22288_v10 }
0x14da   :  { %9690 = vmatmul.mubr.f32.gmra.mrb[140].mxu0 %v22285_v33 }
0x14db   :  { %16450 = vmatpush3.bf16.msra.mxu0 %v21925_v54 }
0x14dc   :  { %16452 = vmatprep.subr.bf16.mxu0 %v21946_v1 }
0x14df   :  { %16454 = vmatpush3.bf16.msra.mxu0 %v21964_v36 }
0x14e0   :  { %16456 = vmatprep.subr.bf16.mxu0 %v21985_v13 }
0x14e3   :  { %16458 = vmatpush3.bf16.msra.mxu0 %v22003_v49 }
0x1541   :  { %v15472_v18 = vpop.f32.mrb[110].mxu0 }
0x1542   :  { %v15473_v41 = vpop.f32.mrb[111].mxu0 }
0x1543   :  { %v15474_v55 = vadd.f32 %v15473_v41, %v15472_v18 }
0x1545   :  { %v15475_v40 = vpop.f32.mrb[120].mxu0 }
0x1546   :  { %v15476_v5 = vpop.f32.mrb[121].mxu0 }
0x1547   :  { %v15477_v42 = vadd.f32 %v15476_v5, %v15475_v40 }
0x1549   :  { %v15478_v46 = vpop.f32.mrb[122].mxu0 }
0x154a   :  { %v15479_v52 = vpop.f32.mrb[123].mxu0 }
0x154b   :  { %v15480_v38 = vadd.f32 %v15479_v52, %v15478_v46 }
0x154d   :  { %v15481_v56 = vpop.f32.mrb[124].mxu0 }
0x154e   :  { %v15482_v6 = vpop.f32.mrb[125].mxu0 }
0x154f   :  { %v15483_v54 = vadd.f32 %v15482_v6, %v15481_v56 }
0x1551   :  { %v15484_v10 = vpop.f32.mrb[126].mxu0 }
0x1552   :  { %v15485_v1 = vpop.f32.mrb[127].mxu0 }
0x1553   :  { %v15486_v25 = vadd.f32 %v15485_v1, %v15484_v10 }
0x1555   :  { %v15487_v36 = vpop.f32.mrb[128].mxu0 }
0x1556   :  { %v15488_v53 = vpop.f32.mrb[129].mxu0 }
0x1557   :  { %v15489_v13 = vadd.f32 %v15488_v53, %v15487_v36 }
0x155a   :  { %v15522_v57 = vpop.f32.mrb[98].mxu1 }
0x155b   :  { %v15523_v49 = vpop.f32.mrb[99].mxu1 }
0x155c   :  { %v15524_v48 = vadd.f32 %v15523_v49, %v15522_v57 }
0x155e   :  { %v15525_v45 = vpop.f32.mrb[116].mxu1  ;;  %v9572_v18 = vadd.f32 %v15524_v48, %v15474_v55 }
0x155f   :  { %v15526_v41 = vpop.f32.mrb[117].mxu1 }
0x1560   :  { %v15527_v28 = vadd.f32 %v15526_v41, %v15525_v45 }
0x1562   :  { %v15528_v40 = vpop.f32.mrb[118].mxu1  ;;  %v9577_v5 = vadd.f32 %v15527_v28, %v15477_v42 }
0x1563   :  { %v15529_v4 = vpop.f32.mrb[119].mxu1 }
0x1564   :  { %v15530_v46 = vadd.f32 %v15529_v4, %v15528_v40 }
0x1566   :  { %v15531_v52 = vpop.f32.mrb[120].mxu1  ;;  %v9582_v59 = vadd.f32 %v15530_v46, %v15480_v38 }
0x1567   :  { %v15532_v6 = vpop.f32.mrb[121].mxu1 }
0x1568   :  { %v15533_v56 = vadd.f32 %v15532_v6, %v15531_v52 }
0x156a   :  { %v15534_v62 = vpop.f32.mrb[122].mxu1  ;;  %v9587_v10 = vadd.f32 %v15533_v56, %v15483_v54 }
0x156b   :  { %v15535_v1 = vpop.f32.mrb[123].mxu1 }
0x156c   :  { %v15536_v44 = vadd.f32 %v15535_v1, %v15534_v62 }
0x156e   :  { %v15537_v53 = vpop.f32.mrb[124].mxu1  ;;  %v9592_v36 = vadd.f32 %v15536_v44, %v15486_v25 }
0x156f   :  { %v15538_v31 = vpop.f32.mrb[125].mxu1 }
0x1570   :  { %v15539_v57 = vadd.f32 %v15538_v31, %v15537_v53 }
0x1572   :  { %v9597_v49 = vadd.f32 %v15539_v57, %v15489_v13 }
0x1599   :  { %v9666_v48 = vpop.f32.mrb[130].mxu0 }
0x159a   :  { %v9667_v55 = vadd.f32 %v9666_v48, %v9572_v18  ;;  %v9668_v45 = vpop.f32.mrb[131].mxu0 }
0x159c   :  { %v9695_v4 = vsel %vm95_vm1, %v9667_v55, 0.0 }
0x159d   :  { %v9671_v41 = vpop.f32.mrb[132].mxu0 }
0x159e   :  { %v9672_v28 = vadd.f32 %v9671_v41, %v9577_v5  ;;  %v9673_v42 = vpop.f32.mrb[133].mxu0 }
0x15a0   :  { %v9696_v38 = vsel %vm95_vm1, %v9672_v28, 0.0 }
0x15a1   :  { %v9697_v40 = vadd.f32 %v9696_v38, %v9695_v4  ;;  %v9676_v46 = vpop.f32.mrb[134].mxu0 }
0x15a2   :  { %v9677_v54 = vadd.f32 %v9676_v46, %v9582_v59  ;;  %v9678_v52 = vpop.f32.mrb[135].mxu0 }
0x15a4   :  { %v9698_v62 = vsel %vm95_vm1, %v9677_v54, 0.0 }
0x15a5   :  { %v9699_v44 = vadd.f32 %v9698_v62, %v9697_v40  ;;  %v9681_v25 = vpop.f32.mrb[136].mxu0 }
0x15a6   :  { %v9682_v31 = vadd.f32 %v9681_v25, %v9587_v10  ;;  %v9683_v13 = vpop.f32.mrb[137].mxu0 }
0x15a8   :  { %v9700_v18 = vsel %vm95_vm1, %v9682_v31, 0.0 }
0x15a9   :  { %v9701_v6 = vadd.f32 %v9700_v18, %v9699_v44  ;;  %v9686_v56 = vpop.f32.mrb[138].mxu0 }
0x15aa   :  { %v9687_v5 = vadd.f32 %v9686_v56, %v9592_v36  ;;  %v9688_v1 = vpop.f32.mrb[139].mxu0 }
0x15ac   :  { %v9702_v53 = vsel %vm95_vm1, %v9687_v5, 0.0 }
0x15ad   :  { %v9703_v57 = vadd.f32 %v9702_v53, %v9701_v6  ;;  %v9691_v48 = vpop.f32.mrb[140].mxu0 }
0x15ae   :  { %v9692_v55 = vadd.f32 %v9691_v48, %v9597_v49  ;;  %v9693_v59 = vpop.f32.mrb[141].mxu0 }
0x15b0   :  { %v9705_v45 = vsel %vm9704_vm15, %v9692_v55, 0.0 }
0x15b1   :  { %v9706_v41 = vadd.f32 %v9705_v45, %v9703_v57 }
0x15b3   :  { %v9707_v28 = vrot.slane %v9706_v41, 4 }
0x15b5   :  { %v9708_v42 = vadd.f32 %v9707_v28, %v9706_v41 }
0x15b7   :  { %v9709_v10 = vrot.slane %v9708_v42, 2 }
0x15b9   :  { %v9710_v4 = vadd.f32 %v9709_v10, %v9708_v42 }
0x15bb   :  { %v9711_v38 = vrot.slane %v9710_v4, 1 }
0x15bd   :  { %v9712_v40 = vadd.f32 %v9711_v38, %v9710_v4  ;;  %v23868_v4 = vmov 0.0|0.0  }
0x15bf   :  { %v22305_v46 = vmul.f32 0.0010330578, %v9712_v40 }
0x15c1   :  { %9718 = vrot.lane.b32.xlu0 %v22305_v46, %s18286_s28  ;;  %9715 = vrot.lane.b32.xlu1 %v22305_v46, %s18284_s4 }
0x15c5   :  { %9721 = vrot.lane.b32.xlu1 %v22305_v46, %s18288_s13 }
0x1633   :  { %v9716_v36 = vpop.permute.xlu1 %9715  ;;  %v9719_v49 = vpop.permute.xlu0 %9718 }
0x1634   :  { %v9724_v54 = vsel %vm95_vm1, %v22305_v46, %v9716_v36 }
0x1635   :  { %v9725_v52 = vsel %vm222_vm3, %v9724_v54, %v9719_v49 }
0x1637   :  { %v9722_v62 = vpop.permute.xlu1 %9721 }
0x1638   :  { %v9726_v44 = vsel %vm4434_vm11, %v9725_v52, %v9722_v62 }
0x1639   :  { %v22318_v25 = vrot.slane %v9726_v44, %v18483_v37 }
0x163b   :  { %v9736_v31 = vsub.f32 %v22044_v2, %v22318_v25  ;;  %v9738_v13 = vsub.f32 %v22146_v8, %v22318_v25  ;;  %v9735_v18 = vsub.f32 %v22040_v61, %v22318_v25  ;;  %v9737_v6 = vsub.f32 %v22137_v47, %v22318_v25 }
0x163c   :  { %v9742_v56 = vsub.f32 %v22059_v12, %v22318_v25  ;;  %v9744_v5 = vsub.f32 %v22163_v51, %v22318_v25  ;;  %v9741_v55 = vsub.f32 %v22054_v14, %v22318_v25  ;;  %v9743_v59 = vsub.f32 %v22153_v63, %v22318_v25 }
0x163d   :  { %v9772_v1 = vmul.f32 %v9736_v31, %v9736_v31  ;;  %v9774_v53 = vmul.f32 %v9738_v13, %v9738_v13  ;;  %v9771_v57 = vmul.f32 %v9735_v18, %v9735_v18  ;;  %v9773_v48 = vmul.f32 %v9737_v6, %v9737_v6 }
0x163e   :  { %v9778_v45 = vmul.f32 %v9742_v56, %v9742_v56  ;;  %v9748_v41 = vsub.f32 %v22075_v30, %v22318_v25  ;;  %v9780_v28 = vmul.f32 %v9744_v5, %v9744_v5  ;;  %v9750_v42 = vsub.f32 %v22181_v0, %v22318_v25 }
0x163f   :  { %9889 = vmatprep.mubr.f32.mxu1 %v9772_v1  ;;  %9984 = vmatprep.mubr.f32.mxu0 %v9774_v53  ;;  %v9747_v10 = vsub.f32 %v22070_v3, %v22318_v25  ;;  %v9777_v38 = vmul.f32 %v9741_v55, %v9741_v55  ;;  %v9779_v40 = vmul.f32 %v9743_v59, %v9743_v59 }
0x1640   :  { %9890 = vmatmul.mubr.f32.vlgmr.msra.gmra.mrb[126].mxu1 %v9771_v57  ;;  %9985 = vmatmul.mubr.f32.vlgmr.msra.gmra.mrb[142].mxu0 %v9773_v48  ;;  %v9749_v36 = vsub.f32 %v22171_v39, %v22318_v25  ;;  %v9784_v49 = vmul.f32 %v9748_v41, %v9748_v41  ;;  %v9754_v52 = vsub.f32 %v22091_v29, %v22318_v25 }
0x1641   :  { %16461 = vmatpush1.bf16.msra.mxu1 %v22042_v23  ;;  %9894 = vmatprep.mubr.f32.mxu1 %v9778_v45  ;;  %v9786_v62 = vmul.f32 %v9750_v42, %v9750_v42  ;;  %v9756_v23 = vsub.f32 %v22199_v35, %v22318_v25  ;;  %v9783_v44 = vmul.f32 %v9747_v10, %v9747_v10 }
0x1642   :  { %9989 = vmatprep.mubr.f32.mxu0 %v9780_v28  ;;  %16462 = vmatprep.subr.bf16.mxu1 %v23868_v4  ;;  %v9785_v31 = vmul.f32 %v9749_v36, %v9749_v36  ;;  %v9753_v13 = vsub.f32 %v22086_v32, %v22318_v25  ;;  %v9755_v18 = vsub.f32 %v22189_v9, %v22318_v25 }
0x1643   :  { %v9790_v6 = vmul.f32 %v9754_v52, %v9754_v52  ;;  %v9760_v56 = vsub.f32 %v22107_v22, %v22318_v25  ;;  %v9792_v5 = vmul.f32 %v9756_v23, %v9756_v23  ;;  %v22361_v1 = vrot.slane %v9724_v54, %v18483_v37 }
0x1644   :  { %9895 = vmatmul.mubr.f32.gmra.mrb[128].mxu1 %v9777_v38  ;;  %9990 = vmatmul.mubr.f32.gmra.mrb[144].mxu0 %v9779_v40  ;;  %v9759_v53 = vsub.f32 %v22102_v21, %v22318_v25  ;;  %v9789_v57 = vmul.f32 %v9753_v13, %v9753_v13  ;;  %v9791_v48 = vmul.f32 %v9755_v18, %v9755_v18  ;;  %v23873_v13 = vld [vmem:[#allocation10_spill] sm:$0xff]  ;;  %v23874_v18 = vld [vmem:[#allocation7_spill] sm:$0xff] }
0x1645   :  { %16464 = vmatpush1.bf16.msra.mxu1 %v22057_v50  ;;  %9899 = vmatprep.mubr.f32.mxu1 %v9784_v49  ;;  %v9762_v50 = vsub.f32 %v22217_v34, %v22318_v25  ;;  %v9761_v55 = vsub.f32 %v22207_v27, %v22318_v25  ;;  %v9796_v59 = vmul.f32 %v9760_v56, %v9760_v56  ;;  %v23875_v56 = vld [vmem:[#allocation9_spill] sm:$0xff] }
0x1646   :  { %9994 = vmatprep.mubr.f32.mxu0 %v9786_v62  ;;  %16465 = vmatprep.subr.bf16.mxu1 %v23868_v4  ;;  %v9766_v45 = vsub.f32 %v22123_v20, %v22318_v25  ;;  %v22373_v54 = vsub.f32 %v22276_v19, %v22318_v25  ;;  %v9768_v28 = vsub.f32 %v22229_v58, %v22318_v25 }
0x1647   :  { %v9798_v41 = vmul.f32 %v9762_v50, %v9762_v50  ;;  %v9795_v42 = vmul.f32 %v9759_v53, %v9759_v53  ;;  %v9797_v10 = vmul.f32 %v9761_v55, %v9761_v55  ;;  %v9765_v38 = vsub.f32 %v22118_v7, %v22318_v25  ;;  %v23876_v53 = vld [vmem:[#allocation12_spill] sm:$0xff] }
0x1648   :  { %9900 = vmatmul.mubr.f32.gmra.mrb[130].mxu1 %v9783_v44  ;;  %9995 = vmatmul.mubr.f32.gmra.mrb[146].mxu0 %v9785_v31  ;;  %v9767_v40 = vsub.f32 %v22225_v15, %v22318_v25  ;;  %v9802_v36 = vmul.f32 %v9766_v45, %v9766_v45  ;;  %v9740_v49 = vsub.f32 %v22244_v11, %v22361_v1  ;;  %v23870_v44 = vld [vmem:[#allocation5_spill] sm:$0xff]  ;;  %v23878_v45 = vld [vmem:[#allocation14_spill] sm:$0xff] }
0x1649   :  { %16467 = vmatpush1.bf16.msra.mxu1 %v22073_v26  ;;  %9904 = vmatprep.mubr.f32.mxu1 %v9790_v6  ;;  %v22377_v26 = vsub.f32 %v22285_v33, %v22318_v25  ;;  %v9804_v52 = vmul.f32 %v9768_v28, %v9768_v28 }
0x164a   :  { %9999 = vmatprep.mubr.f32.mxu0 %v9792_v5  ;;  %16468 = vmatprep.subr.bf16.mxu1 %v23868_v4  ;;  %v9803_v62 = vmul.f32 %v9767_v40, %v9767_v40  ;;  %v9776_v23 = vmul.f32 %v9740_v49, %v9740_v49  ;;  %v9745_v5 = vsub.f32 %v23875_v56, %v22318_v25  ;;  %v23880_v40 = vld [vmem:[#allocation15_spill] sm:$0xff] }
0x164c   :  { %9905 = vmatmul.mubr.f32.gmra.mrb[132].mxu1 %v9789_v57  ;;  %10000 = vmatmul.mubr.f32.gmra.mrb[148].mxu0 %v9791_v48  ;;  %v9752_v57 = vsub.f32 %v23876_v53, %v22361_v1  ;;  %v23877_v48 = vld [vmem:[#allocation11_spill] sm:$0xff] }
0x164d   :  { %16470 = vmatpush1.bf16.msra.mxu1 %v22089_v16  ;;  %9909 = vmatprep.mubr.f32.mxu1 %v9796_v59  ;;  %v9801_v16 = vmul.f32 %v9765_v38, %v9765_v38  ;;  %v9751_v55 = vsub.f32 %v23877_v48, %v22318_v25 }
0x164e   :  { %10004 = vmatprep.mubr.f32.mxu0 %v9798_v41  ;;  %16471 = vmatprep.subr.bf16.mxu1 %v23868_v4  ;;  %v9788_v59 = vmul.f32 %v9752_v57, %v9752_v57  ;;  %v9758_v41 = vsub.f32 %v23878_v45, %v22361_v1  ;;  %v17802_v57 = vld [vmem:[%s23793_s21 + $0x2e0] ss:$8 sps:$4 sm:$0xff]  }
0x164f   :  { %v9787_v28 = vmul.f32 %v9751_v55, %v9751_v55  ;;  %v17810_v55 = vld [vmem:[%s23793_s21 + $0x2f4] ss:$8 sps:$4 sm:$0xff]  }
0x1650   :  { %9910 = vmatmul.mubr.f32.gmra.mrb[134].mxu1 %v9795_v42  ;;  %10005 = vmatmul.mubr.f32.gmra.mrb[150].mxu0 %v9797_v10  ;;  %v23879_v42 = vld [vmem:[#allocation13_spill] sm:$0xff]  ;;  %v9794_v38 = vmul.f32 %v9758_v41, %v9758_v41 }
0x1651   :  { %16473 = vmatpush1.bf16.msra.mxu1 %v22105_v43  ;;  %9914 = vmatprep.mubr.f32.mxu1 %v9802_v36  ;;  %v23869_v43 = vld [vmem:[#allocation4_spill] sm:$0xff]  ;;  %v9757_v10 = vsub.f32 %v23879_v42, %v22318_v25  ;;  %v9764_v36 = vsub.f32 %v23880_v40, %v22361_v1 }
0x1652   :  { %10009 = vmatprep.mubr.f32.mxu0 %v9804_v52  ;;  %16474 = vmatprep.subr.bf16.mxu1 %v23868_v4  ;;  %v17808_v41 = vld [vmem:[%s23793_s21 + $0x2f0] ss:$8 sps:$4 sm:$0xff]  }
0x1653   :  { %v9793_v49 = vmul.f32 %v9757_v10, %v9757_v10  ;;  %v9800_v52 = vmul.f32 %v9764_v36, %v9764_v36  ;;  %v17816_v36 = vld [vmem:[%s23793_s21 + $0x304] ss:$8 sps:$4 sm:$0xff]  }
0x1654   :  { %9915 = vmatmul.mubr.f32.gmra.mrb[136].mxu1 %v9801_v16  ;;  %10010 = vmatmul.mubr.f32.gmra.mrb[152].mxu0 %v9803_v62  ;;  %v23881_v16 = vld [vmem:[#allocation16_spill] sm:$0xff] }
0x1655   :  { %16476 = vmatpush1.bf16.msra.mxu1 %v22121_v60  ;;  %14545 = vmatprep.mubr.msk.f32.mxu1 %vm222_vm3, %v9776_v23  ;;  %v23871_v60 = vld [vmem:[#allocation6_spill] sm:$0xff]  ;;  %v9770_v62 = vsub.f32 %v23881_v16, %v22361_v1  ;;  %v9799_v23 = vmul.f32 %v22373_v54, %v22373_v54 }
0x1656   :  { %16477 = vmatprep.subr.bf16.mxu1 %v23868_v4  ;;  %v17790_v54 = vld [vmem:[%s23793_s21 + $0x2c0] ss:$8 sps:$4 sm:$0xff]  }
0x1659   :  { %16479 = vmatpush1.bf16.msra.mxu1 %v22135_v24  ;;  %v23872_v24 = vld [vmem:[#allocation8_spill] sm:$0xff] }
0x165a   :  { %16480 = vmatprep.subr.bf16.mxu1 %v23868_v4  ;;  %v9739_v31 = vsub.f32 %v23872_v24, %v22318_v25  ;;  %v9805_v25 = vmul.f32 %v22377_v26, %v22377_v26  ;;  %v17793_v26 = vld [vmem:[%s23793_s21 + $0x10] ss:$8 sps:$4 sm:$0xff]  }
0x165c   :  { %v9775_v6 = vmul.f32 %v9739_v31, %v9739_v31  ;;  %v17795_v31 = vld [vmem:[%s23793_s21 + $0x14] ss:$8 sps:$4 sm:$0xff]  }
0x165d   :  { %16482 = vmatpush1.bf16.msra.mxu1 %v22151_v17  ;;  %v9746_v17 = vsub.f32 %v23873_v13, %v22361_v1  ;;  %v17789_v1 = vld [vmem:[%s23793_s21 + $0x4] ss:$8 sps:$4 sm:$0xff]  }
0x165e   :  { %16483 = vmatprep.subr.bf16.mxu1 %v23868_v4  ;;  %10848 = vmatprep.subr.bf16.mxu0 %v17789_v1 }
0x165f   :  { %v9782_v50 = vmul.f32 %v9746_v17, %v9746_v17  ;;  %v17796_v17 = vld [vmem:[%s23793_s21 + $0x2d0] ss:$8 sps:$4 sm:$0xff]  }
0x1661   :  { %16485 = vmatpush1.bf16.msra.mxu1 %v23869_v43  ;;  %v9806_v43 = vmul.f32 %v9770_v62, %v9770_v62 }
0x1662   :  { %16486 = vmatprep.subr.bf16.mxu1 %v23868_v4 }
0x1665   :  { %16488 = vmatpush1.bf16.msra.mxu1 %v23870_v44  ;;  %v17787_v44 = vld [vmem:[%s23793_s21] ss:$8 sps:$4 sm:$0xff]  }
0x1666   :  { %16489 = vmatprep.subr.bf16.mxu1 %v23868_v4  ;;  %10849 = vmatpush1.bf16.msra.mxu0 %v17787_v44  ;;  %v17819_v44 = vld [vmem:[%s23793_s21 + $0x54] ss:$8 sps:$4 sm:$0xff]  }
0x1667   :  { %10850 = vmatprep.subr.bf16.mxu0 %v17795_v31 }
0x1669   :  { %16491 = vmatpush1.bf16.msra.mxu1 %v23871_v60  ;;  %v17792_v60 = vld [vmem:[%s23793_s21 + $0x2c4] ss:$8 sps:$4 sm:$0xff]  }
0x166a   :  { %16492 = vmatprep.subr.bf16.mxu1 %v23868_v4  ;;  %v9781_v4 = vmul.f32 %v9745_v5, %v9745_v5  ;;  %v17799_v5 = vld [vmem:[%s23793_s21 + $0x20] ss:$8 sps:$4 sm:$0xff]   ;;  %10851 = vmatpush1.bf16.msra.mxu0 %v17793_v26  ;;  %v17822_v26 = vld [vmem:[%s23793_s21 + $0x314] ss:$8 sps:$4 sm:$0xff]  }
0x166d   :  { %16494 = vmatpush1.bf16.msra.mxu1 %v23874_v18  ;;  %v17798_v18 = vld [vmem:[%s23793_s21 + $0x2d4] ss:$8 sps:$4 sm:$0xff]  }
0x166e   :  { %11577 = vmatprep.subr.bf16.mxu1 %v17792_v60 }
0x1670   :  { %10080 = vmatmul.mubr.f32.vlgmr.msra.gmra.mrb[138].mxu1 %v9775_v6  ;;  %v17801_v6 = vld [vmem:[%s23793_s21 + $0x24] ss:$8 sps:$4 sm:$0xff]  }
0x1671   :  { %14546 = vmatprep.mubr.msk.f32.mxu1 %vm222_vm3, %v9782_v50  ;;  %11578 = vmatpush1.bf16.msra.mxu1 %v17790_v54  ;;  %v17804_v50 = vld [vmem:[%s23793_s21 + $0x2e4] ss:$8 sps:$4 sm:$0xff]  }
0x1672   :  { %11579 = vmatprep.subr.bf16.mxu1 %v17798_v18  ;;  %10852 = vmatprep.subr.bf16.mxu0 %v17801_v6 }
0x1673   :  { %10853 = vmatpush1.bf16.msra.mxu0 %v17799_v5  ;;  %v17817_v5 = vld [vmem:[%s23793_s21 + $0x50] ss:$8 sps:$4 sm:$0xff]  }
0x1674   :  { %10085 = vmatmul.mubr.f32.gmra.mrb[140].mxu1 %v9781_v4  ;;  %v17807_v4 = vld [vmem:[%s23793_s21 + $0x34] ss:$8 sps:$4 sm:$0xff]  }
0x1675   :  { %14547 = vmatprep.mubr.msk.f32.mxu1 %vm222_vm3, %v9788_v59  ;;  %11580 = vmatpush1.bf16.msra.mxu1 %v17796_v17  ;;  %v17805_v59 = vld [vmem:[%s23793_s21 + $0x30] ss:$8 sps:$4 sm:$0xff]  }
0x1676   :  { %11581 = vmatprep.subr.bf16.mxu1 %v17804_v50  ;;  %10854 = vmatprep.subr.bf16.mxu0 %v17807_v4  ;;  %v17820_v50 = vld [vmem:[%s23793_s21 + $0x310] ss:$8 sps:$4 sm:$0xff]  }
0x1677   :  { %10855 = vmatpush1.bf16.msra.mxu0 %v17805_v59 }
0x1678   :  { %10090 = vmatmul.mubr.f32.gmra.mrb[142].mxu1 %v9787_v28  ;;  %v17813_v28 = vld [vmem:[%s23793_s21 + $0x44] ss:$8 sps:$4 sm:$0xff]  }
0x1679   :  { %14548 = vmatprep.mubr.msk.f32.mxu1 %vm222_vm3, %v9794_v38  ;;  %11582 = vmatpush1.bf16.msra.mxu1 %v17802_v57  ;;  %v17825_v57 = vld [vmem:[%s23793_s21 + $0x64] ss:$8 sps:$4 sm:$0xff]  }
0x167a   :  { %11583 = vmatprep.subr.bf16.mxu1 %v17810_v55  ;;  %10856 = vmatprep.subr.bf16.mxu0 %v17813_v28 }
0x167c   :  { %10095 = vmatmul.mubr.f32.gmra.mrb[144].mxu1 %v9793_v49 }
0x167d   :  { %14549 = vmatprep.mubr.msk.f32.mxu1 %vm222_vm3, %v9800_v52  ;;  %11584 = vmatpush1.bf16.msra.mxu1 %v17808_v41  ;;  %v17828_v41 = vld [vmem:[%s23793_s21 + $0x324] ss:$8 sps:$4 sm:$0xff]  }
0x167e   :  { %11585 = vmatprep.subr.bf16.mxu1 %v17816_v36 }
0x1680   :  { %10100 = vmatmul.mubr.f32.gmra.mrb[146].mxu1 %v9799_v23 }
0x1681   :  { %14550 = vmatprep.mubr.msk.f32.mxu1 %vm222_vm3, %v9806_v43  ;;  %v17811_v43 = vld [vmem:[%s23793_s21 + $0x40] ss:$8 sps:$4 sm:$0xff]  }
0x1682   :  { %10857 = vmatpush1.bf16.msra.mxu0 %v17811_v43 }
0x1683   :  { %10858 = vmatprep.subr.bf16.mxu0 %v17819_v44  ;;  %v17834_v44 = vld [vmem:[%s23793_s21 + $0x334] ss:$8 sps:$4 sm:$0xff]  }
0x1684   :  { %10105 = vmatmul.mubr.f32.gmra.mrb[148].mxu1 %v9805_v25  ;;  %v17814_v25 = vld [vmem:[%s23793_s21 + $0x300] ss:$8 sps:$4 sm:$0xff]  }
0x1685   :  { %11586 = vmatpush1.bf16.msra.mxu1 %v17814_v25 }
0x1686   :  { %11587 = vmatprep.subr.bf16.mxu1 %v17822_v26  ;;  %10859 = vmatpush1.bf16.msra.mxu0 %v17817_v5 }
0x1687   :  { %10860 = vmatprep.subr.bf16.mxu0 %v17825_v57 }
0x1689   :  { %11588 = vmatpush1.bf16.msra.mxu1 %v17820_v50 }
0x168a   :  { %11589 = vmatprep.subr.bf16.mxu1 %v17828_v41 }
0x1713   :  { %v15572_v10 = vpop.f32.mrb[126].mxu1  ;;  %v15622_v38 = vpop.f32.mrb[142].mxu0 }
0x1714   :  { %v15573_v49 = vpop.f32.mrb[127].mxu1  ;;  %v15623_v52 = vpop.f32.mrb[143].mxu0 }
0x1715   :  { %v15574_v62 = vadd.f32 %v15573_v49, %v15572_v10  ;;  %v15624_v23 = vadd.f32 %v15623_v52, %v15622_v38  ;;  %v17823_v49 = vld [vmem:[%s23793_s21 + $0x60] ss:$8 sps:$4 sm:$0xff]  }
0x1716   :  { %v17826_v52 = vld [vmem:[%s23793_s21 + $0x320] ss:$8 sps:$4 sm:$0xff]   ;;  %10861 = vmatpush1.bf16.msra.mxu0 %v17823_v49  ;;  %v17843_v49 = vld [vmem:[%s23793_s21 + $0x94] ss:$8 sps:$4 sm:$0xff]  }
0x1717   :  { %v15575_v1 = vpop.f32.mrb[128].mxu1  ;;  %v15625_v54 = vpop.f32.mrb[144].mxu0  ;;  %v22495_v60 = vadd.f32 %v15624_v23, %v15574_v62  ;;  %v17831_v62 = vld [vmem:[%s23793_s21 + $0x74] ss:$8 sps:$4 sm:$0xff]   ;;  %11590 = vmatpush1.bf16.msra.mxu1 %v17826_v52 }
0x1718   :  { %v15576_v31 = vpop.f32.mrb[129].mxu1  ;;  %v15626_v17 = vpop.f32.mrb[145].mxu0  ;;  %10862 = vmatprep.subr.bf16.mxu0 %v17831_v62  ;;  %11591 = vmatprep.subr.bf16.mxu1 %v17834_v44  ;;  %v17846_v52 = vld [vmem:[%s23793_s21 + $0x354] ss:$8 sps:$4 sm:$0xff]   ;;  %v17841_v44 = vld [vmem:[%s23793_s21 + $0x90] ss:$8 sps:$4 sm:$0xff]  }
0x1719   :  { %v15577_v18 = vadd.f32 %v15576_v31, %v15575_v1  ;;  %v15627_v6 = vadd.f32 %v15626_v17, %v15625_v54  ;;  %v17829_v17 = vld [vmem:[%s23793_s21 + $0x70] ss:$8 sps:$4 sm:$0xff]  }
0x171a   :  { %10863 = vmatpush1.bf16.msra.mxu0 %v17829_v17 }
0x171b   :  { %v15578_v4 = vpop.f32.mrb[130].mxu1  ;;  %v15628_v55 = vpop.f32.mrb[146].mxu0  ;;  %v22509_v59 = vadd.f32 %v15627_v6, %v15577_v18  ;;  %v17832_v18 = vld [vmem:[%s23793_s21 + $0x330] ss:$8 sps:$4 sm:$0xff]   ;;  %v17837_v6 = vld [vmem:[%s23793_s21 + $0x84] ss:$8 sps:$4 sm:$0xff]  }
0x171c   :  { %v15579_v28 = vpop.f32.mrb[131].mxu1  ;;  %v15629_v10 = vpop.f32.mrb[147].mxu0  ;;  %11592 = vmatpush1.bf16.msra.mxu1 %v17832_v18  ;;  %10864 = vmatprep.subr.bf16.mxu0 %v17837_v6  ;;  %v17852_v6 = vld [vmem:[%s23793_s21 + $0x364] ss:$8 sps:$4 sm:$0xff]  }
0x171d   :  { %v15580_v38 = vadd.f32 %v15579_v28, %v15578_v4  ;;  %v15630_v36 = vadd.f32 %v15629_v10, %v15628_v55  ;;  %v17835_v4 = vld [vmem:[%s23793_s21 + $0x80] ss:$8 sps:$4 sm:$0xff]   ;;  %v17840_v55 = vld [vmem:[%s23793_s21 + $0x344] ss:$8 sps:$4 sm:$0xff]  }
0x171e   :  { %v17838_v10 = vld [vmem:[%s23793_s21 + $0x340] ss:$8 sps:$4 sm:$0xff]   ;;  %11593 = vmatprep.subr.bf16.mxu1 %v17840_v55  ;;  %10865 = vmatpush1.bf16.msra.mxu0 %v17835_v4  ;;  %v17855_v4 = vld [vmem:[%s23793_s21 + $0xb4] ss:$8 sps:$4 sm:$0xff]  }
0x171f   :  { %v15581_v23 = vpop.f32.mrb[132].mxu1  ;;  %v15631_v43 = vpop.f32.mrb[148].mxu0  ;;  %v22523_v25 = vadd.f32 %v15630_v36, %v15580_v38  ;;  %10866 = vmatprep.subr.bf16.mxu0 %v17843_v49  ;;  %v17850_v55 = vld [vmem:[%s23793_s21 + $0x360] ss:$8 sps:$4 sm:$0xff]  }
0x1720   :  { %v15582_v1 = vpop.f32.mrb[133].mxu1  ;;  %v15632_v54 = vpop.f32.mrb[149].mxu0  ;;  %11594 = vmatpush1.bf16.msra.mxu1 %v17838_v10  ;;  %v17856_v10 = vld [vmem:[%s23793_s21 + $0x370] ss:$8 sps:$4 sm:$0xff]  }
0x1721   :  { %v15583_v26 = vadd.f32 %v15582_v1, %v15581_v23  ;;  %v15633_v31 = vadd.f32 %v15632_v54, %v15631_v43  ;;  %11595 = vmatprep.subr.bf16.mxu1 %v17846_v52 }
0x1722   :  { %10867 = vmatpush1.bf16.msra.mxu0 %v17841_v44 }
0x1723   :  { %v15584_v5 = vpop.f32.mrb[134].mxu1  ;;  %v15634_v50 = vpop.f32.mrb[150].mxu0  ;;  %v10002_v57 = vadd.f32 %v15633_v31, %v15583_v26  ;;  %v17844_v26 = vld [vmem:[%s23793_s21 + $0x350] ss:$8 sps:$4 sm:$0xff]   ;;  %v17849_v31 = vld [vmem:[%s23793_s21 + $0xa4] ss:$8 sps:$4 sm:$0xff]  }
0x1724   :  { %v15585_v41 = vpop.f32.mrb[135].mxu1  ;;  %v15635_v28 = vpop.f32.mrb[151].mxu0  ;;  %11596 = vmatpush1.bf16.msra.mxu1 %v17844_v26  ;;  %10868 = vmatprep.subr.bf16.mxu0 %v17849_v31 }
0x1725   :  { %v15586_v38 = vadd.f32 %v15585_v41, %v15584_v5  ;;  %v15636_v36 = vadd.f32 %v15635_v28, %v15634_v50  ;;  %v17847_v50 = vld [vmem:[%s23793_s21 + $0xa0] ss:$8 sps:$4 sm:$0xff]   ;;  %v17858_v41 = vld [vmem:[%s23793_s21 + $0x374] ss:$8 sps:$4 sm:$0xff]   ;;  %11597 = vmatprep.subr.bf16.mxu1 %v17852_v6  ;;  %v17853_v28 = vld [vmem:[%s23793_s21 + $0xb0] ss:$8 sps:$4 sm:$0xff]  }
0x1726   :  { %10869 = vmatpush1.bf16.msra.mxu0 %v17847_v50 }
0x1727   :  { %v15587_v62 = vpop.f32.mrb[136].mxu1  ;;  %v15637_v23 = vpop.f32.mrb[152].mxu0  ;;  %v10007_v43 = vadd.f32 %v15636_v36, %v15586_v38  ;;  %10870 = vmatprep.subr.bf16.mxu0 %v17855_v4 }
0x1728   :  { %v15588_v1 = vpop.f32.mrb[137].mxu1  ;;  %v15638_v54 = vpop.f32.mrb[153].mxu0  ;;  %11598 = vmatpush1.bf16.msra.mxu1 %v17850_v55 }
0x1729   :  { %v15589_v17 = vadd.f32 %v15588_v1, %v15587_v62  ;;  %v15639_v18 = vadd.f32 %v15638_v54, %v15637_v23  ;;  %11599 = vmatprep.subr.bf16.mxu1 %v17858_v41 }
0x172a   :  { %10871 = vmatpush1.bf16.msra.mxu0 %v17853_v28 }
0x172b   :  { %v10012_v5 = vadd.f32 %v15639_v18, %v15589_v17 }
0x172c   :  { %11600 = vmatpush1.bf16.msra.mxu1 %v17856_v10 }
0x1743   :  { %v10081_v38 = vpop.f32.mrb[138].mxu1 }
0x1744   :  { %v10082_v36 = vadd.f32 %v10081_v38, %v22495_v60  ;;  %v10083_v49 = vpop.f32.mrb[139].mxu1 }
0x1746   :  { %v10110_v44 = vsel %vm95_vm1, %v10082_v36, 0.0 }
0x1747   :  { %v10086_v52 = vpop.f32.mrb[140].mxu1 }
0x1748   :  { %v10087_v62 = vadd.f32 %v10086_v52, %v22509_v59  ;;  %v10088_v23 = vpop.f32.mrb[141].mxu1 }
0x174a   :  { %v10111_v1 = vsel %vm95_vm1, %v10087_v62, 0.0 }
0x174b   :  { %v10112_v54 = vadd.f32 %v10111_v1, %v10110_v44  ;;  %v10091_v26 = vpop.f32.mrb[142].mxu1 }
0x174c   :  { %v10092_v31 = vadd.f32 %v10091_v26, %v22523_v25  ;;  %v10093_v17 = vpop.f32.mrb[143].mxu1 }
0x174e   :  { %v10113_v18 = vsel %vm95_vm1, %v10092_v31, 0.0 }
0x174f   :  { %v10114_v6 = vadd.f32 %v10113_v18, %v10112_v54  ;;  %v10096_v50 = vpop.f32.mrb[144].mxu1 }
0x1750   :  { %v10097_v55 = vadd.f32 %v10096_v50, %v10002_v57  ;;  %v10098_v60 = vpop.f32.mrb[145].mxu1  ;;  %v17864_v50 = vld [vmem:[%s23793_s21 + $0x384] ss:$8 sps:$4 sm:$0xff]  }
0x1751   :  { %11601 = vmatprep.subr.bf16.mxu1 %v17864_v50  ;;  %v17867_v60 = vld [vmem:[%s23793_s21 + $0xd4] ss:$8 sps:$4 sm:$0xff]  }
0x1752   :  { %v10115_v4 = vsel %vm95_vm1, %v10097_v55, 0.0  ;;  %v17865_v55 = vld [vmem:[%s23793_s21 + $0xd0] ss:$8 sps:$4 sm:$0xff]  }
0x1753   :  { %v10116_v41 = vadd.f32 %v10115_v4, %v10114_v6  ;;  %v10101_v59 = vpop.f32.mrb[146].mxu1  ;;  %v17862_v6 = vld [vmem:[%s23793_s21 + $0x380] ss:$8 sps:$4 sm:$0xff]   ;;  %v17868_v4 = vld [vmem:[%s23793_s21 + $0x390] ss:$8 sps:$4 sm:$0xff]  }
0x1754   :  { %v10102_v28 = vadd.f32 %v10101_v59, %v10007_v43  ;;  %v10103_v10 = vpop.f32.mrb[147].mxu1  ;;  %v17859_v43 = vld [vmem:[%s23793_s21 + $0xc0] ss:$8 sps:$4 sm:$0xff]   ;;  %11602 = vmatpush1.bf16.msra.mxu1 %v17862_v6  ;;  %v17870_v59 = vld [vmem:[%s23793_s21 + $0x394] ss:$8 sps:$4 sm:$0xff]  }
0x1755   :  { %11603 = vmatprep.subr.bf16.mxu1 %v17870_v59 }
0x1756   :  { %v10117_v38 = vsel %vm95_vm1, %v10102_v28, 0.0 }
0x1757   :  { %v10118_v36 = vadd.f32 %v10117_v38, %v10116_v41  ;;  %v10106_v49 = vpop.f32.mrb[148].mxu1  ;;  %v10128_v41 = vld [vmem:[%s23794_s19] sm:$0x1] }
0x1758   :  { %v10107_v52 = vadd.f32 %v10106_v49, %v10012_v5  ;;  %v10108_v62 = vpop.f32.mrb[149].mxu1  ;;  %v17861_v5 = vld [vmem:[%s23793_s21 + $0xc4] ss:$8 sps:$4 sm:$0xff]   ;;  %11604 = vmatpush1.bf16.msra.mxu1 %v17868_v4  ;;  %v10132_v38 = vld [vmem:[%s23795_s20] sm:$0x1] }
0x1759   :  { %10872 = vmatprep.subr.bf16.mxu0 %v17861_v5  ;;  %v17873_v49 = vld [vmem:[%s23793_s21 + $0xe4] ss:$8 sps:$4 sm:$0xff]  }
0x175a   :  { %v10119_v25 = vsel %vm9704_vm15, %v10107_v52, 0.0  ;;  %10873 = vmatpush1.bf16.msra.mxu0 %v17859_v43 }
0x175b   :  { %v10120_v23 = vadd.f32 %v10119_v25, %v10118_v36  ;;  %10874 = vmatprep.subr.bf16.mxu0 %v17867_v60  ;;  %v17871_v36 = vld [vmem:[%s23793_s21 + $0xe0] ss:$8 sps:$4 sm:$0xff]  }
0x175c   :  { %v17874_v25 = vld [vmem:[%s23793_s21 + $0x3a0] ss:$8 sps:$4 sm:$0xff]  }
0x175d   :  { %v10121_v44 = vrot.slane %v10120_v23, 4 }
0x175e   :  { %10875 = vmatpush1.bf16.msra.mxu0 %v17865_v55 }
0x175f   :  { %v10122_v1 = vadd.f32 %v10121_v44, %v10120_v23  ;;  %v17876_v23 = vld [vmem:[%s23793_s21 + $0x3a4] ss:$8 sps:$4 sm:$0xff]   ;;  %v17879_v44 = vld [vmem:[%s23793_s21 + $0xf4] ss:$8 sps:$4 sm:$0xff]   ;;  %10876 = vmatprep.subr.bf16.mxu0 %v17873_v49 }
0x1760   :  { %11605 = vmatprep.subr.bf16.mxu1 %v17876_v23 }
0x1761   :  { %v10123_v54 = vrot.slane %v10122_v1, 2  ;;  %11606 = vmatpush1.bf16.msra.mxu1 %v17874_v25 }
0x1762   :  { %10877 = vmatpush1.bf16.msra.mxu0 %v17871_v36 }
0x1763   :  { %v10124_v57 = vadd.f32 %v10123_v54, %v10122_v1  ;;  %v17882_v1 = vld [vmem:[%s23793_s21 + $0x3b4] ss:$8 sps:$4 sm:$0xff]   ;;  %v17877_v54 = vld [vmem:[%s23793_s21 + $0xf0] ss:$8 sps:$4 sm:$0xff]   ;;  %10878 = vmatprep.subr.bf16.mxu0 %v17879_v44 }
0x1764   :  { %11607 = vmatprep.subr.bf16.mxu1 %v17882_v1 }
0x1765   :  { %v10125_v26 = vrot.slane %v10124_v57, 1 }
0x1766   :  { %10879 = vmatpush1.bf16.msra.mxu0 %v17877_v54 }
0x1767   :  { %v10126_v31 = vadd.f32 %v10125_v26, %v10124_v57  ;;  %v17880_v26 = vld [vmem:[%s23793_s21 + $0x3b0] ss:$8 sps:$4 sm:$0xff]  }
0x1768   :  { %11608 = vmatpush1.bf16.msra.mxu1 %v17880_v26 }
0x1769   :  { %v10127_v17 = vmul.f32 0.0010330578, %v10126_v31  ;;  %v17885_v31 = vld [vmem:[%s23793_s21 + $0x104] ss:$8 sps:$4 sm:$0xff]  }
0x176a   :  { %10911 = vmatprep.subr.bf16.mxu0 %v17885_v31 }
0x176b   :  { %v10129_v18 = vadd.f32 1e-05, %v10127_v17  ;;  %v17888_v17 = vld [vmem:[%s23793_s21 + $0x3c4] ss:$8 sps:$4 sm:$0xff]  }
0x176c   :  { %11640 = vmatprep.subr.bf16.mxu1 %v17888_v17 }
0x176d   :  { %18189 = vrsqrt.f32 %v10129_v18 }
0x1777   :  { %v18190_v28 = vpop.eup %18189 }
0x1778   :  { %v10131_v10 = vmul.f32 %v18190_v28, %v10128_v41 }
0x177a   :  { %v10139_v52 = vrot.slane %v10131_v10, %v18483_v37  ;;  %v10133_v62 = vmul.f32 %v10131_v10, %v22305_v46 }
0x177c   :  { %10143 = vrot.lane.b32.xlu1 %v10139_v52, %s18286_s28  ;;  %10140 = vrot.lane.b32.xlu0 %v10139_v52, %s18284_s4  ;;  %v10134_v46 = vsub.f32 %v10132_v38, %v10133_v62 }
0x177e   :  { %v10200_v57 = vrot.slane %v10134_v46, %v18483_v37 }
0x1780   :  { %10146 = vrot.lane.b32.xlu0 %v10139_v52, %s18288_s13  ;;  %10201 = vrot.lane.b32.xlu1 %v10200_v57, %s18284_s4 }
0x1784   :  { %10204 = vrot.lane.b32.xlu0 %v10200_v57, %s18286_s28  ;;  %10207 = vrot.lane.b32.xlu1 %v10200_v57, %s18288_s13 }
0x17ee   :  { %v10144_v18 = vpop.permute.xlu1 %10143  ;;  %v10141_v43 = vpop.permute.xlu0 %10140 }
0x17ef   :  { %v10149_v5 = vsel %vm95_vm1, %v10131_v10, %v10141_v43 }
0x17f0   :  { %v10159_v6 = vrot.slane %v10149_v5, %v18483_v37  ;;  %v10150_v50 = vsel %vm222_vm3, %v10149_v5, %v10144_v18 }
0x17f2   :  { %v10147_v55 = vpop.permute.xlu0 %10146  ;;  %v10202_v60 = vpop.permute.xlu1 %10201  ;;  %v22664_v4 = vmul.f32 %v10159_v6, %v22244_v11  ;;  %v22667_v41 = vmul.f32 %v10159_v6, %v23873_v13  ;;  %v22670_v59 = vmul.f32 %v10159_v6, %v23876_v53  ;;  %v22673_v28 = vmul.f32 %v10159_v6, %v23878_v45 }
0x17f3   :  { %v10151_v10 = vsel %vm4434_vm11, %v10150_v50, %v10147_v55  ;;  %v10210_v38 = vsel %vm95_vm1, %v10134_v46, %v10202_v60  ;;  %v22678_v36 = vmul.f32 %v10159_v6, %v23880_v40  ;;  %v22681_v49 = vmul.f32 %v10159_v6, %v23881_v16  ;;  %v17883_v60 = vld [vmem:[%s23793_s21 + $0x100] ss:$8 sps:$4 sm:$0xff]  }
0x17f4   :  { %v22684_v11 = vrot.slane %v10151_v10, %v18483_v37  ;;  %v22687_v13 = vrot.slane %v10210_v38, %v18483_v37  ;;  %v17886_v10 = vld [vmem:[%s23793_s21 + $0x3c0] ss:$8 sps:$4 sm:$0xff]   ;;  %vm13208_vm1 = vcmask 31744  }
0x17f6   :  { %v10205_v53 = vpop.permute.xlu0 %10204  ;;  %v10208_v52 = vpop.permute.xlu1 %10207  ;;  %v10161_v45 = vmul.f32 %v22684_v11, %v22044_v2  ;;  %v10167_v62 = vmul.f32 %v22684_v11, %v22059_v12  ;;  %v10160_v40 = vmul.f32 %v22684_v11, %v22040_v61  ;;  %v10166_v16 = vmul.f32 %v22684_v11, %v22054_v14 }
0x17f7   :  { %v10211_v25 = vsel %vm222_vm3, %v10210_v38, %v10205_v53  ;;  %v10173_v23 = vmul.f32 %v22684_v11, %v22075_v30  ;;  %v10179_v44 = vmul.f32 %v22684_v11, %v22091_v29  ;;  %v10172_v2 = vmul.f32 %v22684_v11, %v22070_v3 }
0x17f8   :  { %v10212_v1 = vsel %vm4434_vm11, %v10211_v25, %v10208_v52  ;;  %v10178_v12 = vmul.f32 %v22684_v11, %v22086_v32  ;;  %v10185_v61 = vmul.f32 %v22684_v11, %v22107_v22  ;;  %v10191_v14 = vmul.f32 %v22684_v11, %v22123_v20  ;;  %v17891_v25 = vld [vmem:[%s23793_s21 + $0x114] ss:$8 sps:$4 sm:$0xff]  }
0x17f9   :  { %v22712_v46 = vrot.slane %v10212_v1, %v18483_v37  ;;  %v10184_v30 = vmul.f32 %v22684_v11, %v22102_v21  ;;  %v10190_v3 = vmul.f32 %v22684_v11, %v22118_v7  ;;  %v10163_v29 = vmul.f32 %v22684_v11, %v22146_v8 }
0x17fa   :  { %v10169_v32 = vmul.f32 %v22684_v11, %v22163_v51  ;;  %v10162_v22 = vmul.f32 %v22684_v11, %v22137_v47  ;;  %v10168_v20 = vmul.f32 %v22684_v11, %v22153_v63  ;;  %v10175_v54 = vmul.f32 %v22684_v11, %v22181_v0 }
0x17fb   :  { %v10222_v21 = vadd.f32 %v22712_v46, %v10161_v45  ;;  %v10228_v57 = vadd.f32 %v22712_v46, %v10167_v62  ;;  %v10221_v7 = vadd.f32 %v22712_v46, %v10160_v40  ;;  %v10227_v8 = vadd.f32 %v22712_v46, %v10166_v16 }
0x17fc   :  { %v10234_v26 = vadd.f32 %v22712_v46, %v10173_v23  ;;  %v10240_v51 = vadd.f32 %v22712_v46, %v10179_v44  ;;  %v10233_v47 = vadd.f32 %v22712_v46, %v10172_v2  ;;  %v10239_v31 = vadd.f32 %v22712_v46, %v10178_v12  ;;  %v17894_v23 = vld [vmem:[%s23793_s21 + $0x3d4] ss:$8 sps:$4 sm:$0xff]  }
0x17fd   :  { %v10258_v63 = vmax.f32 %v10222_v21, 0.0  ;;  %v10264_v17 = vmax.f32 %v10228_v57, 0.0  ;;  %v10257_v18 = vmax.f32 %v10221_v7, 0.0  ;;  %v10263_v0 = vmax.f32 %v10227_v8, 0.0  ;;  %v17889_v21 = vld [vmem:[%s23793_s21 + $0x110] ss:$8 sps:$4 sm:$0xff]  }
0x17fe   :  { %v10270_v43 = vmax.f32 %v10234_v26, 0.0  ;;  %v10276_v5 = vmax.f32 %v10240_v51, 0.0  ;;  %v10269_v6 = vmax.f32 %v10233_v47, 0.0  ;;  %v10275_v50 = vmax.f32 %v10239_v31, 0.0 }
0x17ff   :  { %v22736_v55 = vpack.c.bf16 %v10264_v17, %v10258_v63  ;;  %v22744_v38 = vpack.c.bf16 %v10263_v0, %v10257_v18  ;;  %v10246_v53 = vadd.f32 %v22712_v46, %v10185_v61  ;;  %v10252_v52 = vadd.f32 %v22712_v46, %v10191_v14 }
0x1800   :  { %v22748_v45 = vpack.c.bf16 %v10276_v5, %v10270_v43  ;;  %v22750_v62 = vpack.c.bf16 %v10275_v50, %v10269_v6  ;;  %v10245_v40 = vadd.f32 %v22712_v46, %v10184_v30  ;;  %v10251_v16 = vadd.f32 %v22712_v46, %v10190_v3  ;;  %v17898_v6 = vld [vmem:[%s23793_s21 + $0x3e0] ss:$8 sps:$4 sm:$0xff]  }
0x1801   :  { %10880 = vmatprep.mubr.bf16.mxu0 %v22736_v55  ;;  %11609 = vmatprep.mubr.bf16.mxu1 %v22736_v55  ;;  %v10282_v44 = vmax.f32 %v10246_v53, 0.0  ;;  %v10288_v2 = vmax.f32 %v10252_v52, 0.0  ;;  %v10224_v1 = vadd.f32 %v22712_v46, %v10163_v29  ;;  %v10230_v12 = vadd.f32 %v22712_v46, %v10169_v32  ;;  %v17892_v29 = vld [vmem:[%s23793_s21 + $0x3d0] ss:$8 sps:$4 sm:$0xff]   ;;  %v17903_v52 = vld [vmem:[%s23793_s21 + $0x134] ss:$8 sps:$4 sm:$0xff]  }
0x1802   :  { %10881 = vmatmul.mubr.bf16.vlgmr.msra.gmra.mrb[156].mxu0 %v22744_v38  ;;  %11610 = vmatmul.mubr.bf16.vlgmr.msra.gmra.mrb[152].mxu1 %v22744_v38  ;;  %v10281_v61 = vmax.f32 %v10245_v40, 0.0  ;;  %v10287_v14 = vmax.f32 %v10251_v16, 0.0  ;;  %v10223_v30 = vadd.f32 %v22712_v46, %v10162_v22  ;;  %v10229_v3 = vadd.f32 %v22712_v46, %v10168_v20  ;;  %v17897_v22 = vld [vmem:[%s23793_s21 + $0x124] ss:$8 sps:$4 sm:$0xff]  }
0x1803   :  { %10912 = vmatpush1.bf16.msra.mxu0 %v17883_v60  ;;  %11641 = vmatpush1.bf16.msra.mxu1 %v17886_v10  ;;  %v22774_v32 = vpack.c.bf16 %v10288_v2, %v10282_v44  ;;  %v10260_v57 = vmax.f32 %v10224_v1, 0.0  ;;  %v10266_v7 = vmax.f32 %v10230_v12, 0.0  ;;  %v10181_v8 = vmul.f32 %v22684_v11, %v22199_v35  ;;  %v17900_v20 = vld [vmem:[%s23793_s21 + $0x3e4] ss:$8 sps:$4 sm:$0xff]   ;;  %v17901_v1 = vld [vmem:[%s23793_s21 + $0x130] ss:$8 sps:$4 sm:$0xff]  }
0x1804   :  { %10890 = vmatprep.mubr.bf16.mxu0 %v22748_v45  ;;  %11619 = vmatprep.mubr.bf16.mxu1 %v22748_v45  ;;  %v22786_v26 = vpack.c.bf16 %v10287_v14, %v10281_v61  ;;  %v10259_v51 = vmax.f32 %v10223_v30, 0.0  ;;  %v10265_v47 = vmax.f32 %v10229_v3, 0.0  ;;  %v10236_v31 = vadd.f32 %v22712_v46, %v10175_v54  ;;  %v17895_v54 = vld [vmem:[%s23793_s21 + $0x120] ss:$8 sps:$4 sm:$0xff]   ;;  %v17904_v12 = vld [vmem:[%s23793_s21 + $0x3f0] ss:$8 sps:$4 sm:$0xff]  }
0x1805   :  { %10913 = vmatprep.subr.bf16.mxu0 %v17891_v25  ;;  %11642 = vmatprep.subr.bf16.mxu1 %v17894_v23  ;;  %v22789_v35 = vpack.c.bf16 %v10266_v7, %v10260_v57  ;;  %v10242_v63 = vadd.f32 %v22712_v46, %v10181_v8  ;;  %v10174_v17 = vmul.f32 %v22684_v11, %v22171_v39 }
0x1806   :  { %v22794_v18 = vpack.c.bf16 %v10265_v47, %v10259_v51  ;;  %v10272_v0 = vmax.f32 %v10236_v31, 0.0  ;;  %v10180_v43 = vmul.f32 %v22684_v11, %v22189_v9  ;;  %v10187_v5 = vmul.f32 %v22684_v11, %v22217_v34 }
0x1807   :  { %10914 = vmatpush1.bf16.msra.mxu0 %v17889_v21  ;;  %11643 = vmatpush1.bf16.msra.mxu1 %v17892_v29  ;;  %v10278_v39 = vmax.f32 %v10242_v63, 0.0  ;;  %v10235_v50 = vadd.f32 %v22712_v46, %v10174_v17  ;;  %v10193_v60 = vmul.f32 %v22684_v11, %v22229_v58  ;;  %v10186_v9 = vmul.f32 %v22684_v11, %v22207_v27  ;;  %v17906_v58 = vld [vmem:[%s23793_s21 + $0x3f4] ss:$8 sps:$4 sm:$0xff]   ;;  %v17912_v21 = vld [vmem:[%s23793_s21 + $0x404] ss:$8 sps:$4 sm:$0xff]  }
0x1808   :  { %10915 = vmatprep.subr.bf16.mxu0 %v17897_v22  ;;  %11644 = vmatprep.subr.bf16.mxu1 %v17900_v20  ;;  %v10241_v34 = vadd.f32 %v22712_v46, %v10180_v43  ;;  %v10248_v10 = vadd.f32 %v22712_v46, %v10187_v5  ;;  %v10192_v53 = vmul.f32 %v22684_v11, %v22225_v15  ;;  %v17907_v63 = vld [vmem:[%s23793_s21 + $0x140] ss:$8 sps:$4 sm:$0xff]  }
0x1809   :  { %v22821_v40 = vpack.c.bf16 %v10278_v39, %v10272_v0  ;;  %v10271_v27 = vmax.f32 %v10235_v50, 0.0  ;;  %v10254_v16 = vadd.f32 %v22712_v46, %v10193_v60  ;;  %v10247_v25 = vadd.f32 %v22712_v46, %v10186_v9  ;;  %v17915_v39 = vld [vmem:[%s23793_s21 + $0x154] ss:$8 sps:$4 sm:$0xff]  }
0x180a   :  { %10891 = vmatmul.mubr.bf16.gmra.mrb[160].mxu0 %v22750_v62  ;;  %11620 = vmatmul.mubr.bf16.gmra.mrb[156].mxu1 %v22750_v62  ;;  %v10277_v15 = vmax.f32 %v10241_v34, 0.0  ;;  %v10284_v23 = vmax.f32 %v10248_v10, 0.0  ;;  %v10253_v44 = vadd.f32 %v22712_v46, %v10192_v53  ;;  %v10226_v2 = vadd.f32 %v22687_v13, %v22664_v4  ;;  %v17909_v4 = vld [vmem:[%s23793_s21 + $0x144] ss:$8 sps:$4 sm:$0xff]   ;;  %v17918_v50 = vld [vmem:[%s23793_s21 + $0x414] ss:$8 sps:$4 sm:$0xff]  }
0x180b   :  { %10916 = vmatpush1.bf16.msra.mxu0 %v17895_v54  ;;  %11645 = vmatpush1.bf16.msra.mxu1 %v17898_v6  ;;  %v10290_v61 = vmax.f32 %v10254_v16, 0.0  ;;  %v10283_v14 = vmax.f32 %v10247_v25, 0.0  ;;  %v10232_v30 = vadd.f32 %v22687_v13, %v22667_v41  ;;  %v10164_v3 = vmul.f32 %v22684_v11, %v23872_v24  ;;  %v17924_v16 = vld [vmem:[%s23793_s21 + $0x424] ss:$8 sps:$4 sm:$0xff]  }
0x180c   :  { %10900 = vmatprep.mubr.bf16.mxu0 %v22774_v32  ;;  %11629 = vmatprep.mubr.bf16.mxu1 %v22774_v32  ;;  %v22848_v29 = vpack.c.bf16 %v10277_v15, %v10271_v27  ;;  %v10289_v57 = vmax.f32 %v10253_v44, 0.0  ;;  %v10262_v7 = vmax.f32 %v10226_v2, 0.0  ;;  %v10170_v41 = vmul.f32 %v22684_v11, %v23875_v56  ;;  %v17921_v27 = vld [vmem:[%s23793_s21 + $0x164] ss:$8 sps:$4 sm:$0xff]   ;;  %v17919_v44 = vld [vmem:[%s23793_s21 + $0x160] ss:$8 sps:$4 sm:$0xff]  }
0x180d   :  { %10917 = vmatprep.subr.bf16.mxu0 %v17903_v52  ;;  %11646 = vmatprep.subr.bf16.mxu1 %v17906_v58  ;;  %v22852_v24 = vpack.c.bf16 %v10290_v61, %v10284_v23  ;;  %v10268_v8 = vmax.f32 %v10232_v30, 0.0  ;;  %v10225_v22 = vadd.f32 %v22712_v46, %v10164_v3  ;;  %v10238_v20 = vadd.f32 %v22687_v13, %v22670_v59  ;;  %v17910_v59 = vld [vmem:[%s23793_s21 + $0x400] ss:$8 sps:$4 sm:$0xff]   ;;  %v17930_v61 = vld [vmem:[%s23793_s21 + $0x434] ss:$8 sps:$4 sm:$0xff]  }
0x180e   :  { %v22857_v51 = vpack.c.bf16 %v10289_v57, %v10283_v14  ;;  %v10231_v47 = vadd.f32 %v22712_v46, %v10170_v41  ;;  %v10244_v31 = vadd.f32 %v22687_v13, %v22673_v28  ;;  %v10176_v56 = vmul.f32 %v22684_v11, %v23877_v48  ;;  %v17922_v2 = vld [vmem:[%s23793_s21 + $0x420] ss:$8 sps:$4 sm:$0xff]   ;;  %v17925_v14 = vld [vmem:[%s23793_s21 + $0x170] ss:$8 sps:$4 sm:$0xff]   ;;  %v17933_v3 = vld [vmem:[%s23793_s21 + $0x184] ss:$8 sps:$4 sm:$0xff]  }
0x180f   :  { %10918 = vmatpush1.bf16.msra.mxu0 %v17901_v1  ;;  %11647 = vmatpush1.bf16.msra.mxu1 %v17904_v12  ;;  %v22870_v17 = vpack.c.bf16 %v10268_v8, %v10262_v7  ;;  %v10261_v0 = vmax.f32 %v10225_v22, 0.0  ;;  %v10274_v43 = vmax.f32 %v10238_v20, 0.0  ;;  %v10182_v28 = vmul.f32 %v22684_v11, %v23879_v42  ;;  %v17927_v12 = vld [vmem:[%s23793_s21 + $0x174] ss:$8 sps:$4 sm:$0xff]   ;;  %v17928_v30 = vld [vmem:[%s23793_s21 + $0x430] ss:$8 sps:$4 sm:$0xff]  }
0x1810   :  { %10919 = vmatprep.subr.bf16.mxu0 %v17909_v4  ;;  %11648 = vmatprep.subr.bf16.mxu1 %v17912_v21  ;;  %v10267_v48 = vmax.f32 %v10231_v47, 0.0  ;;  %v10280_v5 = vmax.f32 %v10244_v31, 0.0  ;;  %v10237_v54 = vadd.f32 %v22712_v46, %v10176_v56  ;;  %v10250_v6 = vadd.f32 %v22687_v13, %v22678_v36  ;;  %v17936_v4 = vld [vmem:[%s23793_s21 + $0x444] ss:$8 sps:$4 sm:$0xff]   ;;  %v17931_v21 = vld [vmem:[%s23793_s21 + $0x180] ss:$8 sps:$4 sm:$0xff]  }
0x1811   :  { %v10243_v60 = vadd.f32 %v22712_v46, %v10182_v28  ;;  %v10256_v42 = vadd.f32 %v22687_v13, %v22681_v49  ;;  %v10188_v9 = vmul.f32 %v22684_v11, %v22276_v19  ;;  %v10194_v34 = vmul.f32 %v22684_v11, %v22285_v33  ;;  %v17913_v49 = vld [vmem:[%s23793_s21 + $0x150] ss:$8 sps:$4 sm:$0xff]   ;;  %v17934_v57 = vld [vmem:[%s23793_s21 + $0x440] ss:$8 sps:$4 sm:$0xff]   ;;  %v17939_v7 = vld [vmem:[%s23793_s21 + $0x194] ss:$8 sps:$4 sm:$0xff]  }
0x1812   :  { %10901 = vmatmul.mubr.bf16.gmra.mrb[164].mxu0 %v22786_v26  ;;  %11630 = vmatmul.mubr.bf16.gmra.mrb[160].mxu1 %v22786_v26  ;;  %v22892_v36 = vpack.c.bf16 %v10267_v48, %v10261_v0  ;;  %v22894_v10 = vpack.c.bf16 %v10280_v5, %v10274_v43  ;;  %v10273_v53 = vmax.f32 %v10237_v54, 0.0  ;;  %v10286_v52 = vmax.f32 %v10250_v6, 0.0  ;;  %v17916_v19 = vld [vmem:[%s23793_s21 + $0x410] ss:$8 sps:$4 sm:$0xff]   ;;  %v17942_v41 = vld [vmem:[%s23793_s21 + $0x454] ss:$8 sps:$4 sm:$0xff]  }
0x1813   :  { %10920 = vmatpush1.bf16.msra.mxu0 %v17907_v63  ;;  %11649 = vmatpush1.bf16.msra.mxu1 %v17910_v59  ;;  %v10279_v33 = vmax.f32 %v10243_v60, 0.0  ;;  %v10292_v11 = vmax.f32 %v10256_v42, 0.0  ;;  %v10249_v13 = vadd.f32 %v22712_v46, %v10188_v9  ;;  %v10255_v58 = vadd.f32 %v22712_v46, %v10194_v34  ;;  %v17937_v8 = vld [vmem:[%s23793_s21 + $0x190] ss:$8 sps:$4 sm:$0xff]   ;;  %v17945_v20 = vld [vmem:[%s23793_s21 + $0x1a4] ss:$8 sps:$4 sm:$0xff]  }
0x1814   :  { %10943 = vmatprep.mubr.bf16.mxu0 %v22789_v35  ;;  %11672 = vmatprep.mubr.bf16.mxu1 %v22789_v35  ;;  %v17940_v22 = vld [vmem:[%s23793_s21 + $0x450] ss:$8 sps:$4 sm:$0xff]   ;;  %v17948_v47 = vld [vmem:[%s23793_s21 + $0x464] ss:$8 sps:$4 sm:$0xff]   ;;  %v17943_v31 = vld [vmem:[%s23793_s21 + $0x1a0] ss:$8 sps:$4 sm:$0xff]  }
0x1815   :  { %10921 = vmatprep.subr.bf16.mxu0 %v17915_v39  ;;  %11650 = vmatprep.subr.bf16.mxu1 %v17918_v50  ;;  %v22912_v25 = vpack.c.bf16 %v10279_v33, %v10273_v53  ;;  %v22914_v15 = vpack.c.bf16 %v10292_v11, %v10286_v52  ;;  %v10285_v23 = vmax.f32 %v10249_v13, 0.0  ;;  %v10291_v46 = vmax.f32 %v10255_v58, 0.0  ;;  %v17946_v56 = vld [vmem:[%s23793_s21 + $0x460] ss:$8 sps:$4 sm:$0xff]   ;;  %v17951_v63 = vld [vmem:[%s23793_s21 + $0x1b4] ss:$8 sps:$4 sm:$0xff]  }
0x1816   :  { %v17954_v59 = vld [vmem:[%s23793_s21 + $0x474] ss:$8 sps:$4 sm:$0xff]   ;;  %v17949_v0 = vld [vmem:[%s23793_s21 + $0x1b0] ss:$8 sps:$4 sm:$0xff]   ;;  %v17957_v28 = vld [vmem:[%s23793_s21 + $0x1c4] ss:$8 sps:$4 sm:$0xff]  }
0x1817   :  { %10922 = vmatpush1.bf16.msra.mxu0 %v17913_v49  ;;  %11651 = vmatpush1.bf16.msra.mxu1 %v17916_v19  ;;  %v22922_v1 = vpack.c.bf16 %v10291_v46, %v10285_v23  ;;  %v17952_v43 = vld [vmem:[%s23793_s21 + $0x470] ss:$8 sps:$4 sm:$0xff]   ;;  %v17960_v48 = vld [vmem:[%s23793_s21 + $0x484] ss:$8 sps:$4 sm:$0xff]   ;;  %v17955_v5 = vld [vmem:[%s23793_s21 + $0x1c0] ss:$8 sps:$4 sm:$0xff]  }
0x1818   :  { %10923 = vmatprep.subr.bf16.mxu0 %v17921_v27  ;;  %11652 = vmatprep.subr.bf16.mxu1 %v17924_v16  ;;  %v17958_v54 = vld [vmem:[%s23793_s21 + $0x480] ss:$8 sps:$4 sm:$0xff]   ;;  %v17963_v6 = vld [vmem:[%s23793_s21 + $0x1d4] ss:$8 sps:$4 sm:$0xff]   ;;  %v17961_v50 = vld [vmem:[%s23793_s21 + $0x1d0] ss:$8 sps:$4 sm:$0xff]  }
0x1819   :  { %v17966_v39 = vld [vmem:[%s23793_s21 + $0x494] ss:$8 sps:$4 sm:$0xff]   ;;  %v17964_v60 = vld [vmem:[%s23793_s21 + $0x490] ss:$8 sps:$4 sm:$0xff]   ;;  %v17969_v42 = vld [vmem:[%s23793_s21 + $0x1e4] ss:$8 sps:$4 sm:$0xff]  }
0x181a   :  { %v17972_v9 = vld [vmem:[%s23793_s21 + $0x4a4] ss:$8 sps:$4 sm:$0xff]   ;;  %v17967_v34 = vld [vmem:[%s23793_s21 + $0x1e0] ss:$8 sps:$4 sm:$0xff]   ;;  %v17975_v52 = vld [vmem:[%s23793_s21 + $0x1f4] ss:$8 sps:$4 sm:$0xff]  }
0x181b   :  { %10924 = vmatpush1.bf16.msra.mxu0 %v17919_v44  ;;  %11653 = vmatpush1.bf16.msra.mxu1 %v17922_v2  ;;  %v17970_v53 = vld [vmem:[%s23793_s21 + $0x4a0] ss:$8 sps:$4 sm:$0xff]   ;;  %v17978_v49 = vld [vmem:[%s23793_s21 + $0x4b4] ss:$8 sps:$4 sm:$0xff]   ;;  %v17973_v19 = vld [vmem:[%s23793_s21 + $0x1f0] ss:$8 sps:$4 sm:$0xff]  }
0x181c   :  { %10925 = vmatprep.subr.bf16.mxu0 %v17927_v12  ;;  %11654 = vmatprep.subr.bf16.mxu1 %v17930_v61  ;;  %v17976_v33 = vld [vmem:[%s23793_s21 + $0x4b0] ss:$8 sps:$4 sm:$0xff]   ;;  %v17981_v11 = vld [vmem:[%s23793_s21 + $0x204] ss:$8 sps:$4 sm:$0xff]   ;;  %v17979_v58 = vld [vmem:[%s23793_s21 + $0x200] ss:$8 sps:$4 sm:$0xff]  }
0x181d   :  { %v17984_v13 = vld [vmem:[%s23793_s21 + $0x4c4] ss:$8 sps:$4 sm:$0xff]   ;;  %v17982_v27 = vld [vmem:[%s23793_s21 + $0x4c0] ss:$8 sps:$4 sm:$0xff]   ;;  %v17987_v16 = vld [vmem:[%s23793_s21 + $0x214] ss:$8 sps:$4 sm:$0xff]  }
0x181e   :  { %v17990_v23 = vld [vmem:[%s23793_s21 + $0x4d4] ss:$8 sps:$4 sm:$0xff]   ;;  %v17985_v46 = vld [vmem:[%s23793_s21 + $0x210] ss:$8 sps:$4 sm:$0xff]   ;;  %v17993_v2 = vld [vmem:[%s23793_s21 + $0x224] ss:$8 sps:$4 sm:$0xff]  }
0x181f   :  { %10926 = vmatpush1.bf16.msra.mxu0 %v17925_v14  ;;  %11655 = vmatpush1.bf16.msra.mxu1 %v17928_v30  ;;  %v17988_v44 = vld [vmem:[%s23793_s21 + $0x4d0] ss:$8 sps:$4 sm:$0xff]   ;;  %v17996_v12 = vld [vmem:[%s23793_s21 + $0x4e4] ss:$8 sps:$4 sm:$0xff]   ;;  %v17991_v61 = vld [vmem:[%s23793_s21 + $0x220] ss:$8 sps:$4 sm:$0xff]  }
0x1820   :  { %10927 = vmatprep.subr.bf16.mxu0 %v17933_v3  ;;  %11656 = vmatprep.subr.bf16.mxu1 %v17936_v4  ;;  %v17994_v14 = vld [vmem:[%s23793_s21 + $0x4e0] ss:$8 sps:$4 sm:$0xff]   ;;  %v17999_v30 = vld [vmem:[%s23793_s21 + $0x234] ss:$8 sps:$4 sm:$0xff]   ;;  %v17997_v4 = vld [vmem:[%s23793_s21 + $0x230] ss:$8 sps:$4 sm:$0xff]  }
0x1821   :  { %v18002_v3 = vld [vmem:[%s23793_s21 + $0x4f4] ss:$8 sps:$4 sm:$0xff]  }
0x1823   :  { %10928 = vmatpush1.bf16.msra.mxu0 %v17931_v21  ;;  %11657 = vmatpush1.bf16.msra.mxu1 %v17934_v57  ;;  %v18000_v21 = vld [vmem:[%s23793_s21 + $0x4f0] ss:$8 sps:$4 sm:$0xff]   ;;  %v18005_v57 = vld [vmem:[%s23793_s21 + $0x244] ss:$8 sps:$4 sm:$0xff]  }
0x1824   :  { %10929 = vmatprep.subr.bf16.mxu0 %v17939_v7  ;;  %11658 = vmatprep.subr.bf16.mxu1 %v17942_v41  ;;  %v18008_v7 = vld [vmem:[%s23793_s21 + $0x504] ss:$8 sps:$4 sm:$0xff]   ;;  %v18003_v41 = vld [vmem:[%s23793_s21 + $0x240] ss:$8 sps:$4 sm:$0xff]  }
0x1827   :  { %10930 = vmatpush1.bf16.msra.mxu0 %v17937_v8  ;;  %11659 = vmatpush1.bf16.msra.mxu1 %v17940_v22  ;;  %v18006_v8 = vld [vmem:[%s23793_s21 + $0x500] ss:$8 sps:$4 sm:$0xff]   ;;  %v18011_v22 = vld [vmem:[%s23793_s21 + $0x254] ss:$8 sps:$4 sm:$0xff]  }
0x1828   :  { %10931 = vmatprep.subr.bf16.mxu0 %v17945_v20  ;;  %11660 = vmatprep.subr.bf16.mxu1 %v17948_v47  ;;  %v18014_v20 = vld [vmem:[%s23793_s21 + $0x514] ss:$8 sps:$4 sm:$0xff]   ;;  %v18009_v47 = vld [vmem:[%s23793_s21 + $0x250] ss:$8 sps:$4 sm:$0xff]  }
0x182b   :  { %10932 = vmatpush1.bf16.msra.mxu0 %v17943_v31  ;;  %11661 = vmatpush1.bf16.msra.mxu1 %v17946_v56  ;;  %v18012_v31 = vld [vmem:[%s23793_s21 + $0x510] ss:$8 sps:$4 sm:$0xff]   ;;  %v18017_v56 = vld [vmem:[%s23793_s21 + $0x264] ss:$8 sps:$4 sm:$0xff]  }
0x182c   :  { %10933 = vmatprep.subr.bf16.mxu0 %v17951_v63  ;;  %11662 = vmatprep.subr.bf16.mxu1 %v17954_v59  ;;  %v18020_v63 = vld [vmem:[%s23793_s21 + $0x524] ss:$8 sps:$4 sm:$0xff]   ;;  %v18015_v59 = vld [vmem:[%s23793_s21 + $0x260] ss:$8 sps:$4 sm:$0xff]  }
0x182f   :  { %10934 = vmatpush1.bf16.msra.mxu0 %v17949_v0  ;;  %11663 = vmatpush1.bf16.msra.mxu1 %v17952_v43  ;;  %v18018_v0 = vld [vmem:[%s23793_s21 + $0x520] ss:$8 sps:$4 sm:$0xff]   ;;  %v18023_v43 = vld [vmem:[%s23793_s21 + $0x274] ss:$8 sps:$4 sm:$0xff]  }
0x1830   :  { %10935 = vmatprep.subr.bf16.mxu0 %v17957_v28  ;;  %11664 = vmatprep.subr.bf16.mxu1 %v17960_v48  ;;  %v18026_v28 = vld [vmem:[%s23793_s21 + $0x534] ss:$8 sps:$4 sm:$0xff]   ;;  %v18021_v48 = vld [vmem:[%s23793_s21 + $0x270] ss:$8 sps:$4 sm:$0xff]  }
0x1833   :  { %10936 = vmatpush1.bf16.msra.mxu0 %v17955_v5  ;;  %11665 = vmatpush1.bf16.msra.mxu1 %v17958_v54  ;;  %v18024_v5 = vld [vmem:[%s23793_s21 + $0x530] ss:$8 sps:$4 sm:$0xff]   ;;  %v18029_v54 = vld [vmem:[%s23793_s21 + $0x284] ss:$8 sps:$4 sm:$0xff]  }
0x1834   :  { %10937 = vmatprep.subr.bf16.mxu0 %v17963_v6  ;;  %11666 = vmatprep.subr.bf16.mxu1 %v17966_v39  ;;  %v18032_v6 = vld [vmem:[%s23793_s21 + $0x544] ss:$8 sps:$4 sm:$0xff]   ;;  %v18027_v39 = vld [vmem:[%s23793_s21 + $0x280] ss:$8 sps:$4 sm:$0xff]  }
0x1837   :  { %10938 = vmatpush1.bf16.msra.mxu0 %v17961_v50  ;;  %11667 = vmatpush1.bf16.msra.mxu1 %v17964_v60  ;;  %v18030_v50 = vld [vmem:[%s23793_s21 + $0x540] ss:$8 sps:$4 sm:$0xff]   ;;  %v18035_v60 = vld [vmem:[%s23793_s21 + $0x294] ss:$8 sps:$4 sm:$0xff]  }
0x1838   :  { %10939 = vmatprep.subr.bf16.mxu0 %v17969_v42  ;;  %11668 = vmatprep.subr.bf16.mxu1 %v17972_v9  ;;  %v18038_v42 = vld [vmem:[%s23793_s21 + $0x554] ss:$8 sps:$4 sm:$0xff]   ;;  %v18033_v9 = vld [vmem:[%s23793_s21 + $0x290] ss:$8 sps:$4 sm:$0xff]  }
0x183b   :  { %10940 = vmatpush1.bf16.msra.mxu0 %v17967_v34  ;;  %11669 = vmatpush1.bf16.msra.mxu1 %v17970_v53  ;;  %v18036_v34 = vld [vmem:[%s23793_s21 + $0x550] ss:$8 sps:$4 sm:$0xff]   ;;  %v18041_v53 = vld [vmem:[%s23793_s21 + $0x2a4] ss:$8 sps:$4 sm:$0xff]  }
0x183c   :  { %10941 = vmatprep.subr.bf16.mxu0 %v17975_v52  ;;  %11670 = vmatprep.subr.bf16.mxu1 %v17978_v49  ;;  %v18044_v52 = vld [vmem:[%s23793_s21 + $0x564] ss:$8 sps:$4 sm:$0xff]   ;;  %v18039_v49 = vld [vmem:[%s23793_s21 + $0x2a0] ss:$8 sps:$4 sm:$0xff]  }
0x183f   :  { %10942 = vmatpush1.bf16.msra.mxu0 %v17973_v19  ;;  %11671 = vmatpush1.bf16.msra.mxu1 %v17976_v33  ;;  %v18042_v19 = vld [vmem:[%s23793_s21 + $0x560] ss:$8 sps:$4 sm:$0xff]   ;;  %v18047_v33 = vld [vmem:[%s23793_s21 + $0x2b4] ss:$8 sps:$4 sm:$0xff]  }
0x1840   :  { %10974 = vmatprep.subr.bf16.mxu0 %v17981_v11  ;;  %11703 = vmatprep.subr.bf16.mxu1 %v17984_v13  ;;  %v18050_v11 = vld [vmem:[%s23793_s21 + $0x574] ss:$8 sps:$4 sm:$0xff]   ;;  %v18045_v13 = vld [vmem:[%s23793_s21 + $0x2b0] ss:$8 sps:$4 sm:$0xff]  }
0x1842   :  { %10944 = vmatmul.mubr.bf16.vlgmr.msra.gmra.mrb[156].mxu0 %v22794_v18  ;;  %11673 = vmatmul.mubr.bf16.vlgmr.msra.gmra.mrb[152].mxu1 %v22794_v18 }
0x1843   :  { %10953 = vmatprep.mubr.bf16.mxu0 %v22821_v40  ;;  %10975 = vmatpush1.bf16.msra.mxu0 %v17979_v58  ;;  %v18048_v58 = vld [vmem:[%s23793_s21 + $0x570] ss:$8 sps:$4 sm:$0xff]  }
0x1844   :  { %11682 = vmatprep.mubr.bf16.mxu1 %v22821_v40  ;;  %11704 = vmatpush1.bf16.msra.mxu1 %v17982_v27  ;;  %v18053_v27 = vld [vmem:[%s23793_s21 + $0x584] ss:$8 sps:$4 sm:$0xff]  }
0x1845   :  { %10976 = vmatprep.subr.bf16.mxu0 %v17987_v16  ;;  %11705 = vmatprep.subr.bf16.mxu1 %v17990_v23  ;;  %v18051_v16 = vld [vmem:[%s23793_s21 + $0x580] ss:$8 sps:$4 sm:$0xff]   ;;  %v18056_v23 = vld [vmem:[%s23793_s21 + $0x594] ss:$8 sps:$4 sm:$0xff]  }
0x1847   :  { %10977 = vmatpush1.bf16.msra.mxu0 %v17985_v46  ;;  %v18054_v46 = vld [vmem:[%s23793_s21 + $0x590] ss:$8 sps:$4 sm:$0xff]  }
0x1848   :  { %11706 = vmatpush1.bf16.msra.mxu1 %v17988_v44  ;;  %10978 = vmatprep.subr.bf16.mxu0 %v17993_v2  ;;  %v18059_v44 = vld [vmem:[%s23793_s21 + $0x5a4] ss:$8 sps:$4 sm:$0xff]   ;;  %v18057_v2 = vld [vmem:[%s23793_s21 + $0x5a0] ss:$8 sps:$4 sm:$0xff]  }
0x1849   :  { %11707 = vmatprep.subr.bf16.mxu1 %v17996_v12  ;;  %v18062_v12 = vld [vmem:[%s23793_s21 + $0x5b4] ss:$8 sps:$4 sm:$0xff]  }
0x184a   :  { %10954 = vmatmul.mubr.bf16.gmra.mrb[160].mxu0 %v22848_v29  ;;  %11683 = vmatmul.mubr.bf16.gmra.mrb[156].mxu1 %v22848_v29 }
0x184b   :  { %10963 = vmatprep.mubr.bf16.mxu0 %v22852_v24  ;;  %10979 = vmatpush1.bf16.msra.mxu0 %v17991_v61  ;;  %v18060_v61 = vld [vmem:[%s23793_s21 + $0x5b0] ss:$8 sps:$4 sm:$0xff]  }
0x184c   :  { %11692 = vmatprep.mubr.bf16.mxu1 %v22852_v24  ;;  %11708 = vmatpush1.bf16.msra.mxu1 %v17994_v14  ;;  %v18065_v14 = vld [vmem:[%s23793_s21 + $0x5c4] ss:$8 sps:$4 sm:$0xff]  }
0x184d   :  { %10980 = vmatprep.subr.bf16.mxu0 %v17999_v30  ;;  %11709 = vmatprep.subr.bf16.mxu1 %v18002_v3  ;;  %v18063_v30 = vld [vmem:[%s23793_s21 + $0x5c0] ss:$8 sps:$4 sm:$0xff]   ;;  %v18068_v3 = vld [vmem:[%s23793_s21 + $0x5d4] ss:$8 sps:$4 sm:$0xff]  }
0x184f   :  { %10981 = vmatpush1.bf16.msra.mxu0 %v17997_v4  ;;  %v23882_v4 = vmov 0.0  }
0x1850   :  { %11710 = vmatpush1.bf16.msra.mxu1 %v18000_v21  ;;  %10982 = vmatprep.subr.bf16.mxu0 %v18005_v57  ;;  %v18066_v21 = vld [vmem:[%s23793_s21 + $0x5d0] ss:$8 sps:$4 sm:$0xff]   ;;  %v18071_v57 = vld [vmem:[%s23793_s21 + $0x5e4] ss:$8 sps:$4 sm:$0xff]  }
0x1851   :  { %11711 = vmatprep.subr.bf16.mxu1 %v18008_v7  ;;  %v18069_v7 = vld [vmem:[%s23793_s21 + $0x5e0] ss:$8 sps:$4 sm:$0xff]  }
0x1852   :  { %10964 = vmatmul.mubr.bf16.gmra.mrb[164].mxu0 %v22857_v51  ;;  %11693 = vmatmul.mubr.bf16.gmra.mrb[160].mxu1 %v22857_v51 }
0x1853   :  { %10983 = vmatpush1.bf16.msra.mxu0 %v18003_v41  ;;  %14639 = vmatprep.mubr.msk.bf16.mxu0 %vm222_vm3, %v22870_v17  ;;  %v18074_v41 = vld [vmem:[%s23793_s21 + $0x5f4] ss:$8 sps:$4 sm:$0xff]  }
0x1854   :  { %11712 = vmatpush1.bf16.msra.mxu1 %v18006_v8  ;;  %14818 = vmatprep.mubr.msk.bf16.mxu1 %vm222_vm3, %v22870_v17  ;;  %v18077_v8 = vld [vmem:[%s23793_s21 + $0x604] ss:$8 sps:$4 sm:$0xff]  }
0x1855   :  { %10984 = vmatprep.subr.bf16.mxu0 %v18011_v22  ;;  %11713 = vmatprep.subr.bf16.mxu1 %v18014_v20  ;;  %v18075_v22 = vld [vmem:[%s23793_s21 + $0x600] ss:$8 sps:$4 sm:$0xff]   ;;  %v18080_v20 = vld [vmem:[%s23793_s21 + $0x614] ss:$8 sps:$4 sm:$0xff]  }
0x1857   :  { %10985 = vmatpush1.bf16.msra.mxu0 %v18009_v47  ;;  %v18078_v47 = vld [vmem:[%s23793_s21 + $0x610] ss:$8 sps:$4 sm:$0xff]  }
0x1858   :  { %11714 = vmatpush1.bf16.msra.mxu1 %v18012_v31  ;;  %10986 = vmatprep.subr.bf16.mxu0 %v18017_v56  ;;  %v18083_v31 = vld [vmem:[%s23793_s21 + $0x624] ss:$8 sps:$4 sm:$0xff]   ;;  %v18081_v56 = vld [vmem:[%s23793_s21 + $0x620] ss:$8 sps:$4 sm:$0xff]  }
0x1859   :  { %11715 = vmatprep.subr.bf16.mxu1 %v18020_v63  ;;  %v18086_v63 = vld [vmem:[%s23793_s21 + $0x634] ss:$8 sps:$4 sm:$0xff]  }
0x185b   :  { %10987 = vmatpush1.bf16.msra.mxu0 %v18015_v59  ;;  %v18084_v59 = vld [vmem:[%s23793_s21 + $0x630] ss:$8 sps:$4 sm:$0xff]  }
0x185c   :  { %11716 = vmatpush1.bf16.msra.mxu1 %v18018_v0  ;;  %10988 = vmatprep.subr.bf16.mxu0 %v18023_v43  ;;  %v18089_v0 = vld [vmem:[%s23793_s21 + $0x644] ss:$8 sps:$4 sm:$0xff]   ;;  %v18087_v43 = vld [vmem:[%s23793_s21 + $0x640] ss:$8 sps:$4 sm:$0xff]  }
0x185d   :  { %11717 = vmatprep.subr.bf16.mxu1 %v18026_v28  ;;  %v18092_v28 = vld [vmem:[%s23793_s21 + $0x654] ss:$8 sps:$4 sm:$0xff]  }
0x185f   :  { %10989 = vmatpush1.bf16.msra.mxu0 %v18021_v48  ;;  %v18090_v48 = vld [vmem:[%s23793_s21 + $0x650] ss:$8 sps:$4 sm:$0xff]  }
0x1860   :  { %11718 = vmatpush1.bf16.msra.mxu1 %v18024_v5  ;;  %10990 = vmatprep.subr.bf16.mxu0 %v18029_v54  ;;  %v18095_v5 = vld [vmem:[%s23793_s21 + $0x664] ss:$8 sps:$4 sm:$0xff]   ;;  %v18093_v54 = vld [vmem:[%s23793_s21 + $0x660] ss:$8 sps:$4 sm:$0xff]  }
0x1861   :  { %11719 = vmatprep.subr.bf16.mxu1 %v18032_v6  ;;  %v18098_v6 = vld [vmem:[%s23793_s21 + $0x674] ss:$8 sps:$4 sm:$0xff]  }
0x1863   :  { %10991 = vmatpush1.bf16.msra.mxu0 %v18027_v39  ;;  %v18096_v39 = vld [vmem:[%s23793_s21 + $0x670] ss:$8 sps:$4 sm:$0xff]  }
0x1864   :  { %11720 = vmatpush1.bf16.msra.mxu1 %v18030_v50  ;;  %10992 = vmatprep.subr.bf16.mxu0 %v18035_v60  ;;  %v18101_v50 = vld [vmem:[%s23793_s21 + $0x684] ss:$8 sps:$4 sm:$0xff]   ;;  %v18099_v60 = vld [vmem:[%s23793_s21 + $0x680] ss:$8 sps:$4 sm:$0xff]  }
0x1865   :  { %11721 = vmatprep.subr.bf16.mxu1 %v18038_v42  ;;  %v18104_v42 = vld [vmem:[%s23793_s21 + $0x694] ss:$8 sps:$4 sm:$0xff]  }
0x1867   :  { %10993 = vmatpush1.bf16.msra.mxu0 %v18033_v9  ;;  %v18102_v9 = vld [vmem:[%s23793_s21 + $0x690] ss:$8 sps:$4 sm:$0xff]  }
0x1868   :  { %11722 = vmatpush1.bf16.msra.mxu1 %v18036_v34  ;;  %10994 = vmatprep.subr.bf16.mxu0 %v18041_v53  ;;  %v18107_v34 = vld [vmem:[%s23793_s21 + $0x6a4] ss:$8 sps:$4 sm:$0xff]   ;;  %v18105_v53 = vld [vmem:[%s23793_s21 + $0x6a0] ss:$8 sps:$4 sm:$0xff]  }
0x1869   :  { %11723 = vmatprep.subr.bf16.mxu1 %v18044_v52  ;;  %v18113_v52 = vld [vmem:[%s23793_s21 + $0x6c4] ss:$8 sps:$4 sm:$0xff]  }
0x186b   :  { %10995 = vmatpush1.bf16.msra.mxu0 %v18039_v49  ;;  %v18111_v49 = vld [vmem:[%s23793_s21 + $0x6c0] ss:$8 sps:$4 sm:$0xff]  }
0x186c   :  { %11724 = vmatpush1.bf16.msra.mxu1 %v18042_v19  ;;  %10996 = vmatprep.subr.bf16.mxu0 %v18047_v33  ;;  %v18119_v19 = vld [vmem:[%s23793_s21 + $0x6e4] ss:$8 sps:$4 sm:$0xff]   ;;  %v18117_v33 = vld [vmem:[%s23793_s21 + $0x6e0] ss:$8 sps:$4 sm:$0xff]  }
0x186d   :  { %11725 = vmatprep.subr.bf16.mxu1 %v18050_v11  ;;  %v18125_v11 = vld [vmem:[%s23793_s21 + $0x704] ss:$8 sps:$4 sm:$0xff]  }
0x186f   :  { %10997 = vmatpush1.bf16.msra.mxu0 %v18045_v13  ;;  %v18123_v13 = vld [vmem:[%s23793_s21 + $0x700] ss:$8 sps:$4 sm:$0xff]  }
0x1870   :  { %11726 = vmatpush1.bf16.msra.mxu1 %v18048_v58  ;;  %v18128_v58 = vld [vmem:[%s23793_s21 + $0x714] ss:$8 sps:$4 sm:$0xff]  }
0x1871   :  { %12648 = vmatprep.subr.bf16.mxu1 %v18053_v27  ;;  %v18126_v27 = vld [vmem:[%s23793_s21 + $0x710] ss:$8 sps:$4 sm:$0xff]  }
0x1872   :  { %11007 = vmatmul.mubr.bf16.vlgmr.msra.gmra.mrb[156].mxu0 %v22892_v36 }
0x1873   :  { %11736 = vmatmul.mubr.bf16.vlgmr.msra.gmra.mrb[152].mxu1 %v22892_v36  ;;  %14640 = vmatprep.mubr.msk.bf16.mxu0 %vm222_vm3, %v22894_v10 }
0x1874   :  { %14819 = vmatprep.mubr.msk.bf16.mxu1 %vm222_vm3, %v22894_v10  ;;  %12649 = vmatpush1.bf16.msra.mxu1 %v18051_v16  ;;  %v18131_v16 = vld [vmem:[%s23793_s21 + $0x724] ss:$8 sps:$4 sm:$0xff]  }
0x1875   :  { %12650 = vmatprep.subr.bf16.mxu1 %v18056_v23  ;;  %v18129_v23 = vld [vmem:[%s23793_s21 + $0x720] ss:$8 sps:$4 sm:$0xff]  }
0x1878   :  { %12651 = vmatpush1.bf16.msra.mxu1 %v18054_v46  ;;  %v18134_v46 = vld [vmem:[%s23793_s21 + $0x734] ss:$8 sps:$4 sm:$0xff]  }
0x1879   :  { %12652 = vmatprep.subr.bf16.mxu1 %v18059_v44  ;;  %v18132_v44 = vld [vmem:[%s23793_s21 + $0x730] ss:$8 sps:$4 sm:$0xff]  }
0x187a   :  { %11017 = vmatmul.mubr.bf16.gmra.mrb[160].mxu0 %v22912_v25 }
0x187b   :  { %11746 = vmatmul.mubr.bf16.gmra.mrb[156].mxu1 %v22912_v25  ;;  %14641 = vmatprep.mubr.msk.bf16.mxu0 %vm222_vm3, %v22914_v15 }
0x187c   :  { %14820 = vmatprep.mubr.msk.bf16.mxu1 %vm222_vm3, %v22914_v15  ;;  %12653 = vmatpush1.bf16.msra.mxu1 %v18057_v2  ;;  %v18137_v2 = vld [vmem:[%s23793_s21 + $0x744] ss:$8 sps:$4 sm:$0xff]  }
0x187d   :  { %12654 = vmatprep.subr.bf16.mxu1 %v18062_v12  ;;  %v18135_v12 = vld [vmem:[%s23793_s21 + $0x740] ss:$8 sps:$4 sm:$0xff]  }
0x1880   :  { %12655 = vmatpush1.bf16.msra.mxu1 %v18060_v61  ;;  %v18140_v61 = vld [vmem:[%s23793_s21 + $0x754] ss:$8 sps:$4 sm:$0xff]  }
0x1881   :  { %12656 = vmatprep.subr.bf16.mxu1 %v18065_v14  ;;  %v18138_v14 = vld [vmem:[%s23793_s21 + $0x750] ss:$8 sps:$4 sm:$0xff]  }
0x1882   :  { %11027 = vmatmul.mubr.bf16.gmra.mrb[164].mxu0 %v22922_v1 }
0x1883   :  { %11756 = vmatmul.mubr.bf16.gmra.mrb[160].mxu1 %v22922_v1  ;;  %11882 = vmatprep.mubr.f32.mxu0 %v23882_v4 }
0x1884   :  { %12657 = vmatpush1.bf16.msra.mxu1 %v18063_v30  ;;  %12680 = vmatprep.mubr.bf16.mxu1 %v22736_v55  ;;  %v18072_v55 = vld [vmem:[%s23793_s21 + $0x5f0] ss:$8 sps:$4 sm:$0xff]   ;;  %v18143_v30 = vld [vmem:[%s23793_s21 + $0x764] ss:$8 sps:$4 sm:$0xff]  }
0x1885   :  { %12658 = vmatprep.subr.bf16.mxu1 %v18068_v3  ;;  %v18141_v3 = vld [vmem:[%s23793_s21 + $0x760] ss:$8 sps:$4 sm:$0xff]  }
0x1888   :  { %12659 = vmatpush1.bf16.msra.mxu1 %v18066_v21  ;;  %v18146_v21 = vld [vmem:[%s23793_s21 + $0x774] ss:$8 sps:$4 sm:$0xff]  }
0x1889   :  { %12660 = vmatprep.subr.bf16.mxu1 %v18071_v57  ;;  %v18144_v57 = vld [vmem:[%s23793_s21 + $0x770] ss:$8 sps:$4 sm:$0xff]  }
0x188c   :  { %12661 = vmatpush1.bf16.msra.mxu1 %v18069_v7 }
0x188d   :  { %12662 = vmatprep.subr.bf16.mxu1 %v18074_v41 }
0x1890   :  { %12663 = vmatpush1.bf16.msra.mxu1 %v18072_v55 }
0x1891   :  { %12664 = vmatprep.subr.bf16.mxu1 %v18077_v8 }
0x1894   :  { %12665 = vmatpush1.bf16.msra.mxu1 %v18075_v22 }
0x1895   :  { %12666 = vmatprep.subr.bf16.mxu1 %v18080_v20 }
0x1898   :  { %12667 = vmatpush1.bf16.msra.mxu1 %v18078_v47 }
0x1899   :  { %12668 = vmatprep.subr.bf16.mxu1 %v18083_v31 }
0x189c   :  { %12669 = vmatpush1.bf16.msra.mxu1 %v18081_v56 }
0x189d   :  { %12670 = vmatprep.subr.bf16.mxu1 %v18086_v63 }
0x18a0   :  { %12671 = vmatpush1.bf16.msra.mxu1 %v18084_v59 }
0x18a1   :  { %12672 = vmatprep.subr.bf16.mxu1 %v18089_v0 }
0x18a4   :  { %12673 = vmatpush1.bf16.msra.mxu1 %v18087_v43 }
0x18a5   :  { %12674 = vmatprep.subr.bf16.mxu1 %v18092_v28 }
0x18a8   :  { %12675 = vmatpush1.bf16.msra.mxu1 %v18090_v48 }
0x18a9   :  { %12676 = vmatprep.subr.bf16.mxu1 %v18095_v5 }
0x18ac   :  { %12677 = vmatpush1.bf16.msra.mxu1 %v18093_v54 }
0x18ad   :  { %12678 = vmatprep.subr.bf16.mxu1 %v18098_v6 }
0x18b0   :  { %12679 = vmatpush1.bf16.msra.mxu1 %v18096_v39 }
0x18b1   :  { %12711 = vmatprep.subr.bf16.mxu1 %v18101_v50 }
0x18b3   :  { %12681 = vmatmul.mubr.bf16.vlgmr.msra.gmra.mrb[164].mxu1 %v22744_v38  ;;  %v18110_v38 = vld [vmem:[%s23793_s21 + $0x6b4] ss:$8 sps:$4 sm:$0xff]  }
0x18b4   :  { %12690 = vmatprep.mubr.bf16.mxu1 %v22748_v45  ;;  %12712 = vmatpush1.bf16.msra.mxu1 %v18099_v60  ;;  %v18108_v45 = vld [vmem:[%s23793_s21 + $0x6b0] ss:$8 sps:$4 sm:$0xff]  }
0x18b5   :  { %12713 = vmatprep.subr.bf16.mxu1 %v18104_v42 }
0x18b8   :  { %12714 = vmatpush1.bf16.msra.mxu1 %v18102_v9 }
0x18b9   :  { %12715 = vmatprep.subr.bf16.mxu1 %v18107_v34 }
0x18bb   :  { %12691 = vmatmul.mubr.bf16.gmra.mrb[168].mxu1 %v22750_v62  ;;  %v18116_v62 = vld [vmem:[%s23793_s21 + $0x6d4] ss:$8 sps:$4 sm:$0xff]  }
0x18bc   :  { %12700 = vmatprep.mubr.bf16.mxu1 %v22774_v32  ;;  %12716 = vmatpush1.bf16.msra.mxu1 %v18105_v53  ;;  %v18114_v32 = vld [vmem:[%s23793_s21 + $0x6d0] ss:$8 sps:$4 sm:$0xff]  }
0x18bd   :  { %12717 = vmatprep.subr.bf16.mxu1 %v18110_v38 }
0x18c0   :  { %12718 = vmatpush1.bf16.msra.mxu1 %v18108_v45 }
0x18c1   :  { %12719 = vmatprep.subr.bf16.mxu1 %v18113_v52 }
0x18c3   :  { %12701 = vmatmul.mubr.bf16.gmra.mrb[172].mxu1 %v22786_v26  ;;  %v18122_v26 = vld [vmem:[%s23793_s21 + $0x6f4] ss:$8 sps:$4 sm:$0xff]  }
0x18c4   :  { %12720 = vmatpush1.bf16.msra.mxu1 %v18111_v49  ;;  %12743 = vmatprep.mubr.bf16.mxu1 %v22789_v35  ;;  %v18120_v35 = vld [vmem:[%s23793_s21 + $0x6f0] ss:$8 sps:$4 sm:$0xff]  }
0x18c5   :  { %12721 = vmatprep.subr.bf16.mxu1 %v18116_v62 }
0x18c8   :  { %12722 = vmatpush1.bf16.msra.mxu1 %v18114_v32 }
0x18c9   :  { %12723 = vmatprep.subr.bf16.mxu1 %v18119_v19  ;;  %v15039_v19 = vld [vmem:[%s23796_s22 + $0xc0] sm:$0xff] }
0x18cc   :  { %12724 = vmatpush1.bf16.msra.mxu1 %v18117_v33  ;;  %v14821_v33 = vld [vmem:[%s23796_s22 + $0x58] sm:$0xff] }
0x18cd   :  { %12725 = vmatprep.subr.bf16.mxu1 %v18122_v26  ;;  %v14822_v26 = vld [vmem:[%s23796_s22 + $0x60] sm:$0xff] }
0x18d0   :  { %12726 = vmatpush1.bf16.msra.mxu1 %v18120_v35  ;;  %v14823_v35 = vld [vmem:[%s23796_s22 + $0x68] sm:$0xff] }
0x18d1   :  { %12727 = vmatprep.subr.bf16.mxu1 %v18125_v11  ;;  %v18149_v11 = vld [vmem:[%s23793_s21 + $0x784] ss:$8 sps:$4 sm:$0xff]  }
0x18d4   :  { %12728 = vmatpush1.bf16.msra.mxu1 %v18123_v13  ;;  %v14824_v13 = vld [vmem:[%s23796_s22 + $0x70] sm:$0xff] }
0x18d5   :  { %12729 = vmatprep.subr.bf16.mxu1 %v18128_v58  ;;  %v14825_v58 = vld [vmem:[%s23796_s22 + $0x78] sm:$0xff] }
0x18d8   :  { %12730 = vmatpush1.bf16.msra.mxu1 %v18126_v27  ;;  %v14826_v27 = vld [vmem:[%s23796_s22 + $0x80] sm:$0xff] }
0x18d9   :  { %12731 = vmatprep.subr.bf16.mxu1 %v18131_v16  ;;  %v14827_v16 = vld [vmem:[%s23796_s22 + $0x88] sm:$0xff] }
0x18dc   :  { %12732 = vmatpush1.bf16.msra.mxu1 %v18129_v23  ;;  %v14828_v23 = vld [vmem:[%s23796_s22 + $0x90] sm:$0xff] }
0x18dd   :  { %12733 = vmatprep.subr.bf16.mxu1 %v18134_v46  ;;  %v14829_v46 = vld [vmem:[%s23796_s22 + $0x98] sm:$0xff] }
0x18e0   :  { %12734 = vmatpush1.bf16.msra.mxu1 %v18132_v44  ;;  %v14830_v44 = vld [vmem:[%s23796_s22 + $0xa0] sm:$0xff] }
0x18e1   :  { %12735 = vmatprep.subr.bf16.mxu1 %v18137_v2  ;;  %v14831_v2 = vld [vmem:[%s23796_s22 + $0xa8] sm:$0xff] }
0x18e4   :  { %12736 = vmatpush1.bf16.msra.mxu1 %v18135_v12  ;;  %v18147_v12 = vld [vmem:[%s23793_s21 + $0x780] ss:$8 sps:$4 sm:$0xff]  }
0x18e5   :  { %12737 = vmatprep.subr.bf16.mxu1 %v18140_v61  ;;  %v11037_v61 = vld [vmem:[%s23796_s22] sm:$0xff] }
0x18e8   :  { %12738 = vmatpush1.bf16.msra.mxu1 %v18138_v14  ;;  %v18152_v14 = vld [vmem:[%s23793_s21 + $0x794] ss:$8 sps:$4 sm:$0xff]  }
0x18e9   :  { %12739 = vmatprep.subr.bf16.mxu1 %v18143_v30  ;;  %v18150_v30 = vld [vmem:[%s23793_s21 + $0x790] ss:$8 sps:$4 sm:$0xff]  }
0x18ec   :  { %12740 = vmatpush1.bf16.msra.mxu1 %v18141_v3  ;;  %v11038_v3 = vld [vmem:[%s23796_s22 + $0x8] sm:$0xff] }
0x18ed   :  { %12741 = vmatprep.subr.bf16.mxu1 %v18146_v21  ;;  %v18155_v21 = vld [vmem:[%s23793_s21 + $0x7a4] ss:$8 sps:$4 sm:$0xff]  }
0x18f0   :  { %12742 = vmatpush1.bf16.msra.mxu1 %v18144_v57  ;;  %v18153_v57 = vld [vmem:[%s23793_s21 + $0x7a0] ss:$8 sps:$4 sm:$0xff]  }
0x18f3   :  { %12744 = vmatmul.mubr.bf16.vlgmr.msra.gmra.mrb[164].mxu1 %v22794_v18 }
0x18f4   :  { %12753 = vmatprep.mubr.bf16.mxu1 %v22821_v40 }
0x18fb   :  { %12754 = vmatmul.mubr.bf16.gmra.mrb[168].mxu1 %v22848_v29 }
0x18fc   :  { %12763 = vmatprep.mubr.bf16.mxu1 %v22852_v24 }
0x1903   :  { %12764 = vmatmul.mubr.bf16.gmra.mrb[172].mxu1 %v22857_v51 }
0x1945   :  { %v11008_v7 = vpop.f32.mrb[156].mxu0 }
0x1946   :  { %v11737_v41 = vpop.f32.mrb[152].mxu1  ;;  %v11010_v55 = vpop.f32.mrb[157].mxu0 }
0x1947   :  { %v11739_v8 = vpop.f32.mrb[153].mxu1  ;;  %v11012_v22 = vpop.f32.mrb[158].mxu0 }
0x1948   :  { %v16511_v20 = vpack.c.bf16 %v11012_v22, %v11008_v7  ;;  %v11741_v47 = vpop.f32.mrb[154].mxu1  ;;  %v11014_v31 = vpop.f32.mrb[159].mxu0  ;;  %v11039_v7 = vld [vmem:[%s23796_s22 + $0x10] sm:$0xff]  ;;  %v18161_v22 = vld [vmem:[%s23793_s21 + $0x7c4] ss:$8 sps:$4 sm:$0xff]  }
0x1949   :  { %v16497_v56 = vpack.c.bf16 %v11741_v47, %v11737_v41  ;;  %v16509_v63 = vpack.c.bf16 %v11014_v31, %v11010_v55  ;;  %v11743_v59 = vpop.f32.mrb[155].mxu1  ;;  %v18158_v41 = vld [vmem:[%s23793_s21 + $0x7b4] ss:$8 sps:$4 sm:$0xff]   ;;  %v18156_v55 = vld [vmem:[%s23793_s21 + $0x7b0] ss:$8 sps:$4 sm:$0xff]   ;;  %v11041_v47 = vld [vmem:[%s23796_s22 + $0x20] sm:$0xff] }
0x194a   :  { %v16495_v18 = vpack.c.bf16 %v11743_v59, %v11739_v8  ;;  %v11040_v8 = vld [vmem:[%s23796_s22 + $0x18] sm:$0xff]  ;;  %v18167_v59 = vld [vmem:[%s23793_s21 + $0x7e4] ss:$8 sps:$4 sm:$0xff]  }
0x194b   :  { %v18164_v31 = vld [vmem:[%s23793_s21 + $0x7d4] ss:$8 sps:$4 sm:$0xff]  }
0x194c   :  { %16496 = vmatprep.subr.bf16.mxu0 %v16495_v18  ;;  %v18165_v18 = vld [vmem:[%s23793_s21 + $0x7e0] ss:$8 sps:$4 sm:$0xff]  }
0x194d   :  { %16498 = vmatpush1.bf16.msra.mxu0 %v16497_v56  ;;  %v11018_v40 = vpop.f32.mrb[160].mxu0  ;;  %v18162_v56 = vld [vmem:[%s23793_s21 + $0x7d0] ss:$8 sps:$4 sm:$0xff]  }
0x194e   :  { %v11747_v29 = vpop.f32.mrb[156].mxu1  ;;  %v11020_v0 = vpop.f32.mrb[161].mxu0 }
0x194f   :  { %v11749_v24 = vpop.f32.mrb[157].mxu1  ;;  %v11022_v43 = vpop.f32.mrb[162].mxu0 }
0x1950   :  { %v16515_v51 = vpack.c.bf16 %v11022_v43, %v11018_v40  ;;  %v11751_v28 = vpop.f32.mrb[158].mxu1  ;;  %v11024_v48 = vpop.f32.mrb[163].mxu0  ;;  %v11043_v40 = vld [vmem:[%s23796_s22 + $0x30] sm:$0xff]  ;;  %v18173_v43 = vld [vmem:[%s23793_s21 + $0x804] ss:$8 sps:$4 sm:$0xff]  }
0x1951   :  { %v16501_v5 = vpack.c.bf16 %v11751_v28, %v11747_v29  ;;  %v16513_v54 = vpack.c.bf16 %v11024_v48, %v11020_v0  ;;  %v11753_v6 = vpop.f32.mrb[159].mxu1  ;;  %v18170_v29 = vld [vmem:[%s23793_s21 + $0x7f4] ss:$8 sps:$4 sm:$0xff]   ;;  %v18168_v0 = vld [vmem:[%s23793_s21 + $0x7f0] ss:$8 sps:$4 sm:$0xff]   ;;  %v11045_v28 = vld [vmem:[%s23796_s22 + $0x40] sm:$0xff] }
0x1952   :  { %v16499_v39 = vpack.c.bf16 %v11753_v6, %v11749_v24  ;;  %v11044_v24 = vld [vmem:[%s23796_s22 + $0x38] sm:$0xff]  ;;  %v18179_v6 = vld [vmem:[%s23793_s21 + $0x824] ss:$8 sps:$4 sm:$0xff]  }
0x1953   :  { %v18176_v48 = vld [vmem:[%s23793_s21 + $0x814] ss:$8 sps:$4 sm:$0xff]  }
0x1954   :  { %16500 = vmatprep.subr.bf16.mxu0 %v16499_v39  ;;  %v18177_v39 = vld [vmem:[%s23793_s21 + $0x820] ss:$8 sps:$4 sm:$0xff]  }
0x1955   :  { %16502 = vmatpush1.bf16.msra.mxu0 %v16501_v5  ;;  %v11028_v50 = vpop.f32.mrb[164].mxu0  ;;  %v18174_v5 = vld [vmem:[%s23793_s21 + $0x810] ss:$8 sps:$4 sm:$0xff]  }
0x1956   :  { %v11757_v60 = vpop.f32.mrb[160].mxu1  ;;  %v11030_v42 = vpop.f32.mrb[165].mxu0 }
0x1957   :  { %v11759_v9 = vpop.f32.mrb[161].mxu1  ;;  %v11032_v34 = vpop.f32.mrb[166].mxu0 }
0x1958   :  { %v16520_v53 = vpack.c.bf16 %v11032_v34, %v11028_v50  ;;  %v11761_v38 = vpop.f32.mrb[162].mxu1  ;;  %v11034_v45 = vpop.f32.mrb[167].mxu0  ;;  %v11047_v50 = vld [vmem:[%s23796_s22 + $0x50] sm:$0xff] }
0x1959   :  { %v16506_v52 = vpack.c.bf16 %v11761_v38, %v11757_v60  ;;  %v16517_v49 = vpack.c.bf16 %v11034_v45, %v11030_v42  ;;  %v11763_v62 = vpop.f32.mrb[163].mxu1  ;;  %v18182_v60 = vld [vmem:[%s23793_s21 + $0x834] ss:$8 sps:$4 sm:$0xff]   ;;  %v18180_v42 = vld [vmem:[%s23793_s21 + $0x830] ss:$8 sps:$4 sm:$0xff]  }
0x195a   :  { %v16503_v32 = vpack.c.bf16 %v11763_v62, %v11759_v9 }
0x195c   :  { %16505 = vmatprep.subr.msk.bf16.mxu0 %vm19467_vm9, %v16503_v32 }
0x195d   :  { %16508 = vmatpush1.bf16.msk.msra.mxu0 %vm19467_vm9, %v16506_v52 }
0x195e   :  { %16510 = vmatprep.subr.bf16.mxu0 %v16509_v63  ;;  %v11042_v63 = vld [vmem:[%s23796_s22 + $0x28] sm:$0xff] }
0x1960   :  { %14834 = vmatmul.mubr.msk.f32.vlgmr.msra.gmra.mrb[154].mxu0 %vm11778_vm0, %v14821_v33 }
0x1961   :  { %16512 = vmatpush1.bf16.msra.mxu0 %v16511_v20  ;;  %11888 = vmatprep.mubr.f32.mxu0 %v23882_v4  ;;  %v18159_v20 = vld [vmem:[%s23793_s21 + $0x7c0] ss:$8 sps:$4 sm:$0xff]  }
0x1962   :  { %16514 = vmatprep.subr.bf16.mxu0 %v16513_v54  ;;  %v11046_v54 = vld [vmem:[%s23796_s22 + $0x48] sm:$0xff] }
0x1964   :  { %14835 = vmatmul.mubr.msk.f32.gmra.mrb[168].mxu0 %vm11778_vm0, %v14822_v26 }
0x1965   :  { %16516 = vmatpush1.bf16.msra.mxu0 %v16515_v51  ;;  %11894 = vmatprep.mubr.f32.mxu0 %v23882_v4  ;;  %v18171_v51 = vld [vmem:[%s23793_s21 + $0x800] ss:$8 sps:$4 sm:$0xff]  }
0x1966   :  { %16519 = vmatprep.subr.msk.bf16.mxu0 %vm19467_vm9, %v16517_v49 }
0x1968   :  { %14836 = vmatmul.mubr.msk.f32.gmra.mrb[170].mxu0 %vm11778_vm0, %v14823_v35 }
0x1969   :  { %16522 = vmatpush1.bf16.msk.msra.mxu0 %vm19467_vm9, %v16520_v53  ;;  %11900 = vmatprep.mubr.f32.mxu0 %v23882_v4 }
0x196a   :  { %12774 = vmatprep.subr.bf16.mxu0 %v18149_v11 }
0x196c   :  { %14837 = vmatmul.mubr.msk.f32.gmra.mrb[172].mxu0 %vm11778_vm0, %v14824_v13 }
0x196d   :  { %11906 = vmatprep.mubr.f32.mxu0 %v23882_v4 }
0x1970   :  { %14838 = vmatmul.mubr.msk.f32.gmra.mrb[174].mxu0 %vm11778_vm0, %v14825_v58 }
0x1971   :  { %11912 = vmatprep.mubr.f32.mxu0 %v23882_v4 }
0x1974   :  { %14839 = vmatmul.mubr.msk.f32.gmra.mrb[176].mxu0 %vm11778_vm0, %v14826_v27 }
0x1975   :  { %11918 = vmatprep.mubr.f32.mxu0 %v23882_v4 }
0x1978   :  { %14840 = vmatmul.mubr.msk.f32.gmra.mrb[178].mxu0 %vm11778_vm0, %v14827_v16 }
0x1979   :  { %11924 = vmatprep.mubr.f32.mxu0 %v23882_v4 }
0x197c   :  { %14841 = vmatmul.mubr.msk.f32.gmra.mrb[180].mxu0 %vm11778_vm0, %v14828_v23 }
0x197d   :  { %11930 = vmatprep.mubr.f32.mxu0 %v23882_v4 }
0x1980   :  { %14842 = vmatmul.mubr.msk.f32.gmra.mrb[182].mxu0 %vm11778_vm0, %v14829_v46 }
0x1981   :  { %11936 = vmatprep.mubr.f32.mxu0 %v23882_v4 }
0x1984   :  { %14843 = vmatmul.mubr.msk.f32.gmra.mrb[184].mxu0 %vm11778_vm0, %v14830_v44 }
0x1985   :  { %11942 = vmatprep.mubr.f32.mxu0 %v23882_v4 }
0x1988   :  { %14844 = vmatmul.mubr.msk.f32.gmra.mrb[186].mxu0 %vm11778_vm0, %v14831_v2 }
0x1989   :  { %12052 = vmatprep.mubr.f32.mxu0 %v23882_v4 }
0x198c   :  { %14847 = vmatmul.mubr.msk.f32.vlgmr.msra.gmra.mrb[154].mxu0 %vm11778_vm0, %v11037_v61 }
0x198d   :  { %12775 = vmatpush1.bf16.msra.mxu0 %v18147_v12  ;;  %12058 = vmatprep.mubr.f32.mxu0 %v23882_v4 }
0x198e   :  { %12776 = vmatprep.subr.bf16.mxu0 %v18152_v14 }
0x1990   :  { %14848 = vmatmul.mubr.msk.f32.gmra.mrb[168].mxu0 %vm11778_vm0, %v11038_v3 }
0x1991   :  { %12777 = vmatpush1.bf16.msra.mxu0 %v18150_v30  ;;  %12064 = vmatprep.mubr.f32.mxu0 %v23882_v4 }
0x1992   :  { %12778 = vmatprep.subr.bf16.mxu0 %v18155_v21 }
0x1994   :  { %14849 = vmatmul.mubr.msk.f32.gmra.mrb[170].mxu0 %vm11778_vm0, %v11039_v7 }
0x1995   :  { %12779 = vmatpush1.bf16.msra.mxu0 %v18153_v57  ;;  %12070 = vmatprep.mubr.f32.mxu0 %v23882_v4 }
0x1996   :  { %12780 = vmatprep.subr.bf16.mxu0 %v18158_v41 }
0x1998   :  { %14850 = vmatmul.mubr.msk.f32.gmra.mrb[172].mxu0 %vm11778_vm0, %v11040_v8 }
0x1999   :  { %12781 = vmatpush1.bf16.msra.mxu0 %v18156_v55  ;;  %12076 = vmatprep.mubr.f32.mxu0 %v23882_v4 }
0x199a   :  { %12782 = vmatprep.subr.bf16.mxu0 %v18161_v22 }
0x199c   :  { %14851 = vmatmul.mubr.msk.f32.gmra.mrb[174].mxu0 %vm11778_vm0, %v11041_v47 }
0x199d   :  { %12783 = vmatpush1.bf16.msra.mxu0 %v18159_v20  ;;  %12082 = vmatprep.mubr.f32.mxu0 %v23882_v4 }
0x199e   :  { %12784 = vmatprep.subr.bf16.mxu0 %v18164_v31 }
0x19a0   :  { %14852 = vmatmul.mubr.msk.f32.gmra.mrb[176].mxu0 %vm11778_vm0, %v11042_v63  ;;  %v15038_v63 = vld [vmem:[%s23796_s22 + $0xb8] sm:$0xff] }
0x19a1   :  { %12785 = vmatpush1.bf16.msra.mxu0 %v18162_v56  ;;  %12088 = vmatprep.mubr.f32.mxu0 %v23882_v4  ;;  %v15037_v56 = vld [vmem:[%s23796_s22 + $0xb0] sm:$0xff] }
0x19a2   :  { %12786 = vmatprep.subr.bf16.mxu0 %v18167_v59  ;;  %v15040_v59 = vld [vmem:[%s23796_s22 + $0xc8] sm:$0xff] }
0x19a4   :  { %14853 = vmatmul.mubr.msk.f32.gmra.mrb[178].mxu0 %vm11778_vm0, %v11043_v40  ;;  %v15042_v40 = vld [vmem:[%s23796_s22 + $0xd8] sm:$0xff] }
0x19a5   :  { %12787 = vmatpush1.bf16.msra.mxu0 %v18165_v18  ;;  %12094 = vmatprep.mubr.f32.mxu0 %v23882_v4  ;;  %v15041_v18 = vld [vmem:[%s23796_s22 + $0xd0] sm:$0xff] }
0x19a6   :  { %12788 = vmatprep.subr.bf16.mxu0 %v18170_v29  ;;  %v15043_v29 = vld [vmem:[%s23796_s22 + $0xe0] sm:$0xff] }
0x19a8   :  { %14854 = vmatmul.mubr.msk.f32.gmra.mrb[180].mxu0 %vm11778_vm0, %v11044_v24  ;;  %v15045_v24 = vld [vmem:[%s23796_s22 + $0xf0] sm:$0xff] }
0x19a9   :  { %12789 = vmatpush1.bf16.msra.mxu0 %v18168_v0  ;;  %12100 = vmatprep.mubr.f32.mxu0 %v23882_v4  ;;  %v15044_v0 = vld [vmem:[%s23796_s22 + $0xe8] sm:$0xff] }
0x19aa   :  { %12790 = vmatprep.subr.bf16.mxu0 %v18173_v43  ;;  %v15046_v43 = vld [vmem:[%s23796_s22 + $0xf8] sm:$0xff] }
0x19ac   :  { %14855 = vmatmul.mubr.msk.f32.gmra.mrb[182].mxu0 %vm11778_vm0, %v11045_v28  ;;  %v13041_v28 = vld [vmem:[%s23797_s23] sm:$0x3] }
0x19ad   :  { %12791 = vmatpush1.bf16.msra.mxu0 %v18171_v51  ;;  %12106 = vmatprep.mubr.f32.mxu0 %v23882_v4  ;;  %v15047_v51 = vld [vmem:[%s23796_s22 + $0x100] sm:$0xff] }
0x19ae   :  { %12792 = vmatprep.subr.bf16.mxu0 %v18176_v48  ;;  %v23884_v48 = vld [vmem:[#allocation2_spill] sm:$0xff] }
0x19b0   :  { %14856 = vmatmul.mubr.msk.f32.gmra.mrb[184].mxu0 %vm11778_vm0, %v11046_v54  ;;  %v23671_v54 = vrot.slane %v13041_v28, %v18483_v37 }
0x19b1   :  { %12793 = vmatpush1.bf16.msra.mxu0 %v18174_v5  ;;  %12112 = vmatprep.mubr.f32.mxu0 %v23882_v4  ;;  %v13049_v5 = vsub.s32 1, %v23884_v48 }
0x19b2   :  { %12794 = vmatprep.subr.bf16.mxu0 %v18179_v6 }
0x19b3   :  { %v23673_v6 = vrot.slane %v13041_v28, %v13049_v5 }
0x19b4   :  { %14857 = vmatmul.mubr.msk.f32.gmra.mrb[186].mxu0 %vm11778_vm0, %v11047_v50 }
0x19b5   :  { %12795 = vmatpush1.bf16.msra.mxu0 %v18177_v39  ;;  %15034 = vmatprep.mubr.msk.bf16.mxu0 %vm222_vm3, %v22870_v17 }
0x19b6   :  { %12796 = vmatprep.subr.bf16.mxu0 %v18182_v60 }
0x19b9   :  { %12797 = vmatpush1.bf16.msra.mxu0 %v18180_v42 }
0x19bc   :  { %12807 = vmatmul.mubr.bf16.vlgmr.msra.gmra.mrb[188].mxu0 %v22892_v36 }
0x19bd   :  { %15035 = vmatprep.mubr.msk.bf16.mxu0 %vm222_vm3, %v22894_v10 }
0x19c4   :  { %12817 = vmatmul.mubr.bf16.gmra.mrb[192].mxu0 %v22912_v25 }
0x19c5   :  { %15036 = vmatprep.mubr.msk.bf16.mxu0 %vm222_vm3, %v22914_v15 }
0x19c6   :  { %v12745_v9 = vpop.f32.mrb[164].mxu1 }
0x19c7   :  { %v12747_v34 = vpop.f32.mrb[165].mxu1 }
0x19c8   :  { %v12749_v53 = vpop.f32.mrb[166].mxu1 }
0x19c9   :  { %v12751_v17 = vpop.f32.mrb[167].mxu1 }
0x19cc   :  { %12827 = vmatmul.mubr.bf16.gmra.mrb[196].mxu0 %v22922_v1 }
0x19cd   :  { %12952 = vmatprep.mubr.f32.mxu0 %v23882_v4 }
0x19ce   :  { %v12755_v38 = vpop.f32.mrb[168].mxu1 }
0x19cf   :  { %v12757_v45 = vpop.f32.mrb[169].mxu1 }
0x19d0   :  { %v12759_v52 = vpop.f32.mrb[170].mxu1 }
0x19d1   :  { %v12761_v36 = vpop.f32.mrb[171].mxu1 }
0x19d6   :  { %v12765_v49 = vpop.f32.mrb[172].mxu1 }
0x19d7   :  { %v12767_v62 = vpop.f32.mrb[173].mxu1 }
0x19d8   :  { %v12769_v10 = vpop.f32.mrb[174].mxu1 }
0x19d9   :  { %v12771_v32 = vpop.f32.mrb[175].mxu1 }
0x1a8f   :  { %v12808_v25 = vpop.f32.mrb[188].mxu0 }
0x1a90   :  { %v16537_v33 = vadd.f32 %v12808_v25, %v12745_v9  ;;  %v12810_v26 = vpop.f32.mrb[189].mxu0 }
0x1a91   :  { %v16538_v15 = vadd.f32 %v12810_v26, %v12747_v34  ;;  %v12812_v35 = vpop.f32.mrb[190].mxu0 }
0x1a92   :  { %v16539_v11 = vadd.f32 %v12812_v35, %v12749_v53  ;;  %v12814_v13 = vpop.f32.mrb[191].mxu0 }
0x1a93   :  { %v16540_v58 = vadd.f32 %v12814_v13, %v12751_v17 }
0x1a94   :  { %v16525_v27 = vpack.c.bf16 %v16539_v11, %v16537_v33 }
0x1a95   :  { %v16523_v1 = vpack.c.bf16 %v16540_v58, %v16538_v15 }
0x1a97   :  { %v12818_v16 = vpop.f32.mrb[192].mxu0  ;;  %16524 = vmatprep.subr.bf16.mxu0 %v16523_v1 }
0x1a98   :  { %v16541_v23 = vadd.f32 %v12818_v16, %v12755_v38  ;;  %v12820_v46 = vpop.f32.mrb[193].mxu0  ;;  %16526 = vmatpush1.bf16.msra.mxu0 %v16525_v27 }
0x1a99   :  { %v16542_v44 = vadd.f32 %v12820_v46, %v12757_v45  ;;  %v12822_v2 = vpop.f32.mrb[194].mxu0 }
0x1a9a   :  { %v16543_v12 = vadd.f32 %v12822_v2, %v12759_v52  ;;  %v12824_v61 = vpop.f32.mrb[195].mxu0 }
0x1a9b   :  { %v16544_v14 = vadd.f32 %v12824_v61, %v12761_v36 }
0x1a9c   :  { %v16529_v30 = vpack.c.bf16 %v16543_v12, %v16541_v23 }
0x1a9d   :  { %v16527_v3 = vpack.c.bf16 %v16544_v14, %v16542_v44 }
0x1a9f   :  { %v12828_v21 = vpop.f32.mrb[196].mxu0  ;;  %16528 = vmatprep.subr.bf16.mxu0 %v16527_v3 }
0x1aa0   :  { %v16545_v57 = vadd.f32 %v12828_v21, %v12765_v49  ;;  %v12830_v7 = vpop.f32.mrb[197].mxu0  ;;  %16530 = vmatpush1.bf16.msra.mxu0 %v16529_v30 }
0x1aa1   :  { %v16546_v41 = vadd.f32 %v12830_v7, %v12767_v62  ;;  %v12832_v55 = vpop.f32.mrb[198].mxu0 }
0x1aa2   :  { %v16547_v8 = vadd.f32 %v12832_v55, %v12769_v10  ;;  %v12834_v22 = vpop.f32.mrb[199].mxu0 }
0x1aa3   :  { %v16548_v20 = vadd.f32 %v12834_v22, %v12771_v32 }
0x1aa4   :  { %v16534_v47 = vpack.c.bf16 %v16547_v8, %v16545_v57 }
0x1aa5   :  { %v16531_v31 = vpack.c.bf16 %v16548_v20, %v16546_v41 }
0x1aa7   :  { %16533 = vmatprep.subr.msk.bf16.mxu0 %vm19467_vm9, %v16531_v31 }
0x1aa8   :  { %16536 = vmatpush1.bf16.msk.msra.mxu0 %vm19467_vm9, %v16534_v47 }
0x1aab   :  { %15050 = vmatmul.mubr.msk.f32.vlgmr.msra.gmra.mrb[154].mxu0 %vm11778_vm0, %v15037_v56 }
0x1aac   :  { %12958 = vmatprep.mubr.f32.mxu0 %v23882_v4 }
0x1aaf   :  { %15051 = vmatmul.mubr.msk.f32.gmra.mrb[168].mxu0 %vm11778_vm0, %v15038_v63 }
0x1ab0   :  { %12964 = vmatprep.mubr.f32.mxu0 %v23882_v4 }
0x1ab3   :  { %15052 = vmatmul.mubr.msk.f32.gmra.mrb[170].mxu0 %vm11778_vm0, %v15039_v19 }
0x1ab4   :  { %12970 = vmatprep.mubr.f32.mxu0 %v23882_v4 }
0x1ab7   :  { %15053 = vmatmul.mubr.msk.f32.gmra.mrb[172].mxu0 %vm11778_vm0, %v15040_v59 }
0x1ab8   :  { %12976 = vmatprep.mubr.f32.mxu0 %v23882_v4 }
0x1abb   :  { %15054 = vmatmul.mubr.msk.f32.gmra.mrb[174].mxu0 %vm11778_vm0, %v15041_v18 }
0x1abc   :  { %12982 = vmatprep.mubr.f32.mxu0 %v23882_v4 }
0x1abf   :  { %15055 = vmatmul.mubr.msk.f32.gmra.mrb[176].mxu0 %vm11778_vm0, %v15042_v40 }
0x1ac0   :  { %12988 = vmatprep.mubr.f32.mxu0 %v23882_v4 }
0x1ac3   :  { %15056 = vmatmul.mubr.msk.f32.gmra.mrb[178].mxu0 %vm11778_vm0, %v15043_v29 }
0x1ac4   :  { %12994 = vmatprep.mubr.f32.mxu0 %v23882_v4 }
0x1ac7   :  { %15057 = vmatmul.mubr.msk.f32.gmra.mrb[180].mxu0 %vm11778_vm0, %v15044_v0 }
0x1ac8   :  { %13000 = vmatprep.mubr.f32.mxu0 %v23882_v4 }
0x1acb   :  { %15058 = vmatmul.mubr.msk.f32.gmra.mrb[182].mxu0 %vm11778_vm0, %v15045_v24 }
0x1acc   :  { %13006 = vmatprep.mubr.f32.mxu0 %v23882_v4 }
0x1acf   :  { %15059 = vmatmul.mubr.msk.f32.gmra.mrb[184].mxu0 %vm11778_vm0, %v15046_v43 }
0x1ad0   :  { %13012 = vmatprep.mubr.f32.mxu0 %v23882_v4 }
0x1ad3   :  { %15060 = vmatmul.mubr.msk.f32.gmra.mrb[186].mxu0 %vm11778_vm0, %v15047_v51 }
0x1b7e   :  { %v12954_v39 = vpop.f32.mrb[154].mxu0 }
0x1b7f   :  { %v13053_v4 = vadd.f32 %v23671_v54, %v12954_v39  ;;  %v12956_v50 = vpop.f32.mrb[155].mxu0 }
0x1b80   :  { %v13054_v60 = vadd.f32 %v23673_v6, %v12956_v50 }
0x1b81   :  { %v13075_v42 = vsub.f32 0.0, %v13053_v4 }
0x1b82   :  { %v13076_v9 = vsub.f32 0.0, %v13054_v60  ;;  %v12960_v34 = vpop.f32.mrb[168].mxu0 }
0x1b83   :  { %v13097_v53 = vmul.f32 1.442695, %v13075_v42  ;;  %v13055_v17 = vadd.f32 %v23671_v54, %v12960_v34  ;;  %v12962_v38 = vpop.f32.mrb[169].mxu0 }
0x1b84   :  { %v13099_v45 = vmul.f32 1.442695, %v13076_v9  ;;  %v13056_v52 = vadd.f32 %v23673_v6, %v12962_v38 }
0x1b85   :  { %18191 = vpow2.f32 %v13097_v53  ;;  %v13077_v37 = vsub.f32 0.0, %v13055_v17 }
0x1b86   :  { %18193 = vpow2.f32 %v13099_v45  ;;  %v13078_v36 = vsub.f32 0.0, %v13056_v52  ;;  %v12966_v49 = vpop.f32.mrb[170].mxu0 }
0x1b87   :  { %v13101_v62 = vmul.f32 1.442695, %v13077_v37  ;;  %v13057_v10 = vadd.f32 %v23671_v54, %v12966_v49  ;;  %v12968_v32 = vpop.f32.mrb[171].mxu0 }
0x1b88   :  { %v13103_v25 = vmul.f32 1.442695, %v13078_v36  ;;  %v13058_v33 = vadd.f32 %v23673_v6, %v12968_v32 }
0x1b89   :  { %18195 = vpow2.f32 %v13101_v62  ;;  %v13079_v26 = vsub.f32 0.0, %v13057_v10 }
0x1b8a   :  { %18197 = vpow2.f32 %v13103_v25  ;;  %v13080_v15 = vsub.f32 0.0, %v13058_v33  ;;  %v12972_v35 = vpop.f32.mrb[172].mxu0 }
0x1b8b   :  { %v13105_v11 = vmul.f32 1.442695, %v13079_v26  ;;  %v13059_v13 = vadd.f32 %v23671_v54, %v12972_v35  ;;  %v12974_v58 = vpop.f32.mrb[173].mxu0 }
0x1b8c   :  { %v13107_v27 = vmul.f32 1.442695, %v13080_v15  ;;  %v13060_v1 = vadd.f32 %v23673_v6, %v12974_v58 }
0x1b8d   :  { %18199 = vpow2.f32 %v13105_v11  ;;  %v13081_v16 = vsub.f32 0.0, %v13059_v13 }
0x1b8e   :  { %18201 = vpow2.f32 %v13107_v27  ;;  %v13082_v23 = vsub.f32 0.0, %v13060_v1  ;;  %v12978_v46 = vpop.f32.mrb[174].mxu0 }
0x1b8f   :  { %v18192_v44 = vpop.eup %18191  ;;  %v13109_v2 = vmul.f32 1.442695, %v13081_v16  ;;  %v13061_v12 = vadd.f32 %v23671_v54, %v12978_v46  ;;  %v12980_v61 = vpop.f32.mrb[175].mxu0 }
0x1b90   :  { %v18194_v14 = vpop.eup %18193  ;;  %v13141_v30 = vadd.f32 1.0, %v18192_v44  ;;  %v13111_v3 = vmul.f32 1.442695, %v13082_v23  ;;  %v13062_v21 = vadd.f32 %v23673_v6, %v12980_v61 }
0x1b91   :  { %v13142_v57 = vadd.f32 1.0, %v18194_v14  ;;  %18203 = vpow2.f32 %v13109_v2  ;;  %v13083_v7 = vsub.f32 0.0, %v13061_v12 }
0x1b92   :  { %18205 = vrcp.f32 %v13141_v30  ;;  %v13084_v41 = vsub.f32 0.0, %v13062_v21  ;;  %v12984_v55 = vpop.f32.mrb[176].mxu0 }
0x1b93   :  { %v18196_v8 = vpop.eup %18195  ;;  %18207 = vrcp.f32 %v13142_v57  ;;  %v13113_v22 = vmul.f32 1.442695, %v13083_v7  ;;  %v13063_v20 = vadd.f32 %v23671_v54, %v12984_v55  ;;  %v12986_v47 = vpop.f32.mrb[177].mxu0 }
0x1b94   :  { %v18198_v31 = vpop.eup %18197  ;;  %v13143_v56 = vadd.f32 1.0, %v18196_v8  ;;  %18209 = vpow2.f32 %v13111_v3  ;;  %v13115_v63 = vmul.f32 1.442695, %v13084_v41  ;;  %v13064_v19 = vadd.f32 %v23673_v6, %v12986_v47 }
0x1b95   :  { %v13144_v59 = vadd.f32 1.0, %v18198_v31  ;;  %18211 = vpow2.f32 %v13113_v22  ;;  %v13085_v18 = vsub.f32 0.0, %v13063_v20 }
0x1b96   :  { %18213 = vrcp.f32 %v13143_v56  ;;  %v13086_v40 = vsub.f32 0.0, %v13064_v19  ;;  %v12990_v29 = vpop.f32.mrb[178].mxu0 }
0x1b97   :  { %v18200_v0 = vpop.eup %18199  ;;  %18215 = vrcp.f32 %v13144_v59  ;;  %v13117_v24 = vmul.f32 1.442695, %v13085_v18  ;;  %v13065_v43 = vadd.f32 %v23671_v54, %v12990_v29  ;;  %v12992_v51 = vpop.f32.mrb[179].mxu0 }
0x1b98   :  { %v18202_v28 = vpop.eup %18201  ;;  %v13145_v48 = vadd.f32 1.0, %v18200_v0  ;;  %18217 = vpow2.f32 %v13115_v63  ;;  %v13119_v5 = vmul.f32 1.442695, %v13086_v40  ;;  %v13066_v39 = vadd.f32 %v23673_v6, %v12992_v51 }
0x1b99   :  { %v13146_v4 = vadd.f32 1.0, %v18202_v28  ;;  %18219 = vpow2.f32 %v13117_v24  ;;  %v13087_v50 = vsub.f32 0.0, %v13065_v43 }
0x1b9a   :  { %18221 = vrcp.f32 %v13145_v48  ;;  %v13088_v60 = vsub.f32 0.0, %v13066_v39  ;;  %v12996_v42 = vpop.f32.mrb[180].mxu0 }
0x1b9b   :  { %v18204_v9 = vpop.eup %18203  ;;  %18223 = vrcp.f32 %v13146_v4  ;;  %v13121_v34 = vmul.f32 1.442695, %v13087_v50  ;;  %v13067_v53 = vadd.f32 %v23671_v54, %v12996_v42  ;;  %v12998_v17 = vpop.f32.mrb[181].mxu0 }
0x1b9c   :  { %v18206_v38 = vpop.eup %18205  ;;  %v13147_v45 = vadd.f32 1.0, %v18204_v9  ;;  %18225 = vpow2.f32 %v13119_v5  ;;  %v13123_v52 = vmul.f32 1.442695, %v13088_v60  ;;  %v13068_v37 = vadd.f32 %v23673_v6, %v12998_v17 }
0x1b9d   :  { %v18208_v36 = vpop.eup %18207  ;;  %13207 = vst [vmem:[%s23798_s24] sm:$0xff] %v18206_v38  ;;  %18227 = vpow2.f32 %v13121_v34  ;;  %v13089_v49 = vsub.f32 0.0, %v13067_v53 }
0x1b9e   :  { %v18210_v62 = vpop.eup %18209  ;;  %13209 = vst.msk [vmem:[%s23798_s24 + $0x8] sm:$0xff] %vm13208_vm1, %v18208_v36  ;;  %18229 = vrcp.f32 %v13147_v45  ;;  %v13090_v10 = vsub.f32 0.0, %v13068_v37  ;;  %v13002_v32 = vpop.f32.mrb[182].mxu0 }
0x1b9f   :  { %v18212_v25 = vpop.eup %18211  ;;  %v13148_v33 = vadd.f32 1.0, %v18210_v62  ;;  %18231 = vpow2.f32 %v13123_v52  ;;  %v13125_v26 = vmul.f32 1.442695, %v13089_v49  ;;  %v13069_v15 = vadd.f32 %v23671_v54, %v13002_v32  ;;  %v13004_v35 = vpop.f32.mrb[183].mxu0 }
0x1ba0   :  { %v18214_v11 = vpop.eup %18213  ;;  %v13149_v13 = vadd.f32 1.0, %v18212_v25  ;;  %v13127_v58 = vmul.f32 1.442695, %v13090_v10  ;;  %v13070_v27 = vadd.f32 %v23673_v6, %v13004_v35 }
0x1ba1   :  { %v18216_v1 = vpop.eup %18215  ;;  %13210 = vst [vmem:[%s23798_s24 + $0x10] sm:$0xff] %v18214_v11  ;;  %18233 = vrcp.f32 %v13148_v33  ;;  %v13091_v16 = vsub.f32 0.0, %v13069_v15 }
0x1ba2   :  { %v18218_v23 = vpop.eup %18217  ;;  %13211 = vst.msk [vmem:[%s23798_s24 + $0x18] sm:$0xff] %vm13208_vm1, %v18216_v1  ;;  %18235 = vrcp.f32 %v13149_v13  ;;  %v13092_v46 = vsub.f32 0.0, %v13070_v27  ;;  %v13008_v44 = vpop.f32.mrb[184].mxu0 }
0x1ba3   :  { %v18220_v2 = vpop.eup %18219  ;;  %v13150_v12 = vadd.f32 1.0, %v18218_v23  ;;  %18237 = vpow2.f32 %v13125_v26  ;;  %v13129_v61 = vmul.f32 1.442695, %v13091_v16  ;;  %v13071_v14 = vadd.f32 %v23671_v54, %v13008_v44  ;;  %v13010_v30 = vpop.f32.mrb[185].mxu0 }
0x1ba4   :  { %v18222_v3 = vpop.eup %18221  ;;  %v13151_v21 = vadd.f32 1.0, %v18220_v2  ;;  %18239 = vpow2.f32 %v13127_v58  ;;  %v13131_v57 = vmul.f32 1.442695, %v13092_v46  ;;  %v13072_v7 = vadd.f32 %v23673_v6, %v13010_v30 }
0x1ba5   :  { %v18224_v41 = vpop.eup %18223  ;;  %13212 = vst [vmem:[%s23798_s24 + $0x20] sm:$0xff] %v18222_v3  ;;  %18241 = vrcp.f32 %v13150_v12  ;;  %v13093_v55 = vsub.f32 0.0, %v13071_v14 }
0x1ba6   :  { %v18226_v8 = vpop.eup %18225  ;;  %13213 = vst.msk [vmem:[%s23798_s24 + $0x28] sm:$0xff] %vm13208_vm1, %v18224_v41  ;;  %18243 = vrcp.f32 %v13151_v21  ;;  %v13094_v22 = vsub.f32 0.0, %v13072_v7  ;;  %v13014_v20 = vpop.f32.mrb[186].mxu0 }
0x1ba7   :  { %v18228_v47 = vpop.eup %18227  ;;  %v13152_v31 = vadd.f32 1.0, %v18226_v8  ;;  %18245 = vpow2.f32 %v13129_v61  ;;  %v13133_v56 = vmul.f32 1.442695, %v13093_v55  ;;  %v13073_v63 = vadd.f32 %v23671_v54, %v13014_v20  ;;  %v13016_v19 = vpop.f32.mrb[187].mxu0 }
0x1ba8   :  { %v18230_v59 = vpop.eup %18229  ;;  %v13153_v18 = vadd.f32 1.0, %v18228_v47  ;;  %18247 = vpow2.f32 %v13131_v57  ;;  %v13074_v40 = vadd.f32 %v23673_v6, %v13016_v19  ;;  %v13135_v0 = vmul.f32 1.442695, %v13094_v22 }
0x1ba9   :  { %v18232_v29 = vpop.eup %18231  ;;  %13214 = vst [vmem:[%s23798_s24 + $0x30] sm:$0xff] %v18230_v59  ;;  %18249 = vrcp.f32 %v13152_v31  ;;  %v13095_v24 = vsub.f32 0.0, %v13073_v63 }
0x1baa   :  { %18251 = vrcp.f32 %v13153_v18  ;;  %v13154_v43 = vadd.f32 1.0, %v18232_v29  ;;  %v13096_v51 = vsub.f32 0.0, %v13074_v40 }
0x1bab   :  { %v18234_v28 = vpop.eup %18233  ;;  %18253 = vpow2.f32 %v13133_v56  ;;  %v13137_v54 = vmul.f32 1.442695, %v13095_v24 }
0x1bac   :  { %v18236_v48 = vpop.eup %18235  ;;  %13215 = vst.msk [vmem:[%s23798_s24 + $0x38] sm:$0xff] %vm13208_vm1, %v18234_v28  ;;  %18255 = vrcp.f32 %v13154_v43  ;;  %v13139_v6 = vmul.f32 1.442695, %v13096_v51 }
0x1bad   :  { %v18238_v5 = vpop.eup %18237  ;;  %13216 = vst [vmem:[%s23798_s24 + $0x40] sm:$0xff] %v18236_v48  ;;  %18257 = vpow2.f32 %v13135_v0 }
0x1bae   :  { %v18240_v39 = vpop.eup %18239  ;;  %v13155_v4 = vadd.f32 1.0, %v18238_v5  ;;  %18259 = vpow2.f32 %v13137_v54 }
0x1baf   :  { %v18242_v50 = vpop.eup %18241  ;;  %v13156_v60 = vadd.f32 1.0, %v18240_v39  ;;  %18261 = vpow2.f32 %v13139_v6 }
0x1bb0   :  { %v18244_v42 = vpop.eup %18243  ;;  %13217 = vst.msk [vmem:[%s23798_s24 + $0x48] sm:$0xff] %vm13208_vm1, %v18242_v50  ;;  %18263 = vrcp.f32 %v13155_v4 }
0x1bb1   :  { %v18246_v9 = vpop.eup %18245  ;;  %13218 = vst [vmem:[%s23798_s24 + $0x50] sm:$0xff] %v18244_v42  ;;  %18265 = vrcp.f32 %v13156_v60 }
0x1bb2   :  { %v18248_v34 = vpop.eup %18247  ;;  %v13157_v53 = vadd.f32 1.0, %v18246_v9 }
0x1bb3   :  { %v18250_v17 = vpop.eup %18249  ;;  %v13158_v38 = vadd.f32 1.0, %v18248_v34 }
0x1bb4   :  { %v18252_v45 = vpop.eup %18251  ;;  %13219 = vst.msk [vmem:[%s23798_s24 + $0x58] sm:$0xff] %vm13208_vm1, %v18250_v17  ;;  %18267 = vrcp.f32 %v13157_v53 }
0x1bb5   :  { %v18254_v52 = vpop.eup %18253  ;;  %13220 = vst [vmem:[%s23798_s24 + $0x60] sm:$0xff] %v18252_v45  ;;  %18269 = vrcp.f32 %v13158_v38 }
0x1bb6   :  { %v18256_v37 = vpop.eup %18255  ;;  %v13159_v36 = vadd.f32 1.0, %v18254_v52 }
0x1bb7   :  { %v18258_v49 = vpop.eup %18257  ;;  %13221 = vst.msk [vmem:[%s23798_s24 + $0x68] sm:$0xff] %vm13208_vm1, %v18256_v37 }
0x1bb8   :  { %v18260_v62 = vpop.eup %18259  ;;  %18271 = vrcp.f32 %v13159_v36  ;;  %v13160_v10 = vadd.f32 1.0, %v18258_v49 }
0x1bb9   :  { %v18262_v32 = vpop.eup %18261  ;;  %v13161_v25 = vadd.f32 1.0, %v18260_v62 }
0x1bba   :  { %v18264_v33 = vpop.eup %18263  ;;  %18273 = vrcp.f32 %v13160_v10  ;;  %v13162_v26 = vadd.f32 1.0, %v18262_v32 }
0x1bbb   :  { %v18266_v15 = vpop.eup %18265  ;;  %13222 = vst [vmem:[%s23798_s24 + $0x70] sm:$0xff] %v18264_v33  ;;  %18275 = vrcp.f32 %v13161_v25 }
0x1bbc   :  { %13223 = vst.msk [vmem:[%s23798_s24 + $0x78] sm:$0xff] %vm13208_vm1, %v18266_v15  ;;  %18277 = vrcp.f32 %v13162_v26 }
0x1bbe   :  { %v18268_v35 = vpop.eup %18267 }
0x1bbf   :  { %v18270_v11 = vpop.eup %18269  ;;  %13224 = vst [vmem:[%s23798_s24 + $0x80] sm:$0xff] %v18268_v35 }
0x1bc0   :  { %13225 = vst.msk [vmem:[%s23798_s24 + $0x88] sm:$0xff] %vm13208_vm1, %v18270_v11 }
0x1bc2   :  { %v18272_v13 = vpop.eup %18271 }
0x1bc3   :  { %13226 = vst [vmem:[%s23798_s24 + $0x90] sm:$0xff] %v18272_v13 }
0x1bc4   :  { %v18274_v58 = vpop.eup %18273 }
0x1bc5   :  { %v18276_v27 = vpop.eup %18275  ;;  %13227 = vst.msk [vmem:[%s23798_s24 + $0x98] sm:$0xff] %vm13208_vm1, %v18274_v58 }
0x1bc6   :  { %v18278_v1 = vpop.eup %18277  ;;  %13228 = vst [vmem:[%s23798_s24 + $0xa0] sm:$0xff] %v18276_v27 }
0x1bc7   :  { %13229 = vst.msk [vmem:[%s23798_s24 + $0xa8] sm:$0xff] %vm13208_vm1, %v18278_v1 }

</bundles_post_ra>
